<compile_context>
chip_gen: v5e
topology: v5e:2x2
jax: 0.10.0
libtpu: 0.0.40
codegen_flags: <defaults>
</compile_context>

<pallas_src>
import math

import jax
import jax.numpy as jnp
import numpy as np
from jax.experimental import pallas as pl
from jax.experimental.pallas import tpu as pltpu

BN_EPS = 1e-5

_COMPILER_PARAMS = pltpu.CompilerParams(
    dimension_semantics=("parallel",),
    vmem_limit_bytes=32 * 1024 * 1024,
)


# ----------------------------------------------------------------------------
# Host-side parameter folding: banded weights, tiled bias, selections, pooling
# ----------------------------------------------------------------------------
def _band_weights(w, bn_scale, wi, wo, stride, pad):
    """BN-scale-folded, W-banded weights.  w: [Co, Ci, K, K] (PyTorch layout).
    Returns numpy f32 [K, wi*Ci, wo*Co] with
      B[kh, wi*Ci+ci, wo*Co+co] = scale[co] * w[co, ci, kh, wi - wo*stride + pad]
    (zero where the kw tap falls outside the kernel -> W padding)."""
    w = np.asarray(w, np.float32) * np.asarray(bn_scale, np.float32)[:, None, None, None]
    co, ci, k, _ = w.shape
    w = np.transpose(w, (2, 3, 1, 0))                                   # [kh, kw, ci, co]
    kw = np.arange(wi)[:, None] - (np.arange(wo)[None, :] * stride - pad)   # [wi, wo]
    valid = (kw >= 0) & (kw < k)
    b = w[:, np.clip(kw, 0, k - 1)]                                     # [kh, wi, wo, ci, co]
    b = b * valid[None, :, :, None, None]
    b = np.transpose(b, (0, 1, 3, 2, 4)).reshape(k, wi * ci, wo * co)
    return b


def _fold_conv3(w, scale, wi, wo, stride):
    """3x3 conv -> single [3*wi*ci, wo*co] bf16 matrix (taps concatenated on K)."""
    b = _band_weights(w, scale, wi, wo, stride, 1)
    return jnp.asarray(b.reshape(-1, b.shape[2]), jnp.bfloat16)


def _fold_conv1(w, scale, wi, wo, stride):
    """1x1 conv -> [wi*ci, wo*co] bf16."""
    b = _band_weights(w, scale, wi, wo, stride, 0)[0]
    return jnp.asarray(b, jnp.bfloat16)


def _tile_bias(bn_bias, wo):
    return jnp.asarray(np.tile(np.asarray(bn_bias, np.float32), wo)[None, :], jnp.float32)


def _sel_s2_conv3(hi, ho):
    """Stride-2 3x3 conv H row selection on the H-padded activation:
    tap kh, output row o  <-  padded row 2*o + kh."""
    s = np.zeros((3, ho, hi + 2), np.float32)
    for kh in range(3):
        for o in range(ho):
            s[kh, o, 2 * o + kh] = 1.0
    return jnp.asarray(s, jnp.float32)


def _sel_s2_1x1(hi, ho):
    s = np.zeros((ho, hi + 2), np.float32)
    for o in range(ho):
        s[o, 2 * o + 1] = 1.0
    return jnp.asarray(s, jnp.float32)


def _pool_right(wf, co, k=4):
    """avg_pool2d(4) W-sum (with 1/16 folded); output padded to >=128 lanes."""
    wp = wf // k
    cols = max(wp * co, 128)
    r = np.zeros((wf * co, cols), np.float32)
    for w in range(wf):
        for c in range(co):
            r[w * co + c, (w // k) * co + c] = 1.0 / (k * k)
    return jnp.asarray(r, jnp.float32)


def prepare_block(p, hi, wi):
    s = p["stride"]
    co = p["conv1"].shape[0]
    ho, wo = (hi - 1) // s + 1, (wi - 1) // s + 1
    prep = {
        "stride": s, "has_shortcut": bool(p["has_shortcut"]),
        "hi": hi, "ho": ho, "wo": wo, "co": co,
        "B1": _fold_conv3(p["conv1"], p["bn1"][0], wi, wo, s),
        "b1": _tile_bias(p["bn1"][1], wo),
        "B2": _fold_conv3(p["conv2"], p["bn2"][0], wo, wo, 1),
        "b2": _tile_bias(p["bn2"][1], wo),
    }
    if s == 2:
        prep["S1"] = _sel_s2_conv3(hi, ho)
    if prep["has_shortcut"]:
        if s == 2:
            prep["Ssc"] = _sel_s2_1x1(hi, ho)
        prep["Wsc"] = _fold_conv1(p["sc_conv"], p["sc_bn"][0], wi, wo, s)
        prep["bsc"] = _tile_bias(p["sc_bn"][1], wo)
    return prep, ho, wo, co


def prepare_resnet(params, input_hw, global_pooling):
    h, w = input_hw
    nf = params["conv1"].shape[0]
    ci_pad = 4                                    # pad stem input channels 3 -> 4 (128 lanes)
    conv1 = np.zeros((nf, ci_pad, 3, 3), np.float32)
    conv1[:, :3] = np.asarray(params["conv1"], np.float32)
    prepared = {
        "stem": {
            "h": h,
            "B": jnp.asarray(
                _band_weights(conv1, params["bn1"][0], w, w, 1, 1).reshape(-1, w * nf),
                jnp.bfloat16),
            "b": _tile_bias(params["bn1"][1], w),
        },
        "stem_ci": ci_pad,
    }
    blocks = []
    c = nf
    stem_width = w * nf
    for layer in params["layers"]:
        for p in layer:
            bp, h, w, c = prepare_block(p, h, w)
            blocks.append(bp)
    act_w = max([stem_width] + [bp["wo"] * bp["co"] for bp in blocks])
    assert stem_width == act_w and all(bp["wo"] * bp["co"] == act_w for bp in blocks), \
        "fused kernel assumes a constant lane-dense activation width"
    prepared["blocks"] = blocks
    prepared["out_channels"] = c
    prepared["act_width"] = act_w
    prepared["pool"] = None
    prepared["pool_in_wrapper"] = False
    if global_pooling:
        if h == 4 and w % 4 == 0:
            prepared["pool"] = {"PR": _pool_right(w, c, 4)}
        else:
            # TODO(synk): PyTorch floor-mode avg_pool2d for spatial sizes not divisible by 4.
            assert h % 4 == 0 and w % 4 == 0, "avg_pool2d(4) fallback needs spatial % 4 == 0"
            prepared["pool_in_wrapper"] = True
    return prepared


# ----------------------------------------------------------------------------
# Fused Pallas kernel (stem + all blocks + folded pooling)
# ----------------------------------------------------------------------------
def _build_kernel(stem, block_cfgs, pool):
    H = stem["h"]
    n_blocks = len(block_cfgs)

    def kernel(*refs):
        it = iter(refs)
        x_ref = next(it)
        stem_B, stem_b = next(it), next(it)
        wrefs = []
        for cfg in block_cfgs:
            d = {"B1": next(it), "b1": next(it), "B2": next(it), "b2": next(it)}
            if cfg["stride"] == 2:
                d["S1"] = next(it)
            if cfg["has_shortcut"]:
                if cfg["stride"] == 2:
                    d["Ssc"] = next(it)
                d["Wsc"], d["bsc"] = next(it), next(it)
            wrefs.append(d)
        pr_ref = next(it) if pool else None
        o_ref = next(it)
        p_ref, q_ref = next(it), next(it)          # f32 VMEM scratch: block I/O, intra-block

        def dot32(a, b):
            return jnp.dot(a, b, preferred_element_type=jnp.float32)

        def conv_taps(read_rows, h, b_ref, bias_ref):
            # One MXU matmul per conv: taps concatenated along lanes, K = 3*wi*ci.
            rows = jnp.concatenate([read_rows(k, h) for k in range(3)], axis=-1)
            return dot32(rows.astype(jnp.bfloat16), b_ref[...]) + bias_ref[...]

        def store_padded(dst, y, h):
            zero = jnp.zeros((1, dst.shape[1]), dst.dtype)
            dst[0:1, :] = zero
            dst[h + 1:h + 2, :] = zero
            dst[1:h + 1, :] = y.astype(dst.dtype)

        # ---- stem: relu(bn1(conv1(x))); H + channel padding pre-done in HBM ----
        y = conv_taps(lambda k, h: x_ref[0, k:k + h, :], H, stem_B, stem_b)
        store_padded(p_ref, jnp.maximum(y, 0.0), H)

        # ---- BasicBlocks: conv1+bn1+relu, conv2+bn2, shortcut, add, relu ----
        for bi, (cfg, w) in enumerate(zip(block_cfgs, wrefs)):
            hi, ho, s = cfg["hi"], cfg["ho"], cfg["stride"]
            if s == 1:
                y1 = conv_taps(lambda k, h: p_ref[k:k + h, :], hi, w["B1"], w["b1"])
            else:
                xp = p_ref[0:hi + 2, :]
                rows = jnp.concatenate([dot32(w["S1"][k], xp) for k in range(3)], axis=-1)
                y1 = dot32(rows.astype(jnp.bfloat16), w["B1"][...]) + w["b1"][...]
            store_padded(q_ref, jnp.maximum(y1, 0.0), ho)

            y2 = conv_taps(lambda k, h: q_ref[k:k + h, :], ho, w["B2"], w["b2"])

            if cfg["has_shortcut"]:
                if s == 2:
                    sc_rows = dot32(w["Ssc"][...], p_ref[0:hi + 2, :])
                else:
                    sc_rows = p_ref[1:hi + 1, :]
                sc = dot32(sc_rows.astype(jnp.bfloat16), w["Wsc"][...]) + w["bsc"][...]
            else:
                sc = p_ref[1:hi + 1, :]
            y = jnp.maximum(y2 + sc, 0.0)

            if bi + 1 < n_blocks:
                store_padded(p_ref, y, ho)

        # ---- epilogue: folded avg_pool2d(4): VPU row-sum + lane-dense matmul ----
        if pool:
            rs = jnp.sum(y, axis=0, keepdims=True)        # sum over the 4 H rows
            o_ref[0] = dot32(rs, pr_ref[...])             # W-sum * 1/16, padded to 128 lanes
        else:
            o_ref[0] = y

    return kernel


def fused_resnet_call(prepared, x):
    n = x.shape[0]
    stem, blocks, pool = prepared["stem"], prepared["blocks"], prepared["pool"]

    weights = [stem["B"], stem["b"]]
    for bp in blocks:
        weights += [bp["B1"], bp["b1"], bp["B2"], bp["b2"]]
        if bp["stride"] == 2:
            weights.append(bp["S1"])
        if bp["has_shortcut"]:
            if bp["stride"] == 2:
                weights.append(bp["Ssc"])
            weights += [bp["Wsc"], bp["bsc"]]
    if pool:
        weights.append(pool["PR"])

    cmaps = {2: lambda i: (0, 0), 3: lambda i: (0, 0, 0)}
    in_specs = [pl.BlockSpec((1,) + x.shape[1:], lambda i: (i, 0, 0))]
    in_specs += [pl.BlockSpec(wt.shape, cmaps[wt.ndim]) for wt in weights]

    last = blocks[-1]
    out_tail = (1, pool["PR"].shape[1]) if pool else (last["ho"], last["wo"] * last["co"])
    scratch = (stem["h"] + 2, prepared["act_width"])

    return pl.pallas_call(
        _build_kernel(stem, blocks, pool),
        grid=(n,),
        out_shape=jax.ShapeDtypeStruct((n,) + out_tail, jnp.float32),
        in_specs=in_specs,
        out_specs=pl.BlockSpec((1,) + out_tail, lambda i: (i, 0, 0)),
        scratch_shapes=[pltpu.VMEM(scratch, jnp.float32),
                        pltpu.VMEM(scratch, jnp.float32)],
        compiler_params=_COMPILER_PARAMS,
    )(x, *weights)


# ----------------------------------------------------------------------------
# Forward pass wrapper
# ----------------------------------------------------------------------------
def resnet_forward(prepared, x_nchw):
    assert x_nchw.ndim == 4, "Assuming x.view(bsz, C, W, H)"
    n, c, h, w = x_nchw.shape
    ci = prepared["stem_ci"]
    # NCHW -> lane-dense [N, H+2, W*ci] with zero H padding rows and channels padded to 4.
    x = jnp.transpose(x_nchw, (0, 2, 3, 1))
    x = jnp.pad(x, ((0, 0), (1, 1), (0, 0), (0, ci - c)))
    x = x.reshape(n, h + 2, w * ci).astype(jnp.float32)

    out = fused_resnet_call(prepared, x)

    co = prepared["out_channels"]
    if prepared["pool"]:
        return out[:, 0, :co]                       # pooled 1x1 -> NCHW flatten == channels
    hf, wf = out.shape[1], out.shape[2] // co
    feat = out.reshape(n, hf, wf, co)
    if prepared["pool_in_wrapper"]:
        feat = feat.reshape(n, hf // 4, 4, wf // 4, 4, co).mean(axis=(2, 4))
    return jnp.transpose(feat, (0, 3, 1, 2)).reshape(n, -1)


# ----------------------------------------------------------------------------
# Synthetic parameters (deterministic)
# ----------------------------------------------------------------------------
def init_conv(key, cout, cin, k):
    std = math.sqrt(2.0 / (cin * k * k))
    return (std * jax.random.normal(key, (cout, cin, k, k))).astype(jnp.float32)


def init_bn(key, c):
    k1, k2, k3, k4 = jax.random.split(key, 4)
    gamma = 1.0 + 0.1 * jax.random.normal(k1, (c,))
    beta = 0.1 * jax.random.normal(k2, (c,))
    mean = 0.1 * jax.random.normal(k3, (c,))
    var = 0.5 + jax.random.uniform(k4, (c,))
    scale = gamma / jnp.sqrt(var + BN_EPS)
    bias = beta - mean * scale
    return scale.astype(jnp.float32), bias.astype(jnp.float32)


def make_basic_block_params(key, in_planes, planes, stride):
    ks = jax.random.split(key, 6)
    p = {
        "conv1": init_conv(ks[0], planes, in_planes, 3),
        "bn1": init_bn(ks[1], planes),
        "conv2": init_conv(ks[2], planes, planes, 3),
        "bn2": init_bn(ks[3], planes),
        "stride": stride,
        "has_shortcut": (stride != 1 or in_planes != planes),
    }
    if p["has_shortcut"]:
        p["sc_conv"] = init_conv(ks[4], planes, in_planes, 1)
        p["sc_bn"] = init_bn(ks[5], planes)
    return p


def make_resnet_params(key, num_blocks, nf):
    keys = jax.random.split(key, 2 + sum(num_blocks))
    params = {"conv1": init_conv(keys[0], nf, 3, 3), "bn1": init_bn(keys[1], nf)}
    layers = []
    in_planes = nf
    ki = 2
    for nb, mult, stride0 in zip(num_blocks, (1, 2, 4, 8), (1, 2, 2, 2)):
        planes = nf * mult
        strides = [stride0] + [1] * (nb - 1)
        layer = []
        for s in strides:
            layer.append(make_basic_block_params(keys[ki], in_planes, planes, s))
            in_planes = planes
            ki += 1
        layers.append(layer)
    params["layers"] = layers
    return params


# ----------------------------------------------------------------------------
# Pure-JAX f32 reference (XLA convs) for correctness check
# ----------------------------------------------------------------------------
def _ref_conv(x, w, stride, padding):
    w_hwio = jnp.transpose(w, (2, 3, 1, 0))
    return jax.lax.conv_general_dilated(
        x, w_hwio, window_strides=(stride, stride), padding=padding,
        dimension_numbers=("NHWC", "HWIO", "NHWC"))


def _ref_block(p, x):
    s, b = p["bn1"]
    out = jnp.maximum(_ref_conv(x, p["conv1"], p["stride"], [(1, 1), (1, 1)]) * s + b, 0.0)
    s, b = p["bn2"]
    out = _ref_conv(out, p["conv2"], 1, [(1, 1), (1, 1)]) * s + b
    if p["has_shortcut"]:
        s2, b2 = p["sc_bn"]
        sc = _ref_conv(x, p["sc_conv"], p["stride"], [(0, 0), (0, 0)]) * s2 + b2
    else:
        sc = x
    return jnp.maximum(out + sc, 0.0)


def reference_forward(params, x_nchw, global_pooling):
    x = jnp.transpose(x_nchw, (0, 2, 3, 1))
    s, b = params["bn1"]
    out = jnp.maximum(_ref_conv(x, params["conv1"], 1, [(1, 1), (1, 1)]) * s + b, 0.0)
    for layer in params["layers"]:
        for blk in layer:
            out = _ref_block(blk, out)
    if global_pooling:
        n, ho, wo, co = out.shape
        out = out.reshape(n, ho // 4, 4, wo // 4, 4, co).mean(axis=(2, 4))
    return jnp.transpose(out, (0, 3, 1, 2)).reshape(out.shape[0], -1)


# ----------------------------------------------------------------------------
if __name__ == "__main__":
    key = jax.random.PRNGKey(0)
    kp, kx = jax.random.split(key)

    nf = 8
    num_blocks = [1, 1, 1, 1]
    global_pooling = True
    N, C, H, W = 2, 3, 32, 32            # 32x32 input -> layer4 output 4x4 -> pool -> 1x1

    params = make_resnet_params(kp, num_blocks, nf)
    prepared = prepare_resnet(params, (H, W), global_pooling)
    x = jax.random.normal(kx, (N, C, H, W), dtype=jnp.float32)

    fwd = jax.jit(lambda inp: resnet_forward(prepared, inp))
    out = jax.block_until_ready(fwd(x))

    assert out.shape == (N, nf * 8), out.shape
    ref = jax.block_until_ready(reference_forward(params, x, global_pooling))
    # bf16 MXU weights/activations (f32 accumulation) vs f32 XLA reference.
    np.testing.assert_allclose(np.asarray(out), np.asarray(ref), rtol=5e-2, atol=5e-2)

    print("KERNEL_OK")
</pallas_src>

<mosaic_0001>
module attributes {stable_mosaic.version = 11 : i64} {
  func.func @kernel(%arg0: i32, %arg1: memref<1x34x128xf32, #tpu.memory_space<vmem>>, %arg2: memref<384x256xbf16, #tpu.memory_space<vmem>>, %arg3: memref<1x256xf32, #tpu.memory_space<vmem>>, %arg4: memref<768x256xbf16, #tpu.memory_space<vmem>>, %arg5: memref<1x256xf32, #tpu.memory_space<vmem>>, %arg6: memref<768x256xbf16, #tpu.memory_space<vmem>>, %arg7: memref<1x256xf32, #tpu.memory_space<vmem>>, %arg8: memref<768x256xbf16, #tpu.memory_space<vmem>>, %arg9: memref<1x256xf32, #tpu.memory_space<vmem>>, %arg10: memref<768x256xbf16, #tpu.memory_space<vmem>>, %arg11: memref<1x256xf32, #tpu.memory_space<vmem>>, %arg12: memref<3x16x34xf32, #tpu.memory_space<vmem>>, %arg13: memref<16x34xf32, #tpu.memory_space<vmem>>, %arg14: memref<256x256xbf16, #tpu.memory_space<vmem>>, %arg15: memref<1x256xf32, #tpu.memory_space<vmem>>, %arg16: memref<768x256xbf16, #tpu.memory_space<vmem>>, %arg17: memref<1x256xf32, #tpu.memory_space<vmem>>, %arg18: memref<768x256xbf16, #tpu.memory_space<vmem>>, %arg19: memref<1x256xf32, #tpu.memory_space<vmem>>, %arg20: memref<3x8x18xf32, #tpu.memory_space<vmem>>, %arg21: memref<8x18xf32, #tpu.memory_space<vmem>>, %arg22: memref<256x256xbf16, #tpu.memory_space<vmem>>, %arg23: memref<1x256xf32, #tpu.memory_space<vmem>>, %arg24: memref<768x256xbf16, #tpu.memory_space<vmem>>, %arg25: memref<1x256xf32, #tpu.memory_space<vmem>>, %arg26: memref<768x256xbf16, #tpu.memory_space<vmem>>, %arg27: memref<1x256xf32, #tpu.memory_space<vmem>>, %arg28: memref<3x4x10xf32, #tpu.memory_space<vmem>>, %arg29: memref<4x10xf32, #tpu.memory_space<vmem>>, %arg30: memref<256x256xbf16, #tpu.memory_space<vmem>>, %arg31: memref<1x256xf32, #tpu.memory_space<vmem>>, %arg32: memref<256x128xf32, #tpu.memory_space<vmem>>, %arg33: memref<1x1x128xf32, #tpu.memory_space<vmem>>, %arg34: memref<34x256xf32, #tpu.memory_space<vmem>>, %arg35: memref<34x256xf32, #tpu.memory_space<vmem>>) attributes {dimension_semantics = [#tpu.dimension_semantics<parallel>], iteration_bounds = array<i64: 2>, scalar_prefetch = 0 : i64, scratch_operands = 2 : i64, tpu.core_type = #tpu.core_type<tc>, window_params = [{transform_indices = @transform_0, window_bounds = array<i64: 1, 34, 128>}, {pipeline_mode = #tpu.pipeline_mode<synchronous>, transform_indices = @transform_1, window_bounds = array<i64: 384, 256>}, {pipeline_mode = #tpu.pipeline_mode<synchronous>, transform_indices = @transform_2, window_bounds = array<i64: 1, 256>}, {pipeline_mode = #tpu.pipeline_mode<synchronous>, transform_indices = @transform_3, window_bounds = array<i64: 768, 256>}, {pipeline_mode = #tpu.pipeline_mode<synchronous>, transform_indices = @transform_4, window_bounds = array<i64: 1, 256>}, {pipeline_mode = #tpu.pipeline_mode<synchronous>, transform_indices = @transform_5, window_bounds = array<i64: 768, 256>}, {pipeline_mode = #tpu.pipeline_mode<synchronous>, transform_indices = @transform_6, window_bounds = array<i64: 1, 256>}, {pipeline_mode = #tpu.pipeline_mode<synchronous>, transform_indices = @transform_7, window_bounds = array<i64: 768, 256>}, {pipeline_mode = #tpu.pipeline_mode<synchronous>, transform_indices = @transform_8, window_bounds = array<i64: 1, 256>}, {pipeline_mode = #tpu.pipeline_mode<synchronous>, transform_indices = @transform_9, window_bounds = array<i64: 768, 256>}, {pipeline_mode = #tpu.pipeline_mode<synchronous>, transform_indices = @transform_10, window_bounds = array<i64: 1, 256>}, {pipeline_mode = #tpu.pipeline_mode<synchronous>, transform_indices = @transform_11, window_bounds = array<i64: 3, 16, 34>}, {pipeline_mode = #tpu.pipeline_mode<synchronous>, transform_indices = @transform_12, window_bounds = array<i64: 16, 34>}, {pipeline_mode = #tpu.pipeline_mode<synchronous>, transform_indices = @transform_13, window_bounds = array<i64: 256, 256>}, {pipeline_mode = #tpu.pipeline_mode<synchronous>, transform_indices = @transform_14, window_bounds = array<i64: 1, 256>}, {pipeline_mode = #tpu.pipeline_mode<synchronous>, transform_indices = @transform_15, window_bounds = array<i64: 768, 256>}, {pipeline_mode = #tpu.pipeline_mode<synchronous>, transform_indices = @transform_16, window_bounds = array<i64: 1, 256>}, {pipeline_mode = #tpu.pipeline_mode<synchronous>, transform_indices = @transform_17, window_bounds = array<i64: 768, 256>}, {pipeline_mode = #tpu.pipeline_mode<synchronous>, transform_indices = @transform_18, window_bounds = array<i64: 1, 256>}, {pipeline_mode = #tpu.pipeline_mode<synchronous>, transform_indices = @transform_19, window_bounds = array<i64: 3, 8, 18>}, {pipeline_mode = #tpu.pipeline_mode<synchronous>, transform_indices = @transform_20, window_bounds = array<i64: 8, 18>}, {pipeline_mode = #tpu.pipeline_mode<synchronous>, transform_indices = @transform_21, window_bounds = array<i64: 256, 256>}, {pipeline_mode = #tpu.pipeline_mode<synchronous>, transform_indices = @transform_22, window_bounds = array<i64: 1, 256>}, {pipeline_mode = #tpu.pipeline_mode<synchronous>, transform_indices = @transform_23, window_bounds = array<i64: 768, 256>}, {pipeline_mode = #tpu.pipeline_mode<synchronous>, transform_indices = @transform_24, window_bounds = array<i64: 1, 256>}, {pipeline_mode = #tpu.pipeline_mode<synchronous>, transform_indices = @transform_25, window_bounds = array<i64: 768, 256>}, {pipeline_mode = #tpu.pipeline_mode<synchronous>, transform_indices = @transform_26, window_bounds = array<i64: 1, 256>}, {pipeline_mode = #tpu.pipeline_mode<synchronous>, transform_indices = @transform_27, window_bounds = array<i64: 3, 4, 10>}, {pipeline_mode = #tpu.pipeline_mode<synchronous>, transform_indices = @transform_28, window_bounds = array<i64: 4, 10>}, {pipeline_mode = #tpu.pipeline_mode<synchronous>, transform_indices = @transform_29, window_bounds = array<i64: 256, 256>}, {pipeline_mode = #tpu.pipeline_mode<synchronous>, transform_indices = @transform_30, window_bounds = array<i64: 1, 256>}, {pipeline_mode = #tpu.pipeline_mode<synchronous>, transform_indices = @transform_31, window_bounds = array<i64: 256, 128>}, {transform_indices = @transform_32, window_bounds = array<i64: 1, 1, 128>}]} {
    %c0 = arith.constant 0 : index
    %c0_0 = arith.constant 0 : index
    %c0_1 = arith.constant 0 : index
    %0 = vector.load %arg1[%c0, %c0_0, %c0_1] : memref<1x34x128xf32, #tpu.memory_space<vmem>>, vector<1x32x128xf32>
    %1 = vector.shape_cast %0 : vector<1x32x128xf32> to vector<32x128xf32>
    %c0_2 = arith.constant 0 : index
    %c1 = arith.constant 1 : index
    %c0_3 = arith.constant 0 : index
    %2 = vector.load %arg1[%c0_2, %c1, %c0_3] : memref<1x34x128xf32, #tpu.memory_space<vmem>>, vector<1x32x128xf32>
    %3 = vector.shape_cast %2 : vector<1x32x128xf32> to vector<32x128xf32>
    %c0_4 = arith.constant 0 : index
    %c2 = arith.constant 2 : index
    %c0_5 = arith.constant 0 : index
    %4 = vector.load %arg1[%c0_4, %c2, %c0_5] : memref<1x34x128xf32, #tpu.memory_space<vmem>>, vector<1x32x128xf32>
    %5 = vector.shape_cast %4 : vector<1x32x128xf32> to vector<32x128xf32>
    %6 = tpu.concatenate %1, %3, %5 in 1 : vector<32x128xf32>, vector<32x128xf32>, vector<32x128xf32> -> vector<32x384xf32>
    %7 = arith.truncf %6 : vector<32x384xf32> to vector<32x384xbf16>
    %c0_6 = arith.constant 0 : index
    %c0_7 = arith.constant 0 : index
    %8 = vector.load %arg2[%c0_6, %c0_7] : memref<384x256xbf16, #tpu.memory_space<vmem>>, vector<384x256xbf16>
    %cst = arith.constant dense<0.000000e+00> : vector<32x256xf32>
    %9 = tpu.matmul %7, %8, %cst {dimension_numbers = #tpu.dot_dimension_numbers<[1], [0], [0], [1], [0, 0, 1, 1], [], []>} : vector<32x384xbf16>, vector<384x256xbf16>, vector<32x256xf32> -> vector<32x256xf32>
    %c0_8 = arith.constant 0 : index
    %c0_9 = arith.constant 0 : index
    %10 = vector.load %arg3[%c0_8, %c0_9] : memref<1x256xf32, #tpu.memory_space<vmem>>, vector<1x256xf32>
    %11 = vector.broadcast %10 : vector<1x256xf32> to vector<32x256xf32>
    %12 = arith.addf %9, %11 : vector<32x256xf32>
    %cst_10 = arith.constant 0.000000e+00 : f32
    %13 = vector.broadcast %cst_10 : f32 to vector<32x256xf32>
    %14 = arith.maximumf %12, %13 : vector<32x256xf32>
    %cst_11 = arith.constant 0.000000e+00 : f32
    %15 = vector.broadcast %cst_11 : f32 to vector<1x256xf32>
    %c0_12 = arith.constant 0 : index
    %c0_13 = arith.constant 0 : index
    %16 = vector.load %arg34[%c0_12, %c0_13] : memref<34x256xf32, #tpu.memory_space<vmem>>, vector<1x256xf32>
    tpu.vector_store %arg34[%c0_12, %c0_13], %15 {strides = array<i32>} : memref<34x256xf32, #tpu.memory_space<vmem>>, vector<1x256xf32>,
    %c33 = arith.constant 33 : index
    %c0_14 = arith.constant 0 : index
    %17 = vector.load %arg34[%c33, %c0_14] : memref<34x256xf32, #tpu.memory_space<vmem>>, vector<1x256xf32>
    tpu.vector_store %arg34[%c33, %c0_14], %15 {strides = array<i32>} : memref<34x256xf32, #tpu.memory_space<vmem>>, vector<1x256xf32>,
    %c1_15 = arith.constant 1 : index
    %c0_16 = arith.constant 0 : index
    %18 = vector.load %arg34[%c1_15, %c0_16] : memref<34x256xf32, #tpu.memory_space<vmem>>, vector<32x256xf32>
    tpu.vector_store %arg34[%c1_15, %c0_16], %14 {strides = array<i32>} : memref<34x256xf32, #tpu.memory_space<vmem>>, vector<32x256xf32>,
    %c0_17 = arith.constant 0 : index
    %c0_18 = arith.constant 0 : index
    %19 = vector.load %arg34[%c0_17, %c0_18] : memref<34x256xf32, #tpu.memory_space<vmem>>, vector<32x256xf32>
    %c1_19 = arith.constant 1 : index
    %c0_20 = arith.constant 0 : index
    %20 = vector.load %arg34[%c1_19, %c0_20] : memref<34x256xf32, #tpu.memory_space<vmem>>, vector<32x256xf32>
    %c2_21 = arith.constant 2 : index
    %c0_22 = arith.constant 0 : index
    %21 = vector.load %arg34[%c2_21, %c0_22] : memref<34x256xf32, #tpu.memory_space<vmem>>, vector<32x256xf32>
    %22 = tpu.concatenate %19, %20, %21 in 1 : vector<32x256xf32>, vector<32x256xf32>, vector<32x256xf32> -> vector<32x768xf32>
    %23 = arith.truncf %22 : vector<32x768xf32> to vector<32x768xbf16>
    %c0_23 = arith.constant 0 : index
    %c0_24 = arith.constant 0 : index
    %24 = vector.load %arg4[%c0_23, %c0_24] : memref<768x256xbf16, #tpu.memory_space<vmem>>, vector<768x256xbf16>
    %cst_25 = arith.constant dense<0.000000e+00> : vector<32x256xf32>
    %25 = tpu.matmul %23, %24, %cst_25 {dimension_numbers = #tpu.dot_dimension_numbers<[1], [0], [0], [1], [0, 0, 1, 1], [], []>} : vector<32x768xbf16>, vector<768x256xbf16>, vector<32x256xf32> -> vector<32x256xf32>
    %c0_26 = arith.constant 0 : index
    %c0_27 = arith.constant 0 : index
    %26 = vector.load %arg5[%c0_26, %c0_27] : memref<1x256xf32, #tpu.memory_space<vmem>>, vector<1x256xf32>
    %27 = vector.broadcast %26 : vector<1x256xf32> to vector<32x256xf32>
    %28 = arith.addf %25, %27 : vector<32x256xf32>
    %cst_28 = arith.constant 0.000000e+00 : f32
    %29 = vector.broadcast %cst_28 : f32 to vector<32x256xf32>
    %30 = arith.maximumf %28, %29 : vector<32x256xf32>
    %cst_29 = arith.constant 0.000000e+00 : f32
    %31 = vector.broadcast %cst_29 : f32 to vector<1x256xf32>
    %c0_30 = arith.constant 0 : index
    %c0_31 = arith.constant 0 : index
    %32 = vector.load %arg35[%c0_30, %c0_31] : memref<34x256xf32, #tpu.memory_space<vmem>>, vector<1x256xf32>
    tpu.vector_store %arg35[%c0_30, %c0_31], %31 {strides = array<i32>} : memref<34x256xf32, #tpu.memory_space<vmem>>, vector<1x256xf32>,
    %c33_32 = arith.constant 33 : index
    %c0_33 = arith.constant 0 : index
    %33 = vector.load %arg35[%c33_32, %c0_33] : memref<34x256xf32, #tpu.memory_space<vmem>>, vector<1x256xf32>
    tpu.vector_store %arg35[%c33_32, %c0_33], %31 {strides = array<i32>} : memref<34x256xf32, #tpu.memory_space<vmem>>, vector<1x256xf32>,
    %c1_34 = arith.constant 1 : index
    %c0_35 = arith.constant 0 : index
    %34 = vector.load %arg35[%c1_34, %c0_35] : memref<34x256xf32, #tpu.memory_space<vmem>>, vector<32x256xf32>
    tpu.vector_store %arg35[%c1_34, %c0_35], %30 {strides = array<i32>} : memref<34x256xf32, #tpu.memory_space<vmem>>, vector<32x256xf32>,
    %c0_36 = arith.constant 0 : index
    %c0_37 = arith.constant 0 : index
    %35 = vector.load %arg35[%c0_36, %c0_37] : memref<34x256xf32, #tpu.memory_space<vmem>>, vector<32x256xf32>
    %c1_38 = arith.constant 1 : index
    %c0_39 = arith.constant 0 : index
    %36 = vector.load %arg35[%c1_38, %c0_39] : memref<34x256xf32, #tpu.memory_space<vmem>>, vector<32x256xf32>
    %c2_40 = arith.constant 2 : index
    %c0_41 = arith.constant 0 : index
    %37 = vector.load %arg35[%c2_40, %c0_41] : memref<34x256xf32, #tpu.memory_space<vmem>>, vector<32x256xf32>
    %38 = tpu.concatenate %35, %36, %37 in 1 : vector<32x256xf32>, vector<32x256xf32>, vector<32x256xf32> -> vector<32x768xf32>
    %39 = arith.truncf %38 : vector<32x768xf32> to vector<32x768xbf16>
    %c0_42 = arith.constant 0 : index
    %c0_43 = arith.constant 0 : index
    %40 = vector.load %arg6[%c0_42, %c0_43] : memref<768x256xbf16, #tpu.memory_space<vmem>>, vector<768x256xbf16>
    %cst_44 = arith.constant dense<0.000000e+00> : vector<32x256xf32>
    %41 = tpu.matmul %39, %40, %cst_44 {dimension_numbers = #tpu.dot_dimension_numbers<[1], [0], [0], [1], [0, 0, 1, 1], [], []>} : vector<32x768xbf16>, vector<768x256xbf16>, vector<32x256xf32> -> vector<32x256xf32>
    %c0_45 = arith.constant 0 : index
    %c0_46 = arith.constant 0 : index
    %42 = vector.load %arg7[%c0_45, %c0_46] : memref<1x256xf32, #tpu.memory_space<vmem>>, vector<1x256xf32>
    %43 = vector.broadcast %42 : vector<1x256xf32> to vector<32x256xf32>
    %44 = arith.addf %41, %43 : vector<32x256xf32>
    %c1_47 = arith.constant 1 : index
    %c0_48 = arith.constant 0 : index
    %45 = vector.load %arg34[%c1_47, %c0_48] : memref<34x256xf32, #tpu.memory_space<vmem>>, vector<32x256xf32>
    %46 = arith.addf %44, %45 : vector<32x256xf32>
    %cst_49 = arith.constant 0.000000e+00 : f32
    %47 = vector.broadcast %cst_49 : f32 to vector<32x256xf32>
    %48 = arith.maximumf %46, %47 : vector<32x256xf32>
    %cst_50 = arith.constant 0.000000e+00 : f32
    %49 = vector.broadcast %cst_50 : f32 to vector<1x256xf32>
    %c0_51 = arith.constant 0 : index
    %c0_52 = arith.constant 0 : index
    %50 = vector.load %arg34[%c0_51, %c0_52] : memref<34x256xf32, #tpu.memory_space<vmem>>, vector<1x256xf32>
    tpu.vector_store %arg34[%c0_51, %c0_52], %49 {strides = array<i32>} : memref<34x256xf32, #tpu.memory_space<vmem>>, vector<1x256xf32>,
    %c33_53 = arith.constant 33 : index
    %c0_54 = arith.constant 0 : index
    %51 = vector.load %arg34[%c33_53, %c0_54] : memref<34x256xf32, #tpu.memory_space<vmem>>, vector<1x256xf32>
    tpu.vector_store %arg34[%c33_53, %c0_54], %49 {strides = array<i32>} : memref<34x256xf32, #tpu.memory_space<vmem>>, vector<1x256xf32>,
    %c1_55 = arith.constant 1 : index
    %c0_56 = arith.constant 0 : index
    %52 = vector.load %arg34[%c1_55, %c0_56] : memref<34x256xf32, #tpu.memory_space<vmem>>, vector<32x256xf32>
    tpu.vector_store %arg34[%c1_55, %c0_56], %48 {strides = array<i32>} : memref<34x256xf32, #tpu.memory_space<vmem>>, vector<32x256xf32>,
    %c0_57 = arith.constant 0 : index
    %c0_58 = arith.constant 0 : index
    %53 = vector.load %arg34[%c0_57, %c0_58] : memref<34x256xf32, #tpu.memory_space<vmem>>, vector<34x256xf32>
    %c0_59 = arith.constant 0 : index
    %c0_60 = arith.constant 0 : index
    %c0_61 = arith.constant 0 : index
    %54 = vector.load %arg12[%c0_59, %c0_60, %c0_61] : memref<3x16x34xf32, #tpu.memory_space<vmem>>, vector<1x16x34xf32>
    %55 = vector.shape_cast %54 : vector<1x16x34xf32> to vector<16x34xf32>
    %cst_62 = arith.constant dense<0.000000e+00> : vector<16x256xf32>
    %56 = tpu.matmul %55, %53, %cst_62 {dimension_numbers = #tpu.dot_dimension_numbers<[1], [0], [0], [1], [0, 0, 1, 1], [], []>} : vector<16x34xf32>, vector<34x256xf32>, vector<16x256xf32> -> vector<16x256xf32>
    %c1_63 = arith.constant 1 : index
    %c0_64 = arith.constant 0 : index
    %c0_65 = arith.constant 0 : index
    %57 = vector.load %arg12[%c1_63, %c0_64, %c0_65] : memref<3x16x34xf32, #tpu.memory_space<vmem>>, vector<1x16x34xf32>
    %58 = vector.shape_cast %57 : vector<1x16x34xf32> to vector<16x34xf32>
    %cst_66 = arith.constant dense<0.000000e+00> : vector<16x256xf32>
    %59 = tpu.matmul %58, %53, %cst_66 {dimension_numbers = #tpu.dot_dimension_numbers<[1], [0], [0], [1], [0, 0, 1, 1], [], []>} : vector<16x34xf32>, vector<34x256xf32>, vector<16x256xf32> -> vector<16x256xf32>
    %c2_67 = arith.constant 2 : index
    %c0_68 = arith.constant 0 : index
    %c0_69 = arith.constant 0 : index
    %60 = vector.load %arg12[%c2_67, %c0_68, %c0_69] : memref<3x16x34xf32, #tpu.memory_space<vmem>>, vector<1x16x34xf32>
    %61 = vector.shape_cast %60 : vector<1x16x34xf32> to vector<16x34xf32>
    %cst_70 = arith.constant dense<0.000000e+00> : vector<16x256xf32>
    %62 = tpu.matmul %61, %53, %cst_70 {dimension_numbers = #tpu.dot_dimension_numbers<[1], [0], [0], [1], [0, 0, 1, 1], [], []>} : vector<16x34xf32>, vector<34x256xf32>, vector<16x256xf32> -> vector<16x256xf32>
    %63 = tpu.concatenate %56, %59, %62 in 1 : vector<16x256xf32>, vector<16x256xf32>, vector<16x256xf32> -> vector<16x768xf32>
    %64 = arith.truncf %63 : vector<16x768xf32> to vector<16x768xbf16>
    %c0_71 = arith.constant 0 : index
    %c0_72 = arith.constant 0 : index
    %65 = vector.load %arg8[%c0_71, %c0_72] : memref<768x256xbf16, #tpu.memory_space<vmem>>, vector<768x256xbf16>
    %cst_73 = arith.constant dense<0.000000e+00> : vector<16x256xf32>
    %66 = tpu.matmul %64, %65, %cst_73 {dimension_numbers = #tpu.dot_dimension_numbers<[1], [0], [0], [1], [0, 0, 1, 1], [], []>} : vector<16x768xbf16>, vector<768x256xbf16>, vector<16x256xf32> -> vector<16x256xf32>
    %c0_74 = arith.constant 0 : index
    %c0_75 = arith.constant 0 : index
    %67 = vector.load %arg9[%c0_74, %c0_75] : memref<1x256xf32, #tpu.memory_space<vmem>>, vector<1x256xf32>
    %68 = vector.broadcast %67 : vector<1x256xf32> to vector<16x256xf32>
    %69 = arith.addf %66, %68 : vector<16x256xf32>
    %cst_76 = arith.constant 0.000000e+00 : f32
    %70 = vector.broadcast %cst_76 : f32 to vector<16x256xf32>
    %71 = arith.maximumf %69, %70 : vector<16x256xf32>
    %cst_77 = arith.constant 0.000000e+00 : f32
    %72 = vector.broadcast %cst_77 : f32 to vector<1x256xf32>
    %c0_78 = arith.constant 0 : index
    %c0_79 = arith.constant 0 : index
    %73 = vector.load %arg35[%c0_78, %c0_79] : memref<34x256xf32, #tpu.memory_space<vmem>>, vector<1x256xf32>
    tpu.vector_store %arg35[%c0_78, %c0_79], %72 {strides = array<i32>} : memref<34x256xf32, #tpu.memory_space<vmem>>, vector<1x256xf32>,
    %c17 = arith.constant 17 : index
    %c0_80 = arith.constant 0 : index
    %74 = vector.load %arg35[%c17, %c0_80] : memref<34x256xf32, #tpu.memory_space<vmem>>, vector<1x256xf32>
    tpu.vector_store %arg35[%c17, %c0_80], %72 {strides = array<i32>} : memref<34x256xf32, #tpu.memory_space<vmem>>, vector<1x256xf32>,
    %c1_81 = arith.constant 1 : index
    %c0_82 = arith.constant 0 : index
    %75 = vector.load %arg35[%c1_81, %c0_82] : memref<34x256xf32, #tpu.memory_space<vmem>>, vector<16x256xf32>
    tpu.vector_store %arg35[%c1_81, %c0_82], %71 {strides = array<i32>} : memref<34x256xf32, #tpu.memory_space<vmem>>, vector<16x256xf32>,
    %c0_83 = arith.constant 0 : index
    %c0_84 = arith.constant 0 : index
    %76 = vector.load %arg35[%c0_83, %c0_84] : memref<34x256xf32, #tpu.memory_space<vmem>>, vector<16x256xf32>
    %c1_85 = arith.constant 1 : index
    %c0_86 = arith.constant 0 : index
    %77 = vector.load %arg35[%c1_85, %c0_86] : memref<34x256xf32, #tpu.memory_space<vmem>>, vector<16x256xf32>
    %c2_87 = arith.constant 2 : index
    %c0_88 = arith.constant 0 : index
    %78 = vector.load %arg35[%c2_87, %c0_88] : memref<34x256xf32, #tpu.memory_space<vmem>>, vector<16x256xf32>
    %79 = tpu.concatenate %76, %77, %78 in 1 : vector<16x256xf32>, vector<16x256xf32>, vector<16x256xf32> -> vector<16x768xf32>
    %80 = arith.truncf %79 : vector<16x768xf32> to vector<16x768xbf16>
    %c0_89 = arith.constant 0 : index
    %c0_90 = arith.constant 0 : index
    %81 = vector.load %arg10[%c0_89, %c0_90] : memref<768x256xbf16, #tpu.memory_space<vmem>>, vector<768x256xbf16>
    %cst_91 = arith.constant dense<0.000000e+00> : vector<16x256xf32>
    %82 = tpu.matmul %80, %81, %cst_91 {dimension_numbers = #tpu.dot_dimension_numbers<[1], [0], [0], [1], [0, 0, 1, 1], [], []>} : vector<16x768xbf16>, vector<768x256xbf16>, vector<16x256xf32> -> vector<16x256xf32>
    %c0_92 = arith.constant 0 : index
    %c0_93 = arith.constant 0 : index
    %83 = vector.load %arg11[%c0_92, %c0_93] : memref<1x256xf32, #tpu.memory_space<vmem>>, vector<1x256xf32>
    %84 = vector.broadcast %83 : vector<1x256xf32> to vector<16x256xf32>
    %85 = arith.addf %82, %84 : vector<16x256xf32>
    %c0_94 = arith.constant 0 : index
    %c0_95 = arith.constant 0 : index
    %86 = vector.load %arg13[%c0_94, %c0_95] : memref<16x34xf32, #tpu.memory_space<vmem>>, vector<16x34xf32>
    %c0_96 = arith.constant 0 : index
    %c0_97 = arith.constant 0 : index
    %87 = vector.load %arg34[%c0_96, %c0_97] : memref<34x256xf32, #tpu.memory_space<vmem>>, vector<34x256xf32>
    %cst_98 = arith.constant dense<0.000000e+00> : vector<16x256xf32>
    %88 = tpu.matmul %86, %87, %cst_98 {dimension_numbers = #tpu.dot_dimension_numbers<[1], [0], [0], [1], [0, 0, 1, 1], [], []>} : vector<16x34xf32>, vector<34x256xf32>, vector<16x256xf32> -> vector<16x256xf32>
    %89 = arith.truncf %88 : vector<16x256xf32> to vector<16x256xbf16>
    %c0_99 = arith.constant 0 : index
    %c0_100 = arith.constant 0 : index
    %90 = vector.load %arg14[%c0_99, %c0_100] : memref<256x256xbf16, #tpu.memory_space<vmem>>, vector<256x256xbf16>
    %cst_101 = arith.constant dense<0.000000e+00> : vector<16x256xf32>
    %91 = tpu.matmul %89, %90, %cst_101 {dimension_numbers = #tpu.dot_dimension_numbers<[1], [0], [0], [1], [0, 0, 1, 1], [], []>} : vector<16x256xbf16>, vector<256x256xbf16>, vector<16x256xf32> -> vector<16x256xf32>
    %c0_102 = arith.constant 0 : index
    %c0_103 = arith.constant 0 : index
    %92 = vector.load %arg15[%c0_102, %c0_103] : memref<1x256xf32, #tpu.memory_space<vmem>>, vector<1x256xf32>
    %93 = vector.broadcast %92 : vector<1x256xf32> to vector<16x256xf32>
    %94 = arith.addf %91, %93 : vector<16x256xf32>
    %95 = arith.addf %85, %94 : vector<16x256xf32>
    %cst_104 = arith.constant 0.000000e+00 : f32
    %96 = vector.broadcast %cst_104 : f32 to vector<16x256xf32>
    %97 = arith.maximumf %95, %96 : vector<16x256xf32>
    %cst_105 = arith.constant 0.000000e+00 : f32
    %98 = vector.broadcast %cst_105 : f32 to vector<1x256xf32>
    %c0_106 = arith.constant 0 : index
    %c0_107 = arith.constant 0 : index
    %99 = vector.load %arg34[%c0_106, %c0_107] : memref<34x256xf32, #tpu.memory_space<vmem>>, vector<1x256xf32>
    tpu.vector_store %arg34[%c0_106, %c0_107], %98 {strides = array<i32>} : memref<34x256xf32, #tpu.memory_space<vmem>>, vector<1x256xf32>,
    %c17_108 = arith.constant 17 : index
    %c0_109 = arith.constant 0 : index
    %100 = vector.load %arg34[%c17_108, %c0_109] : memref<34x256xf32, #tpu.memory_space<vmem>>, vector<1x256xf32>
    tpu.vector_store %arg34[%c17_108, %c0_109], %98 {strides = array<i32>} : memref<34x256xf32, #tpu.memory_space<vmem>>, vector<1x256xf32>,
    %c1_110 = arith.constant 1 : index
    %c0_111 = arith.constant 0 : index
    %101 = vector.load %arg34[%c1_110, %c0_111] : memref<34x256xf32, #tpu.memory_space<vmem>>, vector<16x256xf32>
    tpu.vector_store %arg34[%c1_110, %c0_111], %97 {strides = array<i32>} : memref<34x256xf32, #tpu.memory_space<vmem>>, vector<16x256xf32>,
    %c0_112 = arith.constant 0 : index
    %c0_113 = arith.constant 0 : index
    %102 = vector.load %arg34[%c0_112, %c0_113] : memref<34x256xf32, #tpu.memory_space<vmem>>, vector<18x256xf32>
    %c0_114 = arith.constant 0 : index
    %c0_115 = arith.constant 0 : index
    %c0_116 = arith.constant 0 : index
    %103 = vector.load %arg20[%c0_114, %c0_115, %c0_116] : memref<3x8x18xf32, #tpu.memory_space<vmem>>, vector<1x8x18xf32>
    %104 = vector.shape_cast %103 : vector<1x8x18xf32> to vector<8x18xf32>
    %cst_117 = arith.constant dense<0.000000e+00> : vector<8x256xf32>
    %105 = tpu.matmul %104, %102, %cst_117 {dimension_numbers = #tpu.dot_dimension_numbers<[1], [0], [0], [1], [0, 0, 1, 1], [], []>} : vector<8x18xf32>, vector<18x256xf32>, vector<8x256xf32> -> vector<8x256xf32>
    %c1_118 = arith.constant 1 : index
    %c0_119 = arith.constant 0 : index
    %c0_120 = arith.constant 0 : index
    %106 = vector.load %arg20[%c1_118, %c0_119, %c0_120] : memref<3x8x18xf32, #tpu.memory_space<vmem>>, vector<1x8x18xf32>
    %107 = vector.shape_cast %106 : vector<1x8x18xf32> to vector<8x18xf32>
    %cst_121 = arith.constant dense<0.000000e+00> : vector<8x256xf32>
    %108 = tpu.matmul %107, %102, %cst_121 {dimension_numbers = #tpu.dot_dimension_numbers<[1], [0], [0], [1], [0, 0, 1, 1], [], []>} : vector<8x18xf32>, vector<18x256xf32>, vector<8x256xf32> -> vector<8x256xf32>
    %c2_122 = arith.constant 2 : index
    %c0_123 = arith.constant 0 : index
    %c0_124 = arith.constant 0 : index
    %109 = vector.load %arg20[%c2_122, %c0_123, %c0_124] : memref<3x8x18xf32, #tpu.memory_space<vmem>>, vector<1x8x18xf32>
    %110 = vector.shape_cast %109 : vector<1x8x18xf32> to vector<8x18xf32>
    %cst_125 = arith.constant dense<0.000000e+00> : vector<8x256xf32>
    %111 = tpu.matmul %110, %102, %cst_125 {dimension_numbers = #tpu.dot_dimension_numbers<[1], [0], [0], [1], [0, 0, 1, 1], [], []>} : vector<8x18xf32>, vector<18x256xf32>, vector<8x256xf32> -> vector<8x256xf32>
    %112 = tpu.concatenate %105, %108, %111 in 1 : vector<8x256xf32>, vector<8x256xf32>, vector<8x256xf32> -> vector<8x768xf32>
    %113 = arith.truncf %112 : vector<8x768xf32> to vector<8x768xbf16>
    %c0_126 = arith.constant 0 : index
    %c0_127 = arith.constant 0 : index
    %114 = vector.load %arg16[%c0_126, %c0_127] : memref<768x256xbf16, #tpu.memory_space<vmem>>, vector<768x256xbf16>
    %cst_128 = arith.constant dense<0.000000e+00> : vector<8x256xf32>
    %115 = tpu.matmul %113, %114, %cst_128 {dimension_numbers = #tpu.dot_dimension_numbers<[1], [0], [0], [1], [0, 0, 1, 1], [], []>} : vector<8x768xbf16>, vector<768x256xbf16>, vector<8x256xf32> -> vector<8x256xf32>
    %c0_129 = arith.constant 0 : index
    %c0_130 = arith.constant 0 : index
    %116 = vector.load %arg17[%c0_129, %c0_130] : memref<1x256xf32, #tpu.memory_space<vmem>>, vector<1x256xf32>
    %117 = vector.broadcast %116 : vector<1x256xf32> to vector<8x256xf32>
    %118 = arith.addf %115, %117 : vector<8x256xf32>
    %cst_131 = arith.constant 0.000000e+00 : f32
    %119 = vector.broadcast %cst_131 : f32 to vector<8x256xf32>
    %120 = arith.maximumf %118, %119 : vector<8x256xf32>
    %cst_132 = arith.constant 0.000000e+00 : f32
    %121 = vector.broadcast %cst_132 : f32 to vector<1x256xf32>
    %c0_133 = arith.constant 0 : index
    %c0_134 = arith.constant 0 : index
    %122 = vector.load %arg35[%c0_133, %c0_134] : memref<34x256xf32, #tpu.memory_space<vmem>>, vector<1x256xf32>
    tpu.vector_store %arg35[%c0_133, %c0_134], %121 {strides = array<i32>} : memref<34x256xf32, #tpu.memory_space<vmem>>, vector<1x256xf32>,
    %c9 = arith.constant 9 : index
    %c0_135 = arith.constant 0 : index
    %123 = vector.load %arg35[%c9, %c0_135] : memref<34x256xf32, #tpu.memory_space<vmem>>, vector<1x256xf32>
    tpu.vector_store %arg35[%c9, %c0_135], %121 {strides = array<i32>} : memref<34x256xf32, #tpu.memory_space<vmem>>, vector<1x256xf32>,
    %c1_136 = arith.constant 1 : index
    %c0_137 = arith.constant 0 : index
    %124 = vector.load %arg35[%c1_136, %c0_137] : memref<34x256xf32, #tpu.memory_space<vmem>>, vector<8x256xf32>
    tpu.vector_store %arg35[%c1_136, %c0_137], %120 {strides = array<i32>} : memref<34x256xf32, #tpu.memory_space<vmem>>, vector<8x256xf32>,
    %c0_138 = arith.constant 0 : index
    %c0_139 = arith.constant 0 : index
    %125 = vector.load %arg35[%c0_138, %c0_139] : memref<34x256xf32, #tpu.memory_space<vmem>>, vector<8x256xf32>
    %c1_140 = arith.constant 1 : index
    %c0_141 = arith.constant 0 : index
    %126 = vector.load %arg35[%c1_140, %c0_141] : memref<34x256xf32, #tpu.memory_space<vmem>>, vector<8x256xf32>
    %c2_142 = arith.constant 2 : index
    %c0_143 = arith.constant 0 : index
    %127 = vector.load %arg35[%c2_142, %c0_143] : memref<34x256xf32, #tpu.memory_space<vmem>>, vector<8x256xf32>
    %128 = tpu.concatenate %125, %126, %127 in 1 : vector<8x256xf32>, vector<8x256xf32>, vector<8x256xf32> -> vector<8x768xf32>
    %129 = arith.truncf %128 : vector<8x768xf32> to vector<8x768xbf16>
    %c0_144 = arith.constant 0 : index
    %c0_145 = arith.constant 0 : index
    %130 = vector.load %arg18[%c0_144, %c0_145] : memref<768x256xbf16, #tpu.memory_space<vmem>>, vector<768x256xbf16>
    %cst_146 = arith.constant dense<0.000000e+00> : vector<8x256xf32>
    %131 = tpu.matmul %129, %130, %cst_146 {dimension_numbers = #tpu.dot_dimension_numbers<[1], [0], [0], [1], [0, 0, 1, 1], [], []>} : vector<8x768xbf16>, vector<768x256xbf16>, vector<8x256xf32> -> vector<8x256xf32>
    %c0_147 = arith.constant 0 : index
    %c0_148 = arith.constant 0 : index
    %132 = vector.load %arg19[%c0_147, %c0_148] : memref<1x256xf32, #tpu.memory_space<vmem>>, vector<1x256xf32>
    %133 = vector.broadcast %132 : vector<1x256xf32> to vector<8x256xf32>
    %134 = arith.addf %131, %133 : vector<8x256xf32>
    %c0_149 = arith.constant 0 : index
    %c0_150 = arith.constant 0 : index
    %135 = vector.load %arg21[%c0_149, %c0_150] : memref<8x18xf32, #tpu.memory_space<vmem>>, vector<8x18xf32>
    %c0_151 = arith.constant 0 : index
    %c0_152 = arith.constant 0 : index
    %136 = vector.load %arg34[%c0_151, %c0_152] : memref<34x256xf32, #tpu.memory_space<vmem>>, vector<18x256xf32>
    %cst_153 = arith.constant dense<0.000000e+00> : vector<8x256xf32>
    %137 = tpu.matmul %135, %136, %cst_153 {dimension_numbers = #tpu.dot_dimension_numbers<[1], [0], [0], [1], [0, 0, 1, 1], [], []>} : vector<8x18xf32>, vector<18x256xf32>, vector<8x256xf32> -> vector<8x256xf32>
    %138 = arith.truncf %137 : vector<8x256xf32> to vector<8x256xbf16>
    %c0_154 = arith.constant 0 : index
    %c0_155 = arith.constant 0 : index
    %139 = vector.load %arg22[%c0_154, %c0_155] : memref<256x256xbf16, #tpu.memory_space<vmem>>, vector<256x256xbf16>
    %cst_156 = arith.constant dense<0.000000e+00> : vector<8x256xf32>
    %140 = tpu.matmul %138, %139, %cst_156 {dimension_numbers = #tpu.dot_dimension_numbers<[1], [0], [0], [1], [0, 0, 1, 1], [], []>} : vector<8x256xbf16>, vector<256x256xbf16>, vector<8x256xf32> -> vector<8x256xf32>
    %c0_157 = arith.constant 0 : index
    %c0_158 = arith.constant 0 : index
    %141 = vector.load %arg23[%c0_157, %c0_158] : memref<1x256xf32, #tpu.memory_space<vmem>>, vector<1x256xf32>
    %142 = vector.broadcast %141 : vector<1x256xf32> to vector<8x256xf32>
    %143 = arith.addf %140, %142 : vector<8x256xf32>
    %144 = arith.addf %134, %143 : vector<8x256xf32>
    %cst_159 = arith.constant 0.000000e+00 : f32
    %145 = vector.broadcast %cst_159 : f32 to vector<8x256xf32>
    %146 = arith.maximumf %144, %145 : vector<8x256xf32>
    %cst_160 = arith.constant 0.000000e+00 : f32
    %147 = vector.broadcast %cst_160 : f32 to vector<1x256xf32>
    %c0_161 = arith.constant 0 : index
    %c0_162 = arith.constant 0 : index
    %148 = vector.load %arg34[%c0_161, %c0_162] : memref<34x256xf32, #tpu.memory_space<vmem>>, vector<1x256xf32>
    tpu.vector_store %arg34[%c0_161, %c0_162], %147 {strides = array<i32>} : memref<34x256xf32, #tpu.memory_space<vmem>>, vector<1x256xf32>,
    %c9_163 = arith.constant 9 : index
    %c0_164 = arith.constant 0 : index
    %149 = vector.load %arg34[%c9_163, %c0_164] : memref<34x256xf32, #tpu.memory_space<vmem>>, vector<1x256xf32>
    tpu.vector_store %arg34[%c9_163, %c0_164], %147 {strides = array<i32>} : memref<34x256xf32, #tpu.memory_space<vmem>>, vector<1x256xf32>,
    %c1_165 = arith.constant 1 : index
    %c0_166 = arith.constant 0 : index
    %150 = vector.load %arg34[%c1_165, %c0_166] : memref<34x256xf32, #tpu.memory_space<vmem>>, vector<8x256xf32>
    tpu.vector_store %arg34[%c1_165, %c0_166], %146 {strides = array<i32>} : memref<34x256xf32, #tpu.memory_space<vmem>>, vector<8x256xf32>,
    %c0_167 = arith.constant 0 : index
    %c0_168 = arith.constant 0 : index
    %151 = vector.load %arg34[%c0_167, %c0_168] : memref<34x256xf32, #tpu.memory_space<vmem>>, vector<10x256xf32>
    %c0_169 = arith.constant 0 : index
    %c0_170 = arith.constant 0 : index
    %c0_171 = arith.constant 0 : index
    %152 = vector.load %arg28[%c0_169, %c0_170, %c0_171] : memref<3x4x10xf32, #tpu.memory_space<vmem>>, vector<1x4x10xf32>
    %153 = vector.shape_cast %152 : vector<1x4x10xf32> to vector<4x10xf32>
    %cst_172 = arith.constant dense<0.000000e+00> : vector<4x256xf32>
    %154 = tpu.matmul %153, %151, %cst_172 {dimension_numbers = #tpu.dot_dimension_numbers<[1], [0], [0], [1], [0, 0, 1, 1], [], []>} : vector<4x10xf32>, vector<10x256xf32>, vector<4x256xf32> -> vector<4x256xf32>
    %c1_173 = arith.constant 1 : index
    %c0_174 = arith.constant 0 : index
    %c0_175 = arith.constant 0 : index
    %155 = vector.load %arg28[%c1_173, %c0_174, %c0_175] : memref<3x4x10xf32, #tpu.memory_space<vmem>>, vector<1x4x10xf32>
    %156 = vector.shape_cast %155 : vector<1x4x10xf32> to vector<4x10xf32>
    %cst_176 = arith.constant dense<0.000000e+00> : vector<4x256xf32>
    %157 = tpu.matmul %156, %151, %cst_176 {dimension_numbers = #tpu.dot_dimension_numbers<[1], [0], [0], [1], [0, 0, 1, 1], [], []>} : vector<4x10xf32>, vector<10x256xf32>, vector<4x256xf32> -> vector<4x256xf32>
    %c2_177 = arith.constant 2 : index
    %c0_178 = arith.constant 0 : index
    %c0_179 = arith.constant 0 : index
    %158 = vector.load %arg28[%c2_177, %c0_178, %c0_179] : memref<3x4x10xf32, #tpu.memory_space<vmem>>, vector<1x4x10xf32>
    %159 = vector.shape_cast %158 : vector<1x4x10xf32> to vector<4x10xf32>
    %cst_180 = arith.constant dense<0.000000e+00> : vector<4x256xf32>
    %160 = tpu.matmul %159, %151, %cst_180 {dimension_numbers = #tpu.dot_dimension_numbers<[1], [0], [0], [1], [0, 0, 1, 1], [], []>} : vector<4x10xf32>, vector<10x256xf32>, vector<4x256xf32> -> vector<4x256xf32>
    %161 = tpu.concatenate %154, %157, %160 in 1 : vector<4x256xf32>, vector<4x256xf32>, vector<4x256xf32> -> vector<4x768xf32>
    %162 = arith.truncf %161 : vector<4x768xf32> to vector<4x768xbf16>
    %c0_181 = arith.constant 0 : index
    %c0_182 = arith.constant 0 : index
    %163 = vector.load %arg24[%c0_181, %c0_182] : memref<768x256xbf16, #tpu.memory_space<vmem>>, vector<768x256xbf16>
    %cst_183 = arith.constant dense<0.000000e+00> : vector<4x256xf32>
    %164 = tpu.matmul %162, %163, %cst_183 {dimension_numbers = #tpu.dot_dimension_numbers<[1], [0], [0], [1], [0, 0, 1, 1], [], []>} : vector<4x768xbf16>, vector<768x256xbf16>, vector<4x256xf32> -> vector<4x256xf32>
    %c0_184 = arith.constant 0 : index
    %c0_185 = arith.constant 0 : index
    %165 = vector.load %arg25[%c0_184, %c0_185] : memref<1x256xf32, #tpu.memory_space<vmem>>, vector<1x256xf32>
    %166 = vector.broadcast %165 : vector<1x256xf32> to vector<4x256xf32>
    %167 = arith.addf %164, %166 : vector<4x256xf32>
    %cst_186 = arith.constant 0.000000e+00 : f32
    %168 = vector.broadcast %cst_186 : f32 to vector<4x256xf32>
    %169 = arith.maximumf %167, %168 : vector<4x256xf32>
    %cst_187 = arith.constant 0.000000e+00 : f32
    %170 = vector.broadcast %cst_187 : f32 to vector<1x256xf32>
    %c0_188 = arith.constant 0 : index
    %c0_189 = arith.constant 0 : index
    %171 = vector.load %arg35[%c0_188, %c0_189] : memref<34x256xf32, #tpu.memory_space<vmem>>, vector<1x256xf32>
    tpu.vector_store %arg35[%c0_188, %c0_189], %170 {strides = array<i32>} : memref<34x256xf32, #tpu.memory_space<vmem>>, vector<1x256xf32>,
    %c5 = arith.constant 5 : index
    %c0_190 = arith.constant 0 : index
    %172 = vector.load %arg35[%c5, %c0_190] : memref<34x256xf32, #tpu.memory_space<vmem>>, vector<1x256xf32>
    tpu.vector_store %arg35[%c5, %c0_190], %170 {strides = array<i32>} : memref<34x256xf32, #tpu.memory_space<vmem>>, vector<1x256xf32>,
    %c1_191 = arith.constant 1 : index
    %c0_192 = arith.constant 0 : index
    %173 = vector.load %arg35[%c1_191, %c0_192] : memref<34x256xf32, #tpu.memory_space<vmem>>, vector<4x256xf32>
    tpu.vector_store %arg35[%c1_191, %c0_192], %169 {strides = array<i32>} : memref<34x256xf32, #tpu.memory_space<vmem>>, vector<4x256xf32>,
    %c0_193 = arith.constant 0 : index
    %c0_194 = arith.constant 0 : index
    %174 = vector.load %arg35[%c0_193, %c0_194] : memref<34x256xf32, #tpu.memory_space<vmem>>, vector<4x256xf32>
    %c1_195 = arith.constant 1 : index
    %c0_196 = arith.constant 0 : index
    %175 = vector.load %arg35[%c1_195, %c0_196] : memref<34x256xf32, #tpu.memory_space<vmem>>, vector<4x256xf32>
    %c2_197 = arith.constant 2 : index
    %c0_198 = arith.constant 0 : index
    %176 = vector.load %arg35[%c2_197, %c0_198] : memref<34x256xf32, #tpu.memory_space<vmem>>, vector<4x256xf32>
    %177 = tpu.concatenate %174, %175, %176 in 1 : vector<4x256xf32>, vector<4x256xf32>, vector<4x256xf32> -> vector<4x768xf32>
    %178 = arith.truncf %177 : vector<4x768xf32> to vector<4x768xbf16>
    %c0_199 = arith.constant 0 : index
    %c0_200 = arith.constant 0 : index
    %179 = vector.load %arg26[%c0_199, %c0_200] : memref<768x256xbf16, #tpu.memory_space<vmem>>, vector<768x256xbf16>
    %cst_201 = arith.constant dense<0.000000e+00> : vector<4x256xf32>
    %180 = tpu.matmul %178, %179, %cst_201 {dimension_numbers = #tpu.dot_dimension_numbers<[1], [0], [0], [1], [0, 0, 1, 1], [], []>} : vector<4x768xbf16>, vector<768x256xbf16>, vector<4x256xf32> -> vector<4x256xf32>
    %c0_202 = arith.constant 0 : index
    %c0_203 = arith.constant 0 : index
    %181 = vector.load %arg27[%c0_202, %c0_203] : memref<1x256xf32, #tpu.memory_space<vmem>>, vector<1x256xf32>
    %182 = vector.broadcast %181 : vector<1x256xf32> to vector<4x256xf32>
    %183 = arith.addf %180, %182 : vector<4x256xf32>
    %c0_204 = arith.constant 0 : index
    %c0_205 = arith.constant 0 : index
    %184 = vector.load %arg29[%c0_204, %c0_205] : memref<4x10xf32, #tpu.memory_space<vmem>>, vector<4x10xf32>
    %c0_206 = arith.constant 0 : index
    %c0_207 = arith.constant 0 : index
    %185 = vector.load %arg34[%c0_206, %c0_207] : memref<34x256xf32, #tpu.memory_space<vmem>>, vector<10x256xf32>
    %cst_208 = arith.constant dense<0.000000e+00> : vector<4x256xf32>
    %186 = tpu.matmul %184, %185, %cst_208 {dimension_numbers = #tpu.dot_dimension_numbers<[1], [0], [0], [1], [0, 0, 1, 1], [], []>} : vector<4x10xf32>, vector<10x256xf32>, vector<4x256xf32> -> vector<4x256xf32>
    %187 = arith.truncf %186 : vector<4x256xf32> to vector<4x256xbf16>
    %c0_209 = arith.constant 0 : index
    %c0_210 = arith.constant 0 : index
    %188 = vector.load %arg30[%c0_209, %c0_210] : memref<256x256xbf16, #tpu.memory_space<vmem>>, vector<256x256xbf16>
    %cst_211 = arith.constant dense<0.000000e+00> : vector<4x256xf32>
    %189 = tpu.matmul %187, %188, %cst_211 {dimension_numbers = #tpu.dot_dimension_numbers<[1], [0], [0], [1], [0, 0, 1, 1], [], []>} : vector<4x256xbf16>, vector<256x256xbf16>, vector<4x256xf32> -> vector<4x256xf32>
    %c0_212 = arith.constant 0 : index
    %c0_213 = arith.constant 0 : index
    %190 = vector.load %arg31[%c0_212, %c0_213] : memref<1x256xf32, #tpu.memory_space<vmem>>, vector<1x256xf32>
    %191 = vector.broadcast %190 : vector<1x256xf32> to vector<4x256xf32>
    %192 = arith.addf %189, %191 : vector<4x256xf32>
    %193 = arith.addf %183, %192 : vector<4x256xf32>
    %cst_214 = arith.constant 0.000000e+00 : f32
    %194 = vector.broadcast %cst_214 : f32 to vector<4x256xf32>
    %195 = arith.maximumf %193, %194 : vector<4x256xf32>
    %cst_215 = arith.constant dense<0.000000e+00> : vector<256xf32>
    %196 = vector.multi_reduction <add>, %195, %cst_215 [0] : vector<4x256xf32> to vector<256xf32>
    %197 = vector.shape_cast %196 : vector<256xf32> to vector<1x256xf32>
    %c0_216 = arith.constant 0 : index
    %c0_217 = arith.constant 0 : index
    %198 = vector.load %arg32[%c0_216, %c0_217] : memref<256x128xf32, #tpu.memory_space<vmem>>, vector<256x128xf32>
    %cst_218 = arith.constant dense<0.000000e+00> : vector<1x128xf32>
    %199 = tpu.matmul %197, %198, %cst_218 {dimension_numbers = #tpu.dot_dimension_numbers<[1], [0], [0], [1], [0, 0, 1, 1], [], []>} : vector<1x256xf32>, vector<256x128xf32>, vector<1x128xf32> -> vector<1x128xf32>
    %c0_219 = arith.constant 0 : index
    %c0_220 = arith.constant 0 : index
    %c0_221 = arith.constant 0 : index
    %200 = vector.load %arg33[%c0_219, %c0_220, %c0_221] : memref<1x1x128xf32, #tpu.memory_space<vmem>>, vector<1x1x128xf32>
    %201 = vector.shape_cast %200 : vector<1x1x128xf32> to vector<1x128xf32>
    %202 = vector.shape_cast %199 : vector<1x128xf32> to vector<1x1x128xf32>
    tpu.vector_store %arg33[%c0_219, %c0_220, %c0_221], %202 {strides = array<i32>} : memref<1x1x128xf32, #tpu.memory_space<vmem>>, vector<1x1x128xf32>,
    return
  }
  func.func @transform_0(%arg0: i32) -> (i32, i32, i32) {
    %c0_i32 = arith.constant 0 : i32
    %c0_i32_0 = arith.constant 0 : i32
    %c0_i32_1 = arith.constant 0 : i32
    return %arg0, %c0_i32, %c0_i32_0 : i32, i32, i32
  }
  func.func @transform_1(%arg0: i32) -> (i32, i32) {
    %c0_i32 = arith.constant 0 : i32
    %c0_i32_0 = arith.constant 0 : i32
    %c0_i32_1 = arith.constant 0 : i32
    return %c0_i32, %c0_i32_0 : i32, i32
  }
  func.func @transform_2(%arg0: i32) -> (i32, i32) {
    %c0_i32 = arith.constant 0 : i32
    %c0_i32_0 = arith.constant 0 : i32
    %c0_i32_1 = arith.constant 0 : i32
    return %c0_i32, %c0_i32_0 : i32, i32
  }
  func.func @transform_3(%arg0: i32) -> (i32, i32) {
    %c0_i32 = arith.constant 0 : i32
    %c0_i32_0 = arith.constant 0 : i32
    %c0_i32_1 = arith.constant 0 : i32
    return %c0_i32, %c0_i32_0 : i32, i32
  }
  func.func @transform_4(%arg0: i32) -> (i32, i32) {
    %c0_i32 = arith.constant 0 : i32
    %c0_i32_0 = arith.constant 0 : i32
    %c0_i32_1 = arith.constant 0 : i32
    return %c0_i32, %c0_i32_0 : i32, i32
  }
  func.func @transform_5(%arg0: i32) -> (i32, i32) {
    %c0_i32 = arith.constant 0 : i32
    %c0_i32_0 = arith.constant 0 : i32
    %c0_i32_1 = arith.constant 0 : i32
    return %c0_i32, %c0_i32_0 : i32, i32
  }
  func.func @transform_6(%arg0: i32) -> (i32, i32) {
    %c0_i32 = arith.constant 0 : i32
    %c0_i32_0 = arith.constant 0 : i32
    %c0_i32_1 = arith.constant 0 : i32
    return %c0_i32, %c0_i32_0 : i32, i32
  }
  func.func @transform_7(%arg0: i32) -> (i32, i32) {
    %c0_i32 = arith.constant 0 : i32
    %c0_i32_0 = arith.constant 0 : i32
    %c0_i32_1 = arith.constant 0 : i32
    return %c0_i32, %c0_i32_0 : i32, i32
  }
  func.func @transform_8(%arg0: i32) -> (i32, i32) {
    %c0_i32 = arith.constant 0 : i32
    %c0_i32_0 = arith.constant 0 : i32
    %c0_i32_1 = arith.constant 0 : i32
    return %c0_i32, %c0_i32_0 : i32, i32
  }
  func.func @transform_9(%arg0: i32) -> (i32, i32) {
    %c0_i32 = arith.constant 0 : i32
    %c0_i32_0 = arith.constant 0 : i32
    %c0_i32_1 = arith.constant 0 : i32
    return %c0_i32, %c0_i32_0 : i32, i32
  }
  func.func @transform_10(%arg0: i32) -> (i32, i32) {
    %c0_i32 = arith.constant 0 : i32
    %c0_i32_0 = arith.constant 0 : i32
    %c0_i32_1 = arith.constant 0 : i32
    return %c0_i32, %c0_i32_0 : i32, i32
  }
  func.func @transform_11(%arg0: i32) -> (i32, i32, i32) {
    %c0_i32 = arith.constant 0 : i32
    %c0_i32_0 = arith.constant 0 : i32
    %c0_i32_1 = arith.constant 0 : i32
    %c0_i32_2 = arith.constant 0 : i32
    return %c0_i32, %c0_i32_0, %c0_i32_1 : i32, i32, i32
  }
  func.func @transform_12(%arg0: i32) -> (i32, i32) {
    %c0_i32 = arith.constant 0 : i32
    %c0_i32_0 = arith.constant 0 : i32
    %c0_i32_1 = arith.constant 0 : i32
    return %c0_i32, %c0_i32_0 : i32, i32
  }
  func.func @transform_13(%arg0: i32) -> (i32, i32) {
    %c0_i32 = arith.constant 0 : i32
    %c0_i32_0 = arith.constant 0 : i32
    %c0_i32_1 = arith.constant 0 : i32
    return %c0_i32, %c0_i32_0 : i32, i32
  }
  func.func @transform_14(%arg0: i32) -> (i32, i32) {
    %c0_i32 = arith.constant 0 : i32
    %c0_i32_0 = arith.constant 0 : i32
    %c0_i32_1 = arith.constant 0 : i32
    return %c0_i32, %c0_i32_0 : i32, i32
  }
  func.func @transform_15(%arg0: i32) -> (i32, i32) {
    %c0_i32 = arith.constant 0 : i32
    %c0_i32_0 = arith.constant 0 : i32
    %c0_i32_1 = arith.constant 0 : i32
    return %c0_i32, %c0_i32_0 : i32, i32
  }
  func.func @transform_16(%arg0: i32) -> (i32, i32) {
    %c0_i32 = arith.constant 0 : i32
    %c0_i32_0 = arith.constant 0 : i32
    %c0_i32_1 = arith.constant 0 : i32
    return %c0_i32, %c0_i32_0 : i32, i32
  }
  func.func @transform_17(%arg0: i32) -> (i32, i32) {
    %c0_i32 = arith.constant 0 : i32
    %c0_i32_0 = arith.constant 0 : i32
    %c0_i32_1 = arith.constant 0 : i32
    return %c0_i32, %c0_i32_0 : i32, i32
  }
  func.func @transform_18(%arg0: i32) -> (i32, i32) {
    %c0_i32 = arith.constant 0 : i32
    %c0_i32_0 = arith.constant 0 : i32
    %c0_i32_1 = arith.constant 0 : i32
    return %c0_i32, %c0_i32_0 : i32, i32
  }
  func.func @transform_19(%arg0: i32) -> (i32, i32, i32) {
    %c0_i32 = arith.constant 0 : i32
    %c0_i32_0 = arith.constant 0 : i32
    %c0_i32_1 = arith.constant 0 : i32
    %c0_i32_2 = arith.constant 0 : i32
    return %c0_i32, %c0_i32_0, %c0_i32_1 : i32, i32, i32
  }
  func.func @transform_20(%arg0: i32) -> (i32, i32) {
    %c0_i32 = arith.constant 0 : i32
    %c0_i32_0 = arith.constant 0 : i32
    %c0_i32_1 = arith.constant 0 : i32
    return %c0_i32, %c0_i32_0 : i32, i32
  }
  func.func @transform_21(%arg0: i32) -> (i32, i32) {
    %c0_i32 = arith.constant 0 : i32
    %c0_i32_0 = arith.constant 0 : i32
    %c0_i32_1 = arith.constant 0 : i32
    return %c0_i32, %c0_i32_0 : i32, i32
  }
  func.func @transform_22(%arg0: i32) -> (i32, i32) {
    %c0_i32 = arith.constant 0 : i32
    %c0_i32_0 = arith.constant 0 : i32
    %c0_i32_1 = arith.constant 0 : i32
    return %c0_i32, %c0_i32_0 : i32, i32
  }
  func.func @transform_23(%arg0: i32) -> (i32, i32) {
    %c0_i32 = arith.constant 0 : i32
    %c0_i32_0 = arith.constant 0 : i32
    %c0_i32_1 = arith.constant 0 : i32
    return %c0_i32, %c0_i32_0 : i32, i32
  }
  func.func @transform_24(%arg0: i32) -> (i32, i32) {
    %c0_i32 = arith.constant 0 : i32
    %c0_i32_0 = arith.constant 0 : i32
    %c0_i32_1 = arith.constant 0 : i32
    return %c0_i32, %c0_i32_0 : i32, i32
  }
  func.func @transform_25(%arg0: i32) -> (i32, i32) {
    %c0_i32 = arith.constant 0 : i32
    %c0_i32_0 = arith.constant 0 : i32
    %c0_i32_1 = arith.constant 0 : i32
    return %c0_i32, %c0_i32_0 : i32, i32
  }
  func.func @transform_26(%arg0: i32) -> (i32, i32) {
    %c0_i32 = arith.constant 0 : i32
    %c0_i32_0 = arith.constant 0 : i32
    %c0_i32_1 = arith.constant 0 : i32
    return %c0_i32, %c0_i32_0 : i32, i32
  }
  func.func @transform_27(%arg0: i32) -> (i32, i32, i32) {
    %c0_i32 = arith.constant 0 : i32
    %c0_i32_0 = arith.constant 0 : i32
    %c0_i32_1 = arith.constant 0 : i32
    %c0_i32_2 = arith.constant 0 : i32
    return %c0_i32, %c0_i32_0, %c0_i32_1 : i32, i32, i32
  }
  func.func @transform_28(%arg0: i32) -> (i32, i32) {
    %c0_i32 = arith.constant 0 : i32
    %c0_i32_0 = arith.constant 0 : i32
    %c0_i32_1 = arith.constant 0 : i32
    return %c0_i32, %c0_i32_0 : i32, i32
  }
  func.func @transform_29(%arg0: i32) -> (i32, i32) {
    %c0_i32 = arith.constant 0 : i32
    %c0_i32_0 = arith.constant 0 : i32
    %c0_i32_1 = arith.constant 0 : i32
    return %c0_i32, %c0_i32_0 : i32, i32
  }
  func.func @transform_30(%arg0: i32) -> (i32, i32) {
    %c0_i32 = arith.constant 0 : i32
    %c0_i32_0 = arith.constant 0 : i32
    %c0_i32_1 = arith.constant 0 : i32
    return %c0_i32, %c0_i32_0 : i32, i32
  }
  func.func @transform_31(%arg0: i32) -> (i32, i32) {
    %c0_i32 = arith.constant 0 : i32
    %c0_i32_0 = arith.constant 0 : i32
    %c0_i32_1 = arith.constant 0 : i32
    return %c0_i32, %c0_i32_0 : i32, i32
  }
  func.func @transform_32(%arg0: i32) -> (i32, i32, i32) {
    %c0_i32 = arith.constant 0 : i32
    %c0_i32_0 = arith.constant 0 : i32
    %c0_i32_1 = arith.constant 0 : i32
    return %arg0, %c0_i32, %c0_i32_0 : i32, i32, i32
  }
}

</mosaic_0001>

<bundles_post_ra>
// kernel: _lambda_.1
= control target key start
LH: loop header
LB: loop body
LE: loop exit
PB: predicated region body
PF: predicated region fallthrough
CT: control target
= control target key end

     0   :  { %s15302_s6 = smov 1   ;;  %s15303_s10 = smov 2   ;;  %s16894_s0 = inlined_call_operand.smem [shape: u32[33], index: -1, kind: input, shape index: {}] }
   0x1   :  { %s15356_s5 = sld [smem:[%s16894_s0]]   ;;  %s15304_s14 = smov 3  }
   0x2   :  { %s15361_s9 = sld [smem:[%s16894_s0 + %s15302_s6]]   ;;  %s15305_s18 = smov 4  }
   0x3   :  { %s15366_s13 = sld [smem:[%s16894_s0 + %s15303_s10]]   ;;  %s15306_s22 = smov 5  }
   0x4   :  { %s15371_s17 = sld [smem:[%s16894_s0 + %s15304_s14]]   ;;  %s15307_s26 = smov 6  }
   0x5   :  { %s15376_s21 = sld [smem:[%s16894_s0 + %s15305_s18]]   ;;  %s15308_s30 = smov 7  }
   0x6   :  { %s15381_s25 = sld [smem:[%s16894_s0 + %s15306_s22]]   ;;  %s15309_s4 = smov 8  }
   0x7   :  { %16913 = sst [smem:[#allocation30_spill]] %s15356_s5  ;;  %s15310_s10 = smov 9  }
   0x8   :  { %s15386_s29 = sld [smem:[%s16894_s0 + %s15307_s26]]   ;;  %s15311_s15 = smov 10  }
   0x9   :  { %s15391_s3 = sld [smem:[%s16894_s0 + %s15308_s30]]   ;;  %s15312_s20 = smov 11  }
   0xa   :  { %s15396_s8 = sld [smem:[%s16894_s0 + %s15309_s4]]   ;;  %s15313_s26 = smov 12  }
   0xb   :  { %s15401_s14 = sld [smem:[%s16894_s0 + %s15310_s10]]   ;;  %s15314_s1 = smov 13  }
   0xc   :  { %16914 = sst [smem:[#allocation31_spill]] %s15381_s25  ;;  %s15315_s7 = smov 14  }
   0xd   :  { %s15406_s19 = sld [smem:[%s16894_s0 + %s15311_s15]]   ;;  %s15316_s15 = smov 15  }
   0xe   :  { %s15411_s24 = sld [smem:[%s16894_s0 + %s15312_s20]]   ;;  %s15317_s22 = smov 16  }
   0xf   :  { %16915 = sst [smem:[#allocation32_spill]] %s15391_s3  ;;  %s15318_s28 = smov 17  }
  0x10   :  { %16916 = sst [smem:[#allocation33_spill]] %s15396_s8 }
  0x11   :  { %s15416_s30 = sld [smem:[%s16894_s0 + %s15313_s26]]  }
  0x12   :  { %s15421_s6 = sld [smem:[%s16894_s0 + %s15314_s1]]  }
  0x13   :  { %16917 = sst [smem:[#allocation34_spill]] %s15406_s19 }
  0x14   :  { %16918 = sst [smem:[#allocation35_spill]] %s15411_s24 }
  0x15   :  { %s15426_s12 = sld [smem:[%s16894_s0 + %s15315_s7]]   ;;  %s15319_s7 = smov 18  }
  0x16   :  { %s15431_s20 = sld [smem:[%s16894_s0 + %s15316_s15]]   ;;  %s15320_s15 = smov 19  }
  0x17   :  { %16919 = sst [smem:[#allocation36_spill]] %s15416_s30 }
  0x18   :  { %s15436_s27 = sld [smem:[%s16894_s0 + %s15317_s22]]   ;;  %s15321_s22 = smov 20  }
  0x19   :  { %s15441_s4 = sld [smem:[%s16894_s0 + %s15318_s28]]   ;;  %s15322_s28 = smov 21  }
  0x1a   :  { %s15451_s19 = sld [smem:[%s16894_s0 + %s15320_s15]]   ;;  %s15324_s15 = smov 23  }
  0x1b   :  { %16920 = sst [smem:[#allocation37_spill]] %s15426_s12 }
  0x1c   :  { %s15446_s12 = sld [smem:[%s16894_s0 + %s15319_s7]]   ;;  %s15323_s7 = smov 22  }
  0x1d   :  { %s15461_s30 = sld [smem:[%s16894_s0 + %s15322_s28]]   ;;  %s15326_s28 = smov 25  }
  0x1e   :  { %16921 = sst [smem:[#allocation38_spill]] %s15436_s27 }
  0x1f   :  { %16922 = sst [smem:[#allocation39_spill]] %s15441_s4 }
  0x20   :  { %16924 = sst [smem:[#allocation41_spill]] %s15451_s19 }
  0x21   :  { %s15456_s27 = sld [smem:[%s16894_s0 + %s15321_s22]]   ;;  %s15325_s22 = smov 24  }
  0x22   :  { %16923 = sst [smem:[#allocation40_spill]] %s15446_s12 }
  0x23   :  { %s15466_s12 = sld [smem:[%s16894_s0 + %s15323_s7]]   ;;  %s15327_s7 = smov 26  }
  0x24   :  { %s15471_s19 = sld [smem:[%s16894_s0 + %s15324_s15]]   ;;  %s15328_s15 = smov 27  }
  0x25   :  { %s15481_s8 = sld [smem:[%s16894_s0 + %s15326_s28]]   ;;  %s15330_s28 = smov 29  }
  0x26   :  { %s15491_s24 = sld [smem:[%s16894_s0 + %s15328_s15]]   ;;  %s15332_s15 = smov 31  }
  0x27   :  { %16925 = sst [smem:[#allocation42_spill]] %s15456_s27 }
  0x28   :  { %s15476_s27 = sld [smem:[%s16894_s0 + %s15325_s22]]   ;;  %s15329_s22 = smov 28  }
  0x29   :  { %16926 = sst [smem:[#allocation43_spill]] %s15466_s12 }
  0x2a   :  { %s15486_s12 = sld [smem:[%s16894_s0 + %s15327_s7]]   ;;  %s15331_s7 = smov 30  }
  0x2b   :  { %16928 = sst [smem:[#allocation45_spill]] %s15481_s8 }
  0x2c   :  { %16930 = sst [smem:[#allocation47_spill]] %s15491_s24 }
  0x2d   :  { %s15501_s8 = sld [smem:[%s16894_s0 + %s15330_s28]]  }
  0x2e   :  { %16927 = sst [smem:[#allocation44_spill]] %s15476_s27 }
  0x2f   :  { %s15496_s27 = sld [smem:[%s16894_s0 + %s15329_s22]]   ;;  %s15333_s22 = smov 32  }
  0x30   :  { %16929 = sst [smem:[#allocation46_spill]] %s15486_s12 }
  0x31   :  { %s15506_s12 = sld [smem:[%s16894_s0 + %s15331_s7]]  }
  0x32   :  { %s15511_s24 = sld [smem:[%s16894_s0 + %s15332_s15]]  }
  0x35   :  { %16931 = sst [smem:[#allocation48_spill]] %s15496_s27 }
  0x36   :  { %s15516_s27 = sld [smem:[%s16894_s0 + %s15333_s22]]  }
  0x3c   :  { %16932 = sst [smem:[#allocation49_spill]] %s15516_s27 }
  0x3d   :  { %70 = vsyncpa [#allocation5], 0 }
  0x3e   :  { %71 = vsyncpa [#allocation8], 0 }
  0x3f   :  { %72 = vsyncpa [#allocation11], 0 }
  0x40   :  { %73 = vsyncpa [#allocation14], 0 }
  0x41   :  { %74 = vsyncpa [#allocation17], 0 }
  0x42   :  { %75 = vsyncpa [#allocation20], 0 }
  0x43   :  { %76 = vsyncpa [#allocation6], 0 }
  0x44   :  { %78 = vsyncpa [#allocation6 + $0x1], 0  ;;  %s15518_s28 = smov 0   ;;  %s15520_s1 = smov 0  }
  0x45   :  { %s15522_s2 = smov 0   ;;  %s15524_s7 = smov 0  }
  0x46 LB: > { %s16933_s4 = sld [smem:[#allocation39_spill]]  ;;  %s15539_s0 = sadd.s32 4294967295, %s15300_s7   ;;  %s15296_s2 = sphi %s15522_s2, %s16978_s2   ;;  %s15292_s1 = sphi %s15520_s1, %s16977_s1   ;;  %s15288_s28 = sphi %s15518_s28, %s16976_s28   ;;  %s15300_s7 = sphi %s15524_s7, %s16975_s7  }
  0x47   : > { %s16934_s3 = sld [smem:[#allocation32_spill]]  ;;  %s10045_s10 = sadd.s32 4294967294, %s15300_s7  }
  0x48   : > { %s16935_s25 = sld [smem:[#allocation31_spill]]  ;;  %s15543_s11 = sadd.s32 1, %s15300_s7  }
  0x49   : > { %16936 = sst [smem:[#allocation50_spill]] %s15288_s28  ;;  %s768_s15 = sadd.s32 1, %s15296_s2 }
  0x4a   : > { %16937 = sst [smem:[#allocation51_spill]] %s15292_s1  ;;  %s765_s16 = ssub.s32 %s15300_s7, %s15543_s11 }
  0x4b   : > { %16938 = sst [smem:[#allocation52_spill]] %s15296_s2  ;;  %p778_p0 = scmp.ne.s32.totalorder %s15296_s2, %s15292_s1 }
  0x4c   : > { %16939 = sst [smem:[#allocation53_spill]] %s15300_s7  ;;  %p766_p1 = scmp.eq.s32.totalorder %s765_s16, 0 }
  0x4d   : > { %16940 = sst [smem:[#allocation54_spill]] %s15543_s11  ;;  %p779_p2 = scmp.eq.s32.totalorder %s15539_s0, 1 }
  0x4e   : > { %p784_p3 = scmp.ne.s32.totalorder %s15292_s1, %s15288_s28  ;;  %p785_p4 = scmp.eq.s32.totalorder %s10045_s10, 1 }
  0x4f   : > { %s15554_s18 = scalar_select %p766_p1, %s15296_s2, %s768_s15  }
  0x50   : > { %p15556_p5 = por %p779_p2, %p778_p0  ;;  %p15560_p6 = por %p785_p4, %p784_p3 }
  0x51   : > { %16941 = sst [smem:[#allocation55_spill]] %s15554_s18  ;;  %p10046_p7 = scmp.ge.s32.totalorder %s15300_s7, 1 }
  0x52   : > { %s16942_s22 = scalar_select %p15556_p5, 1, 0 }
  0x53   : > { %s16944_s23 = scalar_select %p15560_p6, 1, 0 }
  0x54   : > { %16943 = sst [smem:[#allocation56_spill]] %s16942_s22  ;;  %p792_p8 = scmp.lt.s32.totalorder %s15300_s7, 3 }
  0x55   : > { %16945 = sst [smem:[#allocation57_spill]] %s16944_s23  ;;  %p14783_p9 = scmp.eq.s32.totalorder %s15539_s0, 0 }
  0x56   : > { %p15567_p10 = pnand %p10046_p7, %p792_p8  ;;  %s826_s16 = sshll.u32 %s16935_s25, 4  ;;  %s827_s16 = int_to_ptr.hbm [resolvable:$true] %s826_s16 }
  0x57   : > { %s860_s10 = sshll.u32 %s15401_s14, 4  ;;  %s15334_s18 = smov [#allocation7]   ;;  %s15581_s10 = int_to_ptr.hbm [resolvable:$true] %s860_s10 }
  0x58   : > { %p14745_p11 = pneg %p15567_p10  ;;  %s828_s2 = sshll.u32 %s15334_s18, 4  ;;  %s829_s2 = int_to_ptr.vmem [resolvable:$true] %s828_s2 }
  0x59   : > { %s14884_s11 = sshra.s32 %s827_s16, 4  ;;  %s14891_s7 = scalar_lea.hbm %s16935_s25, 768  ;;  %s14885_s11 = int_to_ptr.hbm [resolvable:$true] %s14884_s11 }
  0x5a   : > { %p15577_p12 = pnand %p14783_p9, %p14745_p11  ;;  %s14886_s23 = scalar_lea.hbm %s14885_s11, 768 }
  0x5b   : > { %p14887_p13 = scmp.ne.s32.totalorder %s14885_s11, %s14886_s23  ;;  %p14892_p3 = scmp.lt.s32.totalorder %s14885_s11, %s16935_s25 }
  0x5c   : > { %p15585_p0 = pneg %p15577_p12  ;;  %p14893_p4 = scmp.lt.s32.totalorder %s14891_s7, %s14886_s23 }
  0x5e   : > { %p14889_p1 = pnand %p15585_p0, %p14887_p13  ;;  %p14894_p7 = por %p14893_p4, %p14892_p3 }
  0x60   : > { %p14890_p2 = pneg %p14889_p1 }
  0x62   : > { %p14895_p8 = pnand %p14894_p7, %p14890_p2 }
  0x64   : > { %14898 = shalt.err (!%p14895_p8)
}
  0x65   : > { %s15335_s18 = smov 128   ;;  %s15336_s22 = smov 8  }
  0x66   : > { %14751 = dma.hbm_to_vmem [thread:$0]  (!%p15577_p12), %s827_s16, 12288, %s829_s2, [#allocation8], %s15335_s18, %s15335_s18, %s15336_s22  }
  0x67   : > { %s15337_s27 = smov [#allocation10]   ;;  %s900_s11 = sshll.u32 %s15431_s20, 4  ;;  %s15599_s11 = int_to_ptr.hbm [resolvable:$true] %s900_s11 }
  0x68   : > { %s862_s1 = sshll.u32 %s15337_s27, 4  ;;  %s14914_s7 = sshra.s32 %s15581_s10, 4  ;;  %s863_s1 = int_to_ptr.vmem [resolvable:$true] %s862_s1  ;;  %s14915_s7 = int_to_ptr.hbm [resolvable:$true] %s14914_s7 }
  0x69   : > { %s14916_s23 = scalar_lea.hbm %s14915_s7, 768  ;;  %s14921_s25 = scalar_lea.hbm %s15401_s14, 768 }
  0x6a   : > { %p14917_p11 = scmp.ne.s32.totalorder %s14915_s7, %s14916_s23  ;;  %p14922_p2 = scmp.lt.s32.totalorder %s14915_s7, %s15401_s14 }
  0x6b   : > { %p14923_p3 = scmp.lt.s32.totalorder %s14921_s25, %s14916_s23 }
  0x6c   : > { %p14919_p13 = pnand %p14917_p11, %p15585_p0 }
  0x6d   : > { %p14924_p4 = por %p14923_p3, %p14922_p2 }
  0x6e   : > { %p14920_p1 = pneg %p14919_p13 }
  0x70   : > { %p14925_p7 = pnand %p14924_p4, %p14920_p1 }
  0x72   : > { %14928 = shalt.err (!%p14925_p7)
}
  0x73   : > { %14757 = dma.hbm_to_vmem [thread:$0]  (!%p15577_p12), %s15581_s10, 12288, %s863_s1, [#allocation11], %s15335_s18, %s15335_s18, %s15336_s22  }
  0x74   : > { %s940_s27 = sshll.u32 %s15461_s30, 4  ;;  %s15338_s2 = smov [#allocation13]   ;;  %s15613_s27 = int_to_ptr.hbm [resolvable:$true] %s940_s27 }
  0x75   : > { %s902_s16 = sshll.u32 %s15338_s2, 4  ;;  %s14944_s25 = sshra.s32 %s15599_s11, 4  ;;  %s903_s16 = int_to_ptr.vmem [resolvable:$true] %s902_s16  ;;  %s14945_s25 = int_to_ptr.hbm [resolvable:$true] %s14944_s25 }
  0x76   : > { %s14946_s7 = scalar_lea.hbm %s14945_s25, 768  ;;  %s14951_s23 = scalar_lea.hbm %s15431_s20, 768 }
  0x77   : > { %p14947_p8 = scmp.ne.s32.totalorder %s14945_s25, %s14946_s7  ;;  %p14952_p1 = scmp.lt.s32.totalorder %s14945_s25, %s15431_s20 }
  0x78   : > { %p14953_p2 = scmp.lt.s32.totalorder %s14951_s23, %s14946_s7 }
  0x79   : > { %p14949_p11 = pnand %p14947_p8, %p15585_p0 }
  0x7a   : > { %p14954_p3 = por %p14953_p2, %p14952_p1 }
  0x7b   : > { %p14950_p13 = pneg %p14949_p11 }
  0x7d   : > { %p14955_p4 = pnand %p14954_p3, %p14950_p13 }
  0x7f   : > { %14958 = shalt.err (!%p14955_p4)
}
  0x80   : > { %14763 = dma.hbm_to_vmem [thread:$0]  (!%p15577_p12), %s15599_s11, 12288, %s903_s16, [#allocation14], %s15335_s18, %s15335_s18, %s15336_s22  }
  0x81   : > { %s15339_s1 = smov [#allocation16]   ;;  %s986_s2 = sshll.u32 %s15501_s8, 4  ;;  %s15627_s2 = int_to_ptr.hbm [resolvable:$true] %s986_s2 }
  0x82   : > { %s942_s10 = sshll.u32 %s15339_s1, 4  ;;  %s14974_s25 = sshra.s32 %s15613_s27, 4  ;;  %s943_s10 = int_to_ptr.vmem [resolvable:$true] %s942_s10  ;;  %s14975_s25 = int_to_ptr.hbm [resolvable:$true] %s14974_s25 }
  0x83   : > { %s14976_s7 = scalar_lea.hbm %s14975_s25, 256  ;;  %s14981_s23 = scalar_lea.hbm %s15461_s30, 256 }
  0x84   : > { %p14977_p7 = scmp.ne.s32.totalorder %s14975_s25, %s14976_s7  ;;  %p14982_p13 = scmp.lt.s32.totalorder %s14975_s25, %s15461_s30 }
  0x85   : > { %p14983_p1 = scmp.lt.s32.totalorder %s14981_s23, %s14976_s7 }
  0x86   : > { %p14979_p8 = pnand %p14977_p7, %p15585_p0 }
  0x87   : > { %p14984_p2 = por %p14983_p1, %p14982_p13 }
  0x88   : > { %p14980_p11 = pneg %p14979_p8 }
  0x8a   : > { %p14985_p3 = pnand %p14984_p2, %p14980_p11 }
  0x8c   : > { %14988 = shalt.err (!%p14985_p3)
}
  0x8d   : > { %14769 = dma.hbm_to_vmem [thread:$0]  (!%p15577_p12), %s15613_s27, 4096, %s943_s10, [#allocation17], %s15335_s18, %s15335_s18, %s15336_s22  }
  0x8e   : > { %s809_s11 = sshll.u32 %s15371_s17, 4  ;;  %s15340_s16 = smov [#allocation19]   ;;  %s15641_s11 = int_to_ptr.hbm [resolvable:$true] %s809_s11 }
  0x8f   : > { %s988_s1 = sshll.u32 %s15340_s16, 4  ;;  %s15004_s25 = sshra.s32 %s15627_s2, 4  ;;  %s989_s1 = int_to_ptr.vmem [resolvable:$true] %s988_s1  ;;  %s15005_s25 = int_to_ptr.hbm [resolvable:$true] %s15004_s25 }
  0x90   : > { %s15006_s7 = scalar_lea.hbm %s15005_s25, 256  ;;  %s15011_s23 = scalar_lea.hbm %s15501_s8, 256 }
  0x91   : > { %p15007_p4 = scmp.ne.s32.totalorder %s15005_s25, %s15006_s7  ;;  %p15012_p11 = scmp.lt.s32.totalorder %s15005_s25, %s15501_s8 }
  0x92   : > { %p15013_p13 = scmp.lt.s32.totalorder %s15011_s23, %s15006_s7 }
  0x93   : > { %p15009_p7 = pnand %p15007_p4, %p15585_p0 }
  0x94   : > { %p15014_p1 = por %p15013_p13, %p15012_p11 }
  0x95   : > { %p15010_p8 = pneg %p15009_p7 }
  0x97   : > { %p15015_p2 = pnand %p15014_p1, %p15010_p8 }
  0x99   : > { %15018 = shalt.err (!%p15015_p2)
}
  0x9a   : > { %14775 = dma.hbm_to_vmem [thread:$0]  (!%p15577_p12), %s15627_s2, 4096, %s989_s1, [#allocation20], %s15335_s18, %s15335_s18, %s15336_s22  }
  0x9b   : > { %s15341_s27 = smov [#allocation4]   ;;  %s843_s16 = sshll.u32 %s16934_s3, 4  ;;  %s15655_s16 = int_to_ptr.hbm [resolvable:$true] %s843_s16 }
  0x9c   : > { %s811_s10 = sshll.u32 %s15341_s27, 4  ;;  %s15034_s25 = sshra.s32 %s15641_s11, 4  ;;  %s812_s10 = int_to_ptr.vmem [resolvable:$true] %s811_s10  ;;  %s15035_s25 = int_to_ptr.hbm [resolvable:$true] %s15034_s25 }
  0x9d   : > { %s15036_s7 = scalar_lea.hbm %s15035_s25, 768  ;;  %s15041_s23 = scalar_lea.hbm %s15371_s17, 768 }
  0x9e   : > { %p15037_p3 = scmp.ne.s32.totalorder %s15035_s25, %s15036_s7  ;;  %p15042_p8 = scmp.lt.s32.totalorder %s15035_s25, %s15371_s17 }
  0x9f   : > { %p15043_p11 = scmp.lt.s32.totalorder %s15041_s23, %s15036_s7 }
  0xa0   : > { %p15039_p4 = pnand %p15037_p3, %p15585_p0 }
  0xa1   : > { %p15044_p13 = por %p15043_p11, %p15042_p8 }
  0xa2   : > { %p15040_p7 = pneg %p15039_p4 }
  0xa4   : > { %p15045_p1 = pnand %p15044_p13, %p15040_p7 }
  0xa6   : > { %15048 = shalt.err (!%p15045_p1)
}
  0xa7   : > { %14748 = dma.hbm_to_vmem [thread:$0]  (!%p15577_p12), %s15641_s11, 12288, %s812_s10, [#allocation5], %s15335_s18, %s15335_s18, %s15336_s22  }
  0xa8   : > { %s883_s2 = sshll.u32 %s15421_s6, 4  ;;  %s15342_s1 = smov [#allocation9]   ;;  %s15669_s2 = int_to_ptr.hbm [resolvable:$true] %s883_s2 }
  0xa9   : > { %s845_s27 = sshll.u32 %s15342_s1, 4  ;;  %s15064_s25 = sshra.s32 %s15655_s16, 4  ;;  %s846_s27 = int_to_ptr.vmem [resolvable:$true] %s845_s27  ;;  %s15065_s25 = int_to_ptr.hbm [resolvable:$true] %s15064_s25 }
  0xaa   : > { %s15066_s7 = scalar_lea.hbm %s15065_s25, 768  ;;  %s15071_s23 = scalar_lea.hbm %s16934_s3, 768 }
  0xab   : > { %p15067_p2 = scmp.ne.s32.totalorder %s15065_s25, %s15066_s7  ;;  %p15072_p7 = scmp.lt.s32.totalorder %s15065_s25, %s16934_s3 }
  0xac   : > { %p15073_p8 = scmp.lt.s32.totalorder %s15071_s23, %s15066_s7 }
  0xad   : > { %p15069_p3 = pnand %p15067_p2, %p15585_p0 }
  0xae   : > { %p15074_p11 = por %p15073_p8, %p15072_p7 }
  0xaf   : > { %p15070_p4 = pneg %p15069_p3 }
  0xb1   : > { %p15075_p13 = pnand %p15074_p11, %p15070_p4 }
  0xb3   : > { %15078 = shalt.err (!%p15075_p13)
}
  0xb4   : > { %14754 = dma.hbm_to_vmem [thread:$0]  (!%p15577_p12), %s15655_s16, 12288, %s846_s27, [#allocation8], %s15335_s18, %s15335_s18, %s15336_s22  }
  0xb5   : > { %s15343_s11 = smov [#allocation12]   ;;  %s917_s1 = sshll.u32 %s16933_s4, 4  ;;  %s15683_s1 = int_to_ptr.hbm [resolvable:$true] %s917_s1 }
  0xb6   : > { %s885_s10 = sshll.u32 %s15343_s11, 4  ;;  %s15094_s25 = sshra.s32 %s15669_s2, 4  ;;  %s886_s10 = int_to_ptr.vmem [resolvable:$true] %s885_s10  ;;  %s15095_s25 = int_to_ptr.hbm [resolvable:$true] %s15094_s25 }
  0xb7   : > { %s15096_s7 = scalar_lea.hbm %s15095_s25, 256  ;;  %s15101_s23 = scalar_lea.hbm %s15421_s6, 256 }
  0xb8   : > { %p15097_p1 = scmp.ne.s32.totalorder %s15095_s25, %s15096_s7  ;;  %p15102_p4 = scmp.lt.s32.totalorder %s15095_s25, %s15421_s6 }
  0xb9   : > { %p15103_p7 = scmp.lt.s32.totalorder %s15101_s23, %s15096_s7 }
  0xba   : > { %p15099_p2 = pnand %p15097_p1, %p15585_p0 }
  0xbb   : > { %p15104_p8 = por %p15103_p7, %p15102_p4 }
  0xbc   : > { %p15100_p3 = pneg %p15099_p2 }
  0xbe   : > { %p15105_p11 = pnand %p15104_p8, %p15100_p3 }
  0xc0   : > { %15108 = shalt.err (!%p15105_p11)
}
  0xc1   : > { %14760 = dma.hbm_to_vmem [thread:$0]  (!%p15577_p12), %s15669_s2, 4096, %s886_s10, [#allocation11], %s15335_s18, %s15335_s18, %s15336_s22  }
  0xc2   : > { %s957_s16 = sshll.u32 %s15471_s19, 4  ;;  %s15344_s27 = smov [#allocation15]   ;;  %s15697_s16 = int_to_ptr.hbm [resolvable:$true] %s957_s16 }
  0xc3   : > { %s919_s11 = sshll.u32 %s15344_s27, 4  ;;  %s15124_s25 = sshra.s32 %s15683_s1, 4  ;;  %s920_s11 = int_to_ptr.vmem [resolvable:$true] %s919_s11  ;;  %s15125_s25 = int_to_ptr.hbm [resolvable:$true] %s15124_s25 }
  0xc4   : > { %s15126_s7 = scalar_lea.hbm %s15125_s25, 768  ;;  %s15131_s23 = scalar_lea.hbm %s16933_s4, 768 }
  0xc5   : > { %p15127_p13 = scmp.ne.s32.totalorder %s15125_s25, %s15126_s7  ;;  %p15132_p3 = scmp.lt.s32.totalorder %s15125_s25, %s16933_s4 }
  0xc6   : > { %p15133_p4 = scmp.lt.s32.totalorder %s15131_s23, %s15126_s7 }
  0xc7   : > { %p15129_p1 = pnand %p15127_p13, %p15585_p0 }
  0xc8   : > { %p15134_p7 = por %p15133_p4, %p15132_p3 }
  0xc9   : > { %p15130_p2 = pneg %p15129_p1 }
  0xcb   : > { %p15135_p8 = pnand %p15134_p7, %p15130_p2 }
  0xcd   : > { %15138 = shalt.err (!%p15135_p8)
}
  0xce   : > { %14766 = dma.hbm_to_vmem [thread:$0]  (!%p15577_p12), %s15683_s1, 12288, %s920_s11, [#allocation14], %s15335_s18, %s15335_s18, %s15336_s22  }
  0xcf   : > { %s15345_s2 = smov [#allocation18]   ;;  %s1003_s27 = sshll.u32 %s15511_s24, 4  ;;  %s1004_s27 = int_to_ptr.hbm [resolvable:$true] %s1003_s27 }
  0xd0   : > { %s959_s10 = sshll.u32 %s15345_s2, 4  ;;  %s15154_s25 = sshra.s32 %s15697_s16, 4  ;;  %s960_s10 = int_to_ptr.vmem [resolvable:$true] %s959_s10  ;;  %s15155_s25 = int_to_ptr.hbm [resolvable:$true] %s15154_s25 }
  0xd1   : > { %s15156_s7 = scalar_lea.hbm %s15155_s25, 768  ;;  %s15161_s23 = scalar_lea.hbm %s15471_s19, 768 }
  0xd2   : > { %p15157_p11 = scmp.ne.s32.totalorder %s15155_s25, %s15156_s7  ;;  %p15162_p2 = scmp.lt.s32.totalorder %s15155_s25, %s15471_s19 }
  0xd3   : > { %p15163_p3 = scmp.lt.s32.totalorder %s15161_s23, %s15156_s7 }
  0xd4   : > { %p15159_p13 = pnand %p15157_p11, %p15585_p0 }
  0xd5   : > { %p15164_p4 = por %p15163_p3, %p15162_p2 }
  0xd6   : > { %p15160_p1 = pneg %p15159_p13 }
  0xd8   : > { %p15165_p7 = pnand %p15164_p4, %p15160_p1 }
  0xda   : > { %15168 = shalt.err (!%p15165_p7)
}
  0xdb   : > { %14772 = dma.hbm_to_vmem [thread:$0]  (!%p15577_p12), %s15697_s16, 12288, %s960_s10, [#allocation17], %s15335_s18, %s15335_s18, %s15336_s22  }
  0xdc   : > { %s15346_s1 = smov [#allocation21]   ;;  %s15184_s2 = sshra.s32 %s1004_s27, 4  ;;  %s15185_s2 = int_to_ptr.hbm [resolvable:$true] %s15184_s2 }
  0xdd   : > { %s1005_s11 = sshll.u32 %s15346_s1, 4  ;;  %s15186_s25 = scalar_lea.hbm %s15185_s2, 256  ;;  %s1006_s11 = int_to_ptr.vmem [resolvable:$true] %s1005_s11 }
  0xde   : > { %p15187_p8 = scmp.ne.s32.totalorder %s15185_s2, %s15186_s25  ;;  %s15191_s7 = scalar_lea.hbm %s15511_s24, 256 }
  0xdf   : > { %p15192_p1 = scmp.lt.s32.totalorder %s15185_s2, %s15511_s24  ;;  %p15193_p2 = scmp.lt.s32.totalorder %s15191_s7, %s15186_s25 }
  0xe0   : > { %p15189_p11 = pnand %p15187_p8, %p15585_p0 }
  0xe1   : > { %p15194_p3 = por %p15193_p2, %p15192_p1 }
  0xe2   : > { %p15190_p13 = pneg %p15189_p11 }
  0xe4   : > { %p15195_p4 = pnand %p15194_p3, %p15190_p13 }
  0xe6   : > { %15198 = shalt.err (!%p15195_p4)
}
  0xe7   : > { %14778 = dma.hbm_to_vmem [thread:$0]  (!%p15577_p12), %s1004_s27, 4096, %s1006_s11, [#allocation20], %s15335_s18, %s15335_s18, %s15336_s22  }
  0xe8   : > { %1029 = sbr.rel (%p15567_p10) target bundleno = 3039 (0xbdf), region = 148 }
  0xed   : > { %15259 = dma.done.wait (%p14783_p9), [#allocation5], 12288  }
  0xee   : > { %15261 = vsyncadd (%p14783_p9), [#allocation5], 4294955008 }
  0xef   : > { %15263 = dma.done.wait (%p14783_p9), [#allocation8], 24576  }
  0xf0   : > { %15265 = vsyncadd (%p14783_p9), [#allocation8], 4294942720 }
  0xf1   : > { %15267 = dma.done.wait (%p14783_p9), [#allocation11], 16384  }
  0xf2   : > { %15269 = vsyncadd (%p14783_p9), [#allocation11], 4294950912 }
  0xf3   : > { %15271 = dma.done.wait (%p14783_p9), [#allocation14], 24576  }
  0xf4   : > { %15273 = vsyncadd (%p14783_p9), [#allocation14], 4294942720 }
  0xf5   : > { %15275 = dma.done.wait (%p14783_p9), [#allocation17], 16384  }
  0xf6   : > { %15277 = vsyncadd (%p14783_p9), [#allocation17], 4294950912 }
  0xf7   : > { %15279 = dma.done.wait (%p14783_p9), [#allocation20], 8192  }
  0xf8   : > { %15281 = vsyncadd (%p14783_p9), [#allocation20], 4294959104  ;;  %v10130_v0 = vld [vmem:[%s15361_s9 + $0x70] sm:$0xf]  ;;  %v13801_v1 = vld [vmem:[%s15361_s9 + $0x74] sm:$0xf0] }
  0xf9   : > { %v10194_v2 = vld [vmem:[%s15361_s9 + $0xf0] sm:$0xf]  ;;  %v10131_v3 = vor.u32 %v13801_v1, %v10130_v0  ;;  %v13817_v4 = vld [vmem:[%s15361_s9 + $0xf4] sm:$0xf0]  ;;  %v10122_v9 = vld [vmem:[%s15361_s9 + $0x60] sm:$0xf] }
  0xfa   : > { %v10258_v5 = vld [vmem:[%s15361_s9 + $0x170] sm:$0xf]  ;;  %v13833_v6 = vld [vmem:[%s15361_s9 + $0x174] sm:$0xf0]  ;;  %v10195_v7 = vor.u32 %v13817_v4, %v10194_v2  ;;  %v13799_v10 = vld [vmem:[%s15361_s9 + $0x64] sm:$0xf0] }
  0xfb   : > { %v10259_v8 = vor.u32 %v13833_v6, %v10258_v5  ;;  %v10186_v11 = vld [vmem:[%s15361_s9 + $0xe0] sm:$0xf]  ;;  %1478 = vmatpush.bf16.msra.mxu0 %v10131_v3  ;;  %v10123_v12 = vor.u32 %v13799_v10, %v10122_v9  ;;  %v13815_v13 = vld [vmem:[%s15361_s9 + $0xe4] sm:$0xf0]  ;;  %v10114_v18 = vld [vmem:[%s15361_s9 + $0x50] sm:$0xf] }
  0xfc   : > { %v10250_v14 = vld [vmem:[%s15361_s9 + $0x160] sm:$0xf]  ;;  %v13831_v15 = vld [vmem:[%s15361_s9 + $0x164] sm:$0xf0]  ;;  %1497 = vmatpush.bf16.msra.mxu1 %v10195_v7  ;;  %v10187_v16 = vor.u32 %v13815_v13, %v10186_v11  ;;  %v13797_v19 = vld [vmem:[%s15361_s9 + $0x54] sm:$0xf0] }
  0xfd   : > { %1516 = vmatpush.bf16.msra.mxu2 %v10259_v8  ;;  %v10251_v17 = vor.u32 %v13831_v15, %v10250_v14  ;;  %v10178_v20 = vld [vmem:[%s15361_s9 + $0xd0] sm:$0xf]  ;;  %v13813_v21 = vld [vmem:[%s15361_s9 + $0xd4] sm:$0xf0]  ;;  %v10115_v24 = vor.u32 %v13797_v19, %v10114_v18  ;;  %v10106_v27 = vld [vmem:[%s15361_s9 + $0x40] sm:$0xf] }
  0xfe   : > { %v10242_v22 = vld [vmem:[%s15361_s9 + $0x150] sm:$0xf]  ;;  %v13829_v23 = vld [vmem:[%s15361_s9 + $0x154] sm:$0xf0]  ;;  %v10179_v25 = vor.u32 %v13813_v21, %v10178_v20  ;;  %v13795_v28 = vld [vmem:[%s15361_s9 + $0x44] sm:$0xf0] }
  0xff   : > { %1479 = vmatpush.bf16.msra.mxu0 %v10123_v12  ;;  %v10243_v26 = vor.u32 %v13829_v23, %v10242_v22  ;;  %v10170_v29 = vld [vmem:[%s15361_s9 + $0xc0] sm:$0xf]  ;;  %v13811_v30 = vld [vmem:[%s15361_s9 + $0xc4] sm:$0xf0]  ;;  %v13800_v33 = vld [vmem:[%s15361_s9 + $0x74] sm:$0xf]  ;;  %v10107_v35 = vor.u32 %v13795_v28, %v10106_v27 }
 0x100   : > { %1498 = vmatpush.bf16.msra.mxu1 %v10187_v16  ;;  %v10234_v31 = vld [vmem:[%s15361_s9 + $0x140] sm:$0xf]  ;;  %v13827_v32 = vld [vmem:[%s15361_s9 + $0x144] sm:$0xf0]  ;;  %v10132_v34 = vld [vmem:[%s15361_s9 + $0x78] sm:$0xf0]  ;;  %v10171_v39 = vor.u32 %v13811_v30, %v10170_v29 }
 0x101   : > { %1517 = vmatpush.bf16.msra.mxu2 %v10251_v17  ;;  %p1161_p9 = scmp.lt.s32.totalorder %s15539_s0, 1  ;;  %v10098_v36 = vld [vmem:[%s15361_s9 + $0x30] sm:$0xf]  ;;  %v13793_v37 = vld [vmem:[%s15361_s9 + $0x34] sm:$0xf0]  ;;  %v10135_v38 = vor.u32 %v13800_v33, %v10132_v34  ;;  %v10235_v40 = vor.u32 %v13827_v32, %v10234_v31  ;;  %s16949_s5 = sld [smem:[#allocation30_spill]] }
 0x102   : > { %v10162_v41 = vld [vmem:[%s15361_s9 + $0xb0] sm:$0xf]  ;;  %v13809_v42 = vld [vmem:[%s15361_s9 + $0xb4] sm:$0xf0]  ;;  %v13798_v43 = vld [vmem:[%s15361_s9 + $0x64] sm:$0xf]  ;;  %v10099_v48 = vor.u32 %v13793_v37, %v10098_v36 }
 0x103   : > { %1480 = vmatpush.bf16.msra.mxu0 %v10115_v24  ;;  %v10226_v44 = vld [vmem:[%s15361_s9 + $0x130] sm:$0xf]  ;;  %v13825_v45 = vld [vmem:[%s15361_s9 + $0x134] sm:$0xf0]  ;;  %1535 = vmatpush.bf16.msra.mxu3 %v10135_v38  ;;  %v10124_v46 = vld [vmem:[%s15361_s9 + $0x68] sm:$0xf0]  ;;  %v10163_v51 = vor.u32 %v13809_v42, %v10162_v41 }
 0x104   : > { %1499 = vmatpush.bf16.msra.mxu1 %v10179_v25  ;;  %v10127_v47 = vor.u32 %v13798_v43, %v10124_v46  ;;  %s15795_s28 = scalar_select %p1161_p9, %s15539_s0, 1  ;;  %v13796_v49 = vld [vmem:[%s15361_s9 + $0x54] sm:$0xf]  ;;  %v10116_v50 = vld [vmem:[%s15361_s9 + $0x58] sm:$0xf0]  ;;  %v10227_v52 = vor.u32 %v13825_v45, %v10226_v44  ;;  %vm1617_vm1 = vcmask 1040384  }
 0x105   : > { %1518 = vmatpush.bf16.msra.mxu2 %v10243_v26  ;;  %v10090_v53 = vld [vmem:[%s15361_s9 + $0x20] sm:$0xf]  ;;  %v13791_v54 = vld [vmem:[%s15361_s9 + $0x24] sm:$0xf0]  ;;  %v10119_v59 = vor.u32 %v13796_v49, %v10116_v50  ;;  %v13794_v60 = vld [vmem:[%s15361_s9 + $0x44] sm:$0xf] }
 0x106   : > { %v10154_v55 = vld [vmem:[%s15361_s9 + $0xa0] sm:$0xf]  ;;  %v13807_v56 = vld [vmem:[%s15361_s9 + $0xa4] sm:$0xf0]  ;;  %v10108_v61 = vld [vmem:[%s15361_s9 + $0x48] sm:$0xf0]  ;;  %v10091_v62 = vor.u32 %v13791_v54, %v10090_v53 }
 0x107   : > { %1481 = vmatpush.bf16.msra.mxu0 %v10107_v35  ;;  %v10218_v57 = vld [vmem:[%s15361_s9 + $0x120] sm:$0xf]  ;;  %v13823_v58 = vld [vmem:[%s15361_s9 + $0x124] sm:$0xf0]  ;;  %1536 = vmatpush.bf16.msra.mxu3 %v10127_v47  ;;  %s14698_s22 = smul.u32 40, %s15795_s28  ;;  %v10155_v63 = vor.u32 %v13807_v56, %v10154_v55  ;;  %v10111_v7 = vor.u32 %v13794_v60, %v10108_v61  ;;  %vm1678_vm2 = vcmask 1046528  }
 0x108   : > { %1500 = vmatpush.bf16.msra.mxu1 %v10171_v39  ;;  %v10219_v0 = vor.u32 %v13823_v58, %v10218_v57  ;;  %v10082_v1 = vld [vmem:[%s15361_s9 + $0x10] sm:$0xf]  ;;  %v13789_v2 = vld [vmem:[%s15361_s9 + $0x14] sm:$0xf0]  ;;  %v13792_v8 = vld [vmem:[%s15361_s9 + $0x34] sm:$0xf] }
 0x109   : > { %1519 = vmatpush.bf16.msra.mxu2 %v10235_v40  ;;  %v10146_v3 = vld [vmem:[%s15361_s9 + $0x90] sm:$0xf]  ;;  %v13805_v4 = vld [vmem:[%s15361_s9 + $0x94] sm:$0xf0]  ;;  %s15815_s26 = scalar_lea.vmem %s16949_s5, %s14698_s22  ;;  %v10100_v9 = vld [vmem:[%s15361_s9 + $0x38] sm:$0xf0]  ;;  %v10083_v10 = vor.u32 %v13789_v2, %v10082_v1 }
 0x10a   : > { %v10210_v5 = vld [vmem:[%s15361_s9 + $0x110] sm:$0xf]  ;;  %v13821_v6 = vld [vmem:[%s15361_s9 + $0x114] sm:$0xf0]  ;;  %v10074_v11 = vld [vmem:[%s15361_s9] sm:$0xf]  ;;  %v10147_v14 = vor.u32 %v13805_v4, %v10146_v3  ;;  %v10103_v21 = vor.u32 %v13792_v8, %v10100_v9 }
 0x10b   : > { %1482 = vmatpush.bf16.msra.mxu0 %v10099_v48  ;;  %1537 = vmatpush.bf16.msra.mxu3 %v10119_v59  ;;  %v13787_v12 = vld [vmem:[%s15361_s9 + $0x4] sm:$0xf0]  ;;  %v10138_v13 = vld [vmem:[%s15361_s9 + $0x80] sm:$0xf]  ;;  %v10211_v15 = vor.u32 %v13821_v6, %v10210_v5  ;;  %v13816_v22 = vld [vmem:[%s15361_s9 + $0xf4] sm:$0xf] }
 0x10c   : > { %1501 = vmatpush.bf16.msra.mxu1 %v10163_v51  ;;  %v13803_v16 = vld [vmem:[%s15361_s9 + $0x84] sm:$0xf0]  ;;  %v10202_v17 = vld [vmem:[%s15361_s9 + $0x100] sm:$0xf]  ;;  %v10196_v23 = vld [vmem:[%s15361_s9 + $0xf8] sm:$0xf0]  ;;  %v10075_v26 = vor.u32 %v13787_v12, %v10074_v11 }
 0x10d   : > { %1520 = vmatpush.bf16.msra.mxu2 %v10227_v52  ;;  %v13819_v18 = vld [vmem:[%s15361_s9 + $0x104] sm:$0xf0]  ;;  %v1166_v19 = vld [vmem:[%s15815_s26] sm:$0xff]  ;;  %v13832_v24 = vld [vmem:[%s15361_s9 + $0x174] sm:$0xf]  ;;  %v10139_v30 = vor.u32 %v13803_v16, %v10138_v13  ;;  %v10199_v35 = vor.u32 %v13816_v22, %v10196_v23  ;;  %vm1709_vm3 = vcmask 1045504  }
 0x10e   : > { %v1167_v20 = vld [vmem:[%s15815_s26 + $0x8] sm:$0xff]  ;;  %v10260_v25 = vld [vmem:[%s15361_s9 + $0x178] sm:$0xf0]  ;;  %v13790_v28 = vld [vmem:[%s15361_s9 + $0x24] sm:$0xf]  ;;  %v10203_v31 = vor.u32 %v13819_v18, %v10202_v17  ;;  %vm3644_vm4 = vcmask 1041408  }
 0x10f   : > { %1483 = vmatpush.bf16.msra.mxu0 %v10091_v62  ;;  %1538 = vmatpush.bf16.msra.mxu3 %v10111_v7  ;;  %v1170_v27 = vld [vmem:[%s15815_s26 + $0x1] sm:$0xff]  ;;  %v10092_v29 = vld [vmem:[%s15361_s9 + $0x28] sm:$0xf0]  ;;  %v10263_v36 = vor.u32 %v13832_v24, %v10260_v25  ;;  %v1178_v38 = vpack.c.bf16 %v1167_v20, %v1166_v19  ;;  %v13788_v45 = vld [vmem:[%s15361_s9 + $0x14] sm:$0xf]  ;;  %s16952_s15 = sld [smem:[#allocation35_spill]] }
 0x110   : > { %1502 = vmatpush.bf16.msra.mxu1 %v10155_v63  ;;  %v1171_v32 = vld [vmem:[%s15815_s26 + $0x9] sm:$0xff]  ;;  %v13814_v37 = vld [vmem:[%s15361_s9 + $0xe4] sm:$0xf]  ;;  %v10095_v39 = vor.u32 %v13790_v28, %v10092_v29  ;;  %v10084_v46 = vld [vmem:[%s15361_s9 + $0x18] sm:$0xf0]  ;;  %vm3637_vm5 = vcmask 277504  }
 0x111   : > { %1521 = vmatpush.bf16.msra.mxu2 %v10219_v0  ;;  %v1174_v33 = vld [vmem:[%s15815_s26 + $0x2] sm:$0xff]  ;;  %v1175_v34 = vld [vmem:[%s15815_s26 + $0xa] sm:$0xff]  ;;  %v15841_v43 = vpack.c.bf16 %v1171_v32, %v1170_v27  ;;  %v13812_v49 = vld [vmem:[%s15361_s9 + $0xd4] sm:$0xf]  ;;  %v10087_v50 = vor.u32 %v13788_v45, %v10084_v46  ;;  %s16953_s18 = sld [smem:[#allocation33_spill]]  ;;  %vm5768_vm6 = vcmask 146432  }
 0x112   : > { %v10188_v40 = vld [vmem:[%s15361_s9 + $0xe8] sm:$0xf0]  ;;  %v13830_v41 = vld [vmem:[%s15361_s9 + $0x164] sm:$0xf]  ;;  %v15843_v44 = vpack.c.bf16 %v1175_v34, %v1174_v33  ;;  %v10180_v51 = vld [vmem:[%s15361_s9 + $0xd8] sm:$0xf0] }
 0x113   : > { %1484 = vmatpush.bf16.msra.mxu0 %v10083_v10  ;;  %1539 = vmatpush.bf16.msra.mxu3 %v10103_v21  ;;  %v10252_v42 = vld [vmem:[%s15361_s9 + $0x168] sm:$0xf0]  ;;  %v10191_v47 = vor.u32 %v13814_v37, %v10188_v40  ;;  %v13828_v52 = vld [vmem:[%s15361_s9 + $0x154] sm:$0xf]  ;;  %v10244_v53 = vld [vmem:[%s15361_s9 + $0x158] sm:$0xf0]  ;;  %v10183_v56 = vor.u32 %v13812_v49, %v10180_v51 }
 0x114   : > { %1503 = vmatpush.bf16.msra.mxu1 %v10147_v14  ;;  %v10255_v48 = vor.u32 %v13830_v41, %v10252_v42  ;;  %v13786_v54 = vld [vmem:[%s15361_s9 + $0x4] sm:$0xf]  ;;  %v10076_v55 = vld [vmem:[%s15361_s9 + $0x8] sm:$0xf0]  ;;  %v10247_v57 = vor.u32 %v13828_v52, %v10244_v53  ;;  %v13808_v1 = vld [vmem:[%s15361_s9 + $0xb4] sm:$0xf] }
 0x115   : > { %1522 = vmatpush.bf16.msra.mxu2 %v10211_v15  ;;  %v13810_v58 = vld [vmem:[%s15361_s9 + $0xc4] sm:$0xf]  ;;  %v10079_v59 = vor.u32 %v13786_v54, %v10076_v55  ;;  %v10172_v60 = vld [vmem:[%s15361_s9 + $0xc8] sm:$0xf0]  ;;  %v10164_v2 = vld [vmem:[%s15361_s9 + $0xb8] sm:$0xf0] }
 0x116   : > { %v13826_v61 = vld [vmem:[%s15361_s9 + $0x144] sm:$0xf]  ;;  %v10236_v62 = vld [vmem:[%s15361_s9 + $0x148] sm:$0xf0]  ;;  %v10175_v63 = vor.u32 %v13810_v58, %v10172_v60  ;;  %v13824_v3 = vld [vmem:[%s15361_s9 + $0x134] sm:$0xf]  ;;  %v10167_v11 = vor.u32 %v13808_v1, %v10164_v2  ;;  %v1600_v60 = vlaneseq }
 0x117   : > { %1485 = vmatpush.bf16.msra.mxu0 %v10075_v26  ;;  %1540 = vmatpush.bf16.msra.mxu3 %v10095_v39  ;;  %v10239_v0 = vor.u32 %v13826_v61, %v10236_v62  ;;  %v10228_v4 = vld [vmem:[%s15361_s9 + $0x138] sm:$0xf0]  ;;  %v1168_v5 = vld [vmem:[%s15815_s26 + $0x10] sm:$0xff]  ;;  %v13806_v13 = vld [vmem:[%s15361_s9 + $0xa4] sm:$0xf]  ;;  %s16954_s16 = sld [smem:[#allocation36_spill]] }
 0x118   : > { %1504 = vmatpush.bf16.msra.mxu1 %v10139_v30  ;;  %v1169_v6 = vld [vmem:[%s15815_s26 + $0x18] sm:$0xff]  ;;  %v10231_v12 = vor.u32 %v13824_v3, %v10228_v4  ;;  %v10156_v15 = vld [vmem:[%s15361_s9 + $0xa8] sm:$0xf0]  ;;  %v13822_v16 = vld [vmem:[%s15361_s9 + $0x124] sm:$0xf]  ;;  %vm15883_vm0 = vcmp.lt.s32.totalorder %v1600_v60, 256 }
 0x119   : > { %1523 = vmatpush.bf16.msra.mxu2 %v10203_v31  ;;  %v1172_v7 = vld [vmem:[%s15815_s26 + $0x11] sm:$0xff]  ;;  %v1173_v8 = vld [vmem:[%s15815_s26 + $0x19] sm:$0xff]  ;;  %v1181_v14 = vpack.c.bf16 %v1169_v6, %v1168_v5  ;;  %v10220_v17 = vld [vmem:[%s15361_s9 + $0x128] sm:$0xf0]  ;;  %v10159_v20 = vor.u32 %v13806_v13, %v10156_v15  ;;  %v15347_v5 = vmov 0.0   ;;  %s16955_s10 = sld [smem:[#allocation34_spill]] }
 0x11a   : > { %1486 = vmatmul.bf16.vlgmr.msra.gmra.mxu0 %v1178_v38  ;;  %v1176_v9 = vld [vmem:[%s15815_s26 + $0x12] sm:$0xff]  ;;  %v1177_v10 = vld [vmem:[%s15815_s26 + $0x1a] sm:$0xff]  ;;  %v1182_v18 = vpack.c.bf16 %v1173_v8, %v1172_v7  ;;  %v10223_v21 = vor.u32 %v13822_v16, %v10220_v17  ;;  %v13802_v28 = vld [vmem:[%s15361_s9 + $0x84] sm:$0xf]  ;;  %s16956_s27 = sld [smem:[#allocation37_spill]]  ;;  %vm7779_vm7 = vcmask 80896  }
 0x11b   : > { %1554 = vmatpush.bf16.msrb.mxu0 %v10199_v35  ;;  %1505 = vmatmul.bf16.vlgmr.msra.gmra.mxu1 %v15841_v43  ;;  %v1183_v19 = vpack.c.bf16 %v1177_v10, %v1176_v9  ;;  %v13804_v22 = vld [vmem:[%s15361_s9 + $0x94] sm:$0xf]  ;;  %v10148_v23 = vld [vmem:[%s15361_s9 + $0x98] sm:$0xf0]  ;;  %v10140_v29 = vld [vmem:[%s15361_s9 + $0x88] sm:$0xf0] }
 0x11c   : > { %1573 = vmatpush.bf16.msrb.mxu1 %v10263_v36  ;;  %1524 = vmatmul.bf16.vlgmr.msra.gmra.mxu2 %v15843_v44  ;;  %v13820_v24 = vld [vmem:[%s15361_s9 + $0x114] sm:$0xf]  ;;  %v10212_v25 = vld [vmem:[%s15361_s9 + $0x118] sm:$0xf0]  ;;  %v10151_v26 = vor.u32 %v13804_v22, %v10148_v23  ;;  %v13818_v30 = vld [vmem:[%s15361_s9 + $0x104] sm:$0xf]  ;;  %v10143_v32 = vor.u32 %v13802_v28, %v10140_v29 }
 0x11d   : > { %1541 = vmatpush.bf16.msra.mxu3 %v10087_v50  ;;  %v10215_v27 = vor.u32 %v13820_v24, %v10212_v25  ;;  %v10204_v31 = vld [vmem:[%s15361_s9 + $0x108] sm:$0xf0]  ;;  %v10322_v34 = vld [vmem:[#allocation4 + $0x70] sm:$0xf]  ;;  %v13849_v35 = vld [vmem:[#allocation4 + $0x74] sm:$0xf0] }
 0x11e   : > { %v10207_v33 = vor.u32 %v13818_v30, %v10204_v31  ;;  %v10323_v36 = vor.u32 %v13849_v35, %v10322_v34  ;;  %v10314_v37 = vld [vmem:[#allocation4 + $0x60] sm:$0xf]  ;;  %v10306_v40 = vld [vmem:[#allocation4 + $0x50] sm:$0xf]  ;;  %v13845_v41 = vld [vmem:[#allocation4 + $0x54] sm:$0xf0] }
 0x11f   : > { %1555 = vmatpush.bf16.msrb.mxu0 %v10191_v47  ;;  %v10307_v42 = vor.u32 %v13845_v41, %v10306_v40  ;;  %v10450_v45 = vld [vmem:[#allocation4 + $0x170] sm:$0xf]  ;;  %v13881_v46 = vld [vmem:[#allocation4 + $0x174] sm:$0xf0]  ;;  %v10442_v49 = vld [vmem:[#allocation4 + $0x160] sm:$0xf] }
 0x120   : > { %1574 = vmatpush.bf16.msrb.mxu1 %v10255_v48  ;;  %2330 = vmatpush.bf16.msrb.mxu2 %v10323_v36  ;;  %v10451_v47 = vor.u32 %v13881_v46, %v10450_v45  ;;  %v13843_v48 = vld [vmem:[#allocation4 + $0x44] sm:$0xf0]  ;;  %v10290_v52 = vld [vmem:[#allocation4 + $0x30] sm:$0xf]  ;;  %v13841_v53 = vld [vmem:[#allocation4 + $0x34] sm:$0xf0] }
 0x121   : > { %1542 = vmatpush.bf16.msra.mxu3 %v10079_v59  ;;  %v13879_v50 = vld [vmem:[#allocation4 + $0x164] sm:$0xf0]  ;;  %v10291_v54 = vor.u32 %v13841_v53, %v10290_v52  ;;  %v10434_v55 = vld [vmem:[#allocation4 + $0x150] sm:$0xf]  ;;  %v10282_v58 = vld [vmem:[#allocation4 + $0x20] sm:$0xf] }
 0x122   : > { %v10443_v51 = vor.u32 %v13879_v50, %v10442_v49  ;;  %v13839_v59 = vld [vmem:[#allocation4 + $0x24] sm:$0xf0]  ;;  %v10274_v2 = vld [vmem:[#allocation4 + $0x10] sm:$0xf]  ;;  %v13837_v3 = vld [vmem:[#allocation4 + $0x14] sm:$0xf0] }
 0x123   : > { %1556 = vmatpush.bf16.msrb.mxu0 %v10183_v56  ;;  %v13877_v56 = vld [vmem:[#allocation4 + $0x154] sm:$0xf0]  ;;  %v10283_v61 = vor.u32 %v13839_v59, %v10282_v58  ;;  %v10275_v4 = vor.u32 %v13837_v3, %v10274_v2  ;;  %1604 = vst.msk [vmem:[#allocation2] ss:$8 sm:$0x3] %vm15883_vm0, %v15347_v5  ;;  %s16957_s23 = sld [smem:[#allocation41_spill]] }
 0x124   : > { %1575 = vmatpush.bf16.msrb.mxu1 %v10247_v57  ;;  %1543 = vmatmul.bf16.vlgmr.msra.gmra.mxu3 %v1178_v38  ;;  %v13847_v38 = vld [vmem:[#allocation4 + $0x64] sm:$0xf0]  ;;  %v10435_v57 = vor.u32 %v13877_v56, %v10434_v55  ;;  %1607 = vst.msk [vmem:[#allocation2 + $0x41] ss:$8 sm:$0x3] %vm15883_vm0, %v15347_v5  ;;  %s16958_s1 = sld [smem:[#allocation38_spill]] }
 0x125   : > { %v10315_v39 = vor.u32 %v13847_v38, %v10314_v37  ;;  %v10418_v6 = vld [vmem:[#allocation4 + $0x130] sm:$0xf]  ;;  %v13873_v7 = vld [vmem:[#allocation4 + $0x134] sm:$0xf0]  ;;  %v10266_v9 = vld [vmem:[#allocation4] sm:$0xf] }
 0x126   : > { %v10419_v8 = vor.u32 %v13873_v7, %v10418_v6  ;;  %v13835_v10 = vld [vmem:[#allocation4 + $0x4] sm:$0xf0]  ;;  %v13865_v13 = vld [vmem:[#allocation4 + $0xf4] sm:$0xf0]  ;;  %v10410_v15 = vld [vmem:[#allocation4 + $0x120] sm:$0xf] }
 0x127   : > { %1557 = vmatpush.bf16.msrb.mxu0 %v10175_v63  ;;  %2331 = vmatpush.bf16.msrb.mxu2 %v10315_v39  ;;  %v10426_v63 = vld [vmem:[#allocation4 + $0x140] sm:$0xf]  ;;  %2566 = vst.msk [vmem:[#allocation3] ss:$8 sm:$0x3] %vm15883_vm0, %v15347_v5  ;;  %s16959_s11 = sld [smem:[#allocation42_spill]] }
 0x128   : > { %1576 = vmatpush.bf16.msrb.mxu1 %v10239_v0  ;;  %v13875_v0 = vld [vmem:[#allocation4 + $0x144] sm:$0xf0]  ;;  %2569 = vst.msk [vmem:[#allocation3 + $0x41] ss:$8 sm:$0x3] %vm15883_vm0, %v15347_v5  ;;  %s16960_s2 = sld [smem:[#allocation40_spill]] }
 0x129   : > { %v10427_v1 = vor.u32 %v13875_v0, %v10426_v63  ;;  %v13871_v16 = vld [vmem:[#allocation4 + $0x124] sm:$0xf0]  ;;  %v13913_v22 = vld [vmem:[#allocation4 + $0x274] sm:$0xf0]  ;;  %v15900_v24 = vld [vmem:[%s15366_s13] sm:$0x3] }
 0x12a   : > { %1491 = vmatmul.bf16.gmra.mxu0 %v1181_v14  ;;  %v10411_v17 = vor.u32 %v13871_v16, %v10410_v15  ;;  %v10402_v25 = vld [vmem:[#allocation4 + $0x110] sm:$0xf]  ;;  %v13861_v29 = vld [vmem:[#allocation4 + $0xd4] sm:$0xf0]  ;;  %v10570_v30 = vld [vmem:[#allocation4 + $0x260] sm:$0xf] }
 0x12b   : > { %1558 = vmatpush.bf16.msrb.mxu0 %v10167_v11  ;;  %1510 = vmatmul.bf16.gmra.mxu1 %v1182_v18  ;;  %v10386_v11 = vld [vmem:[#allocation4 + $0xf0] sm:$0xf]  ;;  %v15903_v34 = vperm.slane %v15900_v24, 0  ;;  %v10394_v35 = vld [vmem:[#allocation4 + $0x100] sm:$0xf]  ;;  %s16961_s25 = sld [smem:[#allocation43_spill]] }
 0x12c   : > { %1577 = vmatpush.bf16.msrb.mxu1 %v10231_v12  ;;  %1529 = vmatmul.bf16.gmra.mxu2 %v1183_v19  ;;  %v10267_v12 = vor.u32 %v13835_v10, %v10266_v9  ;;  %v10370_v28 = vld [vmem:[#allocation4 + $0xd0] sm:$0xf]  ;;  %v13867_v36 = vld [vmem:[#allocation4 + $0x104] sm:$0xf0]  ;;  %v13897_v39 = vld [vmem:[#allocation4 + $0x1f4] sm:$0xf0] }
 0x12d   : > { %2332 = vmatpush.bf16.msrb.mxu2 %v10307_v42  ;;  %v10371_v31 = vor.u32 %v13861_v29, %v10370_v28  ;;  %v10395_v37 = vor.u32 %v13867_v36, %v10394_v35  ;;  %v10514_v38 = vld [vmem:[#allocation4 + $0x1f0] sm:$0xf]  ;;  %v10362_v40 = vld [vmem:[#allocation4 + $0xc0] sm:$0xf]  ;;  %v13859_v45 = vld [vmem:[#allocation4 + $0xc4] sm:$0xf0] }
 0x12e   : > { %v10515_v42 = vor.u32 %v13897_v39, %v10514_v38  ;;  %v10562_v46 = vld [vmem:[#allocation4 + $0x250] sm:$0xf]  ;;  %v10506_v50 = vld [vmem:[#allocation4 + $0x1e0] sm:$0xf]  ;;  %v13848_v52 = vld [vmem:[#allocation4 + $0x74] sm:$0xf] }
 0x12f   : > { %1559 = vmatpush.bf16.msrb.mxu0 %v10159_v20  ;;  %v10578_v20 = vld [vmem:[#allocation4 + $0x270] sm:$0xf]  ;;  %v13857_v56 = vld [vmem:[#allocation4 + $0xb4] sm:$0xf0]  ;;  %v10554_v59 = vld [vmem:[#allocation4 + $0x240] sm:$0xf] }
 0x130   : > { %1578 = vmatpush.bf16.msrb.mxu1 %v10223_v21  ;;  %v10579_v23 = vor.u32 %v13913_v22, %v10578_v20  ;;  %v10354_v55 = vld [vmem:[#allocation4 + $0xb0] sm:$0xf]  ;;  %v13907_v60 = vld [vmem:[#allocation4 + $0x244] sm:$0xf0]  ;;  %v13846_v2 = vld [vmem:[#allocation4 + $0x64] sm:$0xf] }
 0x131   : > { %v10355_v58 = vor.u32 %v13857_v56, %v10354_v55  ;;  %v10498_v0 = vld [vmem:[#allocation4 + $0x1d0] sm:$0xf]  ;;  %v10316_v6 = vld [vmem:[#allocation4 + $0x68] sm:$0xf0]  ;;  %v10346_v7 = vld [vmem:[#allocation4 + $0xa0] sm:$0xf] }
 0x132   : > { %v13891_v20 = vld [vmem:[#allocation4 + $0x1c4] sm:$0xf0]  ;;  %v13844_v22 = vld [vmem:[#allocation4 + $0x54] sm:$0xf]  ;;  %v13853_v28 = vld [vmem:[#allocation4 + $0x94] sm:$0xf0] }
 0x133   : > { %1560 = vmatpush.bf16.msrb.mxu0 %v10151_v26  ;;  %v13869_v26 = vld [vmem:[#allocation4 + $0x114] sm:$0xf0]  ;;  %v10538_v29 = vld [vmem:[#allocation4 + $0x220] sm:$0xf]  ;;  %v10482_v35 = vld [vmem:[#allocation4 + $0x1b0] sm:$0xf] }
 0x134   : > { %1579 = vmatpush.bf16.msrb.mxu1 %v10215_v27  ;;  %1548 = vmatmul.bf16.gmra.mxu3 %v1181_v14  ;;  %v10387_v14 = vor.u32 %v13865_v13, %v10386_v11  ;;  %v10403_v27 = vor.u32 %v13869_v26, %v10402_v25  ;;  %v10319_v11 = vor.u32 %v13846_v2, %v10316_v6  ;;  %v10546_v13 = vld [vmem:[#allocation4 + $0x230] sm:$0xf]  ;;  %v13889_v36 = vld [vmem:[#allocation4 + $0x1b4] sm:$0xf0]  ;;  %v13842_v39 = vld [vmem:[#allocation4 + $0x44] sm:$0xf] }
 0x135   : > { %v10338_v25 = vld [vmem:[#allocation4 + $0x90] sm:$0xf]  ;;  %v10483_v38 = vor.u32 %v13889_v36, %v10482_v35  ;;  %v13840_v56 = vld [vmem:[#allocation4 + $0x34] sm:$0xf]  ;;  %v13929_v2 = vld [vmem:[#allocation4 + $0x2f4] sm:$0xf0] }
 0x136   : > { %2349 = vmatpush.bf16.msrb.mxu3 %v10387_v14  ;;  %v13905_v14 = vld [vmem:[#allocation4 + $0x234] sm:$0xf0]  ;;  %v12726_v62 = vld [vmem:[#allocation15 + $0x2e8] sm:$0xf0]  ;;  %s16962_s7 = sld [smem:[#allocation47_spill]]  ;;  %vm9750_vm8 = vcmask 1043456  }
 0x137   : > { %1561 = vmatpush.bf16.msrb.mxu0 %v10143_v32  ;;  %v13911_v32 = vld [vmem:[#allocation4 + $0x264] sm:$0xf0]  ;;  %v10547_v16 = vor.u32 %v13905_v14, %v10546_v13  ;;  %s16964_s28 = sld [smem:[#allocation45_spill]] }
 0x138   : > { %1580 = vmatpush.bf16.msrb.mxu1 %v10207_v33  ;;  %v10571_v33 = vor.u32 %v13911_v32, %v10570_v30  ;;  %v10339_v30 = vor.u32 %v13853_v28, %v10338_v25 }
 0x13a   : > { %1562 = vmatmul.bf16.vlgmr.msrb.gmra.mxu0 %v15841_v43  ;;  %v10298_v43 = vld [vmem:[#allocation4 + $0x40] sm:$0xf] }
 0x13b   : > { %1581 = vmatmul.bf16.vlgmr.msrb.gmra.mxu1 %v15843_v44  ;;  %v10299_v44 = vor.u32 %v13843_v48, %v10298_v43  ;;  %2368 = vmatpush.bf16.msra.mxu0 %v10451_v47  ;;  %v13909_v47 = vld [vmem:[#allocation4 + $0x254] sm:$0xf0]  ;;  %v10363_v48 = vor.u32 %v13859_v45, %v10362_v40  ;;  %v10300_v40 = vld [vmem:[#allocation4 + $0x48] sm:$0xf0] }
 0x13c   : > { %2387 = vmatpush.bf16.msra.mxu1 %v10515_v42  ;;  %s16963_s22 = smov %s16962_s7 }
 0x13d   : > { %2333 = vmatpush.bf16.msrb.mxu2 %v10299_v44  ;;  %v10563_v44 = vor.u32 %v13909_v47, %v10562_v46  ;;  %v10303_v46 = vor.u32 %v13842_v39, %v10300_v40  ;;  %v13851_v47 = vld [vmem:[#allocation4 + $0x84] sm:$0xf0]  ;;  %s16965_s26 = smov %s16964_s28 }
 0x13f   : > { %2369 = vmatpush.bf16.msra.mxu0 %v10443_v51  ;;  %v13895_v51 = vld [vmem:[#allocation4 + $0x1e4] sm:$0xf0] }
 0x140   : > { %v10507_v53 = vor.u32 %v13895_v51, %v10506_v50 }
 0x141   : > { %2334 = vmatpush.bf16.msrb.mxu2 %v10291_v54  ;;  %v10324_v54 = vld [vmem:[#allocation4 + $0x78] sm:$0xf0] }
 0x142   : > { %2388 = vmatpush.bf16.msra.mxu1 %v10507_v53  ;;  %v10474_v53 = vld [vmem:[#allocation4 + $0x1a0] sm:$0xf] }
 0x143   : > { %2370 = vmatpush.bf16.msra.mxu0 %v10435_v57  ;;  %v10327_v57 = vor.u32 %v13848_v52, %v10324_v54  ;;  %v13887_v54 = vld [vmem:[#allocation4 + $0x1a4] sm:$0xf0] }
 0x144   : > { %v10475_v55 = vor.u32 %v13887_v54, %v10474_v53  ;;  %v10268_v53 = vld [vmem:[#allocation4 + $0x8] sm:$0xf0]  ;;  %v13864_v54 = vld [vmem:[#allocation4 + $0xf4] sm:$0xf] }
 0x145   : > { %2335 = vmatpush.bf16.msrb.mxu2 %v10283_v61  ;;  %v10555_v61 = vor.u32 %v13907_v60, %v10554_v59 }
 0x147   : > { %2371 = vmatpush.bf16.msra.mxu0 %v10427_v1  ;;  %v13893_v1 = vld [vmem:[#allocation4 + $0x1d4] sm:$0xf0] }
 0x149   : > { %2336 = vmatpush.bf16.msrb.mxu2 %v10275_v4  ;;  %v10499_v4 = vor.u32 %v13893_v1, %v10498_v0 }
 0x14a   : > { %1567 = vmatmul.bf16.gmra.mxu0 %v1182_v18  ;;  %v10378_v18 = vld [vmem:[#allocation4 + $0xe0] sm:$0xf] }
 0x14b   : > { %1586 = vmatmul.bf16.gmra.mxu1 %v1183_v19  ;;  %2372 = vmatpush.bf16.msra.mxu0 %v10419_v8  ;;  %v13863_v19 = vld [vmem:[#allocation4 + $0xe4] sm:$0xf0] }
 0x14c   : > { %v10379_v21 = vor.u32 %v13863_v19, %v10378_v18  ;;  %v13855_v8 = vld [vmem:[#allocation4 + $0xa4] sm:$0xf0]  ;;  %2389 = vmatpush.bf16.msra.mxu1 %v10499_v4  ;;  %v10490_v19 = vld [vmem:[#allocation4 + $0x1c0] sm:$0xf] }
 0x14d   : > { %2337 = vmatpush.bf16.msrb.mxu2 %v10267_v12  ;;  %v10347_v12 = vor.u32 %v13855_v8, %v10346_v7  ;;  %v10466_v8 = vld [vmem:[#allocation4 + $0x190] sm:$0xf] }
 0x14e   : > { %2350 = vmatpush.bf16.msrb.mxu3 %v10379_v21  ;;  %v10491_v21 = vor.u32 %v13891_v20, %v10490_v19 }
 0x14f   : > { %2373 = vmatpush.bf16.msra.mxu0 %v10411_v17 }
 0x150   : > { %2390 = vmatpush.bf16.msra.mxu1 %v10491_v21  ;;  %v10634_v21 = vld [vmem:[#allocation4 + $0x2e0] sm:$0xf] }
 0x151   : > { %2406 = vmatpush.bf16.msra.mxu2 %v10579_v23  ;;  %v10308_v23 = vld [vmem:[#allocation4 + $0x58] sm:$0xf0] }
 0x152   : > { %2351 = vmatpush.bf16.msrb.mxu3 %v10371_v31  ;;  %v13903_v31 = vld [vmem:[#allocation4 + $0x224] sm:$0xf0] }
 0x153   : > { %2374 = vmatpush.bf16.msra.mxu0 %v10403_v27  ;;  %v10311_v27 = vor.u32 %v13844_v22, %v10308_v23  ;;  %v13927_v22 = vld [vmem:[#allocation4 + $0x2e4] sm:$0xf0]  ;;  %v13880_v23 = vld [vmem:[#allocation4 + $0x174] sm:$0xf] }
 0x154   : > { %2391 = vmatpush.bf16.msra.mxu1 %v10483_v38  ;;  %v10276_v38 = vld [vmem:[#allocation4 + $0x18] sm:$0xf0] }
 0x155   : > { %2407 = vmatpush.bf16.msra.mxu2 %v10571_v33  ;;  %v10539_v33 = vor.u32 %v13903_v31, %v10538_v29 }
 0x156   : > { %2352 = vmatpush.bf16.msrb.mxu3 %v10363_v48  ;;  %v13901_v48 = vld [vmem:[#allocation4 + $0x214] sm:$0xf0] }
 0x157   : > { %2375 = vmatpush.bf16.msra.mxu0 %v10395_v37 }
 0x158   : > { %2392 = vmatpush.bf16.msra.mxu1 %v10475_v55 }
 0x159   : > { %2408 = vmatpush.bf16.msra.mxu2 %v10563_v44 }
 0x15a   : > { %2353 = vmatpush.bf16.msrb.mxu3 %v10355_v58  ;;  %v10522_v58 = vld [vmem:[#allocation4 + $0x200] sm:$0xf] }
 0x15b   : > { %2444 = vmatpush.bf16.msrb.mxu0 %v10327_v57  ;;  %v10292_v57 = vld [vmem:[#allocation4 + $0x38] sm:$0xf0] }
 0x15c   : > { %v10295_v60 = vor.u32 %v13840_v56, %v10292_v57 }
 0x15d   : > { %2409 = vmatpush.bf16.msra.mxu2 %v10555_v61  ;;  %v13899_v61 = vld [vmem:[#allocation4 + $0x204] sm:$0xf0] }
 0x15e   : > { %2354 = vmatpush.bf16.msrb.mxu3 %v10347_v12  ;;  %v10523_v1 = vor.u32 %v13899_v61, %v10522_v58  ;;  %v13923_v61 = vld [vmem:[#allocation4 + $0x2c4] sm:$0xf0] }
 0x15f   : > { %2445 = vmatpush.bf16.msrb.mxu0 %v10319_v11  ;;  %v15913_v11 = vperm.slane %v15900_v24, 1 }
 0x161   : > { %2410 = vmatpush.bf16.msra.mxu2 %v10547_v16 }
 0x162   : > { %2355 = vmatpush.bf16.msrb.mxu3 %v10339_v30 }
 0x163   : > { %2446 = vmatpush.bf16.msrb.mxu0 %v10311_v27  ;;  %v10452_v27 = vld [vmem:[#allocation4 + $0x178] sm:$0xf0] }
 0x164   : > { %v10455_v29 = vor.u32 %v13880_v23, %v10452_v27  ;;  %v13874_v27 = vld [vmem:[#allocation4 + $0x144] sm:$0xf] }
 0x165   : > { %2411 = vmatpush.bf16.msra.mxu2 %v10539_v33  ;;  %v13883_v33 = vld [vmem:[#allocation4 + $0x184] sm:$0xf0] }
 0x167   : > { %2447 = vmatpush.bf16.msrb.mxu0 %v10303_v46  ;;  %v10444_v46 = vld [vmem:[#allocation4 + $0x168] sm:$0xf0] }
 0x16b   : > { %2448 = vmatpush.bf16.msrb.mxu0 %v10295_v60  ;;  %v10618_v60 = vld [vmem:[#allocation4 + $0x2c0] sm:$0xf] }
 0x197   : > { %v1487_v41 = vpop.f32.mrf.mxu0 }
 0x198   : > { %v1506_v43 = vpop.f32.mrf.mxu1  ;;  %v1488_v49 = vadd.f32 %v1487_v41, %v15903_v34  ;;  %v10330_v41 = vld [vmem:[#allocation4 + $0x80] sm:$0xf] }
 0x19a   : > { %v1507_v63 = vadd.f32 %v1506_v43, %v1488_v49  ;;  %v10530_v43 = vld [vmem:[#allocation4 + $0x210] sm:$0xf]  ;;  %v10331_v49 = vor.u32 %v13851_v47, %v10330_v41 }
 0x19b   : > { %v10531_v50 = vor.u32 %v13901_v48, %v10530_v43 }
 0x19c   : > { %2356 = vmatpush.bf16.msrb.mxu3 %v10331_v49 }
 0x19d   : > { %2412 = vmatpush.bf16.msra.mxu2 %v10531_v50 }
 0x19f   : > { %v1525_v3 = vpop.f32.mrf.mxu2  ;;  %v1489_v10 = vpop.f32.mrf.mxu0 }
 0x1a0   : > { %v1526_v9 = vadd.f32 %v1525_v3, %v1507_v63  ;;  %v1508_v15 = vpop.f32.mrf.mxu1  ;;  %v1490_v18 = vadd.f32 %v1489_v10, %v15903_v34  ;;  %v10642_v63 = vld [vmem:[#allocation4 + $0x2f0] sm:$0xf] }
 0x1a1   : > { %v10643_v7 = vor.u32 %v13929_v2, %v10642_v63  ;;  %2413 = vmatpush.bf16.msra.mxu2 %v10523_v1  ;;  %v13876_v2 = vld [vmem:[#allocation4 + $0x154] sm:$0xf] }
 0x1a2   : > { %v1592_v17 = vmax.f32 %v1526_v9, 0.0  ;;  %v1509_v32 = vadd.f32 %v1508_v15, %v1490_v18  ;;  %v13885_v9 = vld [vmem:[#allocation4 + $0x194] sm:$0xf0]  ;;  %v10284_v18 = vld [vmem:[#allocation4 + $0x28] sm:$0xf0] }
 0x1a3   : > { %v10467_v13 = vor.u32 %v13885_v9, %v10466_v8  ;;  %2425 = vmatpush.bf16.msra.mxu3 %v10643_v7  ;;  %v10619_v8 = vor.u32 %v13923_v61, %v10618_v60  ;;  %v10594_v61 = vld [vmem:[#allocation4 + $0x290] sm:$0xf] }
 0x1a4   : > { %v1618_v26 = vrot.slane %v1592_v17, 7  ;;  %v13838_v17 = vld [vmem:[#allocation4 + $0x24] sm:$0xf] }
 0x1a5   : > { %v10287_v20 = vor.u32 %v13838_v17, %v10284_v18  ;;  %2393 = vmatpush.bf16.msra.mxu1 %v10467_v13  ;;  %v13862_v13 = vld [vmem:[#allocation4 + $0xe4] sm:$0xf]  ;;  %v13912_v17 = vld [vmem:[#allocation4 + $0x274] sm:$0xf]  ;;  %v10580_v18 = vld [vmem:[#allocation4 + $0x278] sm:$0xf0] }
 0x1a6   : > { %1642 = vst [vmem:[#allocation2] sm:$0xfe] %v1618_v26 }
 0x1a7   : > { %v1527_v37 = vpop.f32.mrf.mxu2  ;;  %v1492_v45 = vpop.f32.mrf.mxu0  ;;  %2449 = vmatpush.bf16.msrb.mxu0 %v10287_v20  ;;  %v10583_v20 = vor.u32 %v13912_v17, %v10580_v18 }
 0x1a8   : > { %v1528_v42 = vadd.f32 %v1527_v37, %v1509_v32  ;;  %v1511_v44 = vpop.f32.mrf.mxu1  ;;  %v1493_v52 = vadd.f32 %v1492_v45, %v15903_v34  ;;  %v1544_v6 = vpop.f32.mrf.mxu3  ;;  %v10458_v32 = vld [vmem:[#allocation4 + $0x180] sm:$0xf]  ;;  %v13836_v37 = vld [vmem:[#allocation4 + $0x14] sm:$0xf]  ;;  %v13878_v45 = vld [vmem:[#allocation4 + $0x164] sm:$0xf] }
 0x1a9   : > { %v1545_v35 = vadd.f32 %v1544_v6, %v15913_v11  ;;  %v10459_v36 = vor.u32 %v13883_v33, %v10458_v32  ;;  %v10279_v41 = vor.u32 %v13836_v37, %v10276_v38  ;;  %v13910_v37 = vld [vmem:[#allocation4 + $0x264] sm:$0xf] }
 0x1aa   : > { %v1594_v51 = vmax.f32 %v1528_v42, 0.0  ;;  %v1512_v4 = vadd.f32 %v1511_v44, %v1493_v52  ;;  %v13925_v42 = vld [vmem:[#allocation4 + $0x2d4] sm:$0xf0]  ;;  %v10447_v44 = vor.u32 %v13878_v45, %v10444_v46  ;;  %v13834_v52 = vld [vmem:[#allocation4 + $0x4] sm:$0xf] }
 0x1ab   : > { %2394 = vmatpush.bf16.msra.mxu1 %v10459_v36  ;;  %2450 = vmatpush.bf16.msrb.mxu0 %v10279_v41  ;;  %v10271_v1 = vor.u32 %v13834_v52, %v10268_v53  ;;  %v10372_v36 = vld [vmem:[#allocation4 + $0xd8] sm:$0xf0]  ;;  %v10602_v41 = vld [vmem:[#allocation4 + $0x2a0] sm:$0xf]  ;;  %v13908_v52 = vld [vmem:[#allocation4 + $0x254] sm:$0xf] }
 0x1ac   : > { %v1620_v59 = vrot.slane %v1594_v51, 7  ;;  %v10564_v53 = vld [vmem:[#allocation4 + $0x258] sm:$0xf0] }
 0x1ad   : > { %v1652_v0 = vld [vmem:[#allocation2] sm:$0xff]  ;;  %v10567_v60 = vor.u32 %v13908_v52, %v10564_v53 }
 0x1ae   : > { %v15909_v3 = vsel %vm1617_vm1, %v1618_v26, %v1620_v59  ;;  %v1660_v16 = vld [vmem:[#allocation2] sm:$0xfe]  ;;  %v10635_v26 = vor.u32 %v13927_v22, %v10634_v21  ;;  %v10610_v21 = vld [vmem:[#allocation4 + $0x2b0] sm:$0xf]  ;;  %v13921_v22 = vld [vmem:[#allocation4 + $0x2b4] sm:$0xf0] }
 0x1af   : > { %1644 = vst [vmem:[#allocation2 + $0x10] sm:$0xff] %v15909_v3  ;;  %v1530_v10 = vpop.f32.mrf.mxu2  ;;  %v15916_v12 = vpack.c.bf16 %v15909_v3, %v1652_v0  ;;  %v1494_v15 = vpop.f32.mrf.mxu0  ;;  %v1679_v28 = vrot.slane %v1660_v16, 1  ;;  %v1680_v31 = vrot.slane %v15909_v3, 1  ;;  %2451 = vmatpush.bf16.msrb.mxu0 %v10271_v1 }
 0x1b0   : > { %v1531_v14 = vadd.f32 %v1530_v10, %v1512_v4  ;;  %v1513_v19 = vpop.f32.mrf.mxu1  ;;  %v1495_v25 = vadd.f32 %v1494_v15, %v15903_v34  ;;  %2426 = vmatpush.bf16.msra.mxu3 %v10635_v26  ;;  %v10626_v34 = vld [vmem:[#allocation4 + $0x2d0] sm:$0xf]  ;;  %v1546_v50 = vpop.f32.mrf.mxu3  ;;  %v10436_v4 = vld [vmem:[#allocation4 + $0x158] sm:$0xf0]  ;;  %v10611_v26 = vor.u32 %v13921_v22, %v10610_v21 }
 0x1b1   : > { %2338 = vmatmul.bf16.vlgmr.msrb.gmra.mxu2 %v15916_v12  ;;  %v10627_v48 = vor.u32 %v13925_v42, %v10626_v34  ;;  %v1681_v57 = vsel %vm1678_vm2, %v1679_v28, %v1680_v31  ;;  %v10439_v10 = vor.u32 %v13876_v2, %v10436_v4  ;;  %v1547_v23 = vadd.f32 %v1546_v50, %v15913_v11  ;;  %v13919_v42 = vld [vmem:[#allocation4 + $0x2a4] sm:$0xf0] }
 0x1b2   : > { %v1596_v24 = vmax.f32 %v1531_v14, 0.0  ;;  %2482 = vmatpush.bf16.msrb.mxu2 %v10455_v29  ;;  %v1514_v40 = vadd.f32 %v1513_v19, %v1495_v25  ;;  %v10380_v14 = vld [vmem:[#allocation4 + $0xe8] sm:$0xf0] }
 0x1b3   : > { %v10383_v16 = vor.u32 %v13862_v13, %v10380_v14 }
 0x1b4   : > { %v1624_v30 = vrot.slane %v1596_v24, 7  ;;  %2427 = vmatpush.bf16.msra.mxu3 %v10627_v48  ;;  %v13872_v48 = vld [vmem:[#allocation4 + $0x134] sm:$0xf] }
 0x1b6   : > { %v15923_v39 = vsel %vm1617_vm1, %v1620_v59, %v1624_v30  ;;  %2483 = vmatpush.bf16.msrb.mxu2 %v10447_v44  ;;  %v10388_v59 = vld [vmem:[#allocation4 + $0xf8] sm:$0xf0] }
 0x1b7   : > { %1646 = vst [vmem:[#allocation2 + $0x20] sm:$0xff] %v15923_v39  ;;  %v1532_v47 = vpop.f32.mrf.mxu2  ;;  %v1685_v43 = vrot.slane %v15923_v39, 1  ;;  %v1563_v51 = vpop.f32.mrf.mxu0  ;;  %v10391_v7 = vor.u32 %v13864_v54, %v10388_v59  ;;  %v10420_v44 = vld [vmem:[#allocation4 + $0x138] sm:$0xf0]  ;;  %v1716_v2 = vrot.slane %v15923_v39, 2 }
 0x1b8   : > { %v1533_v49 = vadd.f32 %v1532_v47, %v1514_v40  ;;  %v1564_v55 = vadd.f32 %v1563_v51, %v1545_v35  ;;  %v1582_v56 = vpop.f32.mrf.mxu1  ;;  %2428 = vmatpush.bf16.msra.mxu3 %v10619_v8  ;;  %v1549_v38 = vpop.f32.mrf.mxu3  ;;  %v10572_v40 = vld [vmem:[#allocation4 + $0x268] sm:$0xf0]  ;;  %v10603_v47 = vor.u32 %v13919_v42, %v10602_v41  ;;  %v10423_v50 = vor.u32 %v13872_v48, %v10420_v44  ;;  %v13854_v42 = vld [vmem:[#allocation4 + $0xa4] sm:$0xf]  ;;  %v13904_v48 = vld [vmem:[#allocation4 + $0x234] sm:$0xf] }
 0x1b9   : > { %v1686_v58 = vsel %vm1678_vm2, %v1680_v31, %v1685_v43  ;;  %2463 = vmatpush.bf16.msrb.mxu1 %v10391_v7  ;;  %v13860_v31 = vld [vmem:[#allocation4 + $0xd4] sm:$0xf]  ;;  %v10575_v46 = vor.u32 %v13910_v37, %v10572_v40  ;;  %v10364_v51 = vld [vmem:[#allocation4 + $0xc8] sm:$0xf0]  ;;  %v1550_v54 = vadd.f32 %v1549_v38, %v15913_v11  ;;  %v1711_v8 = vrot.slane %v15909_v3, 2 }
 0x1ba   : > { %v1598_v63 = vmax.f32 %v1533_v49, 0.0  ;;  %v15931_v0 = vpack.c.bf16 %v1686_v58, %v1681_v57  ;;  %v1583_v6 = vadd.f32 %v1582_v56, %v1564_v55  ;;  %2484 = vmatpush.bf16.msrb.mxu2 %v10439_v10  ;;  %v10375_v34 = vor.u32 %v13860_v31, %v10372_v36  ;;  %v13858_v49 = vld [vmem:[#allocation4 + $0xc4] sm:$0xf]  ;;  %v10412_v7 = vld [vmem:[#allocation4 + $0x128] sm:$0xf0] }
 0x1bb   : > { %v1664_v57 = vld [vmem:[#allocation2] sm:$0xfc]  ;;  %v10367_v58 = vor.u32 %v13858_v49, %v10364_v51  ;;  %v13915_v31 = vld [vmem:[#allocation4 + $0x284] sm:$0xf0]  ;;  %v13868_v36 = vld [vmem:[#allocation4 + $0x114] sm:$0xf] }
 0x1bc   : > { %v1628_v9 = vrot.slane %v1598_v63, 7  ;;  %2376 = vmatmul.bf16.vlgmr.msra.gmra.mxu0 %v15931_v0  ;;  %v1593_v15 = vmax.f32 %v1583_v6, 0.0  ;;  %2429 = vmatpush.bf16.msra.mxu3 %v10611_v26  ;;  %v13917_v63 = vld [vmem:[#allocation4 + $0x294] sm:$0xf0]  ;;  %v13870_v6 = vld [vmem:[#allocation4 + $0x124] sm:$0xf] }
 0x1bd   : > { %2520 = vmatpush.bf16.msra.mxu0 %v10583_v20  ;;  %2464 = vmatpush.bf16.msrb.mxu1 %v10383_v16  ;;  %v10595_v4 = vor.u32 %v13917_v63, %v10594_v61  ;;  %v13856_v16 = vld [vmem:[#allocation4 + $0xb4] sm:$0xf]  ;;  %v1710_v3 = vrot.slane %v1664_v57, 2  ;;  %v10404_v37 = vld [vmem:[#allocation4 + $0x118] sm:$0xf0] }
 0x1be   : > { %v15935_v19 = vsel %vm1617_vm1, %v1624_v30, %v1628_v9  ;;  %1650 = vst [vmem:[#allocation2 + $0x40] sm:$0x1] %v1628_v9  ;;  %v1619_v24 = vrot.slane %v1593_v15, 7  ;;  %v10428_v30 = vld [vmem:[#allocation4 + $0x148] sm:$0xf0]  ;;  %v10415_v15 = vor.u32 %v13870_v6, %v10412_v7  ;;  %v10407_v41 = vor.u32 %v13868_v36, %v10404_v37 }
 0x1bf   : > { %1648 = vst [vmem:[#allocation2 + $0x30] sm:$0xff] %v15935_v19  ;;  %v15941_v25 = vpack.c.bf16 %v15935_v19, %v15923_v39  ;;  %v1565_v28 = vpop.f32.mrf.mxu0  ;;  %v1689_v29 = vrot.slane %v15935_v19, 1  ;;  %v10431_v35 = vor.u32 %v13874_v27, %v10428_v30  ;;  %v1717_v27 = vsel %vm1709_vm3, %v1711_v8, %v1716_v2  ;;  %v10586_v30 = vld [vmem:[#allocation4 + $0x280] sm:$0xf]  ;;  %v10548_v44 = vld [vmem:[#allocation4 + $0x238] sm:$0xf0] }
 0x1c0   : > { %1643 = vst [vmem:[#allocation2 + $0x8] sm:$0xfe] %v1619_v24  ;;  %v1566_v32 = vadd.f32 %v1565_v28, %v1547_v23  ;;  %v1584_v33 = vpop.f32.mrf.mxu1  ;;  %2430 = vmatpush.bf16.msra.mxu3 %v10603_v47  ;;  %v13866_v49 = vld [vmem:[#allocation4 + $0x104] sm:$0xf]  ;;  %v10551_v53 = vor.u32 %v13904_v48, %v10548_v44  ;;  %v10540_v6 = vld [vmem:[#allocation4 + $0x228] sm:$0xf0] }
 0x1c1   : > { %2343 = vmatmul.bf16.gmra.mxu2 %v15941_v25  ;;  %2465 = vmatpush.bf16.msrb.mxu1 %v10375_v34  ;;  %v1690_v10 = vsel %vm1678_vm2, %v1685_v43, %v1689_v29  ;;  %v10356_v43 = vld [vmem:[#allocation4 + $0xb8] sm:$0xf0]  ;;  %v1712_v34 = vsel %vm1709_vm3, %v1710_v3, %v1711_v8  ;;  %v13894_v7 = vld [vmem:[#allocation4 + $0x1e4] sm:$0xf]  ;;  %v13900_v3 = vld [vmem:[#allocation4 + $0x214] sm:$0xf] }
 0x1c2   : > { %v1585_v45 = vadd.f32 %v1584_v33, %v1566_v32  ;;  %2485 = vmatpush.bf16.msrb.mxu2 %v10431_v35  ;;  %2521 = vmatpush.bf16.msra.mxu0 %v10575_v46  ;;  %v10359_v28 = vor.u32 %v13856_v16, %v10356_v43  ;;  %v1551_v32 = vpop.f32.mrf.mxu3  ;;  %v10587_v35 = vor.u32 %v13915_v31, %v10586_v30  ;;  %v13898_v36 = vld [vmem:[#allocation4 + $0x204] sm:$0xf]  ;;  %v10524_v37 = vld [vmem:[#allocation4 + $0x208] sm:$0xf0]  ;;  %v1720_v48 = vrot.slane %v15935_v19, 2 }
 0x1c3   : > { %v15976_v46 = vpack.c.bf16 %v1717_v27, %v1712_v34  ;;  %v10500_v27 = vld [vmem:[#allocation4 + $0x1d8] sm:$0xf0]  ;;  %v10527_v44 = vor.u32 %v13898_v36, %v10524_v37  ;;  %v13924_v39 = vld [vmem:[#allocation4 + $0x2d4] sm:$0xf] }
 0x1c4   : > { %v1595_v55 = vmax.f32 %v1585_v45, 0.0  ;;  %2431 = vmatpush.bf16.msra.mxu3 %v10595_v4  ;;  %v10348_v45 = vld [vmem:[#allocation4 + $0xa8] sm:$0xf0]  ;;  %v13902_v4 = vld [vmem:[#allocation4 + $0x224] sm:$0xf]  ;;  %v1721_v19 = vsel %vm1709_vm3, %v1716_v2, %v1720_v48 }
 0x1c5   : > { %v1662_v56 = vld [vmem:[#allocation2 + $0x40] sm:$0x1]  ;;  %2466 = vmatpush.bf16.msrb.mxu1 %v10367_v58  ;;  %v10351_v47 = vor.u32 %v13854_v42, %v10348_v45  ;;  %v10516_v58 = vld [vmem:[#allocation4 + $0x1f8] sm:$0xf0]  ;;  %v10492_v45 = vld [vmem:[#allocation4 + $0x1c8] sm:$0xf0] }
 0x1c6   : > { %v1693_v59 = vrot.slane %v1662_v56, 1  ;;  %v15946_v1 = vrot.slane %v1595_v55, 7  ;;  %2486 = vmatpush.bf16.msrb.mxu2 %v10423_v50  ;;  %2522 = vmatpush.bf16.msra.mxu0 %v10567_v60  ;;  %v1552_v50 = vadd.f32 %v1551_v32, %v15913_v11  ;;  %v13896_v55 = vld [vmem:[#allocation4 + $0x1f4] sm:$0xf]  ;;  %v10340_v60 = vld [vmem:[#allocation4 + $0x98] sm:$0xf0] }
 0x1c7   : > { %v1568_v9 = vpop.f32.mrf.mxu0  ;;  %v1653_v14 = vld [vmem:[#allocation2 + $0x8] sm:$0xff]  ;;  %v10519_v11 = vor.u32 %v13896_v55, %v10516_v58  ;;  %v10644_v34 = vld [vmem:[#allocation4 + $0x2f8] sm:$0xf0]  ;;  %v13916_v36 = vld [vmem:[#allocation4 + $0x294] sm:$0xf] }
 0x1c8   : > { %v1694_v13 = vsel %vm1678_vm2, %v1689_v29, %v1693_v59  ;;  %v15956_v17 = vsel %vm1617_vm1, %v1619_v24, %v15946_v1  ;;  %v1569_v18 = vadd.f32 %v1568_v9, %v1550_v54  ;;  %v1587_v20 = vpop.f32.mrf.mxu1  ;;  %3579 = vst.msk [vmem:[#allocation2] ss:$8 sm:$0x3] %vm15883_vm0, %v15347_v5  ;;  %v15967_v23 = vld [vmem:[#allocation2 + $0x8] sm:$0xfe]  ;;  %2432 = vmatpush.bf16.msra.mxu3 %v10587_v35 }
 0x1c9   : > { %v15958_v21 = vpack.c.bf16 %v1694_v13, %v1690_v10  ;;  %1645 = vst [vmem:[#allocation2 + $0x18] sm:$0xff] %v15956_v17  ;;  %v15965_v22 = vpack.c.bf16 %v15956_v17, %v1653_v14  ;;  %v13906_v24 = vld [vmem:[#allocation4 + $0x244] sm:$0xf]  ;;  %v10556_v29 = vld [vmem:[#allocation4 + $0x248] sm:$0xf0]  ;;  %v1682_v40 = vrot.slane %v15967_v23, 1  ;;  %2467 = vmatpush.bf16.msrb.mxu1 %v10359_v28  ;;  %v10543_v14 = vor.u32 %v13902_v4, %v10540_v6 }
 0x1ca   : > { %v1588_v26 = vadd.f32 %v1587_v20, %v1569_v18  ;;  %2487 = vmatpush.bf16.msrb.mxu2 %v10415_v15  ;;  %v10559_v33 = vor.u32 %v13906_v24, %v10556_v29  ;;  %v1683_v52 = vrot.slane %v15956_v17, 1  ;;  %v10396_v54 = vld [vmem:[#allocation4 + $0x108] sm:$0xf0]  ;;  %v13852_v59 = vld [vmem:[#allocation4 + $0x94] sm:$0xf] }
 0x1cb   : > { %2357 = vmatmul.bf16.vlgmr.msrb.gmra.mxu3 %v15965_v22  ;;  %v10399_v57 = vor.u32 %v13866_v49, %v10396_v54  ;;  %v1666_v10 = vld [vmem:[#allocation2 + $0x40] sm:$0x3]  ;;  %v10343_v13 = vor.u32 %v13852_v59, %v10340_v60  ;;  %v10508_v15 = vld [vmem:[#allocation4 + $0x1e8] sm:$0xf0]  ;;  %v13850_v18 = vld [vmem:[#allocation4 + $0x84] sm:$0xf] }
 0x1cc   : > { %2381 = vmatmul.bf16.gmra.mxu0 %v15958_v21  ;;  %v1597_v38 = vmax.f32 %v1588_v26, 0.0  ;;  %2501 = vmatpush.bf16.msrb.mxu3 %v10519_v11  ;;  %v10511_v16 = vor.u32 %v13894_v7, %v10508_v15  ;;  %v10332_v20 = vld [vmem:[#allocation4 + $0x88] sm:$0xf0]  ;;  %v1684_v43 = vsel %vm1678_vm2, %v1682_v40, %v1683_v52  ;;  %v10532_v24 = vld [vmem:[#allocation4 + $0x218] sm:$0xf0] }
 0x1cd   : > { %2523 = vmatpush.bf16.msra.mxu0 %v10559_v33  ;;  %2468 = vmatpush.bf16.msrb.mxu1 %v10351_v47  ;;  %v13892_v26 = vld [vmem:[#allocation4 + $0x1d4] sm:$0xf]  ;;  %v10335_v30 = vor.u32 %v13850_v18, %v10332_v20  ;;  %v10535_v31 = vor.u32 %v13900_v3, %v10532_v24  ;;  %v1724_v33 = vrot.slane %v1666_v10, 2  ;;  %v13890_v40 = vld [vmem:[#allocation4 + $0x1c4] sm:$0xf]  ;;  %v1714_v20 = vrot.slane %v15956_v17, 2 }
 0x1ce   : > { %v1626_v51 = vrot.slane %v1597_v38, 7  ;;  %2488 = vmatpush.bf16.msrb.mxu2 %v10407_v41  ;;  %v10503_v35 = vor.u32 %v13892_v26, %v10500_v27  ;;  %v13928_v38 = vld [vmem:[#allocation4 + $0x2f4] sm:$0xf]  ;;  %v10495_v49 = vor.u32 %v13890_v40, %v10492_v45  ;;  %v10484_v55 = vld [vmem:[#allocation4 + $0x1b8] sm:$0xf0] }
 0x1cf   : > { %v1570_v56 = vpop.f32.mrf.mxu0  ;;  %v10647_v42 = vor.u32 %v13928_v38, %v10644_v34  ;;  %v1665_v59 = vld [vmem:[#allocation2 + $0x8] sm:$0xfc]  ;;  %v10628_v2 = vld [vmem:[#allocation4 + $0x2d8] sm:$0xf0]  ;;  %v13886_v4 = vld [vmem:[#allocation4 + $0x1a4] sm:$0xf] }
 0x1d0   : > { %v15982_v61 = vsel %vm1617_vm1, %v15946_v1, %v1626_v51  ;;  %v1571_v63 = vadd.f32 %v1570_v56, %v1552_v50  ;;  %v1589_v8 = vpop.f32.mrf.mxu1  ;;  %2502 = vmatpush.bf16.msrb.mxu3 %v10511_v16  ;;  %v1725_v50 = vsel %vm1709_vm3, %v1720_v48, %v1724_v33  ;;  %v10476_v10 = vld [vmem:[#allocation4 + $0x1a8] sm:$0xf0]  ;;  %v13884_v16 = vld [vmem:[#allocation4 + $0x194] sm:$0xf]  ;;  %v10468_v18 = vld [vmem:[#allocation4 + $0x198] sm:$0xf0] }
 0x1d1   : > { %2414 = vmatmul.bf16.vlgmr.msra.gmra.mxu2 %v15976_v46  ;;  %1647 = vst [vmem:[#allocation2 + $0x28] sm:$0xff] %v15982_v61  ;;  %v1687_v9 = vrot.slane %v15982_v61, 1  ;;  %2524 = vmatpush.bf16.msra.mxu0 %v10551_v53  ;;  %v13888_v53 = vld [vmem:[#allocation4 + $0x1b4] sm:$0xf]  ;;  %v16009_v56 = vpack.c.bf16 %v1725_v50, %v1721_v19  ;;  %v1718_v11 = vrot.slane %v15982_v61, 2  ;;  %v1713_v3 = vrot.slane %v1665_v59, 2 }
 0x1d2   : > { %v1590_v1 = vadd.f32 %v1589_v8, %v1571_v63  ;;  %2489 = vmatpush.bf16.msrb.mxu2 %v10399_v57  ;;  %2469 = vmatpush.bf16.msrb.mxu1 %v10343_v13  ;;  %v10631_v8 = vor.u32 %v13924_v39, %v10628_v2  ;;  %v13922_v13 = vld [vmem:[#allocation4 + $0x2c4] sm:$0xf]  ;;  %v10612_v24 = vld [vmem:[#allocation4 + $0x2b8] sm:$0xf0]  ;;  %v10460_v27 = vld [vmem:[#allocation4 + $0x188] sm:$0xf0] }
 0x1d3   : > { %v1688_v23 = vsel %vm1678_vm2, %v1683_v52, %v1687_v9  ;;  %v10636_v52 = vld [vmem:[#allocation4 + $0x2e8] sm:$0xf0]  ;;  %v13882_v26 = vld [vmem:[#allocation4 + $0x184] sm:$0xf]  ;;  %v10596_v37 = vld [vmem:[#allocation4 + $0x298] sm:$0xf0] }
 0x1d4   : > { %v1599_v28 = vmax.f32 %v1590_v1, 0.0  ;;  %v15991_v29 = vpack.c.bf16 %v1688_v23, %v1684_v43  ;;  %2503 = vmatpush.bf16.msrb.mxu3 %v10503_v35  ;;  %v10479_v1 = vor.u32 %v13886_v4, %v10476_v10  ;;  %v13920_v23 = vld [vmem:[#allocation4 + $0x2b4] sm:$0xf]  ;;  %v13918_v17 = vld [vmem:[#allocation4 + $0x2a4] sm:$0xf]  ;;  %v10599_v38 = vor.u32 %v13916_v36, %v10596_v37 }
 0x1d5   : > { %2525 = vmatpush.bf16.msra.mxu0 %v10543_v14  ;;  %v10620_v14 = vld [vmem:[#allocation4 + $0x2c8] sm:$0xf0]  ;;  %v13914_v34 = vld [vmem:[#allocation4 + $0x284] sm:$0xf]  ;;  %v10706_v50 = vld [vmem:[#allocation7 + $0x70] sm:$0xf] }
 0x1d6   : > { %v1630_v32 = vrot.slane %v1599_v28, 7  ;;  %2395 = vmatmul.bf16.vlgmr.msra.gmra.mxu1 %v15991_v29  ;;  %v10623_v43 = vor.u32 %v13922_v13, %v10620_v14  ;;  %v1715_v28 = vsel %vm1709_vm3, %v1713_v3, %v1714_v20  ;;  %v10604_v33 = vld [vmem:[#allocation4 + $0x2a8] sm:$0xf0]  ;;  %v10826_v39 = vld [vmem:[#allocation7 + $0x160] sm:$0xf] }
 0x1d7   : > { %2470 = vmatpush.bf16.msrb.mxu1 %v10335_v30  ;;  %v10615_v30 = vor.u32 %v13920_v23, %v10612_v24  ;;  %v10607_v35 = vor.u32 %v13918_v17, %v10604_v33  ;;  %v10588_v40 = vld [vmem:[#allocation4 + $0x288] sm:$0xf0]  ;;  %v13975_v2 = vld [vmem:[#allocation7 + $0x164] sm:$0xf0]  ;;  %v10818_v14 = vld [vmem:[#allocation7 + $0x150] sm:$0xf] }
 0x1d8   : > { %v15995_v41 = vsel %vm1617_vm1, %v1626_v51, %v1630_v32  ;;  %1651 = vst [vmem:[#allocation2 + $0x48] sm:$0x1] %v1630_v32  ;;  %v13926_v51 = vld [vmem:[#allocation4 + $0x2e4] sm:$0xf]  ;;  %2504 = vmatpush.bf16.msrb.mxu3 %v10495_v49  ;;  %v10463_v32 = vor.u32 %v13882_v26, %v10460_v27  ;;  %v10591_v48 = vor.u32 %v13914_v34, %v10588_v40  ;;  %v13971_v23 = vld [vmem:[#allocation7 + $0x144] sm:$0xf0] }
 0x1d9   : > { %1649 = vst [vmem:[#allocation2 + $0x38] sm:$0xff] %v15995_v41  ;;  %v16000_v47 = vpack.c.bf16 %v15995_v41, %v15982_v61  ;;  %2526 = vmatpush.bf16.msra.mxu0 %v10535_v31  ;;  %v10639_v54 = vor.u32 %v13926_v51, %v10636_v52  ;;  %v1691_v57 = vrot.slane %v15995_v41, 1  ;;  %v1719_v61 = vsel %vm1709_vm3, %v1714_v20, %v1718_v11  ;;  %v13935_v20 = vld [vmem:[#allocation7 + $0x24] sm:$0xf0]  ;;  %v10658_v26 = vld [vmem:[#allocation7 + $0x10] sm:$0xf] }
 0x1da   : > { %v1741_v31 = vpack.c.bf16 %v1719_v61, %v1715_v28  ;;  %v1722_v45 = vrot.slane %v15995_v41, 2  ;;  %v10827_v4 = vor.u32 %v13975_v2, %v10826_v39  ;;  %v13933_v27 = vld [vmem:[#allocation7 + $0x14] sm:$0xf0]  ;;  %v10650_v37 = vld [vmem:[#allocation7] sm:$0xf] }
 0x1db   : > { %2539 = vmatpush.bf16.msra.mxu1 %v10647_v42  ;;  %2362 = vmatmul.bf16.gmra.mxu3 %v16000_v47  ;;  %v1692_v6 = vsel %vm1678_vm2, %v1687_v9, %v1691_v57  ;;  %v10471_v9 = vor.u32 %v13884_v16, %v10468_v18  ;;  %v10666_v18 = vld [vmem:[#allocation7 + $0x20] sm:$0xf]  ;;  %v13969_v17 = vld [vmem:[#allocation7 + $0x134] sm:$0xf0]  ;;  %v13963_v2 = vld [vmem:[#allocation7 + $0x104] sm:$0xf0] }
 0x1dc   : > { %2452 = vmatmul.bf16.vlgmr.msrb.gmra.mxu0 %v15916_v12  ;;  %v10487_v12 = vor.u32 %v13888_v53, %v10484_v55  ;;  %v13941_v55 = vld [vmem:[#allocation7 + $0x54] sm:$0xf0]  ;;  %v10667_v3 = vor.u32 %v13935_v20, %v10666_v18 }
 0x1dd   : > { %2527 = vmatpush.bf16.msra.mxu0 %v10527_v44  ;;  %v1723_v44 = vsel %vm1709_vm3, %v1718_v11, %v1722_v45 }
 0x1de   : > { %2505 = vmatpush.bf16.msrb.mxu3 %v10487_v12 }
 0x1df   : > { %2540 = vmatpush.bf16.msra.mxu1 %v10639_v54  ;;  %v1663_v58 = vld [vmem:[#allocation2 + $0x48] sm:$0x1]  ;;  %v10690_v54 = vld [vmem:[#allocation7 + $0x50] sm:$0xf] }
 0x1e0   : > { %v1667_v60 = vld [vmem:[#allocation2 + $0x48] sm:$0x3]  ;;  %v1695_v63 = vrot.slane %v1663_v58, 1  ;;  %v10691_v19 = vor.u32 %v13941_v55, %v10690_v54  ;;  %v10954_v55 = vld [vmem:[#allocation7 + $0x260] sm:$0xf] }
 0x1e1   : > { %2419 = vmatmul.bf16.gmra.mxu2 %v16009_v56  ;;  %3581 = vst.msk [vmem:[#allocation2 + $0x41] ss:$8 sm:$0x3] %vm15883_vm0, %v15347_v5  ;;  %v1726_v42 = vrot.slane %v1667_v60, 2  ;;  %v10682_v60 = vld [vmem:[#allocation7 + $0x40] sm:$0xf] }
 0x1e2   : > { %v1696_v7 = vsel %vm1678_vm2, %v1691_v57, %v1695_v63  ;;  %2506 = vmatpush.bf16.msrb.mxu3 %v10479_v1  ;;  %v13977_v57 = vld [vmem:[#allocation7 + $0x174] sm:$0xf0]  ;;  %v13939_v63 = vld [vmem:[#allocation7 + $0x44] sm:$0xf0] }
 0x1e3   : > { %v1745_v15 = vpack.c.bf16 %v1696_v7, %v1692_v6  ;;  %2541 = vmatpush.bf16.msra.mxu1 %v10631_v8  ;;  %v10683_v11 = vor.u32 %v13939_v63, %v10682_v60  ;;  %v10674_v6 = vld [vmem:[#allocation7 + $0x30] sm:$0xf]  ;;  %v13937_v7 = vld [vmem:[#allocation7 + $0x34] sm:$0xf0] }
 0x1e4   : > { %v10675_v10 = vor.u32 %v13937_v7, %v10674_v6  ;;  %v10946_v6 = vld [vmem:[#allocation7 + $0x250] sm:$0xf]  ;;  %v14005_v7 = vld [vmem:[#allocation7 + $0x254] sm:$0xf0] }
 0x1e6   : > { %2400 = vmatmul.bf16.gmra.mxu1 %v1745_v15  ;;  %2507 = vmatpush.bf16.msrb.mxu3 %v10471_v9  ;;  %v10810_v9 = vld [vmem:[#allocation7 + $0x140] sm:$0xf] }
 0x1e7   : > { %2542 = vmatpush.bf16.msra.mxu1 %v10623_v43  ;;  %v16050_v43 = vld [vmem:[%s15376_s21] sm:$0x3]  ;;  %v10811_v24 = vor.u32 %v13971_v23, %v10810_v9 }
 0x1e8   : > { %v16055_v28 = vperm.slane %v16050_v43, 0 }
 0x1ea   : > { %2508 = vmatpush.bf16.msrb.mxu3 %v10463_v32  ;;  %v10802_v32 = vld [vmem:[#allocation7 + $0x130] sm:$0xf] }
 0x1eb   : > { %2433 = vmatmul.bf16.vlgmr.msra.gmra.mxu3 %v1741_v31  ;;  %2543 = vmatpush.bf16.msra.mxu1 %v10615_v30  ;;  %v10803_v36 = vor.u32 %v13969_v17, %v10802_v32  ;;  %v10754_v17 = vld [vmem:[#allocation7 + $0xd0] sm:$0xf] }
 0x1ec   : > { %2457 = vmatmul.bf16.gmra.mxu0 %v15941_v25  ;;  %v1727_v25 = vsel %vm1709_vm3, %v1722_v45, %v1726_v42  ;;  %v10794_v45 = vld [vmem:[#allocation7 + $0x120] sm:$0xf] }
 0x1ed   : > { %v1747_v49 = vpack.c.bf16 %v1727_v25, %v1723_v44 }
 0x1ef   : > { %2544 = vmatpush.bf16.msra.mxu1 %v10607_v35 }
 0x1f1   : > { %2490 = vmatmul.bf16.vlgmr.msrb.gmra.mxu2 %v15931_v0 }
 0x1f3   : > { %2545 = vmatpush.bf16.msra.mxu1 %v10599_v38  ;;  %v13931_v38 = vld [vmem:[#allocation7 + $0x4] sm:$0xf0] }
 0x1f4   : > { %v10651_v40 = vor.u32 %v13931_v38, %v10650_v37 }
 0x1f6   : > { %2471 = vmatmul.bf16.vlgmr.msrb.gmra.mxu1 %v15965_v22 }
 0x1f7   : > { %2546 = vmatpush.bf16.msra.mxu1 %v10591_v48  ;;  %v13967_v48 = vld [vmem:[#allocation7 + $0x124] sm:$0xf0] }
 0x1f8   : > { %v10795_v44 = vor.u32 %v13967_v48, %v10794_v45  ;;  %v10898_v48 = vld [vmem:[#allocation7 + $0x1f0] sm:$0xf] }
 0x1fb   : > { %2438 = vmatmul.bf16.gmra.mxu3 %v1747_v49 }
 0x1fc   : > { %2528 = vmatmul.bf16.vlgmr.msra.gmra.mxu0 %v15976_v46  ;;  %v13945_v46 = vld [vmem:[#allocation7 + $0x74] sm:$0xf0] }
 0x1fd   : > { %v10707_v51 = vor.u32 %v13945_v46, %v10706_v50  ;;  %v14009_v50 = vld [vmem:[#allocation7 + $0x274] sm:$0xf0] }
 0x1ff   : > { %3289 = vmatpush.bf16.msra.mxu2 %v10707_v51 }
 0x201   : > { %2495 = vmatmul.bf16.gmra.mxu2 %v15958_v21  ;;  %v10698_v21 = vld [vmem:[#allocation7 + $0x60] sm:$0xf] }
 0x206   : > { %2476 = vmatmul.bf16.gmra.mxu1 %v16000_v47  ;;  %v13943_v47 = vld [vmem:[#allocation7 + $0x64] sm:$0xf0] }
 0x207   : > { %v10699_v53 = vor.u32 %v13943_v47, %v10698_v21  ;;  %v10786_v47 = vld [vmem:[#allocation7 + $0x110] sm:$0xf] }
 0x209   : > { %3290 = vmatpush.bf16.msra.mxu2 %v10699_v53 }
 0x20b   : > { %2509 = vmatmul.bf16.vlgmr.msrb.gmra.mxu3 %v15991_v29 }
 0x20c   : > { %2533 = vmatmul.bf16.gmra.mxu0 %v16009_v56  ;;  %v10834_v56 = vld [vmem:[#allocation7 + $0x170] sm:$0xf] }
 0x20d   : > { %3291 = vmatpush.bf16.msra.mxu2 %v10691_v19  ;;  %v10835_v59 = vor.u32 %v13977_v57, %v10834_v56  ;;  %v14007_v19 = vld [vmem:[#allocation7 + $0x264] sm:$0xf0] }
 0x20e   : > { %v10955_v57 = vor.u32 %v14007_v19, %v10954_v55  ;;  %v13940_v19 = vld [vmem:[#allocation7 + $0x54] sm:$0xf] }
 0x20f   : > { %3327 = vmatpush.bf16.msrb.mxu0 %v10835_v59  ;;  %v13961_v59 = vld [vmem:[#allocation7 + $0xf4] sm:$0xf0] }
 0x211   : > { %3292 = vmatpush.bf16.msra.mxu2 %v10683_v11 }
 0x213   : > { %3328 = vmatpush.bf16.msrb.mxu0 %v10827_v4 }
 0x215   : > { %3293 = vmatpush.bf16.msra.mxu2 %v10675_v10 }
 0x216   : > { %2547 = vmatmul.bf16.vlgmr.msra.gmra.mxu1 %v1741_v31  ;;  %v10659_v31 = vor.u32 %v13933_v27, %v10658_v26  ;;  %v14003_v26 = vld [vmem:[#allocation7 + $0x244] sm:$0xf0] }
 0x219   : > { %3294 = vmatpush.bf16.msra.mxu2 %v10667_v3  ;;  %v10708_v3 = vld [vmem:[#allocation7 + $0x78] sm:$0xf0] }
 0x21b   : > { %2514 = vmatmul.bf16.gmra.mxu3 %v1745_v15  ;;  %v13973_v15 = vld [vmem:[#allocation7 + $0x154] sm:$0xf0] }
 0x21c   : > { %v10819_v16 = vor.u32 %v13973_v15, %v10818_v14  ;;  %v10947_v14 = vor.u32 %v14005_v7, %v10946_v6  ;;  %v10762_v15 = vld [vmem:[#allocation7 + $0xe0] sm:$0xf]  ;;  %v13953_v6 = vld [vmem:[#allocation7 + $0xb4] sm:$0xf0] }
 0x21d   : > { %3295 = vmatpush.bf16.msra.mxu2 %v10659_v31 }
 0x21e   : > { %3329 = vmatpush.bf16.msrb.mxu0 %v10819_v16 }
 0x221   : > { %3296 = vmatpush.bf16.msra.mxu2 %v10651_v40  ;;  %v10700_v40 = vld [vmem:[#allocation7 + $0x68] sm:$0xf0] }
 0x222   : > { %3330 = vmatpush.bf16.msrb.mxu0 %v10811_v24  ;;  %v10938_v24 = vld [vmem:[#allocation7 + $0x240] sm:$0xf] }
 0x223   : > { %v10939_v32 = vor.u32 %v14003_v26, %v10938_v24  ;;  %v13997_v26 = vld [vmem:[#allocation7 + $0x214] sm:$0xf0] }
 0x226   : > { %2552 = vmatmul.bf16.gmra.mxu1 %v1747_v49  ;;  %3331 = vmatpush.bf16.msrb.mxu0 %v10803_v36  ;;  %v10962_v49 = vld [vmem:[#allocation7 + $0x270] sm:$0xf]  ;;  %v13957_v36 = vld [vmem:[#allocation7 + $0xd4] sm:$0xf0] }
 0x227   : > { %v10963_v51 = vor.u32 %v14009_v50, %v10962_v49  ;;  %v10755_v37 = vor.u32 %v13957_v36, %v10754_v17 }
 0x229   : > { %3365 = vmatpush.bf16.msrb.mxu2 %v10963_v51 }
 0x22a   : > { %3332 = vmatpush.bf16.msrb.mxu0 %v10795_v44  ;;  %v10930_v44 = vld [vmem:[#allocation7 + $0x230] sm:$0xf] }
 0x22d   : > { %3366 = vmatpush.bf16.msrb.mxu2 %v10955_v57 }
 0x231   : > { %3367 = vmatpush.bf16.msrb.mxu2 %v10947_v14 }
 0x234   : > { %v16035_v0 = vpop.f32.mrf.mxu2 }
 0x235   : > { %v2340_v34 = vadd.f32 %v16035_v0, %v16055_v28  ;;  %v13965_v0 = vld [vmem:[#allocation7 + $0x114] sm:$0xf0]  ;;  %3368 = vmatpush.bf16.msrb.mxu2 %v10939_v32  ;;  %v13951_v32 = vld [vmem:[#allocation7 + $0xa4] sm:$0xf0] }
 0x236   : > { %v10787_v54 = vor.u32 %v13965_v0, %v10786_v47  ;;  %v10746_v47 = vld [vmem:[#allocation7 + $0xc0] sm:$0xf] }
 0x238   : > { %3333 = vmatpush.bf16.msrb.mxu0 %v10787_v54 }
 0x239   : > { %v16037_v22 = vpop.f32.mrf.mxu0 }
 0x23c   : > { %v16039_v41 = vpop.f32.mrf.mxu2 }
 0x23d   : > { %v2342_v56 = vadd.f32 %v16039_v41, %v16055_v28  ;;  %v13959_v41 = vld [vmem:[#allocation7 + $0xe4] sm:$0xf0] }
 0x23e   : > { %v10763_v18 = vor.u32 %v13959_v41, %v10762_v15 }
 0x241   : > { %v16041_v52 = vpop.f32.mrf.mxu0 }
 0x244   : > { %v16043_v29 = vpop.f32.mrf.mxu2 }
 0x245   : > { %v2345_v27 = vadd.f32 %v16043_v29, %v16055_v28  ;;  %v13993_v29 = vld [vmem:[#allocation7 + $0x1f4] sm:$0xf0] }
 0x246   : > { %v10899_v51 = vor.u32 %v13993_v29, %v10898_v48  ;;  %v10874_v48 = vld [vmem:[#allocation7 + $0x1c0] sm:$0xf]  ;;  %v13987_v29 = vld [vmem:[#allocation7 + $0x1c4] sm:$0xf0] }
 0x248   : > { %3346 = vmatpush.bf16.msrb.mxu1 %v10899_v51  ;;  %v10906_v51 = vld [vmem:[#allocation7 + $0x200] sm:$0xf] }
 0x249   : > { %v16045_v12 = vpop.f32.mrf.mxu0 }
 0x24c   : > { %v16047_v13 = vpop.f32.mrf.mxu2 }
 0x24e   : > { %v2358_v58 = vpop.f32.mrf.mxu3 }
 0x24f   : > { %v2359_v42 = vadd.f32 %v2358_v58, %v2340_v34  ;;  %v10770_v58 = vld [vmem:[#allocation7 + $0xf0] sm:$0xf]  ;;  %v13942_v34 = vld [vmem:[#allocation7 + $0x64] sm:$0xf] }
 0x250   : > { %v10771_v63 = vor.u32 %v13961_v59, %v10770_v58  ;;  %v10703_v45 = vor.u32 %v13942_v34, %v10700_v40 }
 0x251   : > { %v16052_v61 = vpop.f32.mrf.mxu0  ;;  %v2378_v21 = vadd.f32 %v16037_v22, %v2359_v42  ;;  %v10778_v22 = vld [vmem:[#allocation7 + $0x100] sm:$0xf] }
 0x252   : > { %3308 = vmatpush.bf16.msra.mxu3 %v10771_v63  ;;  %v10779_v4 = vor.u32 %v13963_v2, %v10778_v22  ;;  %v10890_v63 = vld [vmem:[#allocation7 + $0x1e0] sm:$0xf]  ;;  %v2347_v22 = vadd.f32 %v16047_v13, %v16055_v28  ;;  %v10882_v13 = vld [vmem:[#allocation7 + $0x1d0] sm:$0xf]  ;;  %v13989_v28 = vld [vmem:[#allocation7 + $0x1d4] sm:$0xf0] }
 0x253   : > { %v2396_v8 = vpop.f32.mrf.mxu1  ;;  %v10883_v24 = vor.u32 %v13989_v28, %v10882_v13 }
 0x254   : > { %v2415_v33 = vpop.f32.mrf.mxu2  ;;  %v2397_v11 = vadd.f32 %v2396_v8, %v2378_v21  ;;  %3334 = vmatpush.bf16.msrb.mxu0 %v10779_v4  ;;  %v14001_v21 = vld [vmem:[#allocation7 + $0x234] sm:$0xf0]  ;;  %v13999_v4 = vld [vmem:[#allocation7 + $0x224] sm:$0xf0] }
 0x256   : > { %v2360_v1 = vpop.f32.mrf.mxu3  ;;  %v2416_v8 = vadd.f32 %v2415_v33, %v2397_v11  ;;  %3309 = vmatpush.bf16.msra.mxu3 %v10763_v18  ;;  %v13991_v11 = vld [vmem:[#allocation7 + $0x1e4] sm:$0xf0] }
 0x257   : > { %v2361_v39 = vadd.f32 %v2360_v1, %v2342_v56  ;;  %v13944_v1 = vld [vmem:[#allocation7 + $0x74] sm:$0xf]  ;;  %v10692_v56 = vld [vmem:[#allocation7 + $0x58] sm:$0xf0] }
 0x258   : > { %v10711_v23 = vor.u32 %v13944_v1, %v10708_v3  ;;  %v10695_v59 = vor.u32 %v13940_v19, %v10692_v56  ;;  %v10914_v3 = vld [vmem:[#allocation7 + $0x210] sm:$0xf]  ;;  %v13934_v19 = vld [vmem:[#allocation7 + $0x24] sm:$0xf]  ;;  %v10668_v56 = vld [vmem:[#allocation7 + $0x28] sm:$0xf0] }
 0x259   : > { %v16063_v25 = vpop.f32.mrf.mxu0  ;;  %v2380_v20 = vadd.f32 %v16041_v52, %v2361_v39  ;;  %v10922_v39 = vld [vmem:[#allocation7 + $0x220] sm:$0xf] }
 0x25a   : > { %3403 = vmatpush.bf16.msra.mxu0 %v10711_v23  ;;  %3310 = vmatpush.bf16.msra.mxu3 %v10755_v37  ;;  %v10923_v7 = vor.u32 %v13999_v4, %v10922_v39  ;;  %v16107_v39 = vperm.slane %v16050_v43, 1  ;;  %v10836_v4 = vld [vmem:[#allocation7 + $0x178] sm:$0xf0] }
 0x25b   : > { %v16057_v30 = vpop.f32.mrf.mxu1 }
 0x25c   : > { %v2417_v60 = vpop.f32.mrf.mxu2  ;;  %v2399_v52 = vadd.f32 %v16057_v30, %v2380_v20  ;;  %v10931_v30 = vor.u32 %v14001_v21, %v10930_v44  ;;  %v13938_v20 = vld [vmem:[#allocation7 + $0x44] sm:$0xf]  ;;  %v10722_v21 = vld [vmem:[#allocation7 + $0x90] sm:$0xf] }
 0x25e   : > { %v16059_v35 = vpop.f32.mrf.mxu3  ;;  %3404 = vmatpush.bf16.msra.mxu0 %v10703_v45  ;;  %v2418_v54 = vadd.f32 %v2417_v60, %v2399_v52  ;;  %3369 = vmatpush.bf16.msrb.mxu2 %v10931_v30  ;;  %v10738_v60 = vld [vmem:[#allocation7 + $0xb0] sm:$0xf] }
 0x25f   : > { %v2364_v33 = vadd.f32 %v16059_v35, %v2345_v27  ;;  %v13955_v35 = vld [vmem:[#allocation7 + $0xc4] sm:$0xf0]  ;;  %v10739_v14 = vor.u32 %v13953_v6, %v10738_v60  ;;  %v10730_v27 = vld [vmem:[#allocation7 + $0xa0] sm:$0xf] }
 0x260   : > { %v10747_v55 = vor.u32 %v13955_v35, %v10746_v47  ;;  %v10731_v52 = vor.u32 %v13951_v32, %v10730_v27  ;;  %v13949_v35 = vld [vmem:[#allocation7 + $0x94] sm:$0xf0]  ;;  %v13974_v27 = vld [vmem:[#allocation7 + $0x164] sm:$0xf] }
 0x261   : > { %v16074_v16 = vpop.f32.mrf.mxu0  ;;  %v2383_v0 = vadd.f32 %v16045_v12, %v2364_v33  ;;  %v10891_v12 = vor.u32 %v13991_v11, %v10890_v63  ;;  %v13936_v33 = vld [vmem:[#allocation7 + $0x34] sm:$0xf]  ;;  %v13985_v63 = vld [vmem:[#allocation7 + $0x1b4] sm:$0xf0] }
 0x262   : > { %3311 = vmatpush.bf16.msra.mxu3 %v10747_v55  ;;  %3405 = vmatpush.bf16.msra.mxu0 %v10695_v59  ;;  %v10723_v55 = vor.u32 %v13949_v35, %v10722_v21  ;;  %v10866_v59 = vld [vmem:[#allocation7 + $0x1b0] sm:$0xf]  ;;  %v13976_v11 = vld [vmem:[#allocation7 + $0x174] sm:$0xf]  ;;  %v11018_v35 = vld [vmem:[#allocation7 + $0x2e0] sm:$0xf] }
 0x263   : > { %v16065_v46 = vpop.f32.mrf.mxu1  ;;  %3347 = vmatpush.bf16.msrb.mxu1 %v10891_v12  ;;  %3370 = vmatpush.bf16.msrb.mxu2 %v10923_v7  ;;  %v10867_v12 = vor.u32 %v13985_v63, %v10866_v59  ;;  %v10839_v7 = vor.u32 %v13976_v11, %v10836_v4  ;;  %v10964_v59 = vld [vmem:[#allocation7 + $0x278] sm:$0xf0]  ;;  %v2456_v4 = vadd.f32 %v16074_v16, %v16107_v39 }
 0x264   : > { %v16081_v42 = vpop.f32.mrf.mxu2  ;;  %v2402_v15 = vadd.f32 %v16065_v46, %v2383_v0 }
 0x266   : > { %v16068_v53 = vpop.f32.mrf.mxu3  ;;  %3312 = vmatpush.bf16.msra.mxu3 %v10739_v14  ;;  %v2421_v37 = vadd.f32 %v16081_v42, %v2402_v15  ;;  %v13947_v14 = vld [vmem:[#allocation7 + $0x84] sm:$0xf0] }
 0x267   : > { %v2366_v41 = vadd.f32 %v16068_v53, %v2347_v22  ;;  %v10915_v53 = vor.u32 %v13997_v26, %v10914_v3  ;;  %3348 = vmatpush.bf16.msrb.mxu1 %v10883_v24  ;;  %v10858_v3 = vld [vmem:[#allocation7 + $0x1a0] sm:$0xf]  ;;  %v2454_v24 = vadd.f32 %v16063_v25, %v16107_v39 }
 0x269   : > { %v16086_v57 = vpop.f32.mrf.mxu0  ;;  %v2385_v17 = vadd.f32 %v16052_v61, %v2366_v41  ;;  %3371 = vmatpush.bf16.msrb.mxu2 %v10915_v53  ;;  %v10875_v61 = vor.u32 %v13987_v29, %v10874_v48  ;;  %v10652_v48 = vld [vmem:[#allocation7 + $0x8] sm:$0xf0] }
 0x26a   : > { %3313 = vmatpush.bf16.msra.mxu3 %v10731_v52  ;;  %v14025_v52 = vld [vmem:[#allocation7 + $0x2f4] sm:$0xf0] }
 0x26b   : > { %v16072_v10 = vpop.f32.mrf.mxu1  ;;  %3349 = vmatpush.bf16.msrb.mxu1 %v10875_v61  ;;  %v10850_v61 = vld [vmem:[#allocation7 + $0x190] sm:$0xf] }
 0x26c   : > { %v2404_v0 = vadd.f32 %v16072_v10, %v2385_v17  ;;  %v10714_v10 = vld [vmem:[#allocation7 + $0x80] sm:$0xf] }
 0x26d   : > { %v10715_v43 = vor.u32 %v13947_v14, %v10714_v10 }
 0x26e   : > { %v2434_v9 = vpop.f32.mrf.mxu3  ;;  %3314 = vmatpush.bf16.msra.mxu3 %v10723_v55 }
 0x26f   : > { %v2435_v31 = vadd.f32 %v2434_v9, %v2416_v8  ;;  %v10684_v8 = vld [vmem:[#allocation7 + $0x48] sm:$0xf0]  ;;  %3350 = vmatpush.bf16.msrb.mxu1 %v10867_v12  ;;  %v10842_v12 = vld [vmem:[#allocation7 + $0x180] sm:$0xf] }
 0x270   : > { %v10687_v1 = vor.u32 %v13938_v20, %v10684_v8  ;;  %v10660_v20 = vld [vmem:[#allocation7 + $0x18] sm:$0xf0] }
 0x271   : > { %v2558_v38 = vmax.f32 %v2435_v31, 0.0  ;;  %v2422_v31 = vpop.f32.mrf.mxu2  ;;  %v16102_v47 = vpop.f32.mrf.mxu0 }
 0x272   : > { %3406 = vmatpush.bf16.msra.mxu0 %v10687_v1  ;;  %v2423_v41 = vadd.f32 %v2422_v31, %v2404_v0  ;;  %3315 = vmatpush.bf16.msra.mxu3 %v10715_v43  ;;  %v10828_v31 = vld [vmem:[#allocation7 + $0x168] sm:$0xf0] }
 0x273   : > { %v2579_v49 = vrot.slane %v2558_v38, 7  ;;  %v16083_v50 = vpop.f32.mrf.mxu1  ;;  %v10676_v38 = vld [vmem:[#allocation7 + $0x38] sm:$0xf0]  ;;  %v10831_v17 = vor.u32 %v13974_v27, %v10828_v31  ;;  %v13960_v27 = vld [vmem:[#allocation7 + $0xf4] sm:$0xf] }
 0x274   : > { %v10679_v45 = vor.u32 %v13936_v33, %v10676_v38  ;;  %v2473_v33 = vadd.f32 %v16083_v50, %v2454_v24  ;;  %v14006_v24 = vld [vmem:[#allocation7 + $0x264] sm:$0xf]  ;;  %v10772_v31 = vld [vmem:[#allocation7 + $0xf8] sm:$0xf0] }
 0x275   : > { %2603 = vst [vmem:[#allocation3] sm:$0xfe] %v2579_v49 }
 0x276   : > { %v2436_v58 = vpop.f32.mrf.mxu3  ;;  %3407 = vmatpush.bf16.msra.mxu0 %v10679_v45  ;;  %v13930_v45 = vld [vmem:[#allocation7 + $0x4] sm:$0xf] }
 0x277   : > { %v2437_v2 = vadd.f32 %v2436_v58, %v2418_v54  ;;  %v10671_v58 = vor.u32 %v13934_v19, %v10668_v56 }
 0x279   : > { %v2560_v18 = vmax.f32 %v2437_v2, 0.0  ;;  %v2491_v8 = vpop.f32.mrf.mxu2  ;;  %v2529_v29 = vpop.f32.mrf.mxu0 }
 0x27a   : > { %3408 = vmatpush.bf16.msra.mxu0 %v10671_v58  ;;  %v2492_v19 = vadd.f32 %v2491_v8, %v2473_v33  ;;  %v14008_v58 = vld [vmem:[#allocation7 + $0x274] sm:$0xf]  ;;  %v14021_v8 = vld [vmem:[#allocation7 + $0x2d4] sm:$0xf0] }
 0x27b   : > { %v2581_v9 = vrot.slane %v2560_v18, 7  ;;  %v16092_v23 = vpop.f32.mrf.mxu1  ;;  %v13932_v18 = vld [vmem:[#allocation7 + $0x14] sm:$0xf] }
 0x27c   : > { %v2613_v46 = vld [vmem:[#allocation3] sm:$0xff]  ;;  %v10663_v28 = vor.u32 %v13932_v18, %v10660_v20 }
 0x27d   : > { %v16096_v36 = vsel %vm1617_vm1, %v2579_v49, %v2581_v9  ;;  %v13995_v49 = vld [vmem:[#allocation7 + $0x204] sm:$0xf0]  ;;  %v2621_v42 = vld [vmem:[#allocation3] sm:$0xfe] }
 0x27e   : > { %v2439_v34 = vpop.f32.mrf.mxu3  ;;  %v16100_v40 = vpack.c.bf16 %v16096_v36, %v2613_v46  ;;  %v10907_v30 = vor.u32 %v13995_v49, %v10906_v51  ;;  %v2639_v60 = vrot.slane %v2621_v42, 1  ;;  %v2640_v6 = vrot.slane %v16096_v36, 1  ;;  %3409 = vmatpush.bf16.msra.mxu0 %v10663_v28  ;;  %v13981_v51 = vld [vmem:[#allocation7 + $0x194] sm:$0xf0]  ;;  %v13972_v49 = vld [vmem:[#allocation7 + $0x154] sm:$0xf] }
 0x27f   : > { %v2440_v44 = vadd.f32 %v2439_v34, %v2421_v37  ;;  %v11026_v37 = vld [vmem:[#allocation7 + $0x2f0] sm:$0xf]  ;;  %v10851_v50 = vor.u32 %v13981_v51, %v10850_v61 }
 0x280   : > { %3297 = vmatmul.bf16.vlgmr.msra.gmra.mxu2 %v16100_v40  ;;  %v2641_v46 = vsel %vm1678_vm2, %v2639_v60, %v2640_v6  ;;  %v11027_v34 = vor.u32 %v14025_v52, %v11026_v37  ;;  %v13979_v60 = vld [vmem:[#allocation7 + $0x184] sm:$0xf0]  ;;  %v11010_v20 = vld [vmem:[#allocation7 + $0x2d0] sm:$0xf]  ;;  %v11002_v37 = vld [vmem:[#allocation7 + $0x2c0] sm:$0xf] }
 0x281   : > { %v2562_v54 = vmax.f32 %v2440_v44, 0.0  ;;  %3372 = vmatpush.bf16.msrb.mxu2 %v10907_v30  ;;  %v10655_v44 = vor.u32 %v13930_v45, %v10652_v48  ;;  %v10820_v30 = vld [vmem:[#allocation7 + $0x158] sm:$0xf0]  ;;  %v2493_v14 = vpop.f32.mrf.mxu2  ;;  %v10843_v43 = vor.u32 %v13979_v60, %v10842_v12  ;;  %v14019_v52 = vld [vmem:[#allocation7 + $0x2c4] sm:$0xf0] }
 0x282   : > { %3384 = vmatpush.bf16.msrb.mxu3 %v11027_v34  ;;  %v10823_v0 = vor.u32 %v13972_v49, %v10820_v30  ;;  %v2670_v34 = vrot.slane %v16096_v36, 2  ;;  %v11003_v48 = vor.u32 %v14019_v52, %v11002_v37  ;;  %v10948_v49 = vld [vmem:[#allocation7 + $0x258] sm:$0xf0]  ;;  %v10796_v12 = vld [vmem:[#allocation7 + $0x128] sm:$0xf0] }
 0x283   : > { %v2585_v22 = vrot.slane %v2562_v54, 7  ;;  %v16109_v2 = vpop.f32.mrf.mxu1  ;;  %3410 = vmatpush.bf16.msra.mxu0 %v10655_v44  ;;  %v14023_v54 = vld [vmem:[#allocation7 + $0x2e4] sm:$0xf0]  ;;  %v10748_v37 = vld [vmem:[#allocation7 + $0xc8] sm:$0xf0] }
 0x284   : > { %v11019_v56 = vor.u32 %v14023_v54, %v11018_v35  ;;  %v10764_v54 = vld [vmem:[#allocation7 + $0xe8] sm:$0xf0]  ;;  %v13962_v52 = vld [vmem:[#allocation7 + $0x104] sm:$0xf] }
 0x285   : > { %v16113_v15 = vsel %vm1617_vm1, %v2581_v9, %v2585_v22  ;;  %3441 = vmatpush.bf16.msra.mxu2 %v10839_v7  ;;  %v13983_v9 = vld [vmem:[#allocation7 + $0x1a4] sm:$0xf0]  ;;  %v10812_v7 = vld [vmem:[#allocation7 + $0x148] sm:$0xf0] }
 0x286   : > { %2607 = vst [vmem:[#allocation3 + $0x20] sm:$0xff] %v16113_v15  ;;  %v2441_v1 = vpop.f32.mrf.mxu3  ;;  %v2645_v13 = vrot.slane %v16113_v15, 1  ;;  %v10859_v32 = vor.u32 %v13983_v9, %v10858_v3  ;;  %3385 = vmatpush.bf16.msrb.mxu3 %v11019_v56  ;;  %v11011_v3 = vor.u32 %v14021_v8, %v11010_v20  ;;  %v10756_v20 = vld [vmem:[#allocation7 + $0xd8] sm:$0xf0]  ;;  %v13964_v8 = vld [vmem:[#allocation7 + $0x114] sm:$0xf] }
 0x287   : > { %v2442_v26 = vadd.f32 %v2441_v1, %v2423_v41  ;;  %v16139_v41 = vld [vmem:[#allocation3] sm:$0xfc]  ;;  %v2475_v1 = vadd.f32 %v16092_v23, %v2456_v4  ;;  %v2531_v23 = vpop.f32.mrf.mxu0 }
 0x288   : > { %v2646_v53 = vsel %vm1678_vm2, %v2640_v6, %v2645_v13  ;;  %3351 = vmatpush.bf16.msrb.mxu1 %v10859_v32  ;;  %v13970_v6 = vld [vmem:[#allocation7 + $0x144] sm:$0xf]  ;;  %v10775_v32 = vor.u32 %v13960_v27, %v10772_v31  ;;  %v2669_v51 = vrot.slane %v16139_v41, 2  ;;  %v10994_v4 = vld [vmem:[#allocation7 + $0x2b0] sm:$0xf] }
 0x289   : > { %v2564_v38 = vmax.f32 %v2442_v26, 0.0  ;;  %v16124_v25 = vpack.c.bf16 %v2646_v53, %v2641_v46  ;;  %3442 = vmatpush.bf16.msra.mxu2 %v10831_v17  ;;  %v10815_v18 = vor.u32 %v13970_v6, %v10812_v7  ;;  %v10956_v26 = vld [vmem:[#allocation7 + $0x268] sm:$0xf0]  ;;  %v13968_v46 = vld [vmem:[#allocation7 + $0x134] sm:$0xf]  ;;  %v2494_v44 = vadd.f32 %v2493_v14, %v2475_v1  ;;  %v2496_v1 = vpop.f32.mrf.mxu2 }
 0x28a   : > { %v10959_v9 = vor.u32 %v14006_v24, %v10956_v26  ;;  %3386 = vmatpush.bf16.msrb.mxu3 %v11011_v3  ;;  %v10804_v17 = vld [vmem:[#allocation7 + $0x138] sm:$0xf0]  ;;  %v14002_v7 = vld [vmem:[#allocation7 + $0x244] sm:$0xf]  ;;  %v10940_v14 = vld [vmem:[#allocation7 + $0x248] sm:$0xf0] }
 0x28b   : > { %v2589_v21 = vrot.slane %v2564_v38, 7  ;;  %v16126_v42 = vpop.f32.mrf.mxu1  ;;  %3335 = vmatmul.bf16.vlgmr.msrb.gmra.mxu0 %v16124_v25  ;;  %v10807_v45 = vor.u32 %v13968_v46, %v10804_v17  ;;  %v14000_v27 = vld [vmem:[#allocation7 + $0x234] sm:$0xf]  ;;  %v10932_v31 = vld [vmem:[#allocation7 + $0x238] sm:$0xf0] }
 0x28c   : > { %3352 = vmatpush.bf16.msrb.mxu1 %v10851_v50  ;;  %v2459_v50 = vadd.f32 %v16086_v57, %v16107_v39  ;;  %v14017_v57 = vld [vmem:[#allocation7 + $0x2b4] sm:$0xf0]  ;;  %v13954_v17 = vld [vmem:[#allocation7 + $0xc4] sm:$0xf] }
 0x28d   : > { %v16130_v55 = vsel %vm1617_vm1, %v2585_v22, %v2589_v21  ;;  %2611 = vst [vmem:[#allocation3 + $0x40] sm:$0x1] %v2589_v21  ;;  %3443 = vmatpush.bf16.msra.mxu2 %v10823_v0  ;;  %v10967_v22 = vor.u32 %v14008_v58, %v10964_v59  ;;  %v13958_v21 = vld [vmem:[#allocation7 + $0xe4] sm:$0xf]  ;;  %v2675_v0 = vrot.slane %v16113_v15, 2 }
 0x28e   : > { %v2510_v63 = vpop.f32.mrf.mxu3  ;;  %v16134_v11 = vpack.c.bf16 %v16130_v55, %v16113_v15  ;;  %v2649_v16 = vrot.slane %v16130_v55, 1  ;;  %3387 = vmatpush.bf16.msrb.mxu3 %v11003_v48  ;;  %v10978_v48 = vld [vmem:[#allocation7 + $0x290] sm:$0xf] }
 0x28f   : > { %v2511_v10 = vadd.f32 %v2510_v63, %v2492_v19  ;;  %3479 = vmatpush.bf16.msrb.mxu0 %v10967_v22  ;;  %v13966_v19 = vld [vmem:[#allocation7 + $0x124] sm:$0xf]  ;;  %v10767_v63 = vor.u32 %v13958_v21, %v10764_v54  ;;  %v2676_v24 = vsel %vm1709_vm3, %v2670_v34, %v2675_v0  ;;  %v10924_v54 = vld [vmem:[#allocation7 + $0x228] sm:$0xf0] }
 0x290   : > { %3302 = vmatmul.bf16.gmra.mxu2 %v16134_v11  ;;  %3353 = vmatpush.bf16.msrb.mxu1 %v10843_v43  ;;  %v2650_v58 = vsel %vm1678_vm2, %v2645_v13, %v2649_v16  ;;  %v10799_v6 = vor.u32 %v13966_v19, %v10796_v12  ;;  %v10995_v13 = vor.u32 %v14017_v57, %v10994_v4 }
 0x291   : > { %v2530_v28 = vadd.f32 %v2529_v29, %v2511_v10  ;;  %3444 = vmatpush.bf16.msra.mxu2 %v10815_v18  ;;  %v14004_v29 = vld [vmem:[#allocation7 + $0x254] sm:$0xf]  ;;  %v2478_v10 = vadd.f32 %v16109_v2, %v2459_v50  ;;  %v10943_v43 = vor.u32 %v14002_v7, %v10940_v14  ;;  %v2498_v7 = vpop.f32.mrf.mxu2 }
 0x292   : > { %v10951_v36 = vor.u32 %v14004_v29, %v10948_v49  ;;  %v13956_v18 = vld [vmem:[#allocation7 + $0xd4] sm:$0xf]  ;;  %3388 = vmatpush.bf16.msrb.mxu3 %v10995_v13  ;;  %v14013_v29 = vld [vmem:[#allocation7 + $0x294] sm:$0xf0]  ;;  %v10916_v13 = vld [vmem:[#allocation7 + $0x218] sm:$0xf0] }
 0x293   : > { %v2548_v53 = vpop.f32.mrf.mxu1  ;;  %3480 = vmatpush.bf16.msrb.mxu0 %v10959_v9  ;;  %v10759_v2 = vor.u32 %v13956_v18, %v10756_v20  ;;  %v14015_v9 = vld [vmem:[#allocation7 + $0x2a4] sm:$0xf0] }
 0x294   : > { %v2549_v33 = vadd.f32 %v2548_v53, %v2530_v28  ;;  %v2623_v38 = vld [vmem:[#allocation3 + $0x40] sm:$0x1]  ;;  %3422 = vmatpush.bf16.msra.mxu1 %v10775_v32  ;;  %v10788_v28 = vld [vmem:[#allocation7 + $0x118] sm:$0xf0]  ;;  %v2671_v53 = vsel %vm1709_vm3, %v2669_v51, %v2670_v34  ;;  %v2461_v34 = vadd.f32 %v16102_v47, %v16107_v39 }
 0x295   : > { %v2653_v61 = vrot.slane %v2623_v38, 1  ;;  %3445 = vmatpush.bf16.msra.mxu2 %v10807_v45  ;;  %v10791_v26 = vor.u32 %v13964_v8, %v10788_v28  ;;  %v10751_v38 = vor.u32 %v13954_v17, %v10748_v37  ;;  %v10780_v45 = vld [vmem:[#allocation7 + $0x108] sm:$0xf0]  ;;  %v16163_v21 = vpack.c.bf16 %v2676_v24, %v2671_v53  ;;  %v10740_v47 = vld [vmem:[#allocation7 + $0xb8] sm:$0xf0] }
 0x296   : > { %v2559_v30 = vmax.f32 %v2549_v33, 0.0  ;;  %v2512_v35 = vpop.f32.mrf.mxu3  ;;  %v10935_v33 = vor.u32 %v14000_v27, %v10932_v31  ;;  %v10783_v50 = vor.u32 %v13962_v52, %v10780_v45  ;;  %v2480_v19 = vadd.f32 %v16126_v42, %v2461_v34  ;;  %v2627_v42 = vld [vmem:[#allocation3 + $0x40] sm:$0x3]  ;;  %v13950_v8 = vld [vmem:[#allocation7 + $0xa4] sm:$0xf] }
 0x297   : > { %v2513_v56 = vadd.f32 %v2512_v35, %v2494_v44  ;;  %v2654_v59 = vsel %vm1678_vm2, %v2649_v16, %v2653_v61  ;;  %3481 = vmatpush.bf16.msrb.mxu0 %v10951_v36  ;;  %v10986_v16 = vld [vmem:[#allocation7 + $0x2a0] sm:$0xf]  ;;  %v2534_v44 = vpop.f32.mrf.mxu0  ;;  %v13998_v36 = vld [vmem:[#allocation7 + $0x224] sm:$0xf]  ;;  %v13992_v24 = vld [vmem:[#allocation7 + $0x1f4] sm:$0xf] }
 0x298   : > { %v16153_v22 = vrot.slane %v2559_v30, 7  ;;  %v16155_v60 = vpack.c.bf16 %v2654_v59, %v2650_v58  ;;  %3423 = vmatpush.bf16.msra.mxu1 %v10767_v63  ;;  %v10987_v32 = vor.u32 %v14015_v9, %v10986_v16  ;;  %v10979_v30 = vor.u32 %v14013_v29, %v10978_v48  ;;  %v13952_v63 = vld [vmem:[#allocation7 + $0xb4] sm:$0xf]  ;;  %v13994_v31 = vld [vmem:[#allocation7 + $0x204] sm:$0xf] }
 0x299   : > { %v2532_v41 = vadd.f32 %v2531_v23, %v2513_v56  ;;  %3446 = vmatpush.bf16.msra.mxu2 %v10799_v6  ;;  %v2497_v23 = vadd.f32 %v2496_v1, %v2478_v10  ;;  %v10927_v59 = vor.u32 %v13998_v36, %v10924_v54  ;;  %v10743_v57 = vor.u32 %v13952_v63, %v10740_v47  ;;  %v10970_v10 = vld [vmem:[#allocation7 + $0x280] sm:$0xf]  ;;  %v14011_v6 = vld [vmem:[#allocation7 + $0x284] sm:$0xf0]  ;;  %v10732_v1 = vld [vmem:[#allocation7 + $0xa8] sm:$0xf0] }
 0x29a   : > { %2604 = vst [vmem:[#allocation3 + $0x8] sm:$0xfe] %v16153_v22  ;;  %3389 = vmatpush.bf16.msrb.mxu3 %v10987_v32  ;;  %v2683_v16 = vrot.slane %v2627_v42, 2  ;;  %v13948_v53 = vld [vmem:[#allocation7 + $0x94] sm:$0xf]  ;;  %v2679_v17 = vrot.slane %v16130_v55, 2 }
 0x29b   : > { %v2550_v3 = vpop.f32.mrf.mxu1  ;;  %3340 = vmatmul.bf16.gmra.mxu0 %v16155_v60  ;;  %v10724_v52 = vld [vmem:[#allocation7 + $0x98] sm:$0xf0]  ;;  %v10892_v29 = vld [vmem:[#allocation7 + $0x1e8] sm:$0xf0] }
 0x29c   : > { %v2551_v46 = vadd.f32 %v2550_v3, %v2532_v41  ;;  %3482 = vmatpush.bf16.msrb.mxu0 %v10943_v43  ;;  %3424 = vmatpush.bf16.msra.mxu1 %v10759_v2  ;;  %v10971_v41 = vor.u32 %v14011_v6, %v10970_v10  ;;  %v2499_v43 = vadd.f32 %v2498_v7, %v2480_v19  ;;  %v10716_v36 = vld [vmem:[#allocation7 + $0x88] sm:$0xf0]  ;;  %v11028_v42 = vld [vmem:[#allocation7 + $0x2f8] sm:$0xf0]  ;;  %v13986_v10 = vld [vmem:[#allocation7 + $0x1c4] sm:$0xf] }
 0x29d   : > { %3447 = vmatpush.bf16.msra.mxu2 %v10791_v26  ;;  %v10735_v3 = vor.u32 %v13950_v8, %v10732_v1  ;;  %v10900_v26 = vld [vmem:[#allocation7 + $0x1f8] sm:$0xf0]  ;;  %v10876_v6 = vld [vmem:[#allocation7 + $0x1c8] sm:$0xf0]  ;;  %v14020_v8 = vld [vmem:[#allocation7 + $0x2d4] sm:$0xf] }
 0x29e   : > { %v2561_v61 = vmax.f32 %v2551_v46, 0.0  ;;  %v2515_v49 = vpop.f32.mrf.mxu3  ;;  %3390 = vmatpush.bf16.msrb.mxu3 %v10979_v30  ;;  %v10903_v27 = vor.u32 %v13992_v24, %v10900_v26  ;;  %v10908_v46 = vld [vmem:[#allocation7 + $0x208] sm:$0xf0]  ;;  %v11012_v1 = vld [vmem:[#allocation7 + $0x2d8] sm:$0xf0] }
 0x29f   : > { %v2516_v51 = vadd.f32 %v2515_v49, %v2497_v23  ;;  %v2536_v32 = vpop.f32.mrf.mxu0  ;;  %v13990_v23 = vld [vmem:[#allocation7 + $0x1e4] sm:$0xf]  ;;  %v10911_v48 = vor.u32 %v13994_v31, %v10908_v46  ;;  %v10727_v49 = vor.u32 %v13948_v53, %v10724_v52  ;;  %v11015_v24 = vor.u32 %v14020_v8, %v11012_v1  ;;  %v11004_v53 = vld [vmem:[#allocation7 + $0x2c8] sm:$0xf0] }
 0x2a0   : > { %v2583_v35 = vrot.slane %v2561_v61, 7  ;;  %3373 = vmatmul.bf16.vlgmr.msrb.gmra.mxu2 %v16163_v21  ;;  %3483 = vmatpush.bf16.msrb.mxu0 %v10935_v33  ;;  %v2684_v61 = vsel %vm1709_vm3, %v2679_v17, %v2683_v16  ;;  %v10860_v16 = vld [vmem:[#allocation7 + $0x1a8] sm:$0xf0]  ;;  %v14018_v46 = vld [vmem:[#allocation7 + $0x2c4] sm:$0xf] }
 0x2a1   : > { %v2535_v56 = vadd.f32 %v2534_v44, %v2516_v51  ;;  %v2614_v58 = vld [vmem:[#allocation3 + $0x8] sm:$0xff]  ;;  %3425 = vmatpush.bf16.msra.mxu1 %v10751_v38  ;;  %3448 = vmatpush.bf16.msra.mxu2 %v10783_v50  ;;  %v10895_v50 = vor.u32 %v13990_v23, %v10892_v29  ;;  %v13946_v51 = vld [vmem:[#allocation7 + $0x84] sm:$0xf] }
 0x2a2   : > { %v16171_v12 = vsel %vm1617_vm1, %v16153_v22, %v2583_v35  ;;  %4567 = vst.msk [vmem:[#allocation3] ss:$8 sm:$0x3] %vm15883_vm0, %v15347_v5  ;;  %v13996_v22 = vld [vmem:[#allocation7 + $0x214] sm:$0xf]  ;;  %3391 = vmatpush.bf16.msrb.mxu3 %v10971_v41  ;;  %v10719_v47 = vor.u32 %v13946_v51, %v10716_v36 }
 0x2a3   : > { %v2553_v39 = vpop.f32.mrf.mxu1  ;;  %v16177_v4 = vpack.c.bf16 %v16171_v12, %v2614_v58  ;;  %v2622_v18 = vld [vmem:[#allocation3 + $0x8] sm:$0xfe]  ;;  %v10919_v20 = vor.u32 %v13996_v22, %v10916_v13  ;;  %v2643_v45 = vrot.slane %v16171_v12, 1  ;;  %v14022_v22 = vld [vmem:[#allocation7 + $0x2e4] sm:$0xf] }
 0x2a4   : > { %v2554_v14 = vadd.f32 %v2553_v39, %v2535_v56  ;;  %3484 = vmatpush.bf16.msrb.mxu0 %v10927_v59  ;;  %v2642_v38 = vrot.slane %v2622_v18, 1  ;;  %v10884_v58 = vld [vmem:[#allocation7 + $0x1d8] sm:$0xf0]  ;;  %v11020_v13 = vld [vmem:[#allocation7 + $0x2e8] sm:$0xf0] }
 0x2a5   : > { %3316 = vmatmul.bf16.vlgmr.msra.gmra.mxu3 %v16177_v4  ;;  %3426 = vmatpush.bf16.msra.mxu1 %v10743_v57  ;;  %v11023_v18 = vor.u32 %v14022_v22, %v11020_v13  ;;  %v10852_v23 = vld [vmem:[#allocation7 + $0x198] sm:$0xf0] }
 0x2a6   : > { %v2563_v2 = vmax.f32 %v2554_v14, 0.0  ;;  %v2517_v28 = vpop.f32.mrf.mxu3  ;;  %3460 = vmatpush.bf16.msra.mxu3 %v10903_v27  ;;  %v2644_v54 = vsel %vm1678_vm2, %v2642_v38, %v2643_v45  ;;  %v10879_v14 = vor.u32 %v13986_v10, %v10876_v6  ;;  %v2626_v27 = vld [vmem:[#allocation3 + $0x8] sm:$0xfc]  ;;  %v11007_v38 = vor.u32 %v14018_v46, %v11004_v53  ;;  %v3519_v46 = vld [vmem:[#allocation2 + $0x10] sm:$0xff] }
 0x2a7   : > { %v2518_v9 = vadd.f32 %v2517_v28, %v2499_v43  ;;  %v13984_v43 = vld [vmem:[#allocation7 + $0x1b4] sm:$0xf]  ;;  %v13982_v28 = vld [vmem:[#allocation7 + $0x1a4] sm:$0xf] }
 0x2a8   : > { %v2587_v37 = vrot.slane %v2563_v2, 7  ;;  %3485 = vmatpush.bf16.msrb.mxu0 %v10919_v20  ;;  %v10868_v20 = vld [vmem:[#allocation7 + $0x1b8] sm:$0xf0]  ;;  %v10863_v31 = vor.u32 %v13982_v28, %v10860_v16 }
 0x2a9   : > { %v2537_v33 = vadd.f32 %v2536_v32, %v2518_v9  ;;  %3427 = vmatpush.bf16.msra.mxu1 %v10735_v3  ;;  %v10871_v2 = vor.u32 %v13984_v43, %v10868_v20  ;;  %v13980_v32 = vld [vmem:[#allocation7 + $0x194] sm:$0xf] }
 0x2aa   : > { %v16183_v44 = vsel %vm1617_vm1, %v2583_v35, %v2587_v37  ;;  %v2680_v35 = vsel %vm1709_vm3, %v2675_v0, %v2679_v17  ;;  %3461 = vmatpush.bf16.msra.mxu3 %v10895_v50  ;;  %v14024_v0 = vld [vmem:[#allocation7 + $0x2f4] sm:$0xf]  ;;  %v10855_v29 = vor.u32 %v13980_v32, %v10852_v23  ;;  %v13978_v50 = vld [vmem:[#allocation7 + $0x184] sm:$0xf] }
 0x2ab   : > { %2608 = vst [vmem:[#allocation3 + $0x28] sm:$0xff] %v16183_v44  ;;  %v2555_v55 = vpop.f32.mrf.mxu1  ;;  %3411 = vmatmul.bf16.vlgmr.msra.gmra.mxu0 %v16100_v40  ;;  %v2647_v34 = vrot.slane %v16183_v44, 1  ;;  %v16197_v56 = vpack.c.bf16 %v2684_v61, %v2680_v35  ;;  %v13988_v40 = vld [vmem:[#allocation7 + $0x1d4] sm:$0xf]  ;;  %v11031_v57 = vor.u32 %v14024_v0, %v11028_v42  ;;  %v2677_v52 = vrot.slane %v16183_v44, 2 }
 0x2ac   : > { %4570 = vst.msk [vmem:[#allocation3 + $0x21] ss:$8 sm:$0x3] %vm15883_vm0, %v15347_v5  ;;  %v2556_v30 = vadd.f32 %v2555_v55, %v2537_v33  ;;  %3486 = vmatpush.bf16.msrb.mxu0 %v10911_v48  ;;  %v10887_v39 = vor.u32 %v13988_v40, %v10884_v58  ;;  %v2673_v48 = vrot.slane %v16171_v12, 2  ;;  %v14016_v61 = vld [vmem:[#allocation7 + $0x2b4] sm:$0xf] }
 0x2ad   : > { %v2648_v19 = vsel %vm1678_vm2, %v2643_v45, %v2647_v34  ;;  %3428 = vmatpush.bf16.msra.mxu1 %v10727_v49  ;;  %v2672_v45 = vrot.slane %v2626_v27, 2  ;;  %v10996_v49 = vld [vmem:[#allocation7 + $0x2b8] sm:$0xf0]  ;;  %v14014_v12 = vld [vmem:[#allocation7 + $0x2a4] sm:$0xf] }
 0x2ae   : > { %v2565_v59 = vmax.f32 %v2556_v30, 0.0  ;;  %v16199_v63 = vpack.c.bf16 %v2648_v19, %v2644_v54  ;;  %3462 = vmatpush.bf16.msra.mxu3 %v10887_v39  ;;  %v10999_v55 = vor.u32 %v14016_v61, %v10996_v49  ;;  %v10988_v35 = vld [vmem:[#allocation7 + $0x2a8] sm:$0xf0]  ;;  %v10980_v54 = vld [vmem:[#allocation7 + $0x298] sm:$0xf0] }
 0x2af   : > { %v10991_v36 = vor.u32 %v14014_v12, %v10988_v35  ;;  %v14010_v58 = vld [vmem:[#allocation7 + $0x284] sm:$0xf] }
 0x2b0   : > { %v2591_v15 = vrot.slane %v2565_v59, 7  ;;  %3354 = vmatmul.bf16.vlgmr.msrb.gmra.mxu1 %v16199_v63  ;;  %3378 = vmatmul.bf16.gmra.mxu2 %v16197_v56  ;;  %v10972_v59 = vld [vmem:[#allocation7 + $0x288] sm:$0xf0]  ;;  %v3517_v32 = vld [vmem:[#allocation2] sm:$0xfe] }
 0x2b1   : > { %3429 = vmatpush.bf16.msra.mxu1 %v10719_v47  ;;  %v10975_v39 = vor.u32 %v14010_v58, %v10972_v59 }
 0x2b2   : > { %v16204_v7 = vsel %vm1617_vm1, %v2587_v37, %v2591_v15  ;;  %2612 = vst [vmem:[#allocation3 + $0x48] sm:$0x1] %v2591_v15  ;;  %3463 = vmatpush.bf16.msra.mxu3 %v10879_v14 }
 0x2b3   : > { %v16208_v41 = vpack.c.bf16 %v16204_v7, %v16183_v44  ;;  %v2651_v3 = vrot.slane %v16204_v7, 1  ;;  %v10844_v44 = vld [vmem:[#allocation7 + $0x188] sm:$0xf0]  ;;  %v2681_v15 = vrot.slane %v16204_v7, 2 }
 0x2b4   : > { %v10847_v51 = vor.u32 %v13978_v50, %v10844_v44  ;;  %v3521_v50 = vld [vmem:[#allocation2 + $0x20] sm:$0xff] }
 0x2b5   : > { %3498 = vmatpush.bf16.msrb.mxu1 %v11031_v57  ;;  %3321 = vmatmul.bf16.gmra.mxu3 %v16208_v41  ;;  %v2652_v17 = vsel %vm1678_vm2, %v2647_v34, %v2651_v3  ;;  %v2674_v34 = vsel %vm1709_vm3, %v2672_v45, %v2673_v48  ;;  %v2682_v42 = vsel %vm1709_vm3, %v2677_v52, %v2681_v15 }
 0x2b6   : > { %3464 = vmatpush.bf16.msra.mxu3 %v10871_v2 }
 0x2b9   : > { %3499 = vmatpush.bf16.msrb.mxu1 %v11023_v18  ;;  %v2624_v26 = vld [vmem:[#allocation3 + $0x48] sm:$0x1]  ;;  %v16230_v18 = vld [vmem:[%s15386_s29] sm:$0x3] }
 0x2ba   : > { %v2655_v9 = vrot.slane %v2624_v26, 1  ;;  %3465 = vmatpush.bf16.msra.mxu3 %v10863_v31  ;;  %v2628_v19 = vld [vmem:[#allocation3 + $0x48] sm:$0x3] }
 0x2bb   : > { %3416 = vmatmul.bf16.gmra.mxu0 %v16134_v11  ;;  %v2678_v11 = vsel %vm1709_vm3, %v2673_v48, %v2677_v52  ;;  %v2685_v47 = vrot.slane %v2628_v19, 2 }
 0x2bc   : > { %v2656_v37 = vsel %vm1678_vm2, %v2651_v3, %v2655_v9  ;;  %v2700_v30 = vpack.c.bf16 %v2678_v11, %v2674_v34 }
 0x2bd   : > { %3500 = vmatpush.bf16.msrb.mxu1 %v11015_v24  ;;  %v2704_v33 = vpack.c.bf16 %v2656_v37, %v2652_v17  ;;  %v2686_v0 = vsel %vm1709_vm3, %v2681_v15, %v2685_v47  ;;  %v3538_v37 = vrot.slane %v3519_v46, 1 }
 0x2be   : > { %3466 = vmatpush.bf16.msra.mxu3 %v10855_v29  ;;  %v2706_v57 = vpack.c.bf16 %v2686_v0, %v2682_v42 }
 0x2c0   : > { %3359 = vmatmul.bf16.gmra.mxu1 %v2704_v33  ;;  %3449 = vmatmul.bf16.vlgmr.msra.gmra.mxu2 %v16124_v25  ;;  %v14012_v25 = vld [vmem:[#allocation7 + $0x294] sm:$0xf] }
 0x2c1   : > { %3501 = vmatpush.bf16.msrb.mxu1 %v11007_v38  ;;  %v10983_v40 = vor.u32 %v14012_v25, %v10980_v54  ;;  %v3537_v38 = vrot.slane %v3517_v32, 1 }
 0x2c2   : > { %3467 = vmatpush.bf16.msra.mxu3 %v10847_v51  ;;  %v3543_v51 = vrot.slane %v3521_v50, 1 }
 0x2c3   : > { %v3539_v29 = vsel %vm1678_vm2, %v3537_v38, %v3538_v37 }
 0x2c5   : > { %3392 = vmatmul.bf16.vlgmr.msrb.gmra.mxu3 %v2700_v30  ;;  %3502 = vmatpush.bf16.msrb.mxu1 %v10999_v55 }
 0x2c9   : > { %3503 = vmatpush.bf16.msrb.mxu1 %v10991_v36 }
 0x2cb   : > { %3487 = vmatmul.bf16.vlgmr.msrb.gmra.mxu0 %v16163_v21 }
 0x2cd   : > { %3504 = vmatpush.bf16.msrb.mxu1 %v10983_v40  ;;  %v3544_v40 = vsel %vm1678_vm2, %v3538_v37, %v3543_v51 }
 0x2d0   : > { %3430 = vmatmul.bf16.vlgmr.msra.gmra.mxu1 %v16177_v4  ;;  %3454 = vmatmul.bf16.gmra.mxu2 %v16155_v60 }
 0x2d1   : > { %3505 = vmatpush.bf16.msrb.mxu1 %v10975_v39  ;;  %v3523_v39 = vld [vmem:[#allocation2 + $0x30] sm:$0xff] }
 0x2d5   : > { %3397 = vmatmul.bf16.gmra.mxu3 %v2706_v57 }
 0x2db   : > { %3492 = vmatmul.bf16.gmra.mxu0 %v16197_v56 }
 0x2e0   : > { %3435 = vmatmul.bf16.gmra.mxu1 %v16208_v41  ;;  %v2805_v41 = vperm.slane %v16230_v18, 0 }
 0x2e5   : > { %3468 = vmatmul.bf16.vlgmr.msra.gmra.mxu3 %v16199_v63 }
 0x2f0   : > { %3506 = vmatmul.bf16.vlgmr.msrb.gmra.mxu1 %v2700_v30 }
 0x2f5   : > { %3473 = vmatmul.bf16.gmra.mxu3 %v2704_v33 }
 0x300   : > { %3511 = vmatmul.bf16.gmra.mxu1 %v2706_v57  ;;  %v3547_v57 = vrot.slane %v3523_v39, 1 }
 0x303   : > { %v3298_v21 = vpop.f32.mrf.mxu2 }
 0x304   : > { %v3299_v1 = vadd.f32 %v3298_v21, %v2805_v41 }
 0x308   : > { %v3336_v4 = vpop.f32.mrf.mxu0 }
 0x30b   : > { %v3300_v60 = vpop.f32.mrf.mxu2 }
 0x30c   : > { %v3301_v26 = vadd.f32 %v3300_v60, %v2805_v41 }
 0x310   : > { %v3338_v10 = vpop.f32.mrf.mxu0 }
 0x313   : > { %v3303_v6 = vpop.f32.mrf.mxu2 }
 0x314   : > { %v3304_v45 = vadd.f32 %v3303_v6, %v2805_v41 }
 0x318   : > { %v3341_v7 = vpop.f32.mrf.mxu0 }
 0x31b   : > { %v3305_v13 = vpop.f32.mrf.mxu2 }
 0x31c   : > { %v3306_v54 = vadd.f32 %v3305_v13, %v2805_v41  ;;  %v3525_v41 = vld [vmem:[#allocation2 + $0x40] sm:$0x1] }
 0x320   : > { %v3343_v56 = vpop.f32.mrf.mxu0 }
 0x323   : > { %v3374_v63 = vpop.f32.mrf.mxu2 }
 0x328   : > { %v3317_v14 = vpop.f32.mrf.mxu3  ;;  %v16233_v28 = vpop.f32.mrf.mxu0 }
 0x329   : > { %v3318_v2 = vadd.f32 %v3317_v14, %v3299_v1 }
 0x32b   : > { %v3337_v3 = vadd.f32 %v3336_v4, %v3318_v2  ;;  %v3376_v9 = vpop.f32.mrf.mxu2 }
 0x32d   : > { %v3355_v22 = vpop.f32.mrf.mxu1 }
 0x32e   : > { %v3356_v27 = vadd.f32 %v3355_v22, %v3337_v3  ;;  %v3548_v22 = vsel %vm1678_vm2, %v3543_v51, %v3547_v57 }
 0x330   : > { %v3319_v43 = vpop.f32.mrf.mxu3  ;;  %v16235_v17 = vpop.f32.mrf.mxu0  ;;  %v3375_v52 = vadd.f32 %v3374_v63, %v3356_v27 }
 0x331   : > { %v3320_v31 = vadd.f32 %v3319_v43, %v3301_v26 }
 0x333   : > { %v3339_v23 = vadd.f32 %v3338_v10, %v3320_v31  ;;  %v3379_v55 = vpop.f32.mrf.mxu2 }
 0x335   : > { %v3357_v20 = vpop.f32.mrf.mxu1 }
 0x336   : > { %v3358_v11 = vadd.f32 %v3357_v20, %v3339_v23  ;;  %v16249_v20 = vperm.slane %v16230_v18, 1 }
 0x338   : > { %v3322_v8 = vpop.f32.mrf.mxu3  ;;  %v3377_v35 = vadd.f32 %v3376_v9, %v3358_v11  ;;  %v16238_v36 = vpop.f32.mrf.mxu0 }
 0x339   : > { %v3323_v61 = vadd.f32 %v3322_v8, %v3304_v45  ;;  %v3551_v8 = vrot.slane %v3525_v41, 1 }
 0x33b   : > { %v3342_v30 = vadd.f32 %v3341_v7, %v3323_v61  ;;  %v3381_v42 = vpop.f32.mrf.mxu2  ;;  %v3552_v27 = vsel %vm1678_vm2, %v3547_v57, %v3551_v8 }
 0x33d   : > { %v3360_v16 = vpop.f32.mrf.mxu1 }
 0x33e   : > { %v3361_v58 = vadd.f32 %v3360_v16, %v3342_v30 }
 0x340   : > { %v3324_v24 = vpop.f32.mrf.mxu3  ;;  %v3380_v60 = vadd.f32 %v3379_v55, %v3361_v58  ;;  %v16244_v14 = vpop.f32.mrf.mxu0 }
 0x341   : > { %v3325_v59 = vadd.f32 %v3324_v24, %v3306_v54  ;;  %v3413_v24 = vadd.f32 %v16233_v28, %v16249_v20  ;;  %v3415_v28 = vadd.f32 %v16235_v17, %v16249_v20  ;;  %v3418_v54 = vadd.f32 %v16238_v36, %v16249_v20 }
 0x343   : > { %v3344_v21 = vadd.f32 %v3343_v56, %v3325_v59  ;;  %v3450_v16 = vpop.f32.mrf.mxu2 }
 0x345   : > { %v3362_v53 = vpop.f32.mrf.mxu1 }
 0x346   : > { %v3363_v13 = vadd.f32 %v3362_v53, %v3344_v21  ;;  %v16272_v21 = vld [vmem:[%s16952_s15] sm:$0xff] }
 0x348   : > { %v3393_v33 = vpop.f32.mrf.mxu3  ;;  %v3382_v2 = vadd.f32 %v3381_v42, %v3363_v13  ;;  %v3488_v46 = vpop.f32.mrf.mxu0  ;;  %v3420_v13 = vadd.f32 %v16244_v14, %v16249_v20 }
 0x349   : > { %v3394_v48 = vadd.f32 %v3393_v33, %v3375_v52  ;;  %v3520_v33 = vld [vmem:[#allocation2 + $0x18] sm:$0xff] }
 0x34b   : > { %v3563_v49 = vadd.f32 %v3539_v29, %v3394_v48  ;;  %v3452_v48 = vpop.f32.mrf.mxu2  ;;  %v3518_v29 = vld [vmem:[#allocation2 + $0x8] sm:$0xfe] }
 0x34c   : > { %v3540_v55 = vrot.slane %v3518_v29, 1 }
 0x34d   : > { %v3571_v44 = vmax.f32 %v3563_v49, 0.0  ;;  %v3431_v34 = vpop.f32.mrf.mxu1  ;;  %v3541_v49 = vrot.slane %v3520_v33, 1 }
 0x34e   : > { %v3432_v18 = vadd.f32 %v3431_v34, %v3413_v24 }
 0x34f   : > { %v3591_v12 = vrot.slane %v3571_v44, 7  ;;  %v3542_v51 = vsel %vm1678_vm2, %v3540_v55, %v3541_v49 }
 0x350   : > { %v3395_v25 = vpop.f32.mrf.mxu3  ;;  %v3451_v52 = vadd.f32 %v3450_v16, %v3432_v18  ;;  %v3490_v44 = vpop.f32.mrf.mxu0 }
 0x351   : > { %3615 = vst [vmem:[#allocation2] sm:$0xfe] %v3591_v12  ;;  %v3396_v19 = vadd.f32 %v3395_v25, %v3377_v35  ;;  %v3522_v25 = vld [vmem:[#allocation2 + $0x28] sm:$0xff] }
 0x353   : > { %v3565_v47 = vadd.f32 %v3544_v40, %v3396_v19  ;;  %v3455_v39 = vpop.f32.mrf.mxu2 }
 0x355   : > { %v3573_v15 = vmax.f32 %v3565_v47, 0.0  ;;  %v3433_v0 = vpop.f32.mrf.mxu1  ;;  %v3545_v47 = vrot.slane %v3522_v25, 1 }
 0x356   : > { %v3434_v11 = vadd.f32 %v3433_v0, %v3415_v28 }
 0x357   : > { %v3593_v4 = vrot.slane %v3573_v15, 7  ;;  %v3546_v57 = vsel %vm1678_vm2, %v3541_v49, %v3545_v47 }
 0x358   : > { %v3398_v10 = vpop.f32.mrf.mxu3  ;;  %v3453_v30 = vadd.f32 %v3452_v48, %v3434_v11  ;;  %v16286_v20 = vld [vmem:[#allocation2] sm:$0xff]  ;;  %v16307_v11 = vld [vmem:[%s16952_s15 + $0x28] sm:$0xff] }
 0x359   : > { %v16242_v6 = vsel %vm1617_vm1, %v3591_v12, %v3593_v4  ;;  %v3399_v7 = vadd.f32 %v3398_v10, %v3380_v60 }
 0x35a   : > { %3617 = vst [vmem:[#allocation2 + $0x10] sm:$0xff] %v16242_v6 }
 0x35b   : > { %v3567_v43 = vadd.f32 %v3548_v22, %v3399_v7  ;;  %v3625_v7 = vld [vmem:[#allocation2] sm:$0xff]  ;;  %v3524_v22 = vld [vmem:[#allocation2 + $0x38] sm:$0xff]  ;;  %v3457_v24 = vpop.f32.mrf.mxu2 }
 0x35c   : > { %v3549_v8 = vrot.slane %v3524_v22, 1 }
 0x35d   : > { %v3575_v56 = vmax.f32 %v3567_v43, 0.0  ;;  %v3436_v63 = vpop.f32.mrf.mxu1 }
 0x35e   : > { %v3437_v58 = vadd.f32 %v3436_v63, %v3418_v54  ;;  %v3550_v18 = vsel %vm1678_vm2, %v3545_v47, %v3549_v8  ;;  %v11240_v54 = vld [vmem:[#allocation9 + $0x170] sm:$0xf]  ;;  %v11232_v47 = vld [vmem:[#allocation9 + $0x160] sm:$0xf] }
 0x35f   : > { %v3597_v1 = vrot.slane %v3575_v56, 7 }
 0x360   : > { %v3400_v3 = vpop.f32.mrf.mxu3  ;;  %v3456_v42 = vadd.f32 %v3455_v39, %v3437_v58  ;;  %v14039_v58 = vld [vmem:[#allocation9 + $0x64] sm:$0xf0] }
 0x361   : > { %v16254_v26 = vsel %vm1617_vm1, %v3593_v4, %v3597_v1  ;;  %v3401_v9 = vadd.f32 %v3400_v3, %v3382_v2  ;;  %v3493_v4 = vpop.f32.mrf.mxu0  ;;  %v16280_v2 = vld [vmem:[%s16952_s15 + $0x20] sm:$0xff]  ;;  %v14071_v39 = vld [vmem:[#allocation9 + $0x164] sm:$0xf0] }
 0x362   : > { %3619 = vst [vmem:[#allocation2 + $0x20] sm:$0xff] %v16254_v26 }
 0x363   : > { %v3569_v31 = vadd.f32 %v3552_v27, %v3401_v9 }
 0x365   : > { %v3577_v53 = vmax.f32 %v3569_v31, 0.0  ;;  %v3438_v32 = vpop.f32.mrf.mxu1 }
 0x366   : > { %v3439_v56 = vadd.f32 %v3438_v32, %v3420_v13  ;;  %v11216_v13 = vld [vmem:[#allocation9 + $0x140] sm:$0xf] }
 0x367   : > { %v3601_v37 = vrot.slane %v3577_v53, 7 }
 0x368   : > { %v3469_v23 = vpop.f32.mrf.mxu3  ;;  %v3458_v31 = vadd.f32 %v3457_v24, %v3439_v56  ;;  %v14057_v56 = vld [vmem:[#allocation9 + $0xf4] sm:$0xf0] }
 0x369   : > { %v3602_v38 = vsel %vm1617_vm1, %v3597_v1, %v3601_v37  ;;  %3623 = vst [vmem:[#allocation2 + $0x40] sm:$0x1] %v3601_v37  ;;  %v3470_v45 = vadd.f32 %v3469_v23, %v3451_v52  ;;  %v3526_v37 = vld [vmem:[#allocation2 + $0x48] sm:$0x1]  ;;  %v3495_v23 = vpop.f32.mrf.mxu0  ;;  %v14065_v24 = vld [vmem:[#allocation9 + $0x134] sm:$0xf0] }
 0x36a   : > { %3621 = vst [vmem:[#allocation2 + $0x30] sm:$0xff] %v3602_v38 }
 0x36b   : > { %v3489_v61 = vadd.f32 %v3488_v46, %v3470_v45  ;;  %v16300_v46 = vld [vmem:[%s16952_s15 + $0x8] sm:$0xff] }
 0x36d   : > { %v3507_v50 = vpop.f32.mrf.mxu1 }
 0x36e   : > { %v3508_v34 = vadd.f32 %v3507_v50, %v3489_v61 }
 0x370   : > { %v3564_v12 = vadd.f32 %v3542_v51, %v3508_v34  ;;  %v3471_v17 = vpop.f32.mrf.mxu3  ;;  %v3633_v35 = vld [vmem:[#allocation2 + $0x40] sm:$0x3]  ;;  %v16319_v34 = vld [vmem:[%s16952_s15 + $0x18] sm:$0xff] }
 0x371   : > { %v3472_v19 = vadd.f32 %v3471_v17, %v3453_v30  ;;  %11032 = vmatpush.msk.msrb.mxu2 %vm3644_vm4, %v3633_v35  ;;  %11048 = vmatpush.msk.msra.mxu0 %vm3644_vm4, %v3633_v35  ;;  %v16321_v51 = vld [vmem:[#allocation2 + $0x20] sm:$0xff]  ;;  %v11112_v17 = vld [vmem:[#allocation9 + $0x70] sm:$0xf] }
 0x372   : > { %v3572_v40 = vmax.f32 %v3564_v12, 0.0 }
 0x373   : > { %v3491_v59 = vadd.f32 %v3490_v44, %v3472_v19  ;;  %3663 = vmatpush.msrb.mxu2 %v3602_v38  ;;  %3773 = vmatpush.msra.mxu0 %v3602_v38  ;;  %v14073_v19 = vld [vmem:[#allocation9 + $0x174] sm:$0xf0] }
 0x374   : > { %v3592_v15 = vrot.slane %v3572_v40, 7  ;;  %v11104_v40 = vld [vmem:[#allocation9 + $0x60] sm:$0xf] }
 0x375   : > { %v3509_v0 = vpop.f32.mrf.mxu1  ;;  %3664 = vmatpush.msrb.mxu2 %v16254_v26  ;;  %3774 = vmatpush.msra.mxu0 %v16254_v26 }
 0x376   : > { %3616 = vst [vmem:[#allocation2 + $0x8] sm:$0xfe] %v3592_v15  ;;  %v3510_v36 = vadd.f32 %v3509_v0, %v3491_v59  ;;  %v11241_v59 = vor.u32 %v14073_v19, %v11240_v54  ;;  %v11096_v0 = vld [vmem:[#allocation9 + $0x50] sm:$0xf]  ;;  %v14059_v19 = vld [vmem:[#allocation9 + $0x104] sm:$0xf0] }
 0x377   : > { %3665 = vmatpush.msrb.mxu2 %v16242_v6  ;;  %3775 = vmatpush.msra.mxu0 %v16242_v6 }
 0x378   : > { %v3566_v60 = vadd.f32 %v3546_v57, %v3510_v36  ;;  %v3474_v10 = vpop.f32.mrf.mxu3  ;;  %v14037_v36 = vld [vmem:[#allocation9 + $0x54] sm:$0xf0]  ;;  %v11224_v57 = vld [vmem:[#allocation9 + $0x150] sm:$0xf] }
 0x379   : > { %v3475_v43 = vadd.f32 %v3474_v10, %v3456_v42  ;;  %3666 = vmatpush.msrb.mxu2 %v3625_v7  ;;  %3776 = vmatpush.msra.mxu0 %v3625_v7  ;;  %v11233_v42 = vor.u32 %v14071_v39, %v11232_v47  ;;  %v11088_v10 = vld [vmem:[#allocation9 + $0x40] sm:$0xf] }
 0x37a   : > { %v3574_v41 = vmax.f32 %v3566_v60, 0.0  ;;  %11033 = vmatmul.msk.f32.vlgmr.msrb.gmra.mxu2 %vm3637_vm5, %v16272_v21  ;;  %11049 = vmatmul.msk.f32.vlgmr.msra.gmra.mxu0 %vm3637_vm5, %v16280_v2  ;;  %v11097_v60 = vor.u32 %v14037_v36, %v11096_v0  ;;  %v11152_v39 = vld [vmem:[#allocation9 + $0xc0] sm:$0xf]  ;;  %v11352_v0 = vld [vmem:[#allocation9 + $0x250] sm:$0xf] }
 0x37b   : > { %11040 = vmatpush.msk.msra.mxu2 %vm3644_vm4, %v3633_v35  ;;  %v3494_v63 = vadd.f32 %v3493_v4, %v3475_v43  ;;  %v14041_v35 = vld [vmem:[#allocation9 + $0x74] sm:$0xf0]  ;;  %4423 = vmatpush.bf16.msrb.mxu0 %v11241_v59  ;;  %v14067_v43 = vld [vmem:[#allocation9 + $0x144] sm:$0xf0] }
 0x37c   : > { %v3595_v1 = vrot.slane %v3574_v41, 7  ;;  %v11113_v25 = vor.u32 %v14041_v35, %v11112_v17  ;;  %v14069_v4 = vld [vmem:[#allocation9 + $0x154] sm:$0xf0]  ;;  %v11176_v41 = vld [vmem:[#allocation9 + $0xf0] sm:$0xf] }
 0x37d   : > { %3718 = vmatpush.msra.mxu2 %v3602_v38  ;;  %v3512_v16 = vpop.f32.mrf.mxu1  ;;  %v16284_v14 = vld [vmem:[#allocation2 + $0x8] sm:$0xff]  ;;  %v3553_v38 = vrot.slane %v3526_v37, 1  ;;  %v11225_v22 = vor.u32 %v14069_v4, %v11224_v57  ;;  %v11360_v35 = vld [vmem:[#allocation9 + $0x260] sm:$0xf]  ;;  %v14038_v57 = vld [vmem:[#allocation9 + $0x64] sm:$0xf] }
 0x37e   : > { %v16288_v3 = vld [vmem:[#allocation2 + $0x8] sm:$0xff]  ;;  %v16291_v9 = vsel %vm1617_vm1, %v3592_v15, %v3595_v1  ;;  %v3513_v27 = vadd.f32 %v3512_v16, %v3494_v63  ;;  %v11105_v15 = vor.u32 %v14039_v58, %v11104_v40  ;;  %v11177_v16 = vor.u32 %v14057_v56, %v11176_v41  ;;  %v14040_v40 = vld [vmem:[#allocation9 + $0x74] sm:$0xf]  ;;  %v11114_v58 = vld [vmem:[#allocation9 + $0x78] sm:$0xf0] }
 0x37f   : > { %5734 = vst.msk [vmem:[#allocation2] ss:$8 sm:$0x3] %vm15883_vm0, %v15347_v5  ;;  %3719 = vmatpush.msra.mxu2 %v16254_v26  ;;  %v3554_v61 = vsel %vm1678_vm2, %v3549_v8, %v3553_v38  ;;  %4424 = vmatpush.bf16.msrb.mxu0 %v11233_v42  ;;  %v14033_v8 = vld [vmem:[#allocation9 + $0x34] sm:$0xf0]  ;;  %v11117_v47 = vor.u32 %v14040_v40, %v11114_v58 }
 0x380   : > { %3618 = vst [vmem:[#allocation2 + $0x18] sm:$0xff] %v16291_v9  ;;  %v3568_v53 = vadd.f32 %v3550_v18, %v3513_v27  ;;  %v3476_v32 = vpop.f32.mrf.mxu3  ;;  %v11168_v27 = vld [vmem:[#allocation9 + $0xe0] sm:$0xf]  ;;  %v14055_v18 = vld [vmem:[#allocation9 + $0xe4] sm:$0xf0] }
 0x381   : > { %v3477_v52 = vadd.f32 %v3476_v32, %v3458_v31  ;;  %3720 = vmatpush.msra.mxu2 %v16242_v6  ;;  %v16311_v6 = vld [vmem:[%s16952_s15 + $0x10] sm:$0xff]  ;;  %v14031_v32 = vld [vmem:[#allocation9 + $0x24] sm:$0xf0]  ;;  %v14101_v42 = vld [vmem:[#allocation9 + $0x254] sm:$0xf0] }
 0x382   : > { %v3576_v33 = vmax.f32 %v3568_v53, 0.0  ;;  %11034 = vmatmul.msk.f32.gmra.mxu2 %vm3637_vm5, %v16300_v46  ;;  %11050 = vmatmul.msk.f32.gmra.mxu0 %vm3637_vm5, %v16307_v11  ;;  %v11072_v53 = vld [vmem:[#allocation9 + $0x20] sm:$0xf]  ;;  %v11106_v4 = vld [vmem:[#allocation9 + $0x68] sm:$0xf0] }
 0x383   : > { %v3496_v28 = vadd.f32 %v3495_v23, %v3477_v52  ;;  %3721 = vmatpush.msra.mxu2 %v3625_v7  ;;  %v14035_v7 = vld [vmem:[#allocation9 + $0x44] sm:$0xf0]  ;;  %4425 = vmatpush.bf16.msrb.mxu0 %v11225_v22  ;;  %v11200_v52 = vld [vmem:[#allocation9 + $0x120] sm:$0xf]  ;;  %v11073_v38 = vor.u32 %v14031_v32, %v11072_v53  ;;  %v11109_v22 = vor.u32 %v14038_v57, %v11106_v4  ;;  %v11336_v53 = vld [vmem:[#allocation9 + $0x230] sm:$0xf] }
 0x384   : > { %v3599_v26 = vrot.slane %v3576_v33, 7  ;;  %v11089_v63 = vor.u32 %v14035_v7, %v11088_v10  ;;  %v14063_v23 = vld [vmem:[#allocation9 + $0x124] sm:$0xf0]  ;;  %v11160_v33 = vld [vmem:[#allocation9 + $0xd0] sm:$0xf] }
 0x385   : > { %v3514_v45 = vpop.f32.mrf.mxu1  ;;  %4395 = vmatpush.bf16.msrb.mxu2 %v11113_v25  ;;  %v11184_v25 = vld [vmem:[#allocation9 + $0x100] sm:$0xf]  ;;  %v14049_v10 = vld [vmem:[#allocation9 + $0xb4] sm:$0xf0]  ;;  %v11304_v7 = vld [vmem:[#allocation9 + $0x1f0] sm:$0xf] }
 0x386   : > { %v3600_v48 = vsel %vm1617_vm1, %v3595_v1, %v3599_v26  ;;  %v3515_v29 = vadd.f32 %v3514_v45, %v3496_v28  ;;  %v11217_v1 = vor.u32 %v14067_v43, %v11216_v13  ;;  %v14053_v28 = vld [vmem:[#allocation9 + $0xd4] sm:$0xf0]  ;;  %v11201_v45 = vor.u32 %v14063_v23, %v11200_v52  ;;  %v11344_v56 = vld [vmem:[#allocation9 + $0x240] sm:$0xf]  ;;  %v14034_v52 = vld [vmem:[#allocation9 + $0x44] sm:$0xf] }
 0x387   : > { %3620 = vst [vmem:[#allocation2 + $0x28] sm:$0xff] %v3600_v48  ;;  %v11185_v59 = vor.u32 %v14059_v19, %v11184_v25  ;;  %v14089_v43 = vld [vmem:[#allocation9 + $0x1f4] sm:$0xf0]  ;;  %v11432_v19 = vld [vmem:[#allocation9 + $0x2f0] sm:$0xf] }
 0x388   : > { %v3570_v49 = vadd.f32 %v3554_v61, %v3515_v29  ;;  %4426 = vmatpush.bf16.msrb.mxu0 %v11217_v1  ;;  %v14061_v29 = vld [vmem:[#allocation9 + $0x114] sm:$0xf0]  ;;  %v11056_v61 = vld [vmem:[#allocation9] sm:$0xf]  ;;  %v11305_v41 = vor.u32 %v14089_v43, %v11304_v7  ;;  %v11098_v1 = vld [vmem:[#allocation9 + $0x58] sm:$0xf0] }
 0x389   : > { %4396 = vmatpush.bf16.msrb.mxu2 %v11105_v15  ;;  %v14051_v15 = vld [vmem:[#allocation9 + $0xc4] sm:$0xf0]  ;;  %v14121_v40 = vld [vmem:[#allocation9 + $0x2f4] sm:$0xf0]  ;;  %v11312_v57 = vld [vmem:[#allocation9 + $0x200] sm:$0xf] }
 0x38a   : > { %v3578_v50 = vmax.f32 %v3570_v49, 0.0  ;;  %11041 = vmatmul.msk.f32.vlgmr.msra.gmra.mxu2 %vm3637_vm5, %v16311_v6  ;;  %v14027_v49 = vld [vmem:[#allocation9 + $0x4] sm:$0xf0]  ;;  %v11153_v36 = vor.u32 %v14051_v15, %v11152_v39  ;;  %v11074_v39 = vld [vmem:[#allocation9 + $0x28] sm:$0xf0] }
 0x38b   : > { %v11272_v15 = vld [vmem:[#allocation9 + $0x1b0] sm:$0xf]  ;;  %v14091_v4 = vld [vmem:[#allocation9 + $0x204] sm:$0xf0]  ;;  %v11264_v43 = vld [vmem:[#allocation9 + $0x1a0] sm:$0xf] }
 0x38c   : > { %v3603_v55 = vrot.slane %v3578_v50, 7 }
 0x38d   : > { %4397 = vmatpush.bf16.msrb.mxu2 %v11097_v60  ;;  %v11144_v60 = vld [vmem:[#allocation9 + $0xb0] sm:$0xf] }
 0x38e   : > { %v3604_v44 = vsel %vm1617_vm1, %v3599_v26, %v3603_v55  ;;  %3624 = vst [vmem:[#allocation2 + $0x48] sm:$0x1] %v3603_v55  ;;  %v16323_v30 = vld [vmem:[#allocation2 + $0x28] sm:$0xff]  ;;  %v14029_v26 = vld [vmem:[#allocation9 + $0x14] sm:$0xf0]  ;;  %v11145_v13 = vor.u32 %v14049_v10, %v11144_v60  ;;  %v11313_v60 = vor.u32 %v14091_v4, %v11312_v57 }
 0x38f   : > { %3622 = vst [vmem:[#allocation2 + $0x38] sm:$0xff] %v3604_v44  ;;  %v11368_v55 = vld [vmem:[#allocation9 + $0x270] sm:$0xf]  ;;  %v14119_v10 = vld [vmem:[#allocation9 + $0x2e4] sm:$0xf0] }
 0x390   : > { %5737 = vst.msk [vmem:[#allocation2 + $0x21] ss:$8 sm:$0x3] %vm15883_vm0, %v15347_v5  ;;  %v11376_v4 = vld [vmem:[#allocation9 + $0x280] sm:$0xf] }
 0x391   : > { %4398 = vmatpush.bf16.msrb.mxu2 %v11089_v63  ;;  %v14099_v63 = vld [vmem:[#allocation9 + $0x244] sm:$0xf0] }
 0x392   : > { %11042 = vmatmul.msk.f32.gmra.mxu2 %vm3637_vm5, %v16319_v34 }
 0x395   : > { %v3634_v12 = vld [vmem:[#allocation2 + $0x48] sm:$0x3] }
 0x396   : > { %11035 = vmatpush.msk.msrb.mxu3 %vm3644_vm4, %v3634_v12  ;;  %11051 = vmatpush.msk.msra.mxu1 %vm3644_vm4, %v3634_v12 }
 0x398   : > { %3686 = vmatpush.msrb.mxu3 %v3604_v44  ;;  %3796 = vmatpush.msra.mxu1 %v3604_v44 }
 0x39a   : > { %3687 = vmatpush.msrb.mxu3 %v3600_v48  ;;  %3797 = vmatpush.msra.mxu1 %v3600_v48 }
 0x39c   : > { %3688 = vmatpush.msrb.mxu3 %v16291_v9  ;;  %3798 = vmatpush.msra.mxu1 %v16291_v9 }
 0x39e   : > { %3689 = vmatpush.msrb.mxu3 %v16284_v14  ;;  %3799 = vmatpush.msra.mxu1 %v16284_v14 }
 0x39f   : > { %11036 = vmatmul.msk.f32.vlgmr.msrb.gmra.mxu3 %vm3637_vm5, %v16272_v21  ;;  %11052 = vmatmul.msk.f32.vlgmr.msra.gmra.mxu1 %vm3637_vm5, %v16280_v2  ;;  %v11080_v21 = vld [vmem:[#allocation9 + $0x30] sm:$0xf] }
 0x3a0   : > { %11043 = vmatpush.msk.msra.mxu3 %vm3644_vm4, %v3634_v12  ;;  %v11208_v2 = vld [vmem:[#allocation9 + $0x130] sm:$0xf]  ;;  %v11081_v31 = vor.u32 %v14033_v8, %v11080_v21  ;;  %v11057_v12 = vor.u32 %v14027_v49, %v11056_v61  ;;  %4437 = vmatpush.bf16.msrb.mxu1 %v11305_v41  ;;  %v14036_v21 = vld [vmem:[#allocation9 + $0x54] sm:$0xf]  ;;  %v11345_v8 = vor.u32 %v14099_v63, %v11344_v56  ;;  %v11082_v49 = vld [vmem:[#allocation9 + $0x38] sm:$0xf0] }
 0x3a1   : > { %v11209_v37 = vor.u32 %v14065_v24, %v11208_v2  ;;  %v11136_v2 = vld [vmem:[#allocation9 + $0xa0] sm:$0xf]  ;;  %v11101_v24 = vor.u32 %v14036_v21, %v11098_v1  ;;  %v14079_v56 = vld [vmem:[#allocation9 + $0x1a4] sm:$0xf0]  ;;  %v11416_v63 = vld [vmem:[#allocation9 + $0x2d0] sm:$0xf] }
 0x3a2   : > { %3741 = vmatpush.msra.mxu3 %v3604_v44  ;;  %4399 = vmatpush.bf16.msrb.mxu2 %v11081_v31  ;;  %v14105_v44 = vld [vmem:[#allocation9 + $0x274] sm:$0xf0]  ;;  %v14087_v31 = vld [vmem:[#allocation9 + $0x1e4] sm:$0xf0] }
 0x3a3   : > { %4427 = vmatpush.bf16.msrb.mxu0 %v11209_v37  ;;  %v11369_v17 = vor.u32 %v14105_v44, %v11368_v55  ;;  %v14097_v37 = vld [vmem:[#allocation9 + $0x234] sm:$0xf0]  ;;  %v14043_v55 = vld [vmem:[#allocation9 + $0x84] sm:$0xf0] }
 0x3a4   : > { %3742 = vmatpush.msra.mxu3 %v3600_v48  ;;  %v11192_v48 = vld [vmem:[#allocation9 + $0x110] sm:$0xf]  ;;  %v11337_v23 = vor.u32 %v14097_v37, %v11336_v53  ;;  %v14117_v21 = vld [vmem:[#allocation9 + $0x2d4] sm:$0xf0]  ;;  %v11408_v53 = vld [vmem:[#allocation9 + $0x2c0] sm:$0xf] }
 0x3a5   : > { %v11193_v50 = vor.u32 %v14061_v29, %v11192_v48  ;;  %v11328_v48 = vld [vmem:[#allocation9 + $0x220] sm:$0xf]  ;;  %v14095_v29 = vld [vmem:[#allocation9 + $0x224] sm:$0xf0]  ;;  %v11417_v1 = vor.u32 %v14117_v21, %v11416_v63  ;;  %v14104_v63 = vld [vmem:[#allocation9 + $0x274] sm:$0xf] }
 0x3a6   : > { %3743 = vmatpush.msra.mxu3 %v16291_v9  ;;  %v11169_v9 = vor.u32 %v14055_v18, %v11168_v27  ;;  %4400 = vmatpush.bf16.msrb.mxu2 %v11073_v38  ;;  %v11296_v18 = vld [vmem:[#allocation9 + $0x1e0] sm:$0xf]  ;;  %v14045_v38 = vld [vmem:[#allocation9 + $0x94] sm:$0xf0]  ;;  %v11329_v61 = vor.u32 %v14095_v29, %v11328_v48  ;;  %v14115_v37 = vld [vmem:[#allocation9 + $0x2c4] sm:$0xf0] }
 0x3a7   : > { %11037 = vmatmul.msk.f32.gmra.mxu3 %vm3637_vm5, %v16300_v46  ;;  %11053 = vmatmul.msk.f32.gmra.mxu1 %vm3637_vm5, %v16307_v11  ;;  %v11064_v46 = vld [vmem:[#allocation9 + $0x10] sm:$0xf]  ;;  %v11297_v32 = vor.u32 %v14087_v31, %v11296_v18  ;;  %v11242_v48 = vld [vmem:[#allocation9 + $0x178] sm:$0xf0] }
 0x3a8   : > { %3744 = vmatpush.msra.mxu3 %v16284_v14  ;;  %v11161_v14 = vor.u32 %v14053_v28, %v11160_v33  ;;  %v11065_v11 = vor.u32 %v14029_v26, %v11064_v46  ;;  %4428 = vmatpush.bf16.msrb.mxu0 %v11201_v45  ;;  %v11128_v28 = vld [vmem:[#allocation9 + $0x90] sm:$0xf]  ;;  %v14085_v45 = vld [vmem:[#allocation9 + $0x1d4] sm:$0xf0] }
 0x3a9   : > { %v11288_v46 = vld [vmem:[#allocation9 + $0x1d0] sm:$0xf]  ;;  %4438 = vmatpush.bf16.msrb.mxu1 %v11297_v32  ;;  %v11129_v26 = vor.u32 %v14045_v38, %v11128_v28  ;;  %v14113_v28 = vld [vmem:[#allocation9 + $0x2b4] sm:$0xf0] }
 0x3aa   : > { %4409 = vmatpush.bf16.msrb.mxu3 %v11177_v16  ;;  %4401 = vmatpush.bf16.msrb.mxu2 %v11065_v11  ;;  %v14047_v16 = vld [vmem:[#allocation9 + $0xa4] sm:$0xf0]  ;;  %v14032_v11 = vld [vmem:[#allocation9 + $0x34] sm:$0xf] }
 0x3ab   : > { %v11137_v27 = vor.u32 %v14047_v16, %v11136_v2  ;;  %v11085_v44 = vor.u32 %v14032_v11, %v11082_v49  ;;  %v14026_v2 = vld [vmem:[#allocation9 + $0x4] sm:$0xf]  ;;  %v11058_v16 = vld [vmem:[#allocation9 + $0x8] sm:$0xf0]  ;;  %v11392_v11 = vld [vmem:[#allocation9 + $0x2a0] sm:$0xf] }
 0x3ac   : > { %4429 = vmatpush.bf16.msrb.mxu0 %v11193_v50  ;;  %v11120_v50 = vld [vmem:[#allocation9 + $0x80] sm:$0xf]  ;;  %v11061_v18 = vor.u32 %v14026_v2, %v11058_v16  ;;  %v14054_v49 = vld [vmem:[#allocation9 + $0xe4] sm:$0xf]  ;;  %v11370_v2 = vld [vmem:[#allocation9 + $0x278] sm:$0xf0] }
 0x3ad   : > { %v14064_v16 = vld [vmem:[#allocation9 + $0x134] sm:$0xf] }
 0x3ae   : > { %4410 = vmatpush.bf16.msrb.mxu3 %v11169_v9  ;;  %4402 = vmatpush.bf16.msrb.mxu2 %v11057_v12  ;;  %v11090_v9 = vld [vmem:[#allocation9 + $0x48] sm:$0xf0]  ;;  %v11121_v12 = vor.u32 %v14043_v55, %v11120_v50 }
 0x3af   : > { %11044 = vmatmul.msk.f32.vlgmr.msra.gmra.mxu3 %vm3637_vm5, %v16311_v6  ;;  %v14103_v6 = vld [vmem:[#allocation9 + $0x264] sm:$0xf0]  ;;  %v11093_v33 = vor.u32 %v14034_v52, %v11090_v9  ;;  %v11409_v52 = vor.u32 %v14115_v37, %v11408_v53  ;;  %v11248_v9 = vld [vmem:[#allocation9 + $0x180] sm:$0xf]  ;;  %v11170_v50 = vld [vmem:[#allocation9 + $0xe8] sm:$0xf0] }
 0x3b0   : > { %v11361_v54 = vor.u32 %v14103_v6, %v11360_v35  ;;  %4430 = vmatpush.bf16.msrb.mxu0 %v11185_v59  ;;  %v14083_v35 = vld [vmem:[#allocation9 + $0x1c4] sm:$0xf0]  ;;  %v11320_v6 = vld [vmem:[#allocation9 + $0x210] sm:$0xf]  ;;  %v11433_v59 = vor.u32 %v14121_v40, %v11432_v19  ;;  %v14102_v37 = vld [vmem:[#allocation9 + $0x264] sm:$0xf] }
 0x3b1   : > { %v11384_v19 = vld [vmem:[#allocation9 + $0x290] sm:$0xf] }
 0x3b2   : > { %4411 = vmatpush.bf16.msrb.mxu3 %v11161_v14  ;;  %4451 = vmatpush.bf16.msra.mxu2 %v11369_v17  ;;  %v11289_v14 = vor.u32 %v14085_v45, %v11288_v46  ;;  %v11280_v17 = vld [vmem:[#allocation9 + $0x1c0] sm:$0xf]  ;;  %v14056_v46 = vld [vmem:[#allocation9 + $0xf4] sm:$0xf] }
 0x3b3   : > { %v11281_v25 = vor.u32 %v14083_v35, %v11280_v17  ;;  %v14070_v35 = vld [vmem:[#allocation9 + $0x164] sm:$0xf] }
 0x3b4   : > { %4479 = vmatpush.bf16.msra.mxu0 %v11117_v47  ;;  %4439 = vmatpush.bf16.msrb.mxu1 %v11289_v14  ;;  %v14030_v47 = vld [vmem:[#allocation9 + $0x24] sm:$0xf]  ;;  %v14072_v14 = vld [vmem:[#allocation9 + $0x174] sm:$0xf] }
 0x3b6   : > { %4452 = vmatpush.bf16.msra.mxu2 %v11361_v54  ;;  %4412 = vmatpush.bf16.msrb.mxu3 %v11153_v36  ;;  %v14093_v54 = vld [vmem:[#allocation9 + $0x214] sm:$0xf0] }
 0x3b7   : > { %11045 = vmatmul.msk.f32.gmra.mxu3 %vm3637_vm5, %v16319_v34  ;;  %v11353_v34 = vor.u32 %v14101_v42, %v11352_v0  ;;  %v11321_v58 = vor.u32 %v14093_v54, %v11320_v6  ;;  %v11077_v0 = vor.u32 %v14030_v47, %v11074_v39  ;;  %v14081_v36 = vld [vmem:[#allocation9 + $0x1b4] sm:$0xf0]  ;;  %v11234_v6 = vld [vmem:[#allocation9 + $0x168] sm:$0xf0]  ;;  %v11162_v47 = vld [vmem:[#allocation9 + $0xd8] sm:$0xf0] }
 0x3b8   : > { %4480 = vmatpush.bf16.msra.mxu0 %v11109_v22  ;;  %4440 = vmatpush.bf16.msrb.mxu1 %v11281_v25  ;;  %v11273_v42 = vor.u32 %v14081_v36, %v11272_v15  ;;  %v14028_v22 = vld [vmem:[#allocation9 + $0x14] sm:$0xf]  ;;  %v11237_v40 = vor.u32 %v14070_v35, %v11234_v6  ;;  %v11226_v15 = vld [vmem:[#allocation9 + $0x158] sm:$0xf0]  ;;  %v11122_v35 = vld [vmem:[#allocation9 + $0x88] sm:$0xf0] }
 0x3b9   : > { %v14068_v39 = vld [vmem:[#allocation9 + $0x154] sm:$0xf]  ;;  %v11346_v6 = vld [vmem:[#allocation9 + $0x248] sm:$0xf0] }
 0x3ba   : > { %4453 = vmatpush.bf16.msra.mxu2 %v11353_v34  ;;  %4413 = vmatpush.bf16.msrb.mxu3 %v11145_v13  ;;  %v11424_v34 = vld [vmem:[#allocation9 + $0x2e0] sm:$0xf]  ;;  %v11066_v13 = vld [vmem:[#allocation9 + $0x18] sm:$0xf0]  ;;  %v11229_v57 = vor.u32 %v14068_v39, %v11226_v15 }
 0x3bb   : > { %v11425_v7 = vor.u32 %v14119_v10, %v11424_v34  ;;  %v11069_v41 = vor.u32 %v14028_v22, %v11066_v13  ;;  %v14107_v34 = vld [vmem:[#allocation9 + $0x284] sm:$0xf0]  ;;  %v14066_v10 = vld [vmem:[#allocation9 + $0x144] sm:$0xf]  ;;  %v11154_v13 = vld [vmem:[#allocation9 + $0xc8] sm:$0xf0] }
 0x3bc   : > { %4481 = vmatpush.bf16.msra.mxu0 %v11101_v24  ;;  %4441 = vmatpush.bf16.msrb.mxu1 %v11273_v42  ;;  %v11256_v24 = vld [vmem:[#allocation9 + $0x190] sm:$0xf]  ;;  %v11377_v22 = vor.u32 %v14107_v34, %v11376_v4  ;;  %v11338_v39 = vld [vmem:[#allocation9 + $0x238] sm:$0xf0] }
 0x3be   : > { %4454 = vmatpush.bf16.msra.mxu2 %v11345_v8  ;;  %4414 = vmatpush.bf16.msrb.mxu3 %v11137_v27  ;;  %v11265_v8 = vor.u32 %v14079_v56, %v11264_v43  ;;  %v14077_v27 = vld [vmem:[#allocation9 + $0x194] sm:$0xf0]  ;;  %v11146_v56 = vld [vmem:[#allocation9 + $0xb8] sm:$0xf0] }
 0x3bf   : > { %v11257_v31 = vor.u32 %v14077_v27, %v11256_v24  ;;  %v11210_v24 = vld [vmem:[#allocation9 + $0x138] sm:$0xf0] }
 0x3c0   : > { %4482 = vmatpush.bf16.msra.mxu0 %v11093_v33  ;;  %4442 = vmatpush.bf16.msrb.mxu1 %v11265_v8  ;;  %v11400_v33 = vld [vmem:[#allocation9 + $0x2b0] sm:$0xf] }
 0x3c1   : > { %v11401_v29 = vor.u32 %v14113_v28, %v11400_v33  ;;  %v14062_v33 = vld [vmem:[#allocation9 + $0x124] sm:$0xf]  ;;  %v11202_v28 = vld [vmem:[#allocation9 + $0x128] sm:$0xf0] }
 0x3c2   : > { %4455 = vmatpush.bf16.msra.mxu2 %v11337_v23  ;;  %4415 = vmatpush.bf16.msrb.mxu3 %v11129_v26  ;;  %v14075_v23 = vld [vmem:[#allocation9 + $0x184] sm:$0xf0]  ;;  %v11178_v26 = vld [vmem:[#allocation9 + $0xf8] sm:$0xf0] }
 0x3c3   : > { %v11249_v38 = vor.u32 %v14075_v23, %v11248_v9  ;;  %v11181_v45 = vor.u32 %v14056_v46, %v11178_v26  ;;  %v11362_v23 = vld [vmem:[#allocation9 + $0x268] sm:$0xf0]  ;;  %v14044_v46 = vld [vmem:[#allocation9 + $0x94] sm:$0xf]  ;;  %v11130_v26 = vld [vmem:[#allocation9 + $0x98] sm:$0xf0] }
 0x3c4   : > { %4483 = vmatpush.bf16.msra.mxu0 %v11085_v44  ;;  %4443 = vmatpush.bf16.msrb.mxu1 %v11257_v31  ;;  %v11245_v44 = vor.u32 %v14072_v14, %v11242_v48  ;;  %v11138_v31 = vld [vmem:[#allocation9 + $0xa8] sm:$0xf0]  ;;  %v14100_v14 = vld [vmem:[#allocation9 + $0x254] sm:$0xf]  ;;  %v11205_v48 = vor.u32 %v14062_v33, %v11202_v28 }
 0x3c6   : > { %4456 = vmatpush.bf16.msra.mxu2 %v11329_v61  ;;  %4416 = vmatpush.bf16.msrb.mxu3 %v11121_v12  ;;  %v14111_v61 = vld [vmem:[#allocation9 + $0x2a4] sm:$0xf0]  ;;  %v11173_v12 = vor.u32 %v14054_v49, %v11170_v50  ;;  %v11133_v49 = vor.u32 %v14044_v46, %v11130_v26  ;;  %v14078_v46 = vld [vmem:[#allocation9 + $0x1a4] sm:$0xf] }
 0x3c7   : > { %v11393_v25 = vor.u32 %v14111_v61, %v11392_v11  ;;  %v14060_v11 = vld [vmem:[#allocation9 + $0x114] sm:$0xf]  ;;  %v11194_v61 = vld [vmem:[#allocation9 + $0x118] sm:$0xf0] }
 0x3c8   : > { %4484 = vmatpush.bf16.msra.mxu0 %v11077_v0  ;;  %4444 = vmatpush.bf16.msrb.mxu1 %v11249_v38 }
 0x3ca   : > { %4465 = vmatpush.bf16.msra.mxu3 %v11433_v59  ;;  %4457 = vmatpush.bf16.msra.mxu2 %v11321_v58  ;;  %v14109_v58 = vld [vmem:[#allocation9 + $0x294] sm:$0xf0]  ;;  %v14052_v59 = vld [vmem:[#allocation9 + $0xd4] sm:$0xf] }
 0x3cb   : > { %v11385_v0 = vor.u32 %v14109_v58, %v11384_v19  ;;  %v11165_v36 = vor.u32 %v14052_v59, %v11162_v47  ;;  %v14096_v47 = vld [vmem:[#allocation9 + $0x234] sm:$0xf] }
 0x3cc   : > { %4485 = vmatpush.bf16.msra.mxu0 %v11069_v41  ;;  %4493 = vmatpush.bf16.msra.mxu1 %v11181_v45  ;;  %v14048_v41 = vld [vmem:[#allocation9 + $0xb4] sm:$0xf]  ;;  %v11365_v45 = vor.u32 %v14102_v37, %v11362_v23  ;;  %v11341_v15 = vor.u32 %v14096_v47, %v11338_v39  ;;  %v11274_v37 = vld [vmem:[#allocation9 + $0x1b8] sm:$0xf0]  ;;  %v14110_v39 = vld [vmem:[#allocation9 + $0x2a4] sm:$0xf] }
 0x3ce   : > { %4458 = vmatpush.bf16.msra.mxu2 %v11313_v60  ;;  %4466 = vmatpush.bf16.msra.mxu3 %v11425_v7  ;;  %v14050_v60 = vld [vmem:[#allocation9 + $0xc4] sm:$0xf]  ;;  %v11218_v7 = vld [vmem:[#allocation9 + $0x148] sm:$0xf0] }
 0x3cf   : > { %v11157_v43 = vor.u32 %v14050_v60, %v11154_v13  ;;  %v11221_v8 = vor.u32 %v14066_v10, %v11218_v7  ;;  %v14092_v10 = vld [vmem:[#allocation9 + $0x214] sm:$0xf]  ;;  %v11322_v7 = vld [vmem:[#allocation9 + $0x218] sm:$0xf0]  ;;  %v14086_v13 = vld [vmem:[#allocation9 + $0x1e4] sm:$0xf] }
 0x3d0   : > { %4486 = vmatpush.bf16.msra.mxu0 %v11061_v18  ;;  %4494 = vmatpush.bf16.msra.mxu1 %v11173_v12  ;;  %v14046_v18 = vld [vmem:[#allocation9 + $0xa4] sm:$0xf] }
 0x3d1   : > { %v11141_v38 = vor.u32 %v14046_v18, %v11138_v31  ;;  %v14042_v12 = vld [vmem:[#allocation9 + $0x84] sm:$0xf]  ;;  %v11282_v31 = vld [vmem:[#allocation9 + $0x1c8] sm:$0xf0] }
 0x3d2   : > { %4467 = vmatpush.bf16.msra.mxu3 %v11417_v1  ;;  %v11149_v1 = vor.u32 %v14048_v41, %v11146_v56  ;;  %v11125_v19 = vor.u32 %v14042_v12, %v11122_v35  ;;  %v11325_v41 = vor.u32 %v14092_v10, %v11322_v7  ;;  %v14082_v18 = vld [vmem:[#allocation9 + $0x1c4] sm:$0xf]  ;;  %v11496_v10 = vld [vmem:[#allocation10 + $0x70] sm:$0xf]  ;;  %v14137_v7 = vld [vmem:[#allocation10 + $0x74] sm:$0xf0] }
 0x3d3   : > { %v14074_v35 = vld [vmem:[#allocation9 + $0x184] sm:$0xf] }
 0x3d4   : > { %4495 = vmatpush.bf16.msra.mxu1 %v11165_v36  ;;  %v11330_v36 = vld [vmem:[#allocation9 + $0x228] sm:$0xf0] }
 0x3d6   : > { %4468 = vmatpush.bf16.msra.mxu3 %v11409_v52  ;;  %v11213_v52 = vor.u32 %v14064_v16, %v11210_v24 }
 0x3d8   : > { %4496 = vmatpush.bf16.msra.mxu1 %v11157_v43  ;;  %v11298_v43 = vld [vmem:[#allocation9 + $0x1e8] sm:$0xf0] }
 0x3da   : > { %4469 = vmatpush.bf16.msra.mxu3 %v11401_v29  ;;  %v11354_v29 = vld [vmem:[#allocation9 + $0x258] sm:$0xf0] }
 0x3db   : > { %v11357_v50 = vor.u32 %v14100_v14, %v11354_v29  ;;  %v11266_v14 = vld [vmem:[#allocation9 + $0x1a8] sm:$0xf0] }
 0x3dc   : > { %4497 = vmatpush.bf16.msra.mxu1 %v11149_v1  ;;  %v11290_v1 = vld [vmem:[#allocation9 + $0x1d8] sm:$0xf0]  ;;  %v11426_v29 = vld [vmem:[#allocation9 + $0x2e8] sm:$0xf0] }
 0x3de   : > { %4470 = vmatpush.bf16.msra.mxu3 %v11393_v25  ;;  %v14058_v25 = vld [vmem:[#allocation9 + $0x104] sm:$0xf] }
 0x3e0   : > { %4498 = vmatpush.bf16.msra.mxu1 %v11141_v38 }
 0x3e2   : > { %4471 = vmatpush.bf16.msra.mxu3 %v11385_v0  ;;  %v14094_v0 = vld [vmem:[#allocation9 + $0x224] sm:$0xf] }
 0x3e3   : > { %v11333_v4 = vor.u32 %v14094_v0, %v11330_v36  ;;  %v14108_v36 = vld [vmem:[#allocation9 + $0x294] sm:$0xf] }
 0x3e4   : > { %4499 = vmatpush.bf16.msra.mxu1 %v11133_v49  ;;  %v14076_v49 = vld [vmem:[#allocation9 + $0x194] sm:$0xf] }
 0x3e6   : > { %4472 = vmatpush.bf16.msra.mxu3 %v11377_v22 }
 0x3e8   : > { %4500 = vmatpush.bf16.msra.mxu1 %v11125_v19 }
 0x3f7   : > { %v3778_v54 = vpop.f32.mrf.mxu0 }
 0x3fd   : > { %v3668_v32 = vpop.f32.mrf.mxu2 }
 0x3ff   : > { %v3781_v21 = vpop.f32.mrf.mxu0 }
 0x400   : > { %v16354_v27 = vpack.c.bf16 %v3781_v21, %v3778_v54  ;;  %v11186_v54 = vld [vmem:[#allocation9 + $0x108] sm:$0xf0]  ;;  %v14090_v21 = vld [vmem:[#allocation9 + $0x204] sm:$0xf] }
 0x401   : > { %v11189_v58 = vor.u32 %v14058_v25, %v11186_v54  ;;  %v14114_v25 = vld [vmem:[#allocation9 + $0x2c4] sm:$0xf]  ;;  %v11410_v54 = vld [vmem:[#allocation9 + $0x2c8] sm:$0xf0] }
 0x405   : > { %v3671_v55 = vpop.f32.mrf.mxu2 }
 0x406   : > { %v16351_v17 = vpack.c.bf16 %v3671_v55, %v3668_v32  ;;  %v11373_v32 = vor.u32 %v14104_v63, %v11370_v2  ;;  %v14098_v55 = vld [vmem:[#allocation9 + $0x244] sm:$0xf]  ;;  %v11301_v63 = vor.u32 %v14086_v13, %v11298_v43  ;;  %v11488_v13 = vld [vmem:[#allocation10 + $0x60] sm:$0xf]  ;;  %v11497_v43 = vor.u32 %v14137_v7, %v11496_v10  ;;  %v14155_v7 = vld [vmem:[#allocation10 + $0x104] sm:$0xf0] }
 0x407   : > { %v11568_v10 = vld [vmem:[#allocation10 + $0x100] sm:$0xf] }
 0x408   : > { %4403 = vmatmul.bf16.vlgmr.msrb.gmra.mxu2 %v16351_v17 }
 0x409   : > { %4507 = vmatpush.bf16.msrb.mxu2 %v11245_v44  ;;  %v11197_v44 = vor.u32 %v14060_v11, %v11194_v61  ;;  %v11269_v11 = vor.u32 %v14078_v46, %v11266_v14  ;;  %v11456_v46 = vld [vmem:[#allocation10 + $0x20] sm:$0xf]  ;;  %v11592_v14 = vld [vmem:[#allocation10 + $0x130] sm:$0xf] }
 0x40d   : > { %v3723_v42 = vpop.f32.mrf.mxu2  ;;  %4508 = vmatpush.bf16.msrb.mxu2 %v11237_v40  ;;  %v11349_v40 = vor.u32 %v14098_v55, %v11346_v6  ;;  %v14116_v55 = vld [vmem:[#allocation9 + $0x2d4] sm:$0xf]  ;;  %v11250_v6 = vld [vmem:[#allocation9 + $0x188] sm:$0xf0] }
 0x40e   : > { %v11253_v19 = vor.u32 %v14074_v35, %v11250_v6  ;;  %v14153_v35 = vld [vmem:[#allocation10 + $0xf4] sm:$0xf0]  ;;  %v11440_v6 = vld [vmem:[#allocation10] sm:$0xf] }
 0x411   : > { %4509 = vmatpush.bf16.msrb.mxu2 %v11229_v57  ;;  %v11306_v57 = vld [vmem:[#allocation9 + $0x1f8] sm:$0xf0] }
 0x415   : > { %v3726_v53 = vpop.f32.mrf.mxu2  ;;  %4510 = vmatpush.bf16.msrb.mxu2 %v11221_v8  ;;  %v14084_v8 = vld [vmem:[#allocation9 + $0x1d4] sm:$0xf] }
 0x416   : > { %v3809_v9 = vpack.c.bf16 %v3726_v53, %v3723_v42  ;;  %v14088_v42 = vld [vmem:[#allocation9 + $0x1f4] sm:$0xf]  ;;  %v11293_v24 = vor.u32 %v14084_v8, %v11290_v1  ;;  %v11285_v53 = vor.u32 %v14082_v18, %v11282_v31  ;;  %v14133_v8 = vld [vmem:[#allocation10 + $0x54] sm:$0xf0]  ;;  %v11616_v1 = vld [vmem:[#allocation10 + $0x160] sm:$0xf] }
 0x417   : > { %v11309_v60 = vor.u32 %v14088_v42, %v11306_v57  ;;  %v11386_v42 = vld [vmem:[#allocation9 + $0x298] sm:$0xf0]  ;;  %v14131_v18 = vld [vmem:[#allocation10 + $0x44] sm:$0xf0] }
 0x418   : > { %4431 = vmatmul.bf16.vlgmr.msrb.gmra.mxu0 %v3809_v9  ;;  %4459 = vmatmul.bf16.vlgmr.msra.gmra.mxu2 %v16354_v27  ;;  %v11389_v57 = vor.u32 %v14108_v36, %v11386_v42  ;;  %v14151_v36 = vld [vmem:[#allocation10 + $0xe4] sm:$0xf0]  ;;  %v11688_v42 = vld [vmem:[#allocation10 + $0x1f0] sm:$0xf] }
 0x419   : > { %4535 = vmatpush.bf16.msrb.mxu0 %v11373_v32  ;;  %4511 = vmatpush.bf16.msrb.mxu2 %v11213_v52  ;;  %v14080_v32 = vld [vmem:[#allocation9 + $0x1b4] sm:$0xf] }
 0x41a   : > { %v14120_v52 = vld [vmem:[#allocation9 + $0x2f4] sm:$0xf]  ;;  %v11277_v28 = vor.u32 %v14080_v32, %v11274_v37  ;;  %v14165_v32 = vld [vmem:[#allocation10 + $0x154] sm:$0xf0] }
 0x41c   : > { %v3801_v56 = vpop.f32.mrf.mxu1 }
 0x41d   : > { %4536 = vmatpush.bf16.msrb.mxu0 %v11365_v45  ;;  %4512 = vmatpush.bf16.msrb.mxu2 %v11205_v48  ;;  %v14118_v48 = vld [vmem:[#allocation9 + $0x2e4] sm:$0xf] }
 0x41e   : > { %v11429_v61 = vor.u32 %v14118_v48, %v11426_v29  ;;  %v14161_v48 = vld [vmem:[#allocation10 + $0x134] sm:$0xf0] }
 0x421   : > { %4537 = vmatpush.bf16.msrb.mxu0 %v11357_v50  ;;  %4513 = vmatpush.bf16.msrb.mxu2 %v11197_v44  ;;  %v11258_v50 = vld [vmem:[#allocation9 + $0x198] sm:$0xf0] }
 0x422   : > { %v3691_v59 = vpop.f32.mrf.mxu3  ;;  %v11261_v44 = vor.u32 %v14076_v49, %v11258_v50  ;;  %v14125_v49 = vld [vmem:[#allocation10 + $0x14] sm:$0xf0]  ;;  %v11584_v50 = vld [vmem:[#allocation10 + $0x120] sm:$0xf] }
 0x424   : > { %v3804_v23 = vpop.f32.mrf.mxu1 }
 0x425   : > { %4538 = vmatpush.bf16.msrb.mxu0 %v11349_v40  ;;  %4514 = vmatpush.bf16.msrb.mxu2 %v11189_v58  ;;  %v3812_v45 = vpack.c.bf16 %v3804_v23, %v3801_v56  ;;  %v11413_v40 = vor.u32 %v14114_v25, %v11410_v54  ;;  %v14112_v58 = vld [vmem:[#allocation9 + $0x2b4] sm:$0xf]  ;;  %v11624_v56 = vld [vmem:[#allocation10 + $0x170] sm:$0xf]  ;;  %v14129_v23 = vld [vmem:[#allocation10 + $0x34] sm:$0xf0] }
 0x426   : > { %v14123_v54 = vld [vmem:[#allocation10 + $0x4] sm:$0xf0] }
 0x428   : > { %4487 = vmatmul.bf16.vlgmr.msra.gmra.mxu0 %v16351_v17  ;;  %4515 = vmatmul.bf16.vlgmr.msrb.gmra.mxu2 %v3809_v9  ;;  %v11314_v17 = vld [vmem:[#allocation9 + $0x208] sm:$0xf0]  ;;  %v11434_v9 = vld [vmem:[#allocation9 + $0x2f8] sm:$0xf0] }
 0x429   : > { %4539 = vmatpush.bf16.msrb.mxu0 %v11341_v15  ;;  %v11317_v2 = vor.u32 %v14090_v21, %v11314_v17  ;;  %v11437_v38 = vor.u32 %v14120_v52, %v11434_v9  ;;  %v11394_v15 = vld [vmem:[#allocation9 + $0x2a8] sm:$0xf0]  ;;  %5232 = vmatpush.bf16.msra.mxu2 %v11497_v43  ;;  %v11480_v17 = vld [vmem:[#allocation10 + $0x50] sm:$0xf]  ;;  %v11569_v43 = vor.u32 %v14155_v7, %v11568_v10 }
 0x42a   : > { %v3694_v34 = vpop.f32.mrf.mxu3  ;;  %v11397_v0 = vor.u32 %v14110_v39, %v11394_v15  ;;  %v11464_v9 = vld [vmem:[#allocation10 + $0x30] sm:$0xf]  ;;  %v14201_v39 = vld [vmem:[#allocation10 + $0x274] sm:$0xf0]  ;;  %v11552_v15 = vld [vmem:[#allocation10 + $0xe0] sm:$0xf] }
 0x42b   : > { %v16358_v22 = vpack.c.bf16 %v3694_v34, %v3691_v59  ;;  %v11402_v59 = vld [vmem:[#allocation9 + $0x2b8] sm:$0xf0]  ;;  %v11378_v34 = vld [vmem:[#allocation9 + $0x288] sm:$0xf0] }
 0x42c   : > { %v11405_v47 = vor.u32 %v14112_v58, %v11402_v59  ;;  %v11441_v58 = vor.u32 %v14123_v54, %v11440_v6  ;;  %v14179_v6 = vld [vmem:[#allocation10 + $0x1c4] sm:$0xf0] }
 0x42d   : > { %4417 = vmatmul.bf16.vlgmr.msrb.gmra.mxu3 %v16358_v22  ;;  %4540 = vmatpush.bf16.msrb.mxu0 %v11333_v4  ;;  %v14106_v4 = vld [vmem:[#allocation9 + $0x284] sm:$0xf] }
 0x42e   : > { %4521 = vmatpush.bf16.msrb.mxu3 %v11309_v60  ;;  %v11381_v60 = vor.u32 %v14106_v4, %v11378_v34  ;;  %v11553_v4 = vor.u32 %v14151_v36, %v11552_v15  ;;  %v11520_v15 = vld [vmem:[#allocation10 + $0xa0] sm:$0xf] }
 0x431   : > { %4541 = vmatpush.bf16.msrb.mxu0 %v11325_v41  ;;  %v14135_v41 = vld [vmem:[#allocation10 + $0x64] sm:$0xf0] }
 0x432   : > { %v3746_v16 = vpop.f32.mrf.mxu3  ;;  %4522 = vmatpush.bf16.msrb.mxu3 %v11301_v63  ;;  %v11489_v21 = vor.u32 %v14135_v41, %v11488_v13  ;;  %v11744_v13 = vld [vmem:[#allocation10 + $0x260] sm:$0xf]  ;;  %v14199_v41 = vld [vmem:[#allocation10 + $0x264] sm:$0xf0] }
 0x434   : > { %5233 = vmatpush.bf16.msra.mxu2 %v11489_v21 }
 0x435   : > { %4542 = vmatpush.bf16.msrb.mxu0 %v11317_v2  ;;  %v11481_v2 = vor.u32 %v14133_v8, %v11480_v17  ;;  %v11544_v17 = vld [vmem:[#allocation10 + $0xd0] sm:$0xf]  ;;  %v14149_v8 = vld [vmem:[#allocation10 + $0xd4] sm:$0xf0] }
 0x436   : > { %4523 = vmatpush.bf16.msrb.mxu3 %v11293_v24  ;;  %v11472_v24 = vld [vmem:[#allocation10 + $0x40] sm:$0xf] }
 0x437   : > { %v11473_v37 = vor.u32 %v14131_v18, %v11472_v24  ;;  %v14183_v24 = vld [vmem:[#allocation10 + $0x1e4] sm:$0xf0]  ;;  %v11736_v18 = vld [vmem:[#allocation10 + $0x250] sm:$0xf] }
 0x438   : > { %4543 = vmatmul.bf16.vlgmr.msrb.gmra.mxu0 %v16354_v27  ;;  %v11418_v27 = vld [vmem:[#allocation9 + $0x2d8] sm:$0xf0]  ;;  %5234 = vmatpush.bf16.msra.mxu2 %v11481_v2  ;;  %v16364_v2 = vld [vmem:[%s16953_s18] sm:$0x3]  ;;  %s16966_s18 = sld [smem:[#allocation44_spill]] }
 0x439   : > { %v11421_v12 = vor.u32 %v14116_v55, %v11418_v27  ;;  %v14159_v27 = vld [vmem:[#allocation10 + $0x124] sm:$0xf0] }
 0x43a   : > { %v3749_v33 = vpop.f32.mrf.mxu3  ;;  %4524 = vmatpush.bf16.msrb.mxu3 %v11285_v53  ;;  %v11608_v53 = vld [vmem:[#allocation10 + $0x150] sm:$0xf] }
 0x43b   : > { %v3810_v26 = vpack.c.bf16 %v3749_v33, %v3746_v16  ;;  %v14167_v16 = vld [vmem:[#allocation10 + $0x164] sm:$0xf0]  ;;  %v11609_v52 = vor.u32 %v14165_v32, %v11608_v53  ;;  %v11600_v33 = vld [vmem:[#allocation10 + $0x140] sm:$0xf] }
 0x43c   : > { %v11617_v31 = vor.u32 %v14167_v16, %v11616_v1  ;;  %5235 = vmatpush.bf16.msra.mxu2 %v11473_v37  ;;  %v11680_v1 = vld [vmem:[#allocation10 + $0x1e0] sm:$0xf]  ;;  %v11545_v16 = vor.u32 %v14149_v8, %v11544_v17  ;;  %v14134_v37 = vld [vmem:[#allocation10 + $0x64] sm:$0xf]  ;;  %v14175_v17 = vld [vmem:[#allocation10 + $0x1a4] sm:$0xf0] }
 0x43d   : > { %4445 = vmatmul.bf16.vlgmr.msrb.gmra.mxu1 %v3810_v26  ;;  %4473 = vmatmul.bf16.vlgmr.msra.gmra.mxu3 %v3812_v45  ;;  %v11681_v53 = vor.u32 %v14183_v24, %v11680_v1  ;;  %v11704_v8 = vld [vmem:[#allocation10 + $0x210] sm:$0xf] }
 0x43e   : > { %4525 = vmatpush.bf16.msrb.mxu3 %v11277_v28  ;;  %4549 = vmatpush.bf16.msrb.mxu1 %v11437_v38  ;;  %v11465_v28 = vor.u32 %v14129_v23, %v11464_v9  ;;  %v14163_v38 = vld [vmem:[#allocation10 + $0x144] sm:$0xf0]  ;;  %v11536_v9 = vld [vmem:[#allocation10 + $0xc0] sm:$0xf] }
 0x440   : > { %5236 = vmatpush.bf16.msra.mxu2 %v11465_v28  ;;  %v11672_v28 = vld [vmem:[#allocation10 + $0x1d0] sm:$0xf] }
 0x442   : > { %4526 = vmatpush.bf16.msrb.mxu3 %v11269_v11  ;;  %4550 = vmatpush.bf16.msrb.mxu1 %v11429_v61  ;;  %v11593_v11 = vor.u32 %v14161_v48, %v11592_v14  ;;  %v11448_v61 = vld [vmem:[#allocation10 + $0x10] sm:$0xf]  ;;  %v3911_v14 = vperm.slane %v16364_v2, 0  ;;  %v11728_v48 = vld [vmem:[#allocation10 + $0x240] sm:$0xf] }
 0x443   : > { %v11449_v55 = vor.u32 %v14125_v49, %v11448_v61  ;;  %v14132_v49 = vld [vmem:[#allocation10 + $0x54] sm:$0xf] }
 0x446   : > { %4527 = vmatpush.bf16.msrb.mxu3 %v11261_v44  ;;  %4551 = vmatpush.bf16.msrb.mxu1 %v11421_v12  ;;  %v11585_v44 = vor.u32 %v14159_v27, %v11584_v50  ;;  %v11560_v12 = vld [vmem:[#allocation10 + $0xf0] sm:$0xf]  ;;  %v11482_v50 = vld [vmem:[#allocation10 + $0x58] sm:$0xf0] }
 0x447   : > { %v11561_v25 = vor.u32 %v14153_v35, %v11560_v12  ;;  %v14145_v12 = vld [vmem:[#allocation10 + $0xb4] sm:$0xf0]  ;;  %v11664_v35 = vld [vmem:[#allocation10 + $0x1c0] sm:$0xf] }
 0x448   : > { %v11665_v54 = vor.u32 %v14179_v6, %v11664_v35 }
 0x44a   : > { %4528 = vmatpush.bf16.msrb.mxu3 %v11253_v19  ;;  %4552 = vmatpush.bf16.msrb.mxu1 %v11413_v40  ;;  %v11576_v19 = vld [vmem:[#allocation10 + $0x110] sm:$0xf]  ;;  %v14157_v40 = vld [vmem:[#allocation10 + $0x114] sm:$0xf0] }
 0x44b   : > { %v11577_v59 = vor.u32 %v14157_v40, %v11576_v19  ;;  %v11720_v19 = vld [vmem:[#allocation10 + $0x230] sm:$0xf]  ;;  %v14193_v40 = vld [vmem:[#allocation10 + $0x234] sm:$0xf0] }
 0x44d   : > { %4501 = vmatmul.bf16.vlgmr.msra.gmra.mxu1 %v16358_v22  ;;  %4529 = vmatmul.bf16.vlgmr.msrb.gmra.mxu3 %v3810_v26  ;;  %v14169_v22 = vld [vmem:[#allocation10 + $0x174] sm:$0xf0]  ;;  %v14127_v26 = vld [vmem:[#allocation10 + $0x24] sm:$0xf0] }
 0x44e   : > { %4553 = vmatpush.bf16.msrb.mxu1 %v11405_v47  ;;  %v11625_v63 = vor.u32 %v14169_v22, %v11624_v56  ;;  %v11457_v29 = vor.u32 %v14127_v26, %v11456_v46  ;;  %v11752_v47 = vld [vmem:[#allocation10 + $0x270] sm:$0xf]  ;;  %5246 = vmatpush.bf16.msra.mxu3 %v11561_v25  ;;  %v14136_v56 = vld [vmem:[#allocation10 + $0x74] sm:$0xf]  ;;  %v11498_v22 = vld [vmem:[#allocation10 + $0x78] sm:$0xf0] }
 0x44f   : > { %v11501_v21 = vor.u32 %v14136_v56, %v11498_v22  ;;  %v11512_v56 = vld [vmem:[#allocation10 + $0x90] sm:$0xf]  ;;  %v11648_v22 = vld [vmem:[#allocation10 + $0x1a0] sm:$0xf] }
 0x450   : > { %5260 = vmatpush.bf16.msra.mxu0 %v11625_v63  ;;  %5237 = vmatpush.bf16.msra.mxu2 %v11457_v29  ;;  %v11745_v63 = vor.u32 %v14199_v41, %v11744_v13  ;;  %v14195_v29 = vld [vmem:[#allocation10 + $0x244] sm:$0xf0]  ;;  %v11466_v41 = vld [vmem:[#allocation10 + $0x38] sm:$0xf0] }
 0x451   : > { %v11729_v61 = vor.u32 %v14195_v29, %v11728_v48  ;;  %v14191_v13 = vld [vmem:[#allocation10 + $0x224] sm:$0xf0] }
 0x452   : > { %4554 = vmatpush.bf16.msrb.mxu1 %v11397_v0  ;;  %v11753_v0 = vor.u32 %v14201_v39, %v11752_v47  ;;  %5247 = vmatpush.bf16.msra.mxu3 %v11553_v4  ;;  %v11721_v47 = vor.u32 %v14193_v40, %v11720_v19  ;;  %v11474_v39 = vld [vmem:[#allocation10 + $0x48] sm:$0xf0]  ;;  %v14177_v4 = vld [vmem:[#allocation10 + $0x1b4] sm:$0xf0] }
 0x454   : > { %5261 = vmatpush.bf16.msra.mxu0 %v11617_v31  ;;  %5238 = vmatpush.bf16.msra.mxu2 %v11449_v55  ;;  %v14197_v31 = vld [vmem:[#allocation10 + $0x254] sm:$0xf0]  ;;  %v11528_v55 = vld [vmem:[#allocation10 + $0xb0] sm:$0xf] }
 0x455   : > { %v11737_v32 = vor.u32 %v14197_v31, %v11736_v18  ;;  %v11529_v25 = vor.u32 %v14145_v12, %v11528_v55  ;;  %v14189_v18 = vld [vmem:[#allocation10 + $0x214] sm:$0xf0]  ;;  %v14126_v31 = vld [vmem:[#allocation10 + $0x24] sm:$0xf]  ;;  %v14124_v55 = vld [vmem:[#allocation10 + $0x14] sm:$0xf] }
 0x456   : > { %4555 = vmatpush.bf16.msrb.mxu1 %v11389_v57  ;;  %v14185_v57 = vld [vmem:[#allocation10 + $0x1f4] sm:$0xf0]  ;;  %5248 = vmatpush.bf16.msra.mxu3 %v11545_v16 }
 0x457   : > { %v11689_v34 = vor.u32 %v14185_v57, %v11688_v42  ;;  %v11656_v57 = vld [vmem:[#allocation10 + $0x1b0] sm:$0xf] }
 0x458   : > { %5262 = vmatpush.bf16.msra.mxu0 %v11609_v52  ;;  %5239 = vmatpush.bf16.msra.mxu2 %v11441_v58  ;;  %v11490_v52 = vld [vmem:[#allocation10 + $0x68] sm:$0xf0]  ;;  %v14130_v58 = vld [vmem:[#allocation10 + $0x44] sm:$0xf]  ;;  %v11657_v7 = vor.u32 %v14177_v4, %v11656_v57  ;;  %v11562_v57 = vld [vmem:[#allocation10 + $0xf8] sm:$0xf0] }
 0x459   : > { %v11493_v23 = vor.u32 %v14134_v37, %v11490_v52  ;;  %v11477_v36 = vor.u32 %v14130_v58, %v11474_v39  ;;  %v11649_v37 = vor.u32 %v14175_v17, %v11648_v22  ;;  %v11504_v52 = vld [vmem:[#allocation10 + $0x80] sm:$0xf]  ;;  %v11800_v22 = vld [vmem:[#allocation10 + $0x2d0] sm:$0xf]  ;;  %v11554_v17 = vld [vmem:[#allocation10 + $0xe8] sm:$0xf0] }
 0x45a   : > { %4556 = vmatpush.bf16.msrb.mxu1 %v11381_v60  ;;  %v11632_v58 = vld [vmem:[#allocation10 + $0x180] sm:$0xf] }
 0x45c   : > { %5288 = vmatpush.bf16.msrb.mxu2 %v11753_v0  ;;  %v14143_v0 = vld [vmem:[#allocation10 + $0xa4] sm:$0xf0] }
 0x45d   : > { %4557 = vmatmul.bf16.vlgmr.msrb.gmra.mxu1 %v3812_v45  ;;  %v11601_v45 = vor.u32 %v14163_v38, %v11600_v33  ;;  %v14147_v33 = vld [vmem:[#allocation10 + $0xc4] sm:$0xf0]  ;;  %v14181_v38 = vld [vmem:[#allocation10 + $0x1d4] sm:$0xf0]  ;;  %v11521_v42 = vor.u32 %v14143_v0, %v11520_v15 }
 0x45e   : > { %5274 = vmatpush.bf16.msra.mxu1 %v11689_v34  ;;  %v11537_v46 = vor.u32 %v14147_v33, %v11536_v9  ;;  %v11673_v26 = vor.u32 %v14181_v38, %v11672_v28  ;;  %v11712_v34 = vld [vmem:[#allocation10 + $0x220] sm:$0xf]  ;;  %v14139_v9 = vld [vmem:[#allocation10 + $0x84] sm:$0xf0]  ;;  %v14173_v38 = vld [vmem:[#allocation10 + $0x194] sm:$0xf0] }
 0x45f   : > { %5263 = vmatpush.bf16.msra.mxu0 %v11601_v45 }
 0x460   : > { %5289 = vmatpush.bf16.msrb.mxu2 %v11745_v63  ;;  %5249 = vmatpush.bf16.msra.mxu3 %v11537_v46  ;;  %v11713_v63 = vor.u32 %v14191_v13, %v11712_v34  ;;  %v11816_v46 = vld [vmem:[#allocation10 + $0x2f0] sm:$0xf]  ;;  %v14122_v13 = vld [vmem:[#allocation10 + $0x4] sm:$0xf] }
 0x462   : > { %5275 = vmatpush.bf16.msra.mxu1 %v11681_v53  ;;  %v11458_v53 = vld [vmem:[#allocation10 + $0x28] sm:$0xf0] }
 0x463   : > { %5264 = vmatpush.bf16.msra.mxu0 %v11593_v11 }
 0x464   : > { %5290 = vmatpush.bf16.msrb.mxu2 %v11737_v32  ;;  %5250 = vmatpush.bf16.msra.mxu3 %v11529_v25 }
 0x466   : > { %5276 = vmatpush.bf16.msra.mxu1 %v11673_v26  ;;  %v14217_v26 = vld [vmem:[#allocation10 + $0x2f4] sm:$0xf0] }
 0x467   : > { %5265 = vmatpush.bf16.msra.mxu0 %v11585_v44  ;;  %v11485_v44 = vor.u32 %v14132_v49, %v11482_v50  ;;  %v11696_v49 = vld [vmem:[#allocation10 + $0x200] sm:$0xf]  ;;  %v14187_v50 = vld [vmem:[#allocation10 + $0x204] sm:$0xf0] }
 0x468   : > { %5291 = vmatpush.bf16.msrb.mxu2 %v11729_v61  ;;  %5251 = vmatpush.bf16.msra.mxu3 %v11521_v42  ;;  %v11461_v61 = vor.u32 %v14126_v31, %v11458_v53  ;;  %v11697_v6 = vor.u32 %v14187_v50, %v11696_v49  ;;  %v14152_v42 = vld [vmem:[#allocation10 + $0xf4] sm:$0xf]  ;;  %v11792_v53 = vld [vmem:[#allocation10 + $0x2c0] sm:$0xf] }
 0x46a   : > { %5277 = vmatpush.bf16.msra.mxu1 %v11665_v54 }
 0x46b   : > { %5266 = vmatpush.bf16.msra.mxu0 %v11577_v59 }
 0x46c   : > { %5292 = vmatpush.bf16.msrb.mxu2 %v11721_v47  ;;  %v11808_v47 = vld [vmem:[#allocation10 + $0x2e0] sm:$0xf] }
 0x46e   : > { %5278 = vmatpush.bf16.msra.mxu1 %v11657_v7  ;;  %v11565_v7 = vor.u32 %v14152_v42, %v11562_v57  ;;  %v11754_v42 = vld [vmem:[#allocation10 + $0x278] sm:$0xf0]  ;;  %v14164_v57 = vld [vmem:[#allocation10 + $0x154] sm:$0xf] }
 0x46f   : > { %5267 = vmatpush.bf16.msra.mxu0 %v11569_v43  ;;  %v14128_v43 = vld [vmem:[#allocation10 + $0x34] sm:$0xf] }
 0x470   : > { %5293 = vmatpush.bf16.msrb.mxu2 %v11713_v63  ;;  %v14213_v63 = vld [vmem:[#allocation10 + $0x2d4] sm:$0xf0] }
 0x472   : > { %5279 = vmatpush.bf16.msra.mxu1 %v11649_v37 }
 0x473   : > { %5316 = vmatpush.bf16.msrb.mxu0 %v11501_v21  ;;  %v11469_v21 = vor.u32 %v14128_v43, %v11466_v41  ;;  %v11442_v43 = vld [vmem:[#allocation10 + $0x8] sm:$0xf0] }
 0x474   : > { %v11445_v41 = vor.u32 %v14122_v13, %v11442_v43 }
 0x477   : > { %5317 = vmatpush.bf16.msrb.mxu0 %v11493_v23  ;;  %v11640_v23 = vld [vmem:[#allocation10 + $0x190] sm:$0xf] }
 0x478   : > { %v11641_v35 = vor.u32 %v14173_v38, %v11640_v23  ;;  %v14168_v38 = vld [vmem:[#allocation10 + $0x174] sm:$0xf] }
 0x47a   : > { %5280 = vmatpush.bf16.msra.mxu1 %v11641_v35  ;;  %v11538_v35 = vld [vmem:[#allocation10 + $0xc8] sm:$0xf0] }
 0x47b   : > { %5318 = vmatpush.bf16.msrb.mxu0 %v11485_v44  ;;  %v11450_v44 = vld [vmem:[#allocation10 + $0x18] sm:$0xf0] }
 0x47c   : > { %v11453_v25 = vor.u32 %v14124_v55, %v11450_v44 }
 0x47f   : > { %5319 = vmatpush.bf16.msrb.mxu0 %v11477_v36  ;;  %v14215_v36 = vld [vmem:[#allocation10 + $0x2e4] sm:$0xf0] }
 0x483   : > { %5320 = vmatpush.bf16.msrb.mxu0 %v11469_v21  ;;  %v14150_v21 = vld [vmem:[#allocation10 + $0xe4] sm:$0xf] }
 0x487   : > { %5321 = vmatpush.bf16.msrb.mxu0 %v11461_v61  ;;  %v14209_v61 = vld [vmem:[#allocation10 + $0x2b4] sm:$0xf0] }
 0x48b   : > { %v4404_v60 = vpop.f32.mrf.mxu2  ;;  %5322 = vmatpush.bf16.msrb.mxu0 %v11453_v25  ;;  %v11618_v25 = vld [vmem:[#allocation10 + $0x168] sm:$0xf0] }
 0x48c   : > { %v4405_v59 = vadd.f32 %v4404_v60, %v3911_v14  ;;  %v14141_v60 = vld [vmem:[#allocation10 + $0x94] sm:$0xf0] }
 0x48d   : > { %v11513_v24 = vor.u32 %v14141_v60, %v11512_v56 }
 0x48f   : > { %5252 = vmatpush.bf16.msra.mxu3 %v11513_v24  ;;  %5323 = vmatpush.bf16.msrb.mxu0 %v11445_v41 }
 0x493   : > { %v4406_v27 = vpop.f32.mrf.mxu2 }
 0x494   : > { %v4407_v33 = vadd.f32 %v4406_v27, %v3911_v14  ;;  %v11817_v14 = vor.u32 %v14217_v26, %v11816_v46  ;;  %v11626_v46 = vld [vmem:[#allocation10 + $0x178] sm:$0xf0] }
 0x495   : > { %v4432_v45 = vpop.f32.mrf.mxu0 }
 0x49b   : > { %v4460_v48 = vpop.f32.mrf.mxu2 }
 0x49d   : > { %v4434_v1 = vpop.f32.mrf.mxu0 }
 0x4a3   : > { %v4462_v56 = vpop.f32.mrf.mxu2 }
 0x4a5   : > { %v4488_v39 = vpop.f32.mrf.mxu0 }
 0x4ab   : > { %v4516_v50 = vpop.f32.mrf.mxu2 }
 0x4b0   : > { %v4418_v11 = vpop.f32.mrf.mxu3 }
 0x4b1   : > { %v4419_v10 = vadd.f32 %v4418_v11, %v4405_v59  ;;  %v11705_v11 = vor.u32 %v14189_v18, %v11704_v8  ;;  %v14171_v59 = vld [vmem:[#allocation10 + $0x184] sm:$0xf0]  ;;  %v3912_v18 = vperm.slane %v16364_v2, 1 }
 0x4b2   : > { %v11633_v0 = vor.u32 %v14171_v59, %v11632_v58  ;;  %v11776_v58 = vld [vmem:[#allocation10 + $0x2a0] sm:$0xf] }
 0x4b3   : > { %v4433_v32 = vadd.f32 %v4432_v45, %v4419_v10  ;;  %v11505_v45 = vor.u32 %v14139_v9, %v11504_v52  ;;  %5294 = vmatpush.bf16.msrb.mxu2 %v11705_v11  ;;  %v11809_v10 = vor.u32 %v14215_v36, %v11808_v47  ;;  %v14148_v9 = vld [vmem:[#allocation10 + $0xd4] sm:$0xf]  ;;  %v11784_v11 = vld [vmem:[#allocation10 + $0x2b0] sm:$0xf] }
 0x4b4   : > { %5281 = vmatpush.bf16.msra.mxu1 %v11633_v0  ;;  %v11785_v49 = vor.u32 %v14209_v61, %v11784_v11  ;;  %v11530_v0 = vld [vmem:[#allocation10 + $0xb8] sm:$0xf0]  ;;  %v14200_v36 = vld [vmem:[#allocation10 + $0x274] sm:$0xf] }
 0x4b5   : > { %5253 = vmatpush.bf16.msra.mxu3 %v11505_v45  ;;  %v14146_v45 = vld [vmem:[#allocation10 + $0xc4] sm:$0xf] }
 0x4b7   : > { %5295 = vmatpush.bf16.msrb.mxu2 %v11697_v6  ;;  %v14166_v6 = vld [vmem:[#allocation10 + $0x164] sm:$0xf] }
 0x4b8   : > { %v4420_v16 = vpop.f32.mrf.mxu3  ;;  %5330 = vmatpush.bf16.msrb.mxu1 %v11565_v7  ;;  %v11621_v47 = vor.u32 %v14166_v6, %v11618_v25  ;;  %v14160_v6 = vld [vmem:[#allocation10 + $0x134] sm:$0xf] }
 0x4b9   : > { %v4421_v12 = vadd.f32 %v4420_v16, %v4407_v33  ;;  %5302 = vmatpush.bf16.msrb.mxu3 %v11817_v14  ;;  %v11557_v16 = vor.u32 %v14150_v21, %v11554_v17  ;;  %v11546_v33 = vld [vmem:[#allocation10 + $0xd8] sm:$0xf0] }
 0x4ba   : > { %v4446_v28 = vpop.f32.mrf.mxu1  ;;  %v11549_v26 = vor.u32 %v14148_v9, %v11546_v33 }
 0x4bb   : > { %v4447_v29 = vadd.f32 %v4446_v28, %v4433_v32  ;;  %v4435_v19 = vadd.f32 %v4434_v1, %v4421_v12  ;;  %v11801_v1 = vor.u32 %v14213_v63, %v11800_v22  ;;  %v14211_v32 = vld [vmem:[#allocation10 + $0x2c4] sm:$0xf0]  ;;  %v4490_v28 = vpop.f32.mrf.mxu0  ;;  %v11629_v12 = vor.u32 %v14168_v38, %v11626_v46  ;;  %v11768_v22 = vld [vmem:[#allocation10 + $0x290] sm:$0xf]  ;;  %v14205_v63 = vld [vmem:[#allocation10 + $0x294] sm:$0xf0] }
 0x4bc   : > { %5331 = vmatpush.bf16.msrb.mxu1 %v11557_v16  ;;  %v11793_v52 = vor.u32 %v14211_v32, %v11792_v53  ;;  %v4491_v7 = vadd.f32 %v4490_v28, %v3912_v18  ;;  %v14142_v16 = vld [vmem:[#allocation10 + $0xa4] sm:$0xf]  ;;  %v11522_v32 = vld [vmem:[#allocation10 + $0xa8] sm:$0xf0]  ;;  %v11757_v46 = vor.u32 %v14200_v36, %v11754_v42 }
 0x4bd   : > { %v4461_v27 = vadd.f32 %v4460_v48, %v4447_v29  ;;  %5303 = vmatpush.bf16.msrb.mxu3 %v11809_v10  ;;  %v4489_v48 = vadd.f32 %v4488_v39, %v3912_v18  ;;  %v14207_v39 = vld [vmem:[#allocation10 + $0x2a4] sm:$0xf0]  ;;  %v11525_v9 = vor.u32 %v14142_v16, %v11522_v32 }
 0x4c0   : > { %v4474_v54 = vpop.f32.mrf.mxu3  ;;  %5332 = vmatpush.bf16.msrb.mxu1 %v11549_v26  ;;  %v11760_v26 = vld [vmem:[#allocation10 + $0x280] sm:$0xf] }
 0x4c1   : > { %v4475_v40 = vadd.f32 %v4474_v54, %v4461_v27  ;;  %5304 = vmatpush.bf16.msrb.mxu3 %v11801_v1  ;;  %v11541_v54 = vor.u32 %v14146_v45, %v11538_v35  ;;  %v11769_v1 = vor.u32 %v14205_v63, %v11768_v22  ;;  %v11730_v22 = vld [vmem:[#allocation10 + $0x248] sm:$0xf0] }
 0x4c2   : > { %v4448_v15 = vpop.f32.mrf.mxu1 }
 0x4c3   : > { %v4563_v4 = vmax.f32 %v4475_v40, 0.0  ;;  %v4449_v34 = vadd.f32 %v4448_v15, %v4435_v19  ;;  %v14144_v15 = vld [vmem:[#allocation10 + $0xb4] sm:$0xf]  ;;  %v4544_v21 = vpop.f32.mrf.mxu0 }
 0x4c4   : > { %5333 = vmatpush.bf16.msrb.mxu1 %v11541_v54  ;;  %v11533_v10 = vor.u32 %v14144_v15, %v11530_v0  ;;  %v14196_v15 = vld [vmem:[#allocation10 + $0x254] sm:$0xf]  ;;  %v11738_v0 = vld [vmem:[#allocation10 + $0x258] sm:$0xf0] }
 0x4c5   : > { %v4576_v60 = vrot.slane %v4563_v4, 7  ;;  %v4463_v8 = vadd.f32 %v4462_v56, %v4449_v34  ;;  %5305 = vmatpush.bf16.msrb.mxu3 %v11793_v52  ;;  %v11610_v4 = vld [vmem:[#allocation10 + $0x158] sm:$0xf0]  ;;  %v11777_v34 = vor.u32 %v14207_v39, %v11776_v58  ;;  %v14162_v56 = vld [vmem:[#allocation10 + $0x144] sm:$0xf] }
 0x4c6   : > { %v11613_v53 = vor.u32 %v14164_v57, %v11610_v4  ;;  %v11506_v58 = vld [vmem:[#allocation10 + $0x88] sm:$0xf0] }
 0x4c7   : > { %4588 = vst [vmem:[#allocation3] sm:$0xfe] %v4576_v60 }
 0x4c8   : > { %v4476_v24 = vpop.f32.mrf.mxu3  ;;  %5334 = vmatpush.bf16.msrb.mxu1 %v11533_v10 }
 0x4c9   : > { %v4477_v31 = vadd.f32 %v4476_v24, %v4463_v8  ;;  %5306 = vmatpush.bf16.msrb.mxu3 %v11785_v49  ;;  %v11746_v49 = vld [vmem:[#allocation10 + $0x268] sm:$0xf0] }
 0x4ca   : > { %v4502_v37 = vpop.f32.mrf.mxu1 }
 0x4cb   : > { %v4565_v23 = vmax.f32 %v4477_v31, 0.0  ;;  %v4503_v44 = vadd.f32 %v4502_v37, %v4489_v48  ;;  %v14198_v37 = vld [vmem:[#allocation10 + $0x264] sm:$0xf]  ;;  %v14203_v48 = vld [vmem:[#allocation10 + $0x284] sm:$0xf0] }
 0x4cc   : > { %5335 = vmatpush.bf16.msrb.mxu1 %v11525_v9  ;;  %v11761_v25 = vor.u32 %v14203_v48, %v11760_v26  ;;  %v11749_v39 = vor.u32 %v14198_v37, %v11746_v49  ;;  %v14154_v9 = vld [vmem:[#allocation10 + $0x104] sm:$0xf] }
 0x4cd   : > { %v4578_v29 = vrot.slane %v4565_v23, 7  ;;  %v4517_v59 = vadd.f32 %v4516_v50, %v4503_v44  ;;  %5307 = vmatpush.bf16.msrb.mxu3 %v11777_v34  ;;  %v4518_v23 = vpop.f32.mrf.mxu2  ;;  %v4546_v34 = vpop.f32.mrf.mxu0 }
 0x4ce   : > { %v4594_v2 = vld [vmem:[#allocation3] sm:$0xff] }
 0x4cf   : > { %v16373_v55 = vsel %vm1617_vm1, %v4576_v60, %v4578_v29  ;;  %4592 = vst [vmem:[#allocation3 + $0x20] sm:$0x1] %v4578_v29  ;;  %v4598_v40 = vld [vmem:[#allocation3] sm:$0xfe]  ;;  %v11602_v60 = vld [vmem:[#allocation10 + $0x148] sm:$0xf0] }
 0x4d0   : > { %4590 = vst [vmem:[#allocation3 + $0x10] sm:$0xff] %v16373_v55  ;;  %v4530_v14 = vpop.f32.mrf.mxu3  ;;  %v16377_v27 = vpack.c.bf16 %v16373_v55, %v4594_v2  ;;  %v4612_v43 = vrot.slane %v4598_v40, 1  ;;  %v4613_v41 = vrot.slane %v16373_v55, 1  ;;  %v4602_v18 = vld [vmem:[#allocation3] sm:$0xfc]  ;;  %v11605_v45 = vor.u32 %v14162_v56, %v11602_v60 }
 0x4d1   : > { %v4531_v13 = vadd.f32 %v4530_v14, %v4517_v59  ;;  %v14140_v29 = vld [vmem:[#allocation10 + $0x94] sm:$0xf]  ;;  %v4630_v50 = vrot.slane %v4602_v18, 2  ;;  %v4631_v44 = vrot.slane %v16373_v55, 2  ;;  %5308 = vmatpush.bf16.msrb.mxu3 %v11769_v1  ;;  %v14138_v40 = vld [vmem:[#allocation10 + $0x84] sm:$0xf] }
 0x4d2   : > { %v4504_v19 = vpop.f32.mrf.mxu1  ;;  %5240 = vmatmul.bf16.vlgmr.msra.gmra.mxu2 %v16377_v27  ;;  %v4614_v28 = vsel %vm1678_vm2, %v4612_v43, %v4613_v41  ;;  %v11509_v36 = vor.u32 %v14138_v40, %v11506_v58  ;;  %v14194_v60 = vld [vmem:[#allocation10 + $0x244] sm:$0xf]  ;;  %v11690_v18 = vld [vmem:[#allocation10 + $0x1f8] sm:$0xf0] }
 0x4d3   : > { %5344 = vmatpush.bf16.msra.mxu2 %v11629_v12  ;;  %v4505_v24 = vadd.f32 %v4504_v19, %v4491_v7  ;;  %v4545_v33 = vadd.f32 %v4544_v21, %v4531_v13  ;;  %v11514_v12 = vld [vmem:[#allocation10 + $0x98] sm:$0xf0]  ;;  %v4632_v57 = vsel %vm1709_vm3, %v4630_v50, %v4631_v44  ;;  %v14158_v7 = vld [vmem:[#allocation10 + $0x124] sm:$0xf]  ;;  %v11586_v13 = vld [vmem:[#allocation10 + $0x128] sm:$0xf0]  ;;  %v11733_v16 = vor.u32 %v14194_v60, %v11730_v22 }
 0x4d4   : > { %v11517_v54 = vor.u32 %v14140_v29, %v11514_v12  ;;  %v11594_v19 = vld [vmem:[#allocation10 + $0x138] sm:$0xf0]  ;;  %v11589_v21 = vor.u32 %v14158_v7, %v11586_v13  ;;  %v14182_v29 = vld [vmem:[#allocation10 + $0x1e4] sm:$0xf]  ;;  %v14188_v50 = vld [vmem:[#allocation10 + $0x214] sm:$0xf] }
 0x4d5   : > { %v4519_v35 = vadd.f32 %v4518_v23, %v4505_v24  ;;  %5309 = vmatpush.bf16.msrb.mxu3 %v11761_v25  ;;  %v11597_v4 = vor.u32 %v14160_v6, %v11594_v19  ;;  %v14192_v24 = vld [vmem:[#allocation10 + $0x234] sm:$0xf]  ;;  %v11570_v23 = vld [vmem:[#allocation10 + $0x108] sm:$0xf0]  ;;  %v11706_v12 = vld [vmem:[#allocation10 + $0x218] sm:$0xf0] }
 0x4d6   : > { %v4600_v17 = vld [vmem:[#allocation3 + $0x20] sm:$0x1]  ;;  %5336 = vmatpush.bf16.msrb.mxu1 %v11517_v54  ;;  %v14216_v54 = vld [vmem:[#allocation10 + $0x2f4] sm:$0xf]  ;;  %v11818_v40 = vld [vmem:[#allocation10 + $0x2f8] sm:$0xf0] }
 0x4d7   : > { %v4604_v8 = vld [vmem:[#allocation3 + $0x20] sm:$0x3]  ;;  %v4618_v31 = vrot.slane %v4600_v17, 1  ;;  %5345 = vmatpush.bf16.msra.mxu2 %v11621_v47  ;;  %v14156_v17 = vld [vmem:[#allocation10 + $0x114] sm:$0xf]  ;;  %v11821_v7 = vor.u32 %v14216_v54, %v11818_v40  ;;  %v5409_v54 = vld [vmem:[#allocation2 + $0x38] sm:$0xff] }
 0x4d8   : > { %v4636_v52 = vrot.slane %v4604_v8, 2  ;;  %v4532_v11 = vpop.f32.mrf.mxu3  ;;  %v11578_v8 = vld [vmem:[#allocation10 + $0x118] sm:$0xf0]  ;;  %v5404_v22 = vld [vmem:[#allocation2 + $0x10] sm:$0xff]  ;;  %v11762_v40 = vld [vmem:[#allocation10 + $0x288] sm:$0xf0] }
 0x4d9   : > { %v4619_v38 = vsel %vm1678_vm2, %v4613_v41, %v4618_v31  ;;  %v4533_v59 = vadd.f32 %v4532_v11, %v4519_v35  ;;  %v11741_v41 = vor.u32 %v14196_v15, %v11738_v0  ;;  %v11722_v31 = vld [vmem:[#allocation10 + $0x238] sm:$0xf0]  ;;  %v11581_v37 = vor.u32 %v14156_v17, %v11578_v8  ;;  %v11682_v11 = vld [vmem:[#allocation10 + $0x1e8] sm:$0xf0]  ;;  %v14180_v35 = vld [vmem:[#allocation10 + $0x1d4] sm:$0xf] }
 0x4da   : > { %v4558_v61 = vpop.f32.mrf.mxu1  ;;  %v16383_v2 = vpack.c.bf16 %v4619_v38, %v4614_v28  ;;  %v4637_v55 = vsel %vm1709_vm3, %v4631_v44, %v4636_v52  ;;  %5337 = vmatpush.bf16.msrb.mxu1 %v11509_v36  ;;  %v11725_v28 = vor.u32 %v14192_v24, %v11722_v31  ;;  %v14190_v38 = vld [vmem:[#allocation10 + $0x224] sm:$0xf]  ;;  %v11685_v44 = vor.u32 %v14182_v29, %v11682_v11  ;;  %v11698_v15 = vld [vmem:[#allocation10 + $0x208] sm:$0xf0]  ;;  %v14176_v8 = vld [vmem:[#allocation10 + $0x1b4] sm:$0xf] }
 0x4db   : > { %v4559_v14 = vadd.f32 %v4558_v61, %v4545_v33  ;;  %5346 = vmatpush.bf16.msra.mxu2 %v11613_v53  ;;  %v16389_v10 = vpack.c.bf16 %v4637_v55, %v4632_v57  ;;  %v4547_v43 = vadd.f32 %v4546_v34, %v4533_v59  ;;  %v14184_v53 = vld [vmem:[#allocation10 + $0x1f4] sm:$0xf]  ;;  %v11573_v61 = vor.u32 %v14154_v9, %v11570_v23  ;;  %v14186_v55 = vld [vmem:[#allocation10 + $0x204] sm:$0xf]  ;;  %v11802_v24 = vld [vmem:[#allocation10 + $0x2d8] sm:$0xf0] }
 0x4dc   : > { %5268 = vmatmul.bf16.vlgmr.msra.gmra.mxu0 %v16383_v2  ;;  %v11693_v26 = vor.u32 %v14184_v53, %v11690_v18  ;;  %v11709_v59 = vor.u32 %v14188_v50, %v11706_v12  ;;  %v14178_v36 = vld [vmem:[#allocation10 + $0x1c4] sm:$0xf]  ;;  %v11701_v60 = vor.u32 %v14186_v55, %v11698_v15  ;;  %v11794_v23 = vld [vmem:[#allocation10 + $0x2c8] sm:$0xf0]  ;;  %v11886_v55 = vld [vmem:[#allocation12 + $0x70] sm:$0xf] }
 0x4dd   : > { %v4564_v47 = vmax.f32 %v4559_v14, 0.0  ;;  %5372 = vmatpush.bf16.msra.mxu0 %v11757_v46  ;;  %v11714_v46 = vld [vmem:[#allocation10 + $0x228] sm:$0xf0]  ;;  %v11674_v14 = vld [vmem:[#allocation10 + $0x1d8] sm:$0xf0]  ;;  %v5400_v29 = vld [vmem:[%s16954_s16] sm:$0xff] }
 0x4de   : > { %v11677_v0 = vor.u32 %v14180_v35, %v11674_v14  ;;  %v14210_v9 = vld [vmem:[#allocation10 + $0x2c4] sm:$0xf]  ;;  %v11778_v50 = vld [vmem:[#allocation10 + $0x2a8] sm:$0xf0]  ;;  %v14204_v35 = vld [vmem:[#allocation10 + $0x294] sm:$0xf] }
 0x4df   : > { %v4577_v42 = vrot.slane %v4564_v47, 7  ;;  %5347 = vmatpush.bf16.msra.mxu2 %v11605_v45  ;;  %v11717_v45 = vor.u32 %v14190_v38, %v11714_v46  ;;  %v11797_v38 = vor.u32 %v14210_v9, %v11794_v23  ;;  %v14208_v46 = vld [vmem:[#allocation10 + $0x2b4] sm:$0xf]  ;;  %v11770_v14 = vld [vmem:[#allocation10 + $0x298] sm:$0xf0] }
 0x4e0   : > { %v14232_v15 = vld [vmem:[#allocation12 + $0x74] sm:$0xf]  ;;  %v11862_v9 = vld [vmem:[#allocation12 + $0x40] sm:$0xf]  ;;  %v14227_v23 = vld [vmem:[#allocation12 + $0x44] sm:$0xf0] }
 0x4e1   : > { %4589 = vst [vmem:[#allocation3 + $0x8] sm:$0xfe] %v4577_v42  ;;  %5373 = vmatpush.bf16.msra.mxu0 %v11749_v39  ;;  %v5408_v39 = vld [vmem:[#allocation2 + $0x30] sm:$0xff] }
 0x4e2   : > { %v4560_v56 = vpop.f32.mrf.mxu1  ;;  %5296 = vmatmul.bf16.vlgmr.msrb.gmra.mxu2 %v16389_v10 }
 0x4e3   : > { %v4561_v63 = vadd.f32 %v4560_v56, %v4547_v43  ;;  %5348 = vmatpush.bf16.msra.mxu2 %v11597_v4  ;;  %v11810_v56 = vld [vmem:[#allocation10 + $0x2e8] sm:$0xf0] }
 0x4e5   : > { %v4566_v1 = vmax.f32 %v4561_v63, 0.0  ;;  %5374 = vmatpush.bf16.msra.mxu0 %v11741_v41  ;;  %v14214_v41 = vld [vmem:[#allocation10 + $0x2e4] sm:$0xf] }
 0x4e7   : > { %v4580_v32 = vrot.slane %v4566_v1, 7  ;;  %5349 = vmatpush.bf16.msra.mxu2 %v11589_v21  ;;  %v11813_v1 = vor.u32 %v14214_v41, %v11810_v56  ;;  %v11870_v41 = vld [vmem:[#allocation12 + $0x50] sm:$0xf]  ;;  %v14229_v56 = vld [vmem:[#allocation12 + $0x54] sm:$0xf0] }
 0x4e8   : > { %v4595_v52 = vld [vmem:[#allocation3 + $0x8] sm:$0xff] }
 0x4e9   : > { %v16393_v33 = vsel %vm1617_vm1, %v4577_v42, %v4580_v32  ;;  %4593 = vst [vmem:[#allocation3 + $0x28] sm:$0x1] %v4580_v32  ;;  %5375 = vmatpush.bf16.msra.mxu0 %v11733_v16  ;;  %v4599_v49 = vld [vmem:[#allocation3 + $0x8] sm:$0xfe]  ;;  %v11666_v42 = vld [vmem:[#allocation10 + $0x1c8] sm:$0xf0] }
 0x4ea   : > { %4591 = vst [vmem:[#allocation3 + $0x18] sm:$0xff] %v16393_v33  ;;  %v16397_v48 = vpack.c.bf16 %v16393_v33, %v4595_v52  ;;  %v4615_v6 = vrot.slane %v4599_v49, 1  ;;  %v4616_v25 = vrot.slane %v16393_v33, 1  ;;  %v4603_v57 = vld [vmem:[#allocation3 + $0x8] sm:$0xfc]  ;;  %v11669_v63 = vor.u32 %v14178_v36, %v11666_v42 }
 0x4eb   : > { %5350 = vmatpush.bf16.msra.mxu2 %v11581_v37  ;;  %6654 = vst.msk [vmem:[#allocation3] ss:$8 sm:$0x3] %vm15883_vm0, %v15347_v5  ;;  %v4633_v21 = vrot.slane %v4603_v57, 2  ;;  %v4634_v17 = vrot.slane %v16393_v33, 2 }
 0x4ec   : > { %5324 = vmatmul.bf16.vlgmr.msrb.gmra.mxu0 %v16377_v27  ;;  %5254 = vmatmul.bf16.vlgmr.msra.gmra.mxu3 %v16397_v48  ;;  %6657 = vst.msk [vmem:[#allocation3 + $0x11] ss:$8 sm:$0x3] %vm15883_vm0, %v15347_v5  ;;  %v5410_v27 = vld [vmem:[#allocation2 + $0x40] sm:$0x3]  ;;  %v4617_v4 = vsel %vm1678_vm2, %v4615_v6, %v4616_v25  ;;  %v5401_v6 = vld [vmem:[%s16954_s16 + $0x8] sm:$0xff] }
 0x4ed   : > { %5376 = vmatpush.bf16.msra.mxu0 %v11725_v28  ;;  %5358 = vmatpush.bf16.msra.mxu3 %v11693_v26  ;;  %v4635_v31 = vsel %vm1709_vm3, %v4633_v21, %v4634_v17  ;;  %v14174_v32 = vld [vmem:[#allocation10 + $0x1a4] sm:$0xf]  ;;  %v11650_v37 = vld [vmem:[#allocation10 + $0x1a8] sm:$0xf0]  ;;  %v14172_v33 = vld [vmem:[#allocation10 + $0x194] sm:$0xf] }
 0x4ee   : > { %v11642_v28 = vld [vmem:[#allocation10 + $0x198] sm:$0xf0]  ;;  %v11634_v49 = vld [vmem:[#allocation10 + $0x188] sm:$0xf0]  ;;  %v14249_v21 = vld [vmem:[#allocation12 + $0xf4] sm:$0xf0] }
 0x4ef   : > { %5351 = vmatpush.bf16.msra.mxu2 %v11573_v61  ;;  %v11786_v26 = vld [vmem:[#allocation10 + $0x2b8] sm:$0xf0]  ;;  %v11645_v11 = vor.u32 %v14172_v33, %v11642_v28  ;;  %v14170_v61 = vld [vmem:[#allocation10 + $0x184] sm:$0xf]  ;;  %v11863_v33 = vor.u32 %v14227_v23, %v11862_v9  ;;  %v14247_v28 = vld [vmem:[#allocation12 + $0xe4] sm:$0xf0] }
 0x4f0   : > { %v4601_v19 = vld [vmem:[#allocation3 + $0x28] sm:$0x1]  ;;  %v11888_v42 = vld [vmem:[#allocation12 + $0x78] sm:$0xf0]  ;;  %v11830_v9 = vld [vmem:[#allocation12] sm:$0xf] }
 0x4f1   : > { %v4605_v58 = vld [vmem:[#allocation3 + $0x28] sm:$0x3]  ;;  %5377 = vmatpush.bf16.msra.mxu0 %v11717_v45  ;;  %v4620_v47 = vrot.slane %v4601_v19, 1  ;;  %5359 = vmatpush.bf16.msra.mxu3 %v11685_v44  ;;  %v11789_v45 = vor.u32 %v14208_v46, %v11786_v26  ;;  %v11637_v44 = vor.u32 %v14170_v61, %v11634_v49  ;;  %v14202_v19 = vld [vmem:[#allocation10 + $0x284] sm:$0xf]  ;;  %v11891_v57 = vor.u32 %v14232_v15, %v11888_v42 }
 0x4f2   : > { %5352 = vmatmul.bf16.vlgmr.msra.gmra.mxu2 %v16383_v2  ;;  %v4638_v13 = vrot.slane %v4605_v58, 2  ;;  %v11658_v2 = vld [vmem:[#allocation10 + $0x1b8] sm:$0xf0]  ;;  %v11864_v46 = vld [vmem:[#allocation12 + $0x48] sm:$0xf0] }
 0x4f3   : > { %11822 = vmatpush.msk.msrb.mxu2 %vm3644_vm4, %v5410_v27  ;;  %v4621_v34 = vsel %vm1678_vm2, %v4616_v25, %v4620_v47  ;;  %v11661_v53 = vor.u32 %v14176_v8, %v11658_v2  ;;  %v5411_v25 = vld [vmem:[#allocation2 + $0x48] sm:$0x3]  ;;  %v11773_v27 = vor.u32 %v14204_v35, %v11770_v14  ;;  %v5405_v58 = vld [vmem:[#allocation2 + $0x18] sm:$0xff]  ;;  %v11871_v2 = vor.u32 %v14229_v56, %v11870_v41  ;;  %v11944_v61 = vld [vmem:[#allocation12 + $0xe8] sm:$0xf0] }
 0x4f4   : > { %v16412_v43 = vpack.c.bf16 %v4621_v34, %v4617_v4  ;;  %v4639_v16 = vsel %vm1709_vm3, %v4634_v17, %v4638_v13  ;;  %v11878_v4 = vld [vmem:[#allocation12 + $0x60] sm:$0xf]  ;;  %v14231_v34 = vld [vmem:[#allocation12 + $0x64] sm:$0xf0]  ;;  %v14228_v17 = vld [vmem:[#allocation12 + $0x54] sm:$0xf] }
 0x4f5   : > { %5436 = vmatpush.msrb.mxu2 %v5408_v39  ;;  %5378 = vmatpush.bf16.msra.mxu0 %v11709_v59  ;;  %v4649_v18 = vpack.c.bf16 %v4639_v16, %v4635_v31  ;;  %v11879_v13 = vor.u32 %v14231_v34, %v11878_v4  ;;  %v11872_v16 = vld [vmem:[#allocation12 + $0x58] sm:$0xf0]  ;;  %v11854_v49 = vld [vmem:[#allocation12 + $0x30] sm:$0xf]  ;;  %v14223_v15 = vld [vmem:[#allocation12 + $0x24] sm:$0xf0] }
 0x4f6   : > { %5360 = vmatpush.bf16.msra.mxu3 %v11677_v0  ;;  %5282 = vmatmul.bf16.vlgmr.msra.gmra.mxu1 %v16412_v43  ;;  %v16437_v0 = vld [vmem:[%s16955_s10] sm:$0x3]  ;;  %v14243_v4 = vld [vmem:[#allocation12 + $0xc4] sm:$0xf0]  ;;  %v14222_v34 = vld [vmem:[#allocation12 + $0x24] sm:$0xf] }
 0x4f7   : > { %5437 = vmatpush.msrb.mxu2 %v16321_v51  ;;  %5386 = vmatpush.bf16.msra.mxu1 %v11821_v7  ;;  %v14212_v51 = vld [vmem:[#allocation10 + $0x2d4] sm:$0xf]  ;;  %v14230_v7 = vld [vmem:[#allocation12 + $0x64] sm:$0xf]  ;;  %v11838_v41 = vld [vmem:[#allocation12 + $0x10] sm:$0xf] }
 0x4f8   : > { %v11805_v52 = vor.u32 %v14212_v51, %v11802_v24  ;;  %v14248_v51 = vld [vmem:[#allocation12 + $0xf4] sm:$0xf]  ;;  %v11952_v24 = vld [vmem:[#allocation12 + $0xf8] sm:$0xf0]  ;;  %v14219_v23 = vld [vmem:[#allocation12 + $0x4] sm:$0xf0] }
 0x4f9   : > { %5438 = vmatpush.msrb.mxu2 %v5404_v22  ;;  %5379 = vmatpush.bf16.msra.mxu0 %v11701_v60  ;;  %s16967_s10 = sld [smem:[#allocation48_spill]] }
 0x4fa   : > { %5361 = vmatpush.bf16.msra.mxu3 %v11669_v63  ;;  %v11950_v63 = vld [vmem:[#allocation12 + $0xf0] sm:$0xf] }
 0x4fb   : > { %5439 = vmatpush.msrb.mxu2 %v16286_v20  ;;  %5387 = vmatpush.bf16.msra.mxu1 %v11813_v1  ;;  %v11653_v20 = vor.u32 %v14174_v32, %v11650_v37  ;;  %v11951_v1 = vor.u32 %v14249_v21, %v11950_v63  ;;  %v14221_v21 = vld [vmem:[#allocation12 + $0x14] sm:$0xf0] }
 0x4fc   : > { %5380 = vmatmul.bf16.vlgmr.msra.gmra.mxu0 %v16389_v10  ;;  %5310 = vmatmul.bf16.vlgmr.msrb.gmra.mxu3 %v4649_v18  ;;  %v14206_v10 = vld [vmem:[#allocation10 + $0x2a4] sm:$0xf] }
 0x4fd   : > { %v11781_v12 = vor.u32 %v14206_v10, %v11778_v50  ;;  %5698 = vmatpush.bf16.msra.mxu2 %v11891_v57  ;;  %v14225_v50 = vld [vmem:[#allocation12 + $0x34] sm:$0xf0] }
 0x4fe   : > { %5362 = vmatpush.bf16.msra.mxu3 %v11661_v53  ;;  %v11875_v53 = vor.u32 %v14228_v17, %v11872_v16  ;;  %v11855_v14 = vor.u32 %v14225_v50, %v11854_v49  ;;  %v11918_v17 = vld [vmem:[#allocation12 + $0xb0] sm:$0xf] }
 0x4ff   : > { %5388 = vmatpush.bf16.msra.mxu1 %v11805_v52 }
 0x502   : > { %5363 = vmatpush.bf16.msra.mxu3 %v11653_v20  ;;  %11823 = vmatmul.msk.f32.vlgmr.msrb.gmra.mxu2 %vm3637_vm5, %v5400_v29  ;;  %v11942_v20 = vld [vmem:[#allocation12 + $0xe0] sm:$0xf] }
 0x503   : > { %5389 = vmatpush.bf16.msra.mxu1 %v11797_v38  ;;  %v14226_v38 = vld [vmem:[#allocation12 + $0x44] sm:$0xf]  ;;  %v11943_v26 = vor.u32 %v14247_v28, %v11942_v20  ;;  %v14239_v28 = vld [vmem:[#allocation12 + $0xa4] sm:$0xf0] }
 0x506   : > { %5364 = vmatpush.bf16.msra.mxu3 %v11645_v11  ;;  %5338 = vmatmul.bf16.vlgmr.msrb.gmra.mxu1 %v16397_v48  ;;  %v11765_v48 = vor.u32 %v14202_v19, %v11762_v40  ;;  %v14246_v11 = vld [vmem:[#allocation12 + $0xe4] sm:$0xf] }
 0x507   : > { %5390 = vmatpush.bf16.msra.mxu1 %v11789_v45  ;;  %v11947_v10 = vor.u32 %v14246_v11, %v11944_v61  ;;  %v14238_v11 = vld [vmem:[#allocation12 + $0xa4] sm:$0xf]  ;;  %v11912_v61 = vld [vmem:[#allocation12 + $0xa8] sm:$0xf0] }
 0x50a   : > { %5365 = vmatpush.bf16.msra.mxu3 %v11637_v44  ;;  %11824 = vmatmul.msk.f32.gmra.mxu2 %vm3637_vm5, %v5401_v6  ;;  %v11934_v44 = vld [vmem:[#allocation12 + $0xd0] sm:$0xf] }
 0x50b   : > { %5391 = vmatpush.bf16.msra.mxu1 %v11781_v12  ;;  %v14245_v12 = vld [vmem:[#allocation12 + $0xd4] sm:$0xf0] }
 0x50d   : > { %5366 = vmatmul.bf16.vlgmr.msra.gmra.mxu3 %v16412_v43  ;;  %v11880_v43 = vld [vmem:[#allocation12 + $0x68] sm:$0xf0] }
 0x50e   : > { %11825 = vmatpush.msk.msrb.mxu3 %vm3644_vm4, %v5411_v25  ;;  %v11883_v22 = vor.u32 %v14230_v7, %v11880_v43  ;;  %v14224_v25 = vld [vmem:[#allocation12 + $0x34] sm:$0xf]  ;;  %v11848_v7 = vld [vmem:[#allocation12 + $0x28] sm:$0xf0] }
 0x50f   : > { %5392 = vmatpush.bf16.msra.mxu1 %v11773_v27  ;;  %v11856_v27 = vld [vmem:[#allocation12 + $0x38] sm:$0xf0]  ;;  %v11928_v43 = vld [vmem:[#allocation12 + $0xc8] sm:$0xf0] }
 0x510   : > { %5459 = vmatpush.msrb.mxu3 %v5409_v54  ;;  %5699 = vmatpush.bf16.msra.mxu2 %v11883_v22  ;;  %v14244_v54 = vld [vmem:[#allocation12 + $0xd4] sm:$0xf]  ;;  %v11859_v40 = vor.u32 %v14224_v25, %v11856_v27 }
 0x512   : > { %5460 = vmatpush.msrb.mxu3 %v16323_v30  ;;  %v14233_v30 = vld [vmem:[#allocation12 + $0x74] sm:$0xf0] }
 0x513   : > { %5393 = vmatpush.bf16.msra.mxu1 %v11765_v48  ;;  %v11887_v36 = vor.u32 %v14233_v30, %v11886_v55  ;;  %v11936_v48 = vld [vmem:[#allocation12 + $0xd8] sm:$0xf0]  ;;  %v11846_v30 = vld [vmem:[#allocation12 + $0x20] sm:$0xf] }
 0x514   : > { %5461 = vmatpush.msrb.mxu3 %v5405_v58  ;;  %5700 = vmatpush.bf16.msra.mxu2 %v11875_v53  ;;  %v11939_v58 = vor.u32 %v14244_v54, %v11936_v48  ;;  %v11847_v57 = vor.u32 %v14223_v15, %v11846_v30  ;;  %v14234_v30 = vld [vmem:[#allocation12 + $0x84] sm:$0xf]  ;;  %v11896_v15 = vld [vmem:[#allocation12 + $0x88] sm:$0xf0] }
 0x515   : > { %5670 = vmatpush.bf16.msrb.mxu0 %v11887_v36  ;;  %v11926_v36 = vld [vmem:[#allocation12 + $0xc0] sm:$0xf] }
 0x516   : > { %5462 = vmatpush.msrb.mxu3 %v16288_v3  ;;  %5394 = vmatmul.bf16.vlgmr.msra.gmra.mxu1 %v4649_v18  ;;  %v4748_v3 = vperm.slane %v16437_v0, 0  ;;  %v11955_v18 = vor.u32 %v14248_v51, %v11952_v24  ;;  %v14220_v51 = vld [vmem:[#allocation12 + $0x14] sm:$0xf]  ;;  %v11840_v24 = vld [vmem:[#allocation12 + $0x18] sm:$0xf0] }
 0x517   : > { %5684 = vmatpush.bf16.msrb.mxu1 %v11951_v1  ;;  %v11839_v1 = vor.u32 %v14221_v21, %v11838_v41  ;;  %v11843_v53 = vor.u32 %v14220_v51, %v11840_v24 }
 0x518   : > { %5712 = vmatpush.bf16.msra.mxu3 %v11955_v18  ;;  %v11920_v18 = vld [vmem:[#allocation12 + $0xb8] sm:$0xf0] }
 0x519   : > { %5671 = vmatpush.bf16.msrb.mxu0 %v11879_v13  ;;  %v11927_v13 = vor.u32 %v14243_v4, %v11926_v36  ;;  %v4749_v4 = vperm.slane %v16437_v0, 1 }
 0x51b   : > { %5685 = vmatpush.bf16.msrb.mxu1 %v11943_v26  ;;  %v11831_v26 = vor.u32 %v14219_v23, %v11830_v9 }
 0x51c   : > { %5713 = vmatpush.bf16.msra.mxu3 %v11947_v10 }
 0x51d   : > { %11826 = vmatmul.msk.f32.vlgmr.msrb.gmra.mxu3 %vm3637_vm5, %v5400_v29  ;;  %5672 = vmatpush.bf16.msrb.mxu0 %v11871_v2  ;;  %v11867_v29 = vor.u32 %v14226_v38, %v11864_v46  ;;  %v14218_v38 = vld [vmem:[#allocation12 + $0x4] sm:$0xf] }
 0x51f   : > { %5701 = vmatpush.bf16.msra.mxu2 %v11867_v29  ;;  %v11832_v29 = vld [vmem:[#allocation12 + $0x8] sm:$0xf0] }
 0x520   : > { %5714 = vmatpush.bf16.msra.mxu3 %v11939_v58  ;;  %v11835_v10 = vor.u32 %v14218_v38, %v11832_v29 }
 0x521   : > { %5673 = vmatpush.bf16.msrb.mxu0 %v11863_v33  ;;  %v11910_v33 = vld [vmem:[#allocation12 + $0xa0] sm:$0xf] }
 0x522   : > { %v11911_v49 = vor.u32 %v14239_v28, %v11910_v33 }
 0x523   : > { %5702 = vmatpush.bf16.msra.mxu2 %v11859_v40 }
 0x525   : > { %11827 = vmatmul.msk.f32.gmra.mxu3 %vm3637_vm5, %v5401_v6  ;;  %v11935_v6 = vor.u32 %v14245_v12, %v11934_v44  ;;  %5674 = vmatpush.bf16.msrb.mxu0 %v11855_v14  ;;  %v11915_v44 = vor.u32 %v14238_v11, %v11912_v61  ;;  %v11902_v12 = vld [vmem:[#allocation12 + $0x90] sm:$0xf]  ;;  %v14236_v14 = vld [vmem:[#allocation12 + $0x94] sm:$0xf] }
 0x527   : > { %5686 = vmatpush.bf16.msrb.mxu1 %v11935_v6  ;;  %v11904_v6 = vld [vmem:[#allocation12 + $0x98] sm:$0xf0] }
 0x528   : > { %v11907_v58 = vor.u32 %v14236_v14, %v11904_v6 }
 0x529   : > { %5675 = vmatpush.bf16.msrb.mxu0 %v11847_v57 }
 0x52b   : > { %5687 = vmatpush.bf16.msrb.mxu1 %v11927_v13 }
 0x52d   : > { %5676 = vmatpush.bf16.msrb.mxu0 %v11839_v1 }
 0x531   : > { %5677 = vmatpush.bf16.msrb.mxu0 %v11831_v26 }
 0x555   : > { %v5241_v59 = vpop.f32.mrf.mxu2 }
 0x556   : > { %v5242_v8 = vadd.f32 %v5241_v59, %v4748_v3 }
 0x559   : > { %v16442_v32 = vpop.f32.mrf.mxu0 }
 0x55d   : > { %v16432_v47 = vpop.f32.mrf.mxu2 }
 0x55e   : > { %v5244_v19 = vadd.f32 %v16432_v47, %v4748_v3  ;;  %v11851_v47 = vor.u32 %v14222_v34, %v11848_v7  ;;  %v14242_v3 = vld [vmem:[#allocation12 + $0xc4] sm:$0xf] }
 0x55f   : > { %v11931_v63 = vor.u32 %v14242_v3, %v11928_v43 }
 0x560   : > { %5703 = vmatpush.bf16.msra.mxu2 %v11851_v47 }
 0x561   : > { %v5271_v59 = vpop.f32.mrf.mxu0  ;;  %5715 = vmatpush.bf16.msra.mxu3 %v11931_v63 }
 0x564   : > { %5704 = vmatpush.bf16.msra.mxu2 %v11843_v53 }
 0x565   : > { %v16434_v39 = vpop.f32.mrf.mxu2 }
 0x568   : > { %5705 = vmatpush.bf16.msra.mxu2 %v11835_v10 }
 0x569   : > { %v5325_v50 = vpop.f32.mrf.mxu0 }
 0x56d   : > { %v16440_v60 = vpop.f32.mrf.mxu2 }
 0x56f   : > { %v5255_v31 = vpop.f32.mrf.mxu3 }
 0x570   : > { %v16444_v37 = vadd.f32 %v5255_v31, %v5242_v8  ;;  %v14241_v8 = vld [vmem:[#allocation12 + $0xb4] sm:$0xf0]  ;;  %v14240_v31 = vld [vmem:[#allocation12 + $0xb4] sm:$0xf] }
 0x571   : > { %v11919_v16 = vor.u32 %v14241_v8, %v11918_v17  ;;  %v11923_v20 = vor.u32 %v14240_v31, %v11920_v18  ;;  %v5327_v57 = vpop.f32.mrf.mxu0  ;;  %v5504_v31 = vld [vmem:[%s16956_s27] sm:$0x3]  ;;  %s16968_s27 = sld [smem:[#allocation46_spill]] }
 0x572   : > { %v5328_v47 = vadd.f32 %v5327_v57, %v4749_v4  ;;  %v5270_v51 = vadd.f32 %v16442_v32, %v16444_v37  ;;  %v5506_v9 = vperm.slane %v5504_v31, 0  ;;  %v5507_v29 = vperm.slane %v5504_v31, 1  ;;  %v14261_v31 = vld [vmem:[#allocation13 + $0x54] sm:$0xf0] }
 0x573   : > { %v16446_v52 = vpop.f32.mrf.mxu1  ;;  %5688 = vmatpush.bf16.msrb.mxu1 %v11919_v16  ;;  %5716 = vmatpush.bf16.msra.mxu3 %v11923_v20  ;;  %v5326_v16 = vadd.f32 %v5325_v50, %v4749_v4  ;;  %v12028_v4 = vld [vmem:[#allocation13 + $0x70] sm:$0xf] }
 0x575   : > { %v16448_v45 = vpop.f32.mrf.mxu2 }
 0x577   : > { %v5257_v35 = vpop.f32.mrf.mxu3  ;;  %5689 = vmatpush.bf16.msrb.mxu1 %v11911_v49  ;;  %5717 = vmatpush.bf16.msra.mxu3 %v11915_v44 }
 0x578   : > { %v5258_v55 = vadd.f32 %v5257_v35, %v5244_v19  ;;  %v14237_v35 = vld [vmem:[#allocation12 + $0x94] sm:$0xf0] }
 0x579   : > { %v11903_v40 = vor.u32 %v14237_v35, %v11902_v12  ;;  %v5381_v0 = vpop.f32.mrf.mxu0 }
 0x57a   : > { %v5272_v56 = vadd.f32 %v5271_v59, %v5258_v55  ;;  %v11894_v59 = vld [vmem:[#allocation12 + $0x80] sm:$0xf]  ;;  %v14235_v55 = vld [vmem:[#allocation12 + $0x84] sm:$0xf0] }
 0x57b   : > { %v5285_v42 = vpop.f32.mrf.mxu1  ;;  %5690 = vmatpush.bf16.msrb.mxu1 %v11903_v40  ;;  %v11895_v36 = vor.u32 %v14235_v55, %v11894_v59  ;;  %5718 = vmatpush.bf16.msra.mxu3 %v11907_v58 }
 0x57c   : > { %v5286_v46 = vadd.f32 %v5285_v42, %v5272_v56  ;;  %v11899_v42 = vor.u32 %v14234_v30, %v11896_v15 }
 0x57d   : > { %v16451_v22 = vpop.f32.mrf.mxu2 }
 0x57e   : > { %v5300_v27 = vadd.f32 %v16440_v60, %v5286_v46 }
 0x57f   : > { %v16453_v2 = vpop.f32.mrf.mxu3  ;;  %5691 = vmatpush.bf16.msrb.mxu1 %v11895_v36  ;;  %5719 = vmatpush.bf16.msra.mxu3 %v11899_v42 }
 0x581   : > { %v5383_v1 = vpop.f32.mrf.mxu0 }
 0x583   : > { %v5339_v25 = vpop.f32.mrf.mxu1 }
 0x584   : > { %v5340_v53 = vadd.f32 %v5339_v25, %v5326_v16 }
 0x585   : > { %v5441_v54 = vpop.f32.mrf.mxu2 }
 0x586   : > { %v5354_v23 = vadd.f32 %v16448_v45, %v5340_v53  ;;  %v12220_v53 = vld [vmem:[#allocation13 + $0x1f0] sm:$0xf] }
 0x587   : > { %v5313_v19 = vpop.f32.mrf.mxu3 }
 0x588   : > { %v16456_v48 = vadd.f32 %v5313_v19, %v5300_v27 }
 0x58b   : > { %v5341_v7 = vpop.f32.mrf.mxu1 }
 0x58c   : > { %v5342_v3 = vadd.f32 %v5341_v7, %v5328_v47  ;;  %v5767_v7 = vld [vmem:[%s16957_s23] sm:$0xff] }
 0x58d   : > { %v5444_v60 = vpop.f32.mrf.mxu2 }
 0x58e   : > { %v5470_v34 = vpack.c.bf16 %v5444_v60, %v5441_v54  ;;  %v5356_v43 = vadd.f32 %v16451_v22, %v5342_v3  ;;  %v5284_v22 = vadd.f32 %v16446_v52, %v5270_v51  ;;  %v12012_v51 = vld [vmem:[#allocation13 + $0x50] sm:$0xf] }
 0x590   : > { %v5367_v13 = vpop.f32.mrf.mxu3  ;;  %5678 = vmatmul.bf16.vlgmr.msrb.gmra.mxu0 %v5470_v34  ;;  %5706 = vmatmul.bf16.vlgmr.msra.gmra.mxu2 %v5470_v34  ;;  %v5298_v20 = vadd.f32 %v16434_v39, %v5284_v22  ;;  %v14265_v34 = vld [vmem:[#allocation13 + $0x74] sm:$0xf0] }
 0x591   : > { %v5368_v33 = vadd.f32 %v5367_v13, %v5354_v23  ;;  %v11960_v13 = vld [vmem:[%s16957_s23 + $0x8] sm:$0xff]  ;;  %v12029_v3 = vor.u32 %v14265_v34, %v12028_v4 }
 0x592   : > { %v5312_v26 = vadd.f32 %v16453_v2, %v5298_v20  ;;  %v14279_v23 = vld [vmem:[#allocation13 + $0xe4] sm:$0xf0]  ;;  %v12148_v20 = vld [vmem:[#allocation13 + $0x160] sm:$0xf] }
 0x593   : > { %v5395_v8 = vpop.f32.mrf.mxu1  ;;  %v5382_v32 = vadd.f32 %v5381_v0, %v5368_v33  ;;  %v14297_v0 = vld [vmem:[#allocation13 + $0x174] sm:$0xf0]  ;;  %v14295_v33 = vld [vmem:[#allocation13 + $0x164] sm:$0xf0] }
 0x595   : > { %v5396_v12 = vadd.f32 %v5395_v8, %v5382_v32  ;;  %v14311_v32 = vld [vmem:[#allocation13 + $0x1e4] sm:$0xf0] }
 0x598   : > { %v5369_v41 = vpop.f32.mrf.mxu3 }
 0x599   : > { %v5370_v56 = vadd.f32 %v5369_v41, %v5356_v43  ;;  %v12020_v41 = vld [vmem:[#allocation13 + $0x60] sm:$0xf] }
 0x59b   : > { %v5397_v24 = vpop.f32.mrf.mxu1  ;;  %v5384_v25 = vadd.f32 %v5383_v1, %v5370_v56  ;;  %v14263_v56 = vld [vmem:[#allocation13 + $0x64] sm:$0xf0]  ;;  %v11965_v1 = vld [vmem:[%s16957_s23 + $0x10] sm:$0xff] }
 0x59c   : > { %v12021_v16 = vor.u32 %v14263_v56, %v12020_v41  ;;  %v12188_v41 = vld [vmem:[#allocation13 + $0x1b0] sm:$0xf]  ;;  %v14305_v56 = vld [vmem:[#allocation13 + $0x1b4] sm:$0xf0] }
 0x59d   : > { %v5398_v55 = vadd.f32 %v5397_v24, %v5384_v25  ;;  %v12068_v25 = vld [vmem:[#allocation13 + $0xc0] sm:$0xf] }
 0x5a0   : > { %v5464_v63 = vpop.f32.mrf.mxu3 }
 0x5a8   : > { %v5467_v21 = vpop.f32.mrf.mxu3 }
 0x5a9   : > { %v5471_v17 = vpack.c.bf16 %v5467_v21, %v5464_v63  ;;  %v12092_v63 = vld [vmem:[#allocation13 + $0xf0] sm:$0xf]  ;;  %v14281_v21 = vld [vmem:[#allocation13 + $0xf4] sm:$0xf0] }
 0x5aa   : > { %v12093_v24 = vor.u32 %v14281_v21, %v12092_v63 }
 0x5ab   : > { %5692 = vmatmul.bf16.vlgmr.msrb.gmra.mxu1 %v5471_v17  ;;  %5720 = vmatmul.bf16.vlgmr.msra.gmra.mxu3 %v5471_v17  ;;  %v12156_v17 = vld [vmem:[#allocation13 + $0x170] sm:$0xf] }
 0x5ac   : > { %v12157_v22 = vor.u32 %v14297_v0, %v12156_v17  ;;  %v12052_v17 = vld [vmem:[#allocation13 + $0xa0] sm:$0xf]  ;;  %v14271_v0 = vld [vmem:[#allocation13 + $0xa4] sm:$0xf0] }
 0x60d   : > { %v5679_v18 = vpop.f32.mrf.mxu0 }
 0x60e   : > { %v5680_v28 = vadd.f32 %v5679_v18, %v5506_v9  ;;  %v14313_v18 = vld [vmem:[#allocation13 + $0x1f4] sm:$0xf0] }
 0x613   : > { %v5707_v38 = vpop.f32.mrf.mxu2 }
 0x614   : > { %v5708_v49 = vadd.f32 %v5707_v38, %v5507_v29  ;;  %v12004_v38 = vld [vmem:[#allocation13 + $0x40] sm:$0xf] }
 0x615   : > { %v5681_v61 = vpop.f32.mrf.mxu0 }
 0x616   : > { %v5682_v52 = vadd.f32 %v5681_v61, %v5506_v9  ;;  %v12084_v9 = vld [vmem:[#allocation13 + $0xe0] sm:$0xf]  ;;  %v12076_v61 = vld [vmem:[#allocation13 + $0xd0] sm:$0xf] }
 0x61b   : > { %v5709_v6 = vpop.f32.mrf.mxu2 }
 0x61c   : > { %v5710_v54 = vadd.f32 %v5709_v6, %v5507_v29  ;;  %v14259_v29 = vld [vmem:[#allocation13 + $0x44] sm:$0xf0] }
 0x628   : > { %v5693_v46 = vpop.f32.mrf.mxu1 }
 0x629   : > { %v5694_v11 = vadd.f32 %v5693_v46, %v5680_v28  ;;  %v12013_v28 = vor.u32 %v14261_v31, %v12012_v51  ;;  %v12221_v46 = vor.u32 %v14313_v18, %v12220_v53  ;;  %v11972_v51 = vld [vmem:[#allocation13] sm:$0xf]  ;;  %v14251_v31 = vld [vmem:[#allocation13 + $0x4] sm:$0xf0]  ;;  %v12189_v53 = vor.u32 %v14305_v56, %v12188_v41 }
 0x62a   : > { %v12053_v18 = vor.u32 %v14271_v0, %v12052_v17  ;;  %v14323_v56 = vld [vmem:[#allocation13 + $0x244] sm:$0xf0]  ;;  %v12086_v17 = vld [vmem:[#allocation13 + $0xe8] sm:$0xf0] }
 0x62b   : > { %v5726_v37 = vadd.f32 %v5694_v11, %v5312_v26  ;;  %v12085_v26 = vor.u32 %v14279_v23, %v12084_v9  ;;  %v12212_v11 = vld [vmem:[#allocation13 + $0x1e0] sm:$0xf]  ;;  %v14303_v23 = vld [vmem:[#allocation13 + $0x1a4] sm:$0xf0] }
 0x62c   : > { %v12180_v9 = vld [vmem:[#allocation13 + $0x1a0] sm:$0xf] }
 0x62d   : > { %v5730_v10 = vmax.f32 %v5726_v37, 0.0  ;;  %v12149_v37 = vor.u32 %v14295_v33, %v12148_v20  ;;  %v14329_v33 = vld [vmem:[#allocation13 + $0x274] sm:$0xf0] }
 0x62e   : > { %v5721_v50 = vpop.f32.mrf.mxu3 }
 0x62f   : > { %v5743_v44 = vrot.slane %v5730_v10, 7  ;;  %v5722_v45 = vadd.f32 %v5721_v50, %v5708_v49  ;;  %v14277_v49 = vld [vmem:[#allocation13 + $0xd4] sm:$0xf0]  ;;  %v12140_v10 = vld [vmem:[#allocation13 + $0x150] sm:$0xf] }
 0x630   : > { %v5695_v35 = vpop.f32.mrf.mxu1  ;;  %v14293_v50 = vld [vmem:[#allocation13 + $0x154] sm:$0xf0] }
 0x631   : > { %5755 = vst [vmem:[#allocation2] sm:$0xfe] %v5743_v44  ;;  %v5727_v39 = vadd.f32 %v5722_v45, %v5396_v12  ;;  %v5696_v14 = vadd.f32 %v5695_v35, %v5682_v52  ;;  %v12005_v52 = vor.u32 %v14259_v29, %v12004_v38  ;;  %v12213_v12 = vor.u32 %v14311_v32, %v12212_v11  ;;  %v14257_v35 = vld [vmem:[#allocation13 + $0x34] sm:$0xf0]  ;;  %v12276_v32 = vld [vmem:[#allocation13 + $0x260] sm:$0xf] }
 0x632   : > { %v12077_v45 = vor.u32 %v14277_v49, %v12076_v61  ;;  %v12141_v6 = vor.u32 %v14293_v50, %v12140_v10  ;;  %v14269_v38 = vld [vmem:[#allocation13 + $0x94] sm:$0xf0]  ;;  %v11973_v29 = vor.u32 %v14251_v31, %v11972_v51  ;;  %v12181_v11 = vor.u32 %v14303_v23, %v12180_v9  ;;  %v14327_v49 = vld [vmem:[#allocation13 + $0x264] sm:$0xf0]  ;;  %v12172_v10 = vld [vmem:[#allocation13 + $0x190] sm:$0xf] }
 0x633   : > { %v5731_v27 = vmax.f32 %v5727_v39, 0.0  ;;  %v5728_v2 = vadd.f32 %v5696_v14, %v16456_v48  ;;  %v12204_v39 = vld [vmem:[#allocation13 + $0x1d0] sm:$0xf]  ;;  %v14309_v14 = vld [vmem:[#allocation13 + $0x1d4] sm:$0xf0] }
 0x634   : > { %v14301_v50 = vld [vmem:[#allocation13 + $0x194] sm:$0xf0]  ;;  %v14260_v51 = vld [vmem:[#allocation13 + $0x54] sm:$0xf] }
 0x635   : > { %v5744_v19 = vrot.slane %v5731_v27, 7  ;;  %v5732_v40 = vmax.f32 %v5728_v2, 0.0  ;;  %v14275_v27 = vld [vmem:[#allocation13 + $0xc4] sm:$0xf0]  ;;  %v12132_v2 = vld [vmem:[#allocation13 + $0x140] sm:$0xf] }
 0x636   : > { %v5723_v58 = vpop.f32.mrf.mxu3  ;;  %v14321_v9 = vld [vmem:[#allocation13 + $0x234] sm:$0xf0]  ;;  %v14276_v23 = vld [vmem:[#allocation13 + $0xd4] sm:$0xf] }
 0x637   : > { %5756 = vst [vmem:[#allocation2 + $0x8] sm:$0xfe] %v5744_v19  ;;  %v5745_v59 = vrot.slane %v5732_v40, 7  ;;  %v5724_v30 = vadd.f32 %v5723_v58, %v5710_v54  ;;  %v14291_v54 = vld [vmem:[#allocation13 + $0x144] sm:$0xf0]  ;;  %v12205_v58 = vor.u32 %v14309_v14, %v12204_v39 }
 0x638   : > { %v5761_v47 = vld [vmem:[#allocation2] sm:$0xff]  ;;  %v12348_v39 = vld [vmem:[#allocation13 + $0x2f0] sm:$0xf]  ;;  %v14345_v14 = vld [vmem:[#allocation13 + $0x2f4] sm:$0xf0] }
 0x639   : > { %v5746_v15 = vsel %vm1617_vm1, %v5743_v44, %v5745_v59  ;;  %5759 = vst [vmem:[#allocation2 + $0x20] sm:$0x1] %v5745_v59  ;;  %v5729_v36 = vadd.f32 %v5724_v30, %v5398_v55  ;;  %v11996_v44 = vld [vmem:[#allocation13 + $0x30] sm:$0xf]  ;;  %v11988_v40 = vld [vmem:[#allocation13 + $0x20] sm:$0xf]  ;;  %v12069_v59 = vor.u32 %v14275_v27, %v12068_v25  ;;  %v12173_v27 = vor.u32 %v14301_v50, %v12172_v10 }
 0x63a   : > { %5757 = vst [vmem:[#allocation2 + $0x10] sm:$0xff] %v5746_v15  ;;  %v14255_v55 = vld [vmem:[#allocation13 + $0x24] sm:$0xf0]  ;;  %v12196_v30 = vld [vmem:[#allocation13 + $0x1c0] sm:$0xf] }
 0x63b   : > { %v5733_v42 = vmax.f32 %v5729_v36, 0.0  ;;  %v12133_v36 = vor.u32 %v14291_v54, %v12132_v2  ;;  %v16492_v63 = vld [vmem:[#allocation2] sm:$0xff]  ;;  %v12030_v25 = vld [vmem:[#allocation13 + $0x78] sm:$0xf0]  ;;  %v12277_v2 = vor.u32 %v14327_v49, %v12276_v32  ;;  %v12070_v10 = vld [vmem:[#allocation13 + $0xc8] sm:$0xf0] }
 0x63c   : > { %v14274_v49 = vld [vmem:[#allocation13 + $0xc4] sm:$0xf] }
 0x63d   : > { %v5747_v57 = vrot.slane %v5733_v42, 7  ;;  %v12060_v42 = vld [vmem:[#allocation13 + $0xb0] sm:$0xf] }
 0x63e   : > { %v5762_v8 = vld [vmem:[#allocation2 + $0x8] sm:$0xff] }
 0x63f   : > { %v5748_v60 = vsel %vm1617_vm1, %v5744_v19, %v5747_v57  ;;  %5760 = vst [vmem:[#allocation2 + $0x28] sm:$0x1] %v5747_v57  ;;  %v11997_v19 = vor.u32 %v14257_v35, %v11996_v44  ;;  %v14273_v57 = vld [vmem:[#allocation13 + $0xb4] sm:$0xf0]  ;;  %v12036_v44 = vld [vmem:[#allocation13 + $0x80] sm:$0xf] }
 0x640   : > { %5758 = vst [vmem:[#allocation2 + $0x18] sm:$0xff] %v5748_v60  ;;  %v5765_v48 = vld [vmem:[#allocation2 + $0x20] sm:$0x3]  ;;  %v14283_v35 = vld [vmem:[#allocation13 + $0x104] sm:$0xf0] }
 0x641   : > { %11956 = vmatpush.msk.msra.mxu0 %vm3644_vm4, %v5765_v48  ;;  %11961 = vmatpush.msk.msrb.mxu2 %vm3644_vm4, %v5765_v48  ;;  %v16485_v4 = vld [vmem:[#allocation2 + $0x10] sm:$0xff] }
 0x643   : > { %5792 = vmatpush.msra.mxu0 %v5746_v15  ;;  %5837 = vmatpush.msrb.mxu2 %v5746_v15 }
 0x645   : > { %5793 = vmatpush.msra.mxu0 %v5761_v47  ;;  %5838 = vmatpush.msrb.mxu2 %v5761_v47 }
 0x646   : > { %11957 = vmatmul.msk.f32.vlgmr.msra.gmra.mxu0 %vm5768_vm6, %v5767_v7  ;;  %11962 = vmatmul.msk.f32.vlgmr.msrb.gmra.mxu2 %vm5768_vm6, %v11960_v13  ;;  %v5766_v43 = vld [vmem:[#allocation2 + $0x28] sm:$0x3] }
 0x647   : > { %11966 = vmatpush.msk.msrb.mxu0 %vm3644_vm4, %v5765_v48  ;;  %11958 = vmatpush.msk.msra.mxu1 %vm3644_vm4, %v5766_v43  ;;  %v14289_v48 = vld [vmem:[#allocation13 + $0x134] sm:$0xf0] }
 0x648   : > { %11963 = vmatpush.msk.msrb.mxu3 %vm3644_vm4, %v5766_v43  ;;  %6496 = vmatpush.bf16.msra.mxu2 %v12029_v3  ;;  %v16487_v34 = vld [vmem:[#allocation2 + $0x18] sm:$0xff]  ;;  %v12061_v3 = vor.u32 %v14273_v57, %v12060_v42  ;;  %v12340_v57 = vld [vmem:[#allocation13 + $0x2e0] sm:$0xf] }
 0x649   : > { %5882 = vmatpush.msrb.mxu0 %v5746_v15  ;;  %5812 = vmatpush.msra.mxu1 %v5748_v60  ;;  %v14307_v15 = vld [vmem:[#allocation13 + $0x1c4] sm:$0xf0]  ;;  %7762 = vst.msk [vmem:[#allocation2 + $0x11] ss:$8 sm:$0x3] %vm15883_vm0, %v15347_v5 }
 0x64a   : > { %5857 = vmatpush.msrb.mxu3 %v5748_v60 }
 0x64b   : > { %5883 = vmatpush.msrb.mxu0 %v5761_v47  ;;  %5813 = vmatpush.msra.mxu1 %v5762_v8  ;;  %v12197_v47 = vor.u32 %v14307_v15, %v12196_v30  ;;  %v14325_v30 = vld [vmem:[#allocation13 + $0x254] sm:$0xf0]  ;;  %v14280_v15 = vld [vmem:[#allocation13 + $0xf4] sm:$0xf] }
 0x64c   : > { %5858 = vmatpush.msrb.mxu3 %v5762_v8  ;;  %11959 = vmatmul.msk.f32.vlgmr.msra.gmra.mxu1 %vm5768_vm6, %v5767_v7  ;;  %v11989_v7 = vor.u32 %v14255_v55, %v11988_v40  ;;  %v12164_v40 = vld [vmem:[#allocation13 + $0x180] sm:$0xf]  ;;  %v12349_v55 = vor.u32 %v14345_v14, %v12348_v39  ;;  %v12073_v39 = vor.u32 %v14274_v49, %v12070_v10  ;;  %v14292_v10 = vld [vmem:[#allocation13 + $0x154] sm:$0xf] }
 0x64d   : > { %11964 = vmatmul.msk.f32.vlgmr.msrb.gmra.mxu3 %vm5768_vm6, %v11960_v13  ;;  %11968 = vmatpush.msk.msrb.mxu1 %vm3644_vm4, %v5766_v43  ;;  %v11980_v13 = vld [vmem:[#allocation13 + $0x10] sm:$0xf]  ;;  %v14253_v43 = vld [vmem:[#allocation13 + $0x14] sm:$0xf0] }
 0x64e   : > { %11967 = vmatmul.msk.f32.vlgmr.msrb.gmra.mxu0 %vm5768_vm6, %v11965_v1  ;;  %6497 = vmatpush.bf16.msra.mxu2 %v12021_v16  ;;  %v14287_v16 = vld [vmem:[#allocation13 + $0x124] sm:$0xf0] }
 0x64f   : > { %5902 = vmatpush.msrb.mxu1 %v5748_v60  ;;  %6509 = vmatpush.bf16.msra.mxu3 %v12093_v24  ;;  %v12124_v60 = vld [vmem:[#allocation13 + $0x130] sm:$0xf]  ;;  %v11981_v24 = vor.u32 %v14253_v43, %v11980_v13 }
 0x650   : > { %6522 = vmatpush.bf16.msra.mxu0 %v12157_v22  ;;  %v12125_v21 = vor.u32 %v14289_v48, %v12124_v60  ;;  %v12284_v22 = vld [vmem:[#allocation13 + $0x270] sm:$0xf]  ;;  %v14343_v60 = vld [vmem:[#allocation13 + $0x2e4] sm:$0xf0]  ;;  %v14262_v48 = vld [vmem:[#allocation13 + $0x64] sm:$0xf] }
 0x651   : > { %5903 = vmatpush.msrb.mxu1 %v5762_v8  ;;  %v16494_v8 = vld [vmem:[#allocation2 + $0x8] sm:$0xff]  ;;  %v12341_v41 = vor.u32 %v14343_v60, %v12340_v57  ;;  %v12062_v57 = vld [vmem:[#allocation13 + $0xb8] sm:$0xf0] }
 0x652   : > { %6498 = vmatpush.bf16.msra.mxu2 %v12013_v28  ;;  %7759 = vst.msk [vmem:[#allocation2] ss:$8 sm:$0x3] %vm15883_vm0, %v15347_v5  ;;  %v12044_v28 = vld [vmem:[#allocation13 + $0x90] sm:$0xf] }
 0x653   : > { %6535 = vmatpush.bf16.msra.mxu1 %v12221_v46  ;;  %6510 = vmatpush.bf16.msra.mxu3 %v12085_v26  ;;  %v12108_v46 = vld [vmem:[#allocation13 + $0x110] sm:$0xf]  ;;  %v14285_v26 = vld [vmem:[#allocation13 + $0x114] sm:$0xf0]  ;;  %v12045_v61 = vor.u32 %v14269_v38, %v12044_v28  ;;  %v12324_v28 = vld [vmem:[#allocation13 + $0x2c0] sm:$0xf] }
 0x654   : > { %11969 = vmatmul.msk.f32.vlgmr.msrb.gmra.mxu1 %vm5768_vm6, %v11965_v1  ;;  %6523 = vmatpush.bf16.msra.mxu0 %v12149_v37  ;;  %v12116_v1 = vld [vmem:[#allocation13 + $0x120] sm:$0xf]  ;;  %v12285_v37 = vor.u32 %v14329_v33, %v12284_v22  ;;  %v14339_v38 = vld [vmem:[#allocation13 + $0x2c4] sm:$0xf0] }
 0x655   : > { %v12117_v20 = vor.u32 %v14287_v16, %v12116_v1  ;;  %v12332_v1 = vld [vmem:[#allocation13 + $0x2d0] sm:$0xf]  ;;  %v14341_v16 = vld [vmem:[#allocation13 + $0x2d4] sm:$0xf0] }
 0x656   : > { %6499 = vmatpush.bf16.msra.mxu2 %v12005_v52  ;;  %v12109_v52 = vor.u32 %v14285_v26, %v12108_v46  ;;  %v12333_v22 = vor.u32 %v14341_v16, %v12332_v1  ;;  %v14258_v46 = vld [vmem:[#allocation13 + $0x44] sm:$0xf]  ;;  %v12006_v26 = vld [vmem:[#allocation13 + $0x48] sm:$0xf0] }
 0x657   : > { %6536 = vmatpush.bf16.msra.mxu1 %v12213_v12  ;;  %6511 = vmatpush.bf16.msra.mxu3 %v12077_v45  ;;  %v14267_v12 = vld [vmem:[#allocation13 + $0x84] sm:$0xf0]  ;;  %v12100_v45 = vld [vmem:[#allocation13 + $0x100] sm:$0xf]  ;;  %v12009_v50 = vor.u32 %v14258_v46, %v12006_v26  ;;  %v14250_v1 = vld [vmem:[#allocation13 + $0x4] sm:$0xf] }
 0x658   : > { %6524 = vmatpush.bf16.msra.mxu0 %v12141_v6  ;;  %v14264_v6 = vld [vmem:[#allocation13 + $0x74] sm:$0xf]  ;;  %v12037_v54 = vor.u32 %v14267_v12, %v12036_v44  ;;  %v14337_v44 = vld [vmem:[#allocation13 + $0x2b4] sm:$0xf0]  ;;  %v14294_v26 = vld [vmem:[#allocation13 + $0x164] sm:$0xf] }
 0x659   : > { %v12033_v42 = vor.u32 %v14264_v6, %v12030_v25  ;;  %v14256_v12 = vld [vmem:[#allocation13 + $0x34] sm:$0xf]  ;;  %v12236_v6 = vld [vmem:[#allocation13 + $0x210] sm:$0xf]  ;;  %v14317_v25 = vld [vmem:[#allocation13 + $0x214] sm:$0xf0] }
 0x65a   : > { %6500 = vmatpush.bf16.msra.mxu2 %v11997_v19  ;;  %v12268_v19 = vld [vmem:[#allocation13 + $0x250] sm:$0xf] }
 0x65b   : > { %6537 = vmatpush.bf16.msra.mxu1 %v12205_v58  ;;  %6512 = vmatpush.bf16.msra.mxu3 %v12069_v59  ;;  %v14299_v58 = vld [vmem:[#allocation13 + $0x184] sm:$0xf0]  ;;  %v12101_v59 = vor.u32 %v14283_v35, %v12100_v45  ;;  %v11998_v45 = vld [vmem:[#allocation13 + $0x38] sm:$0xf0] }
 0x65c   : > { %6525 = vmatpush.bf16.msra.mxu0 %v12133_v36  ;;  %v12094_v36 = vld [vmem:[#allocation13 + $0xf8] sm:$0xf0]  ;;  %v12165_v13 = vor.u32 %v14299_v58, %v12164_v40  ;;  %v14254_v40 = vld [vmem:[#allocation13 + $0x24] sm:$0xf] }
 0x65d   : > { %v12097_v43 = vor.u32 %v14280_v15, %v12094_v36  ;;  %v14315_v15 = vld [vmem:[#allocation13 + $0x204] sm:$0xf0]  ;;  %v14272_v36 = vld [vmem:[#allocation13 + $0xb4] sm:$0xf] }
 0x65e   : > { %6501 = vmatpush.bf16.msra.mxu2 %v11989_v7  ;;  %v12022_v7 = vld [vmem:[#allocation13 + $0x68] sm:$0xf0]  ;;  %v12065_v60 = vor.u32 %v14272_v36, %v12062_v57  ;;  %v14324_v36 = vld [vmem:[#allocation13 + $0x254] sm:$0xf] }
 0x65f   : > { %6538 = vmatpush.bf16.msra.mxu1 %v12197_v47  ;;  %6513 = vmatpush.bf16.msra.mxu3 %v12061_v3  ;;  %v12269_v47 = vor.u32 %v14325_v30, %v12268_v19  ;;  %v12260_v3 = vld [vmem:[#allocation13 + $0x240] sm:$0xf]  ;;  %v12025_v0 = vor.u32 %v14262_v48, %v12022_v7  ;;  %v14335_v19 = vld [vmem:[#allocation13 + $0x2a4] sm:$0xf0]  ;;  %v12300_v48 = vld [vmem:[#allocation13 + $0x290] sm:$0xf] }
 0x660   : > { %6526 = vmatpush.bf16.msra.mxu0 %v12125_v21  ;;  %v14278_v21 = vld [vmem:[#allocation13 + $0xe4] sm:$0xf]  ;;  %v12261_v31 = vor.u32 %v14323_v56, %v12260_v3  ;;  %v12228_v30 = vld [vmem:[#allocation13 + $0x200] sm:$0xf]  ;;  %v14333_v7 = vld [vmem:[#allocation13 + $0x294] sm:$0xf0] }
 0x661   : > { %v11982_v3 = vld [vmem:[#allocation13 + $0x18] sm:$0xf0]  ;;  %v12054_v56 = vld [vmem:[#allocation13 + $0xa8] sm:$0xf0] }
 0x662   : > { %6502 = vmatpush.bf16.msra.mxu2 %v11981_v24  ;;  %v12014_v24 = vld [vmem:[#allocation13 + $0x58] sm:$0xf0] }
 0x663   : > { %6539 = vmatpush.bf16.msra.mxu1 %v12189_v53  ;;  %6514 = vmatpush.bf16.msra.mxu3 %v12053_v18  ;;  %v12252_v53 = vld [vmem:[#allocation13 + $0x230] sm:$0xf]  ;;  %v12089_v18 = vor.u32 %v14278_v21, %v12086_v17  ;;  %v12017_v33 = vor.u32 %v14260_v51, %v12014_v24  ;;  %v12292_v17 = vld [vmem:[#allocation13 + $0x280] sm:$0xf]  ;;  %v11974_v51 = vld [vmem:[#allocation13 + $0x8] sm:$0xf0] }
 0x664   : > { %6527 = vmatpush.bf16.msra.mxu0 %v12117_v20  ;;  %v12078_v20 = vld [vmem:[#allocation13 + $0xd8] sm:$0xf0]  ;;  %v11977_v24 = vor.u32 %v14250_v1, %v11974_v51  ;;  %v12198_v1 = vld [vmem:[#allocation13 + $0x1c8] sm:$0xf0] }
 0x665   : > { %v12081_v32 = vor.u32 %v14276_v23, %v12078_v20  ;;  %v14296_v20 = vld [vmem:[#allocation13 + $0x174] sm:$0xf]  ;;  %v12262_v51 = vld [vmem:[#allocation13 + $0x248] sm:$0xf0] }
 0x666   : > { %6503 = vmatpush.bf16.msra.mxu2 %v11973_v29  ;;  %v12253_v29 = vor.u32 %v14321_v9, %v12252_v53  ;;  %v12046_v53 = vld [vmem:[#allocation13 + $0x98] sm:$0xf0]  ;;  %v12038_v9 = vld [vmem:[#allocation13 + $0x88] sm:$0xf0] }
 0x667   : > { %6540 = vmatpush.bf16.msra.mxu1 %v12181_v11  ;;  %6515 = vmatpush.bf16.msra.mxu3 %v12045_v61  ;;  %v12244_v11 = vld [vmem:[#allocation13 + $0x220] sm:$0xf]  ;;  %v14319_v61 = vld [vmem:[#allocation13 + $0x224] sm:$0xf0] }
 0x668   : > { %6528 = vmatpush.bf16.msra.mxu0 %v12109_v52  ;;  %v12316_v52 = vld [vmem:[#allocation13 + $0x2b0] sm:$0xf]  ;;  %v12245_v35 = vor.u32 %v14319_v61, %v12244_v11  ;;  %v14312_v11 = vld [vmem:[#allocation13 + $0x1f4] sm:$0xf]  ;;  %v12286_v61 = vld [vmem:[#allocation13 + $0x278] sm:$0xf0] }
 0x669   : > { %v12317_v14 = vor.u32 %v14337_v44, %v12316_v52 }
 0x66a   : > { %6548 = vmatpush.bf16.msrb.mxu2 %v12285_v37  ;;  %v12325_v37 = vor.u32 %v14339_v38, %v12324_v28 }
 0x66b   : > { %6541 = vmatpush.bf16.msra.mxu1 %v12173_v27  ;;  %6516 = vmatpush.bf16.msra.mxu3 %v12037_v54  ;;  %v12001_v27 = vor.u32 %v14256_v12, %v11998_v45  ;;  %v12308_v54 = vld [vmem:[#allocation13 + $0x2a0] sm:$0xf] }
 0x66c   : > { %6529 = vmatpush.bf16.msra.mxu0 %v12101_v59  ;;  %v12309_v58 = vor.u32 %v14335_v19, %v12308_v54  ;;  %v11990_v59 = vld [vmem:[#allocation13 + $0x28] sm:$0xf0]  ;;  %v14290_v54 = vld [vmem:[#allocation13 + $0x144] sm:$0xf] }
 0x66d   : > { %v12134_v19 = vld [vmem:[#allocation13 + $0x148] sm:$0xf0] }
 0x66e   : > { %6549 = vmatpush.bf16.msrb.mxu2 %v12277_v2  ;;  %v12237_v2 = vor.u32 %v14317_v25, %v12236_v6  ;;  %v12214_v6 = vld [vmem:[#allocation13 + $0x1e8] sm:$0xf0]  ;;  %v14326_v25 = vld [vmem:[#allocation13 + $0x264] sm:$0xf] }
 0x66f   : > { %6561 = vmatpush.bf16.msrb.mxu3 %v12349_v55  ;;  %6542 = vmatpush.bf16.msra.mxu1 %v12165_v13  ;;  %v11993_v55 = vor.u32 %v14254_v40, %v11990_v59  ;;  %v14252_v13 = vld [vmem:[#allocation13 + $0x14] sm:$0xf] }
 0x670   : > { %6574 = vmatpush.bf16.msrb.mxu0 %v12033_v42  ;;  %v12229_v42 = vor.u32 %v14315_v15, %v12228_v30  ;;  %v14344_v59 = vld [vmem:[#allocation13 + $0x2f4] sm:$0xf]  ;;  %v12206_v15 = vld [vmem:[#allocation13 + $0x1d8] sm:$0xf0] }
 0x671   : > { %v14308_v30 = vld [vmem:[#allocation13 + $0x1d4] sm:$0xf] }
 0x672   : > { %6550 = vmatpush.bf16.msrb.mxu2 %v12269_v47  ;;  %v12301_v47 = vor.u32 %v14333_v7, %v12300_v48 }
 0x673   : > { %6587 = vmatpush.bf16.msrb.mxu1 %v12097_v43  ;;  %6562 = vmatpush.bf16.msrb.mxu3 %v12341_v41  ;;  %v11985_v43 = vor.u32 %v14252_v13, %v11982_v3  ;;  %v14270_v41 = vld [vmem:[#allocation13 + $0xa4] sm:$0xf]  ;;  %v14288_v13 = vld [vmem:[#allocation13 + $0x134] sm:$0xf] }
 0x674   : > { %6575 = vmatpush.bf16.msrb.mxu0 %v12025_v0  ;;  %v12057_v21 = vor.u32 %v14270_v41, %v12054_v56  ;;  %v14331_v0 = vld [vmem:[#allocation13 + $0x284] sm:$0xf0]  ;;  %v14342_v56 = vld [vmem:[#allocation13 + $0x2e4] sm:$0xf] }
 0x675   : > { %v12293_v16 = vor.u32 %v14331_v0, %v12292_v17  ;;  %v14306_v17 = vld [vmem:[#allocation13 + $0x1c4] sm:$0xf] }
 0x676   : > { %6551 = vmatpush.bf16.msrb.mxu2 %v12261_v31  ;;  %v14268_v31 = vld [vmem:[#allocation13 + $0x94] sm:$0xf] }
 0x677   : > { %6588 = vmatpush.bf16.msrb.mxu1 %v12089_v18  ;;  %6563 = vmatpush.bf16.msrb.mxu3 %v12333_v22  ;;  %v12049_v18 = vor.u32 %v14268_v31, %v12046_v53  ;;  %v14266_v22 = vld [vmem:[#allocation13 + $0x84] sm:$0xf] }
 0x678   : > { %6576 = vmatpush.bf16.msrb.mxu0 %v12017_v33  ;;  %v12041_v23 = vor.u32 %v14266_v22, %v12038_v9  ;;  %v12158_v33 = vld [vmem:[#allocation13 + $0x178] sm:$0xf0]  ;;  %v14286_v53 = vld [vmem:[#allocation13 + $0x124] sm:$0xf]  ;;  %v12201_v9 = vor.u32 %v14306_v17, %v12198_v1  ;;  %v12166_v17 = vld [vmem:[#allocation13 + $0x188] sm:$0xf0] }
 0x679   : > { %v12161_v38 = vor.u32 %v14296_v20, %v12158_v33  ;;  %v14340_v20 = vld [vmem:[#allocation13 + $0x2d4] sm:$0xf]  ;;  %v12334_v33 = vld [vmem:[#allocation13 + $0x2d8] sm:$0xf0]  ;;  %v14314_v1 = vld [vmem:[#allocation13 + $0x204] sm:$0xf] }
 0x67a   : > { %6552 = vmatpush.bf16.msrb.mxu2 %v12253_v29  ;;  %v12150_v29 = vld [vmem:[#allocation13 + $0x168] sm:$0xf0] }
 0x67b   : > { %6589 = vmatpush.bf16.msrb.mxu1 %v12081_v32  ;;  %6564 = vmatpush.bf16.msrb.mxu3 %v12325_v37  ;;  %v12222_v32 = vld [vmem:[#allocation13 + $0x1f8] sm:$0xf0]  ;;  %v14328_v37 = vld [vmem:[#allocation13 + $0x274] sm:$0xf]  ;;  %v12153_v49 = vor.u32 %v14294_v26, %v12150_v29 }
 0x67c   : > { %6577 = vmatpush.bf16.msrb.mxu0 %v12009_v50  ;;  %v12142_v50 = vld [vmem:[#allocation13 + $0x158] sm:$0xf0]  ;;  %v12225_v12 = vor.u32 %v14312_v11, %v12222_v32  ;;  %v12289_v45 = vor.u32 %v14328_v37, %v12286_v61  ;;  %v14320_v29 = vld [vmem:[#allocation13 + $0x234] sm:$0xf]  ;;  %v12337_v37 = vor.u32 %v14340_v20, %v12334_v33  ;;  %v12396_v20 = vld [vmem:[#allocation15 + $0x50] sm:$0xf] }
 0x67d   : > { %v12254_v11 = vld [vmem:[#allocation13 + $0x238] sm:$0xf0]  ;;  %v14284_v61 = vld [vmem:[#allocation13 + $0x114] sm:$0xf]  ;;  %v14357_v33 = vld [vmem:[#allocation15 + $0x54] sm:$0xf0] }
 0x67e   : > { %6553 = vmatpush.bf16.msrb.mxu2 %v12245_v35  ;;  %v14310_v35 = vld [vmem:[#allocation13 + $0x1e4] sm:$0xf] }
 0x67f   : > { %6590 = vmatpush.bf16.msrb.mxu1 %v12073_v39  ;;  %6565 = vmatpush.bf16.msrb.mxu3 %v12317_v14  ;;  %v12217_v40 = vor.u32 %v14310_v35, %v12214_v6  ;;  %v14318_v6 = vld [vmem:[#allocation13 + $0x224] sm:$0xf] }
 0x680   : > { %6578 = vmatpush.bf16.msrb.mxu0 %v12001_v27  ;;  %v12278_v27 = vld [vmem:[#allocation13 + $0x268] sm:$0xf0] }
 0x682   : > { %6554 = vmatpush.bf16.msrb.mxu2 %v12237_v2  ;;  %v12145_v2 = vor.u32 %v14292_v10, %v12142_v50  ;;  %v14338_v50 = vld [vmem:[#allocation13 + $0x2c4] sm:$0xf] }
 0x683   : > { %6566 = vmatpush.bf16.msrb.mxu3 %v12309_v58  ;;  %6591 = vmatpush.bf16.msrb.mxu1 %v12065_v60  ;;  %v12281_v58 = vor.u32 %v14326_v25, %v12278_v27  ;;  %v12137_v60 = vor.u32 %v14290_v54, %v12134_v19  ;;  %v12246_v25 = vld [vmem:[#allocation13 + $0x228] sm:$0xf0]  ;;  %v14336_v19 = vld [vmem:[#allocation13 + $0x2b4] sm:$0xf] }
 0x684   : > { %6579 = vmatpush.bf16.msrb.mxu0 %v11993_v55  ;;  %v12350_v55 = vld [vmem:[#allocation13 + $0x2f8] sm:$0xf0]  ;;  %v12102_v54 = vld [vmem:[#allocation13 + $0x108] sm:$0xf0] }
 0x685   : > { %v12353_v7 = vor.u32 %v14344_v59, %v12350_v55  ;;  %v12412_v59 = vld [vmem:[#allocation15 + $0x70] sm:$0xf]  ;;  %v14361_v55 = vld [vmem:[#allocation15 + $0x74] sm:$0xf0] }
 0x686   : > { %6555 = vmatpush.bf16.msrb.mxu2 %v12229_v42  ;;  %v12270_v42 = vld [vmem:[#allocation13 + $0x258] sm:$0xf0] }
 0x687   : > { %6567 = vmatpush.bf16.msrb.mxu3 %v12301_v47  ;;  %6592 = vmatpush.bf16.msrb.mxu1 %v12057_v21  ;;  %v12126_v47 = vld [vmem:[#allocation13 + $0x138] sm:$0xf0]  ;;  %v12273_v41 = vor.u32 %v14324_v36, %v12270_v42  ;;  %v12342_v21 = vld [vmem:[#allocation13 + $0x2e8] sm:$0xf0] }
 0x688   : > { %6580 = vmatpush.bf16.msrb.mxu0 %v11985_v43  ;;  %v12209_v43 = vor.u32 %v14308_v30, %v12206_v15  ;;  %v12345_v31 = vor.u32 %v14342_v56, %v12342_v21  ;;  %v12249_v30 = vor.u32 %v14318_v6, %v12246_v25  ;;  %v14300_v15 = vld [vmem:[#allocation13 + $0x194] sm:$0xf]  ;;  %v12174_v36 = vld [vmem:[#allocation13 + $0x198] sm:$0xf0]  ;;  %v14298_v21 = vld [vmem:[#allocation13 + $0x184] sm:$0xf] }
 0x689   : > { %v12516_v6 = vld [vmem:[#allocation15 + $0x140] sm:$0xf]  ;;  %v14387_v25 = vld [vmem:[#allocation15 + $0x144] sm:$0xf0] }
 0x68b   : > { %6568 = vmatpush.bf16.msrb.mxu3 %v12293_v16  ;;  %6593 = vmatpush.bf16.msrb.mxu1 %v12049_v18  ;;  %v14322_v16 = vld [vmem:[#allocation13 + $0x244] sm:$0xf]  ;;  %v12118_v18 = vld [vmem:[#allocation13 + $0x128] sm:$0xf0] }
 0x68c   : > { %6581 = vmatpush.bf16.msrb.mxu0 %v11977_v24  ;;  %v12129_v24 = vor.u32 %v14288_v13, %v12126_v47  ;;  %v12121_v26 = vor.u32 %v14286_v53, %v12118_v18  ;;  %v12413_v13 = vor.u32 %v14361_v55, %v12412_v59  ;;  %v12177_v47 = vor.u32 %v14300_v15, %v12174_v36  ;;  %v14393_v53 = vld [vmem:[#allocation15 + $0x174] sm:$0xf0]  ;;  %v12364_v15 = vld [vmem:[#allocation15 + $0x10] sm:$0xf] }
 0x68d   : > { %v12169_v18 = vor.u32 %v14298_v21, %v12166_v17  ;;  %v14385_v59 = vld [vmem:[#allocation15 + $0x134] sm:$0xf0]  ;;  %v12460_v21 = vld [vmem:[#allocation15 + $0xd0] sm:$0xf] }
 0x68e   : > { %v14349_v36 = vld [vmem:[#allocation15 + $0x14] sm:$0xf0] }
 0x68f   : > { %6594 = vmatpush.bf16.msrb.mxu1 %v12041_v23  ;;  %v12265_v23 = vor.u32 %v14322_v16, %v12262_v51  ;;  %v12230_v16 = vld [vmem:[#allocation13 + $0x208] sm:$0xf0] }
 0x6c3   : > { %v5795_v28 = vpop.f32.mrf.mxu0 }
 0x6c4   : > { %v16499_v46 = vpack.c.bf16 %v5795_v28, %v5795_v28  ;;  %v14304_v28 = vld [vmem:[#allocation13 + $0x1b4] sm:$0xf] }
 0x6c6   : > { %6504 = vmatmul.bf16.vlgmr.msra.gmra.mxu2 %v16499_v46 }
 0x6c7   : > { %6600 = vmatpush.bf16.msra.mxu2 %v12161_v38  ;;  %v12190_v38 = vld [vmem:[#allocation13 + $0x1b8] sm:$0xf0] }
 0x6c8   : > { %v12193_v10 = vor.u32 %v14304_v28, %v12190_v38  ;;  %v12532_v38 = vld [vmem:[#allocation15 + $0x160] sm:$0xf] }
 0x6c9   : > { %v5815_v52 = vpop.f32.mrf.mxu1  ;;  %v5840_v44 = vpop.f32.mrf.mxu2 }
 0x6ca   : > { %v16502_v39 = vpack.c.bf16 %v5815_v52, %v5815_v52  ;;  %v16504_v14 = vpack.c.bf16 %v5840_v44, %v5840_v44  ;;  %v12326_v52 = vld [vmem:[#allocation13 + $0x2c8] sm:$0xf0]  ;;  %v12257_v44 = vor.u32 %v14320_v29, %v12254_v11  ;;  %v14330_v29 = vld [vmem:[#allocation13 + $0x284] sm:$0xf] }
 0x6cb   : > { %6601 = vmatpush.bf16.msra.mxu2 %v12153_v49  ;;  %v5885_v57 = vpop.f32.mrf.mxu0  ;;  %v12110_v49 = vld [vmem:[#allocation13 + $0x118] sm:$0xf0]  ;;  %v12329_v27 = vor.u32 %v14338_v50, %v12326_v52  ;;  %v12294_v11 = vld [vmem:[#allocation13 + $0x288] sm:$0xf0]  ;;  %v12524_v50 = vld [vmem:[#allocation15 + $0x150] sm:$0xf] }
 0x6cc   : > { %6517 = vmatmul.bf16.vlgmr.msra.gmra.mxu3 %v16502_v39  ;;  %6530 = vmatmul.bf16.vlgmr.msra.gmra.mxu0 %v16504_v14  ;;  %v16510_v0 = vpack.c.bf16 %v5885_v57, %v5885_v57  ;;  %v12113_v35 = vor.u32 %v14284_v61, %v12110_v49  ;;  %v14316_v57 = vld [vmem:[#allocation13 + $0x214] sm:$0xf]  ;;  %v12388_v61 = vld [vmem:[#allocation15 + $0x40] sm:$0xf]  ;;  %v14355_v49 = vld [vmem:[#allocation15 + $0x44] sm:$0xf0] }
 0x6cd   : > { %6613 = vmatpush.bf16.msra.mxu3 %v12225_v12  ;;  %6626 = vmatpush.bf16.msra.mxu0 %v12289_v45  ;;  %v14302_v12 = vld [vmem:[#allocation13 + $0x1a4] sm:$0xf]  ;;  %v12182_v45 = vld [vmem:[#allocation13 + $0x1a8] sm:$0xf0]  ;;  %v14389_v52 = vld [vmem:[#allocation15 + $0x154] sm:$0xf0] }
 0x6cf   : > { %6602 = vmatpush.bf16.msra.mxu2 %v12145_v2  ;;  %v14282_v2 = vld [vmem:[#allocation13 + $0x104] sm:$0xf] }
 0x6d0   : > { %v5860_v48 = vpop.f32.mrf.mxu3  ;;  %v12105_v42 = vor.u32 %v14282_v2, %v12102_v54  ;;  %v12372_v2 = vld [vmem:[#allocation15 + $0x20] sm:$0xf]  ;;  %v14351_v54 = vld [vmem:[#allocation15 + $0x24] sm:$0xf0] }
 0x6d1   : > { %v16508_v3 = vpack.c.bf16 %v5860_v48, %v5860_v48  ;;  %6614 = vmatpush.bf16.msra.mxu3 %v12217_v40  ;;  %6627 = vmatpush.bf16.msra.mxu0 %v12281_v58  ;;  %v5905_v22 = vpop.f32.mrf.mxu1  ;;  %v12185_v40 = vor.u32 %v14302_v12, %v12182_v45  ;;  %v12318_v58 = vld [vmem:[#allocation13 + $0x2b8] sm:$0xf0]  ;;  %v12380_v12 = vld [vmem:[#allocation15 + $0x30] sm:$0xf]  ;;  %v14353_v45 = vld [vmem:[#allocation15 + $0x34] sm:$0xf0] }
 0x6d2   : > { %v16514_v32 = vpack.c.bf16 %v5905_v22, %v5905_v22  ;;  %v12321_v48 = vor.u32 %v14336_v19, %v12318_v58  ;;  %v14332_v22 = vld [vmem:[#allocation13 + $0x294] sm:$0xf]  ;;  %v12373_v19 = vor.u32 %v14351_v54, %v12372_v2  ;;  %v12508_v58 = vld [vmem:[#allocation15 + $0x130] sm:$0xf]  ;;  %v14358_v54 = vld [vmem:[#allocation15 + $0x64] sm:$0xf] }
 0x6d3   : > { %6543 = vmatmul.bf16.vlgmr.msra.gmra.mxu1 %v16508_v3  ;;  %6603 = vmatpush.bf16.msra.mxu2 %v12137_v60  ;;  %v12238_v60 = vld [vmem:[#allocation13 + $0x218] sm:$0xf0] }
 0x6d4   : > { %6639 = vmatpush.bf16.msra.mxu1 %v12353_v7  ;;  %v14334_v7 = vld [vmem:[#allocation13 + $0x2a4] sm:$0xf]  ;;  %v12241_v56 = vor.u32 %v14316_v57, %v12238_v60  ;;  %v12365_v57 = vor.u32 %v14349_v36, %v12364_v15  ;;  %v14375_v60 = vld [vmem:[#allocation15 + $0xe4] sm:$0xf0] }
 0x6d5   : > { %6615 = vmatpush.bf16.msra.mxu3 %v12209_v43  ;;  %6628 = vmatpush.bf16.msra.mxu0 %v12273_v41  ;;  %v12404_v43 = vld [vmem:[#allocation15 + $0x60] sm:$0xf]  ;;  %v14359_v41 = vld [vmem:[#allocation15 + $0x64] sm:$0xf0] }
 0x6d6   : > { %6556 = vmatmul.bf16.vlgmr.msrb.gmra.mxu2 %v16510_v0 }
 0x6d7   : > { %6604 = vmatpush.bf16.msra.mxu2 %v12129_v24  ;;  %v12405_v24 = vor.u32 %v14359_v41, %v12404_v43  ;;  %v12356_v41 = vld [vmem:[#allocation15] sm:$0xf] }
 0x6d8   : > { %6640 = vmatpush.bf16.msra.mxu1 %v12345_v31  ;;  %v12540_v31 = vld [vmem:[#allocation15 + $0x170] sm:$0xf] }
 0x6d9   : > { %6616 = vmatpush.bf16.msra.mxu3 %v12201_v9  ;;  %6629 = vmatpush.bf16.msra.mxu0 %v12265_v23  ;;  %v12302_v9 = vld [vmem:[#allocation13 + $0x298] sm:$0xf0]  ;;  %v12233_v23 = vor.u32 %v14314_v1, %v12230_v16  ;;  %v14373_v1 = vld [vmem:[#allocation15 + $0xd4] sm:$0xf0]  ;;  %v12492_v16 = vld [vmem:[#allocation15 + $0x110] sm:$0xf] }
 0x6da   : > { %v12305_v28 = vor.u32 %v14332_v22, %v12302_v9  ;;  %v12668_v22 = vld [vmem:[#allocation15 + $0x270] sm:$0xf] }
 0x6db   : > { %6605 = vmatpush.bf16.msra.mxu2 %v12121_v26  ;;  %v14391_v26 = vld [vmem:[#allocation15 + $0x164] sm:$0xf0] }
 0x6dc   : > { %6641 = vmatpush.bf16.msra.mxu1 %v12337_v37  ;;  %6569 = vmatmul.bf16.vlgmr.msrb.gmra.mxu3 %v16514_v32  ;;  %v12397_v37 = vor.u32 %v14357_v33, %v12396_v20  ;;  %v12452_v20 = vld [vmem:[#allocation15 + $0xc0] sm:$0xf]  ;;  %v14371_v33 = vld [vmem:[#allocation15 + $0xc4] sm:$0xf0] }
 0x6dd   : > { %6582 = vmatmul.bf16.vlgmr.msrb.gmra.mxu0 %v16499_v46  ;;  %6617 = vmatpush.bf16.msra.mxu3 %v12193_v10  ;;  %v12310_v46 = vld [vmem:[#allocation13 + $0x2a8] sm:$0xf0]  ;;  %v12533_v10 = vor.u32 %v14391_v26, %v12532_v38  ;;  %v12484_v38 = vld [vmem:[#allocation15 + $0x100] sm:$0xf]  ;;  %v14379_v26 = vld [vmem:[#allocation15 + $0x104] sm:$0xf0] }
 0x6de   : > { %6630 = vmatpush.bf16.msra.mxu0 %v12257_v44  ;;  %v12313_v51 = vor.u32 %v14334_v7, %v12310_v46  ;;  %v12389_v44 = vor.u32 %v14355_v49, %v12388_v61  ;;  %v14409_v46 = vld [vmem:[#allocation15 + $0x1f4] sm:$0xf0]  ;;  %v12660_v61 = vld [vmem:[#allocation15 + $0x260] sm:$0xf]  ;;  %v14423_v49 = vld [vmem:[#allocation15 + $0x264] sm:$0xf0] }
 0x6df   : > { %6606 = vmatpush.bf16.msra.mxu2 %v12113_v35  ;;  %v12525_v35 = vor.u32 %v14389_v52, %v12524_v50  ;;  %v14360_v50 = vld [vmem:[#allocation15 + $0x74] sm:$0xf]  ;;  %v12414_v52 = vld [vmem:[#allocation15 + $0x78] sm:$0xf0] }
 0x6e0   : > { %6642 = vmatpush.bf16.msra.mxu1 %v12329_v27  ;;  %v12381_v27 = vor.u32 %v14353_v45, %v12380_v12  ;;  %v12444_v12 = vld [vmem:[#allocation15 + $0xb0] sm:$0xf]  ;;  %v14369_v45 = vld [vmem:[#allocation15 + $0xb4] sm:$0xf0] }
 0x6e1   : > { %6618 = vmatpush.bf16.msra.mxu3 %v12185_v40  ;;  %v14377_v40 = vld [vmem:[#allocation15 + $0xf4] sm:$0xf0] }
 0x6e2   : > { %6631 = vmatpush.bf16.msra.mxu0 %v12249_v30  ;;  %v12509_v30 = vor.u32 %v14385_v59, %v12508_v58  ;;  %v14367_v59 = vld [vmem:[#allocation15 + $0xa4] sm:$0xf0] }
 0x6e3   : > { %6595 = vmatmul.bf16.vlgmr.msrb.gmra.mxu1 %v16502_v39  ;;  %6607 = vmatpush.bf16.msra.mxu2 %v12105_v42  ;;  %v12541_v39 = vor.u32 %v14393_v53, %v12540_v31  ;;  %v12468_v42 = vld [vmem:[#allocation15 + $0xe0] sm:$0xf] }
 0x6e4   : > { %6643 = vmatpush.bf16.msra.mxu1 %v12321_v48  ;;  %v14383_v48 = vld [vmem:[#allocation15 + $0x124] sm:$0xf0]  ;;  %v12469_v7 = vor.u32 %v14375_v60, %v12468_v42  ;;  %v12596_v53 = vld [vmem:[#allocation15 + $0x1e0] sm:$0xf] }
 0x6e5   : > { %6619 = vmatpush.bf16.msra.mxu3 %v12177_v47  ;;  %v12604_v47 = vld [vmem:[#allocation15 + $0x1f0] sm:$0xf]  ;;  %v16524_v42 = vld [vmem:[%s16958_s1] sm:$0x3]  ;;  %s16969_s1 = sld [smem:[#allocation51_spill]] }
 0x6e6   : > { %6632 = vmatpush.bf16.msra.mxu0 %v12241_v56  ;;  %6608 = vmatmul.bf16.vlgmr.msra.gmra.mxu2 %v16504_v14  ;;  %v12297_v14 = vor.u32 %v14330_v29, %v12294_v11  ;;  %v12605_v43 = vor.u32 %v14409_v46, %v12604_v47  ;;  %v14347_v56 = vld [vmem:[#allocation15 + $0x4] sm:$0xf0]  ;;  %v12588_v29 = vld [vmem:[#allocation15 + $0x1d0] sm:$0xf]  ;;  %v12485_v11 = vor.u32 %v14379_v26, %v12484_v38  ;;  %v12644_v60 = vld [vmem:[#allocation15 + $0x240] sm:$0xf] }
 0x6e7   : > { %7291 = vmatpush.bf16.msrb.mxu2 %v12413_v13  ;;  %v12357_v17 = vor.u32 %v14347_v56, %v12356_v41  ;;  %v12428_v47 = vld [vmem:[#allocation15 + $0x90] sm:$0xf]  ;;  %v14365_v46 = vld [vmem:[#allocation15 + $0x94] sm:$0xf0]  ;;  %v14415_v38 = vld [vmem:[#allocation15 + $0x224] sm:$0xf0] }
 0x6e8   : > { %6644 = vmatpush.bf16.msra.mxu1 %v12313_v51  ;;  %v14381_v51 = vld [vmem:[#allocation15 + $0x114] sm:$0xf0] }
 0x6e9   : > { %6620 = vmatpush.bf16.msra.mxu3 %v12169_v18  ;;  %v12493_v31 = vor.u32 %v14381_v51, %v12492_v16  ;;  %v14407_v18 = vld [vmem:[#allocation15 + $0x1e4] sm:$0xf0]  ;;  %v12636_v16 = vld [vmem:[#allocation15 + $0x230] sm:$0xf] }
 0x6ea   : > { %6633 = vmatpush.bf16.msra.mxu0 %v12233_v23  ;;  %v12597_v9 = vor.u32 %v14407_v18, %v12596_v53  ;;  %v14425_v23 = vld [vmem:[#allocation15 + $0x274] sm:$0xf0]  ;;  %v12390_v53 = vld [vmem:[#allocation15 + $0x48] sm:$0xf0] }
 0x6eb   : > { %7292 = vmatpush.bf16.msrb.mxu2 %v12405_v24  ;;  %v12461_v24 = vor.u32 %v14373_v1, %v12460_v21  ;;  %v12429_v21 = vor.u32 %v14365_v46, %v12428_v47  ;;  %v14399_v1 = vld [vmem:[#allocation15 + $0x1a4] sm:$0xf0]  ;;  %v12716_v46 = vld [vmem:[#allocation15 + $0x2d0] sm:$0xf] }
 0x6ec   : > { %6645 = vmatpush.bf16.msra.mxu1 %v12305_v28  ;;  %6621 = vmatmul.bf16.vlgmr.msra.gmra.mxu3 %v16508_v3  ;;  %v12517_v3 = vor.u32 %v14387_v25, %v12516_v6  ;;  %v12453_v28 = vor.u32 %v14371_v33, %v12452_v20  ;;  %v12445_v6 = vor.u32 %v14369_v45, %v12444_v12  ;;  %v14403_v25 = vld [vmem:[#allocation15 + $0x1c4] sm:$0xf0]  ;;  %v12556_v20 = vld [vmem:[#allocation15 + $0x190] sm:$0xf]  ;;  %v14413_v45 = vld [vmem:[#allocation15 + $0x214] sm:$0xf0] }
 0x6ed   : > { %6634 = vmatmul.bf16.vlgmr.msra.gmra.mxu0 %v16510_v0  ;;  %v12476_v0 = vld [vmem:[#allocation15 + $0xf0] sm:$0xf]  ;;  %v14411_v47 = vld [vmem:[#allocation15 + $0x204] sm:$0xf0] }
 0x6ee   : > { %7317 = vmatpush.bf16.msrb.mxu0 %v12541_v39  ;;  %v12477_v55 = vor.u32 %v14377_v40, %v12476_v0  ;;  %v12669_v39 = vor.u32 %v14425_v23, %v12668_v22  ;;  %v12406_v0 = vld [vmem:[#allocation15 + $0x68] sm:$0xf0]  ;;  %v14363_v23 = vld [vmem:[#allocation15 + $0x84] sm:$0xf0]  ;;  %v12620_v12 = vld [vmem:[#allocation15 + $0x210] sm:$0xf] }
 0x6ef   : > { %7293 = vmatpush.bf16.msrb.mxu2 %v12397_v37  ;;  %v14405_v37 = vld [vmem:[#allocation15 + $0x1d4] sm:$0xf0]  ;;  %v12409_v58 = vor.u32 %v14358_v54, %v12406_v0  ;;  %v12374_v54 = vld [vmem:[#allocation15 + $0x28] sm:$0xf0] }
 0x6f0   : > { %6646 = vmatpush.bf16.msra.mxu1 %v12297_v14  ;;  %7304 = vmatpush.bf16.msrb.mxu3 %v12477_v55  ;;  %v12661_v14 = vor.u32 %v14423_v49, %v12660_v61  ;;  %v12572_v55 = vld [vmem:[#allocation15 + $0x1b0] sm:$0xf] }
 0x6f2   : > { %7318 = vmatpush.bf16.msrb.mxu0 %v12533_v10  ;;  %v12589_v10 = vor.u32 %v14405_v37, %v12588_v29  ;;  %v12732_v29 = vld [vmem:[#allocation15 + $0x2f0] sm:$0xf]  ;;  %v14352_v37 = vld [vmem:[#allocation15 + $0x34] sm:$0xf] }
 0x6f3   : > { %7294 = vmatpush.bf16.msrb.mxu2 %v12389_v44  ;;  %6647 = vmatmul.bf16.vlgmr.msra.gmra.mxu1 %v16514_v32  ;;  %v12500_v32 = vld [vmem:[#allocation15 + $0x120] sm:$0xf]  ;;  %v12417_v44 = vor.u32 %v14360_v50, %v12414_v52  ;;  %v14395_v50 = vld [vmem:[#allocation15 + $0x184] sm:$0xf0] }
 0x6f4   : > { %v12501_v13 = vor.u32 %v14383_v48, %v12500_v32  ;;  %7330 = vmatpush.bf16.msrb.mxu1 %v12605_v43  ;;  %7305 = vmatpush.bf16.msrb.mxu3 %v12469_v7  ;;  %v14419_v32 = vld [vmem:[#allocation15 + $0x244] sm:$0xf0]  ;;  %v14356_v48 = vld [vmem:[#allocation15 + $0x54] sm:$0xf] }
 0x6f5   : > { %v12645_v7 = vor.u32 %v14419_v32, %v12644_v60 }
 0x6f6   : > { %7319 = vmatpush.bf16.msrb.mxu0 %v12525_v35  ;;  %v12580_v35 = vld [vmem:[#allocation15 + $0x1c0] sm:$0xf] }
 0x6f7   : > { %7295 = vmatpush.bf16.msrb.mxu2 %v12381_v27  ;;  %v12652_v27 = vld [vmem:[#allocation15 + $0x250] sm:$0xf]  ;;  %v12581_v2 = vor.u32 %v14403_v25, %v12580_v35  ;;  %v12724_v35 = vld [vmem:[#allocation15 + $0x2e0] sm:$0xf] }
 0x6f8   : > { %7306 = vmatpush.bf16.msrb.mxu3 %v12461_v24  ;;  %7331 = vmatpush.bf16.msrb.mxu1 %v12597_v9  ;;  %v14417_v24 = vld [vmem:[#allocation15 + $0x234] sm:$0xf0]  ;;  %v12420_v9 = vld [vmem:[#allocation15 + $0x80] sm:$0xf] }
 0x6f9   : > { %v12637_v18 = vor.u32 %v14417_v24, %v12636_v16  ;;  %v12421_v33 = vor.u32 %v14363_v23, %v12420_v9  ;;  %v14374_v24 = vld [vmem:[#allocation15 + $0xe4] sm:$0xf] }
 0x6fa   : > { %7320 = vmatpush.bf16.msrb.mxu0 %v12517_v3  ;;  %v14421_v3 = vld [vmem:[#allocation15 + $0x254] sm:$0xf0] }
 0x6fb   : > { %7296 = vmatpush.bf16.msrb.mxu2 %v12373_v19  ;;  %v12436_v19 = vld [vmem:[#allocation15 + $0xa0] sm:$0xf]  ;;  %v12653_v40 = vor.u32 %v14421_v3, %v12652_v27  ;;  %v14439_v3 = vld [vmem:[#allocation15 + $0x2e4] sm:$0xf0] }
 0x6fc   : > { %7307 = vmatpush.bf16.msrb.mxu3 %v12453_v28  ;;  %7332 = vmatpush.bf16.msrb.mxu1 %v12589_v10  ;;  %v12437_v15 = vor.u32 %v14367_v59, %v12436_v19  ;;  %v12628_v28 = vld [vmem:[#allocation15 + $0x220] sm:$0xf]  ;;  %v12382_v10 = vld [vmem:[#allocation15 + $0x38] sm:$0xf0] }
 0x6fd   : > { %v12629_v61 = vor.u32 %v14415_v38, %v12628_v28  ;;  %v12478_v59 = vld [vmem:[#allocation15 + $0xf8] sm:$0xf0] }
 0x6fe   : > { %7321 = vmatpush.bf16.msrb.mxu0 %v12509_v30  ;;  %v14401_v30 = vld [vmem:[#allocation15 + $0x1b4] sm:$0xf0] }
 0x6ff   : > { %7297 = vmatpush.bf16.msrb.mxu2 %v12365_v57  ;;  %v12573_v36 = vor.u32 %v14401_v30, %v12572_v55  ;;  %v6012_v57 = vperm.slane %v16524_v42, 0  ;;  %v12621_v55 = vor.u32 %v14413_v45, %v12620_v12 }
 0x700   : > { %7308 = vmatpush.bf16.msrb.mxu3 %v12445_v6  ;;  %7333 = vmatpush.bf16.msrb.mxu1 %v12581_v2  ;;  %v14350_v2 = vld [vmem:[#allocation15 + $0x24] sm:$0xf] }
 0x702   : > { %7322 = vmatpush.bf16.msrb.mxu0 %v12501_v13  ;;  %v12398_v13 = vld [vmem:[#allocation15 + $0x58] sm:$0xf0] }
 0x703   : > { %7298 = vmatpush.bf16.msrb.mxu2 %v12357_v17  ;;  %v12401_v56 = vor.u32 %v14356_v48, %v12398_v13  ;;  %v12564_v17 = vld [vmem:[#allocation15 + $0x1a0] sm:$0xf] }
 0x704   : > { %7309 = vmatpush.bf16.msrb.mxu3 %v12437_v15  ;;  %7334 = vmatpush.bf16.msrb.mxu1 %v12573_v36  ;;  %v12565_v51 = vor.u32 %v14399_v1, %v12564_v17  ;;  %v12377_v15 = vor.u32 %v14350_v2, %v12374_v54  ;;  %v12612_v13 = vld [vmem:[#allocation15 + $0x200] sm:$0xf]  ;;  %v14348_v17 = vld [vmem:[#allocation15 + $0x14] sm:$0xf]  ;;  %v12366_v1 = vld [vmem:[#allocation15 + $0x18] sm:$0xf0] }
 0x706   : > { %7323 = vmatpush.bf16.msrb.mxu0 %v12493_v31  ;;  %v14354_v31 = vld [vmem:[#allocation15 + $0x44] sm:$0xf] }
 0x707   : > { %7343 = vmatpush.bf16.msra.mxu2 %v12669_v39  ;;  %v12393_v22 = vor.u32 %v14354_v31, %v12390_v53  ;;  %v14397_v39 = vld [vmem:[#allocation15 + $0x194] sm:$0xf0]  ;;  %v12470_v31 = vld [vmem:[#allocation15 + $0xe8] sm:$0xf0] }
 0x708   : > { %7310 = vmatpush.bf16.msrb.mxu3 %v12429_v21  ;;  %7335 = vmatpush.bf16.msrb.mxu1 %v12565_v51  ;;  %v12557_v26 = vor.u32 %v14397_v39, %v12556_v20  ;;  %v14437_v21 = vld [vmem:[#allocation15 + $0x2d4] sm:$0xf0]  ;;  %v12369_v51 = vor.u32 %v14348_v17, %v12366_v1  ;;  %v14346_v20 = vld [vmem:[#allocation15 + $0x4] sm:$0xf]  ;;  %v14372_v39 = vld [vmem:[#allocation15 + $0xd4] sm:$0xf] }
 0x709   : > { %v12717_v16 = vor.u32 %v14437_v21, %v12716_v46  ;;  %v14364_v21 = vld [vmem:[#allocation15 + $0x94] sm:$0xf] }
 0x70a   : > { %7324 = vmatpush.bf16.msrb.mxu0 %v12485_v11  ;;  %v14441_v11 = vld [vmem:[#allocation15 + $0x2f4] sm:$0xf0] }
 0x70b   : > { %7344 = vmatpush.bf16.msra.mxu2 %v12661_v14  ;;  %v12733_v49 = vor.u32 %v14441_v11, %v12732_v29  ;;  %v12548_v14 = vld [vmem:[#allocation15 + $0x180] sm:$0xf]  ;;  %v12462_v29 = vld [vmem:[#allocation15 + $0xd8] sm:$0xf0] }
 0x70c   : > { %7311 = vmatpush.bf16.msrb.mxu3 %v12421_v33  ;;  %7336 = vmatpush.bf16.msrb.mxu1 %v12557_v26  ;;  %v12549_v27 = vor.u32 %v14395_v50, %v12548_v14  ;;  %v12358_v33 = vld [vmem:[#allocation15 + $0x8] sm:$0xf0]  ;;  %v14433_v14 = vld [vmem:[#allocation15 + $0x2b4] sm:$0xf0]  ;;  %v14370_v50 = vld [vmem:[#allocation15 + $0xc4] sm:$0xf] }
 0x70d   : > { %v12361_v26 = vor.u32 %v14346_v20, %v12358_v33 }
 0x70e   : > { %7369 = vmatpush.bf16.msra.mxu0 %v12417_v44  ;;  %v12385_v44 = vor.u32 %v14352_v37, %v12382_v10  ;;  %v12465_v37 = vor.u32 %v14372_v39, %v12462_v29  ;;  %v14388_v29 = vld [vmem:[#allocation15 + $0x154] sm:$0xf] }
 0x70f   : > { %7345 = vmatpush.bf16.msra.mxu2 %v12653_v40  ;;  %v12725_v40 = vor.u32 %v14439_v3, %v12724_v35  ;;  %v12692_v35 = vld [vmem:[#allocation15 + $0x2a0] sm:$0xf]  ;;  %v12446_v3 = vld [vmem:[#allocation15 + $0xb8] sm:$0xf0] }
 0x710   : > { %7356 = vmatpush.bf16.msra.mxu3 %v12733_v49  ;;  %7337 = vmatpush.bf16.msrb.mxu1 %v12549_v27  ;;  %v6013_v27 = vperm.slane %v16524_v42, 1 }
 0x712   : > { %7370 = vmatpush.bf16.msra.mxu0 %v12409_v58  ;;  %v14376_v58 = vld [vmem:[#allocation15 + $0xf4] sm:$0xf] }
 0x713   : > { %7346 = vmatpush.bf16.msra.mxu2 %v12645_v7  ;;  %v12481_v30 = vor.u32 %v14376_v58, %v12478_v59  ;;  %v14429_v58 = vld [vmem:[#allocation15 + $0x294] sm:$0xf0] }
 0x714   : > { %7357 = vmatpush.bf16.msra.mxu3 %v12725_v40  ;;  %v12684_v40 = vld [vmem:[#allocation15 + $0x290] sm:$0xf] }
 0x715   : > { %7382 = vmatpush.bf16.msra.mxu1 %v12481_v30  ;;  %v12438_v30 = vld [vmem:[#allocation15 + $0xa8] sm:$0xf0]  ;;  %v12685_v42 = vor.u32 %v14429_v58, %v12684_v40 }
 0x716   : > { %7371 = vmatpush.bf16.msra.mxu0 %v12401_v56  ;;  %v12613_v56 = vor.u32 %v14411_v47, %v12612_v13  ;;  %v12534_v13 = vld [vmem:[#allocation15 + $0x168] sm:$0xf0]  ;;  %v14424_v47 = vld [vmem:[#allocation15 + $0x274] sm:$0xf] }
 0x717   : > { %7347 = vmatpush.bf16.msra.mxu2 %v12637_v18  ;;  %v12473_v18 = vor.u32 %v14374_v24, %v12470_v31 }
 0x718   : > { %7358 = vmatpush.bf16.msra.mxu3 %v12717_v16 }
 0x719   : > { %7383 = vmatpush.bf16.msra.mxu1 %v12473_v18  ;;  %v12670_v18 = vld [vmem:[#allocation15 + $0x278] sm:$0xf0] }
 0x71a   : > { %7372 = vmatpush.bf16.msra.mxu0 %v12393_v22  ;;  %v12708_v22 = vld [vmem:[#allocation15 + $0x2c0] sm:$0xf] }
 0x71b   : > { %7348 = vmatpush.bf16.msra.mxu2 %v12629_v61  ;;  %v12700_v61 = vld [vmem:[#allocation15 + $0x2b0] sm:$0xf] }
 0x71d   : > { %7384 = vmatpush.bf16.msra.mxu1 %v12465_v37  ;;  %v12422_v37 = vld [vmem:[#allocation15 + $0x88] sm:$0xf0] }
 0x71e   : > { %7373 = vmatpush.bf16.msra.mxu0 %v12385_v44  ;;  %v12454_v44 = vld [vmem:[#allocation15 + $0xc8] sm:$0xf0] }
 0x71f   : > { %7349 = vmatpush.bf16.msra.mxu2 %v12621_v55  ;;  %v12457_v45 = vor.u32 %v14370_v50, %v12454_v44  ;;  %v14366_v55 = vld [vmem:[#allocation15 + $0xa4] sm:$0xf] }
 0x720   : > { %v12441_v46 = vor.u32 %v14366_v55, %v12438_v30  ;;  %v14422_v50 = vld [vmem:[#allocation15 + $0x264] sm:$0xf] }
 0x721   : > { %7385 = vmatpush.bf16.msra.mxu1 %v12457_v45 }
 0x722   : > { %7374 = vmatpush.bf16.msra.mxu0 %v12377_v15 }
 0x723   : > { %7350 = vmatpush.bf16.msra.mxu2 %v12613_v56  ;;  %v14427_v56 = vld [vmem:[#allocation15 + $0x284] sm:$0xf0] }
 0x726   : > { %7375 = vmatpush.bf16.msra.mxu0 %v12369_v51  ;;  %v12430_v51 = vld [vmem:[#allocation15 + $0x98] sm:$0xf0] }
 0x727   : > { %v12433_v33 = vor.u32 %v14364_v21, %v12430_v51  ;;  %v12606_v21 = vld [vmem:[#allocation15 + $0x1f8] sm:$0xf0] }
 0x728   : > { %v12494_v51 = vld [vmem:[#allocation15 + $0x118] sm:$0xf0] }
 0x72a   : > { %7376 = vmatpush.bf16.msra.mxu0 %v12361_v26  ;;  %v12673_v26 = vor.u32 %v14424_v47, %v12670_v18  ;;  %v14382_v47 = vld [vmem:[#allocation15 + $0x124] sm:$0xf] }
 0x749   : > { %v6505_v43 = vpop.f32.mrf.mxu2  ;;  %v16527_v41 = vpop.f32.mrf.mxu0 }
 0x74a   : > { %v6506_v6 = vadd.f32 %v6505_v43, %v6012_v57 }
 0x74f   : > { %v6518_v52 = vpop.f32.mrf.mxu3 }
 0x750   : > { %v6544_v25 = vpop.f32.mrf.mxu1  ;;  %v6519_v36 = vadd.f32 %v6518_v52, %v6506_v6  ;;  %v12701_v52 = vor.u32 %v14433_v14, %v12700_v61  ;;  %v14431_v6 = vld [vmem:[#allocation15 + $0x2a4] sm:$0xf0]  ;;  %v12526_v14 = vld [vmem:[#allocation15 + $0x158] sm:$0xf0] }
 0x751   : > { %v6507_v0 = vpop.f32.mrf.mxu2  ;;  %v6533_v19 = vpop.f32.mrf.mxu0  ;;  %v12693_v54 = vor.u32 %v14431_v6, %v12692_v35  ;;  %v12529_v6 = vor.u32 %v14388_v29, %v12526_v14  ;;  %v12734_v29 = vld [vmem:[#allocation15 + $0x2f8] sm:$0xf0]  ;;  %v14378_v14 = vld [vmem:[#allocation15 + $0x104] sm:$0xf] }
 0x752   : > { %v6532_v60 = vadd.f32 %v16527_v41, %v6519_v36  ;;  %v14435_v41 = vld [vmem:[#allocation15 + $0x2c4] sm:$0xf0] }
 0x753   : > { %v12709_v23 = vor.u32 %v14435_v41, %v12708_v22 }
 0x754   : > { %v6545_v43 = vadd.f32 %v6544_v25, %v6532_v60  ;;  %v14368_v25 = vld [vmem:[#allocation15 + $0xb4] sm:$0xf]  ;;  %v12542_v60 = vld [vmem:[#allocation15 + $0x178] sm:$0xf0] }
 0x755   : > { %7359 = vmatpush.bf16.msra.mxu3 %v12709_v23  ;;  %v12449_v19 = vor.u32 %v14368_v25, %v12446_v3  ;;  %v12518_v3 = vld [vmem:[#allocation15 + $0x148] sm:$0xf0] }
 0x757   : > { %v6520_v57 = vpop.f32.mrf.mxu3  ;;  %7386 = vmatpush.bf16.msra.mxu1 %v12449_v19 }
 0x758   : > { %v6546_v32 = vpop.f32.mrf.mxu1  ;;  %v14392_v57 = vld [vmem:[#allocation15 + $0x174] sm:$0xf] }
 0x759   : > { %v6557_v48 = vpop.f32.mrf.mxu2  ;;  %7360 = vmatpush.bf16.msra.mxu3 %v12701_v52  ;;  %v12545_v1 = vor.u32 %v14392_v57, %v12542_v60  ;;  %v12662_v52 = vld [vmem:[#allocation15 + $0x268] sm:$0xf0]  ;;  %v12510_v57 = vld [vmem:[#allocation15 + $0x138] sm:$0xf0]  ;;  %v14418_v60 = vld [vmem:[#allocation15 + $0x244] sm:$0xf] }
 0x75a   : > { %v6583_v7 = vpop.f32.mrf.mxu0  ;;  %v6558_v53 = vadd.f32 %v6557_v48, %v6545_v43  ;;  %v14390_v48 = vld [vmem:[#allocation15 + $0x164] sm:$0xf]  ;;  %v12676_v43 = vld [vmem:[#allocation15 + $0x280] sm:$0xf]  ;;  %v12665_v25 = vor.u32 %v14422_v50, %v12662_v52  ;;  %v12486_v50 = vld [vmem:[#allocation15 + $0x108] sm:$0xf0] }
 0x75b   : > { %v6584_v15 = vadd.f32 %v6583_v7, %v6013_v27  ;;  %7387 = vmatpush.bf16.msra.mxu1 %v12441_v46  ;;  %v14386_v27 = vld [vmem:[#allocation15 + $0x144] sm:$0xf] }
 0x75c   : > { %v12521_v30 = vor.u32 %v14386_v27, %v12518_v3  ;;  %v12489_v27 = vor.u32 %v14378_v14, %v12486_v50  ;;  %v12800_v14 = vld [vmem:[#allocation16 + $0x70] sm:$0xf]  ;;  %v14457_v50 = vld [vmem:[#allocation16 + $0x74] sm:$0xf0] }
 0x75d   : > { %7361 = vmatpush.bf16.msra.mxu3 %v12693_v54  ;;  %v14420_v54 = vld [vmem:[#allocation15 + $0x254] sm:$0xf] }
 0x75f   : > { %v6570_v9 = vpop.f32.mrf.mxu3  ;;  %7388 = vmatpush.bf16.msra.mxu1 %v12433_v33 }
 0x760   : > { %v6571_v28 = vadd.f32 %v6570_v9, %v6558_v53  ;;  %v6596_v38 = vpop.f32.mrf.mxu1  ;;  %v12677_v9 = vor.u32 %v14427_v56, %v12676_v43  ;;  %v12502_v43 = vld [vmem:[#allocation15 + $0x128] sm:$0xf0]  ;;  %v14408_v56 = vld [vmem:[#allocation15 + $0x1f4] sm:$0xf] }
 0x761   : > { %v6559_v11 = vpop.f32.mrf.mxu2  ;;  %v6597_v32 = vadd.f32 %v6596_v38, %v6584_v15  ;;  %7362 = vmatpush.bf16.msra.mxu3 %v12685_v42  ;;  %v12537_v38 = vor.u32 %v14390_v48, %v12534_v13  ;;  %v12646_v42 = vld [vmem:[#allocation15 + $0x248] sm:$0xf0]  ;;  %v12505_v18 = vor.u32 %v14382_v47, %v12502_v43  ;;  %v14434_v47 = vld [vmem:[#allocation15 + $0x2c4] sm:$0xf] }
 0x762   : > { %v6652_v49 = vmax.f32 %v6571_v28, 0.0  ;;  %v6585_v10 = vpop.f32.mrf.mxu0  ;;  %v14362_v11 = vld [vmem:[#allocation15 + $0x84] sm:$0xf]  ;;  %v12649_v13 = vor.u32 %v14418_v60, %v12646_v42  ;;  %v12710_v43 = vld [vmem:[#allocation15 + $0x2c8] sm:$0xf0] }
 0x763   : > { %v12425_v35 = vor.u32 %v14362_v11, %v12422_v37 }
 0x764   : > { %v6661_v12 = vrot.slane %v6652_v49, 7 }
 0x765   : > { %7363 = vmatpush.bf16.msra.mxu3 %v12677_v9  ;;  %7389 = vmatpush.bf16.msra.mxu1 %v12425_v35  ;;  %v14414_v9 = vld [vmem:[#allocation15 + $0x224] sm:$0xf]  ;;  %v14412_v35 = vld [vmem:[#allocation15 + $0x214] sm:$0xf] }
 0x766   : > { %6665 = vst [vmem:[#allocation3] sm:$0xfe] %v6661_v12 }
 0x767   : > { %6667 = vst [vmem:[#allocation3 + $0x10] sm:$0x1] %v6661_v12  ;;  %v6572_v2 = vpop.f32.mrf.mxu3 }
 0x768   : > { %v6598_v0 = vpop.f32.mrf.mxu1 }
 0x769   : > { %v6609_v59 = vpop.f32.mrf.mxu2  ;;  %v12654_v0 = vld [vmem:[#allocation15 + $0x258] sm:$0xf0] }
 0x76a   : > { %v6635_v36 = vpop.f32.mrf.mxu0  ;;  %v6610_v24 = vadd.f32 %v6609_v59, %v6597_v32  ;;  %v12657_v15 = vor.u32 %v14420_v54, %v12654_v0 }
 0x76d   : > { %v6669_v17 = vld [vmem:[#allocation3] sm:$0xff] }
 0x76e   : > { %v6671_v16 = vld [vmem:[#allocation3] sm:$0xfe]  ;;  %v16531_v7 = vpack.c.bf16 %v6669_v17, %v6669_v17  ;;  %v6673_v31 = vld [vmem:[#allocation3 + $0x10] sm:$0x1] }
 0x76f   : > { %v6683_v53 = vrot.slane %v6671_v16, 1  ;;  %v6622_v22 = vpop.f32.mrf.mxu3  ;;  %v6684_v41 = vrot.slane %v6673_v31, 1  ;;  %v6675_v12 = vld [vmem:[#allocation3] sm:$0xfc]  ;;  %v6677_v45 = vld [vmem:[#allocation3 + $0x10] sm:$0x3] }
 0x770   : > { %v6623_v23 = vadd.f32 %v6622_v22, %v6610_v24  ;;  %v6648_v20 = vpop.f32.mrf.mxu1  ;;  %7299 = vmatmul.bf16.vlgmr.msrb.gmra.mxu2 %v16531_v7  ;;  %v6695_v40 = vrot.slane %v6675_v12, 2  ;;  %v6696_v58 = vrot.slane %v6677_v45, 2  ;;  %v14416_v17 = vld [vmem:[#allocation15 + $0x234] sm:$0xf]  ;;  %v14406_v24 = vld [vmem:[#allocation15 + $0x1e4] sm:$0xf]  ;;  %v12609_v22 = vor.u32 %v14408_v56, %v12606_v21 }
 0x771   : > { %7395 = vmatpush.bf16.msrb.mxu2 %v12545_v1  ;;  %v6611_v39 = vpop.f32.mrf.mxu2  ;;  %v6685_v28 = vsel %vm1678_vm2, %v6683_v53, %v6684_v41  ;;  %v12638_v1 = vld [vmem:[#allocation15 + $0x238] sm:$0xf0]  ;;  %v14380_v16 = vld [vmem:[#allocation15 + $0x114] sm:$0xf]  ;;  %v12598_v31 = vld [vmem:[#allocation15 + $0x1e8] sm:$0xf0] }
 0x772   : > { %v6636_v61 = vadd.f32 %v6635_v36, %v6623_v23  ;;  %v6637_v49 = vpop.f32.mrf.mxu0  ;;  %v16535_v10 = vpack.c.bf16 %v6685_v28, %v6685_v28  ;;  %v14384_v36 = vld [vmem:[#allocation15 + $0x134] sm:$0xf]  ;;  %v6697_v32 = vsel %vm1709_vm3, %v6695_v40, %v6696_v58  ;;  %v12630_v23 = vld [vmem:[#allocation15 + $0x228] sm:$0xf0]  ;;  %v12641_v39 = vor.u32 %v14416_v17, %v12638_v1  ;;  %v12590_v45 = vld [vmem:[#allocation15 + $0x1d8] sm:$0xf0] }
 0x773   : > { %v12513_v48 = vor.u32 %v14384_v36, %v12510_v57  ;;  %v16539_v46 = vpack.c.bf16 %v6697_v32, %v6697_v32  ;;  %v12601_v49 = vor.u32 %v14406_v24, %v12598_v31  ;;  %v14410_v40 = vld [vmem:[#allocation15 + $0x204] sm:$0xf]  ;;  %v12614_v58 = vld [vmem:[#allocation15 + $0x208] sm:$0xf0]  ;;  %v7452_v57 = vld [vmem:[#allocation2 + $0x20] sm:$0x3]  ;;  %v12713_v17 = vor.u32 %v14434_v47, %v12710_v43 }
 0x774   : > { %v6649_v44 = vadd.f32 %v6648_v20, %v6636_v61  ;;  %7325 = vmatmul.bf16.vlgmr.msrb.gmra.mxu0 %v16535_v10  ;;  %v14440_v20 = vld [vmem:[#allocation15 + $0x2f4] sm:$0xf]  ;;  %v12497_v61 = vor.u32 %v14380_v16, %v12494_v51  ;;  %v12617_v60 = vor.u32 %v14410_v40, %v12614_v58  ;;  %v14398_v1 = vld [vmem:[#allocation15 + $0x1a4] sm:$0xf]  ;;  %v12566_v16 = vld [vmem:[#allocation15 + $0x1a8] sm:$0xf0] }
 0x775   : > { %7396 = vmatpush.bf16.msrb.mxu2 %v12537_v38  ;;  %7421 = vmatpush.bf16.msrb.mxu0 %v12673_v26  ;;  %v12737_v12 = vor.u32 %v14440_v20, %v12734_v29  ;;  %v14400_v32 = vld [vmem:[#allocation15 + $0x1b4] sm:$0xf]  ;;  %v12702_v24 = vld [vmem:[#allocation15 + $0x2b8] sm:$0xf0]  ;;  %v12569_v31 = vor.u32 %v14398_v1, %v12566_v16  ;;  %v12678_v29 = vld [vmem:[#allocation15 + $0x288] sm:$0xf0] }
 0x776   : > { %v6653_v2 = vmax.f32 %v6649_v44, 0.0  ;;  %v12633_v44 = vor.u32 %v14414_v9, %v12630_v23  ;;  %v14432_v51 = vld [vmem:[#allocation15 + $0x2b4] sm:$0xf]  ;;  %v14394_v9 = vld [vmem:[#allocation15 + $0x184] sm:$0xf] }
 0x777   : > { %v6624_v19 = vpop.f32.mrf.mxu3  ;;  %v12550_v23 = vld [vmem:[#allocation15 + $0x188] sm:$0xf0]  ;;  %v14428_v20 = vld [vmem:[#allocation15 + $0x294] sm:$0xf]  ;;  %v12856_v40 = vld [vmem:[#allocation16 + $0xe0] sm:$0xf] }
 0x778   : > { %v6662_v59 = vrot.slane %v6653_v2, 7  ;;  %v6650_v55 = vpop.f32.mrf.mxu1  ;;  %v14402_v2 = vld [vmem:[#allocation15 + $0x1c4] sm:$0xf]  ;;  %v12582_v19 = vld [vmem:[#allocation15 + $0x1c8] sm:$0xf0] }
 0x779   : > { %7397 = vmatpush.bf16.msrb.mxu2 %v12529_v6  ;;  %7422 = vmatpush.bf16.msrb.mxu0 %v12665_v25  ;;  %v12622_v6 = vld [vmem:[#allocation15 + $0x218] sm:$0xf0]  ;;  %v14438_v25 = vld [vmem:[#allocation15 + $0x2e4] sm:$0xf]  ;;  %v12585_v36 = vor.u32 %v14402_v2, %v12582_v19  ;;  %v14471_v58 = vld [vmem:[#allocation16 + $0xe4] sm:$0xf0] }
 0x77a   : > { %6666 = vst [vmem:[#allocation3 + $0x8] sm:$0xfe] %v6662_v59  ;;  %v12625_v54 = vor.u32 %v14412_v35, %v12622_v6  ;;  %v12729_v0 = vor.u32 %v14438_v25, %v12726_v62  ;;  %v12718_v55 = vld [vmem:[#allocation15 + $0x2d8] sm:$0xf0]  ;;  %v14473_v35 = vld [vmem:[#allocation16 + $0xf4] sm:$0xf0] }
 0x77b   : > { %6668 = vst [vmem:[#allocation3 + $0x18] sm:$0x1] %v6662_v59  ;;  %v14436_v59 = vld [vmem:[#allocation15 + $0x2d4] sm:$0xf]  ;;  %v14469_v43 = vld [vmem:[#allocation16 + $0xd4] sm:$0xf0] }
 0x77c   : > { %v12721_v42 = vor.u32 %v14436_v59, %v12718_v55  ;;  %v14472_v25 = vld [vmem:[#allocation16 + $0xf4] sm:$0xf]  ;;  %v14470_v59 = vld [vmem:[#allocation16 + $0xe4] sm:$0xf]  ;;  %v12857_v55 = vor.u32 %v14471_v58, %v12856_v40  ;;  %v12826_v40 = vld [vmem:[#allocation16 + $0xa8] sm:$0xf0] }
 0x77d   : > { %7398 = vmatpush.bf16.msrb.mxu2 %v12521_v30  ;;  %7423 = vmatpush.bf16.msrb.mxu0 %v12657_v15  ;;  %v12752_v58 = vld [vmem:[#allocation16 + $0x10] sm:$0xf] }
 0x780   : > { %7351 = vmatmul.bf16.vlgmr.msra.gmra.mxu2 %v16539_v46 }
 0x781   : > { %7399 = vmatpush.bf16.msrb.mxu2 %v12513_v48  ;;  %7424 = vmatpush.bf16.msrb.mxu0 %v12649_v13  ;;  %v6670_v53 = vld [vmem:[#allocation3 + $0x8] sm:$0xff] }
 0x782   : > { %v6672_v41 = vld [vmem:[#allocation3 + $0x8] sm:$0xfe]  ;;  %v16542_v33 = vpack.c.bf16 %v6670_v53, %v6670_v53  ;;  %8665 = vst.msk [vmem:[#allocation3] ss:$8 sm:$0x3] %vm15883_vm0, %v15347_v5 }
 0x783   : > { %v6674_v28 = vld [vmem:[#allocation3 + $0x18] sm:$0x1]  ;;  %v6686_v38 = vrot.slane %v6672_v41, 1  ;;  %v6676_v11 = vld [vmem:[#allocation3 + $0x8] sm:$0xfc] }
 0x784   : > { %v6687_v26 = vrot.slane %v6674_v28, 1  ;;  %7377 = vmatmul.bf16.vlgmr.msra.gmra.mxu0 %v16531_v7  ;;  %7312 = vmatmul.bf16.vlgmr.msrb.gmra.mxu3 %v16542_v33  ;;  %8668 = vst.msk [vmem:[#allocation3 + $0x5] ss:$8 sm:$0x3] %vm15883_vm0, %v15347_v5  ;;  %v14404_v7 = vld [vmem:[#allocation15 + $0x1d4] sm:$0xf] }
 0x785   : > { %7400 = vmatpush.bf16.msrb.mxu2 %v12505_v18  ;;  %7408 = vmatpush.bf16.msrb.mxu3 %v12609_v22  ;;  %v6678_v5 = vld [vmem:[#allocation3 + $0x18] sm:$0x3]  ;;  %v12593_v3 = vor.u32 %v14404_v7, %v12590_v45  ;;  %v6698_v30 = vrot.slane %v6676_v11, 2  ;;  %v12574_v48 = vld [vmem:[#allocation15 + $0x1b8] sm:$0xf0]  ;;  %v7447_v28 = vld [vmem:[%s16959_s11] sm:$0xff]  ;;  %v12801_v7 = vor.u32 %v14457_v50, %v12800_v14 }
 0x786   : > { %v6688_v37 = vsel %vm1678_vm2, %v6686_v38, %v6687_v26  ;;  %7425 = vmatpush.bf16.msrb.mxu0 %v12641_v39  ;;  %v6699_v15 = vrot.slane %v6678_v5, 2  ;;  %v12577_v56 = vor.u32 %v14400_v32, %v12574_v48  ;;  %v12558_v53 = vld [vmem:[#allocation15 + $0x198] sm:$0xf0]  ;;  %v14430_v18 = vld [vmem:[#allocation15 + $0x2a4] sm:$0xf]  ;;  %s16970_s11 = sld [smem:[#allocation49_spill]] }
 0x787   : > { %v16553_v52 = vpack.c.bf16 %v6688_v37, %v6688_v37  ;;  %v12694_v22 = vld [vmem:[#allocation15 + $0x2a8] sm:$0xf0]  ;;  %v12686_v39 = vld [vmem:[#allocation15 + $0x298] sm:$0xf0]  ;;  %v14426_v26 = vld [vmem:[#allocation15 + $0x284] sm:$0xf] }
 0x788   : > { %v6700_v13 = vsel %vm1709_vm3, %v6698_v30, %v6699_v15  ;;  %v12689_v38 = vor.u32 %v14428_v20, %v12686_v39  ;;  %v7453_v11 = vld [vmem:[#allocation2 + $0x28] sm:$0x3]  ;;  %v12802_v45 = vld [vmem:[#allocation16 + $0x78] sm:$0xf0]  ;;  %v12792_v5 = vld [vmem:[#allocation16 + $0x60] sm:$0xf] }
 0x789   : > { %7338 = vmatmul.bf16.vlgmr.msrb.gmra.mxu1 %v16553_v52  ;;  %7401 = vmatpush.bf16.msrb.mxu2 %v12497_v61  ;;  %v6708_v21 = vpack.c.bf16 %v6700_v13, %v6700_v13  ;;  %v12858_v30 = vld [vmem:[#allocation16 + $0xe8] sm:$0xf0]  ;;  %v12784_v15 = vld [vmem:[#allocation16 + $0x50] sm:$0xf]  ;;  %v14452_v32 = vld [vmem:[#allocation16 + $0x54] sm:$0xf] }
 0x78a   : > { %7409 = vmatpush.bf16.msrb.mxu3 %v12601_v49  ;;  %7426 = vmatpush.bf16.msrb.mxu0 %v12633_v44  ;;  %v14456_v44 = vld [vmem:[#allocation16 + $0x74] sm:$0xf]  ;;  %v12786_v48 = vld [vmem:[#allocation16 + $0x58] sm:$0xf0]  ;;  %v12848_v13 = vld [vmem:[#allocation16 + $0xd0] sm:$0xf] }
 0x78b   : > { %7434 = vmatpush.bf16.msrb.mxu1 %v12737_v12  ;;  %v12789_v47 = vor.u32 %v14452_v32, %v12786_v48  ;;  %v12849_v1 = vor.u32 %v14469_v43, %v12848_v13  ;;  %v12816_v13 = vld [vmem:[#allocation16 + $0x90] sm:$0xf]  ;;  %v14460_v43 = vld [vmem:[#allocation16 + $0x94] sm:$0xf] }
 0x78d   : > { %7402 = vmatpush.bf16.msrb.mxu2 %v12489_v27  ;;  %v14455_v27 = vld [vmem:[#allocation16 + $0x64] sm:$0xf0] }
 0x78e   : > { %7410 = vmatpush.bf16.msrb.mxu3 %v12593_v3  ;;  %7427 = vmatpush.bf16.msrb.mxu0 %v12625_v54  ;;  %v14454_v3 = vld [vmem:[#allocation16 + $0x64] sm:$0xf]  ;;  %v12793_v2 = vor.u32 %v14455_v27, %v12792_v5  ;;  %v12794_v54 = vld [vmem:[#allocation16 + $0x68] sm:$0xf0]  ;;  %v14447_v5 = vld [vmem:[#allocation16 + $0x24] sm:$0xf0] }
 0x78f   : > { %7435 = vmatpush.bf16.msrb.mxu1 %v12729_v0  ;;  %v16573_v0 = vld [vmem:[%s16960_s2] sm:$0x3]  ;;  %v12797_v19 = vor.u32 %v14454_v3, %v12794_v54  ;;  %v14446_v27 = vld [vmem:[#allocation16 + $0x24] sm:$0xf]  ;;  %s1159_s2 = sand.u32 1, %s16969_s1  }
 0x790   : > { %7403 = vmatmul.bf16.vlgmr.msrb.gmra.mxu2 %v16535_v10  ;;  %v12705_v10 = vor.u32 %v14432_v51, %v12702_v24  ;;  %v6807_v51 = vperm.slane %v16573_v0, 0  ;;  %v12824_v54 = vld [vmem:[#allocation16 + $0xa0] sm:$0xf] }
 0x791   : > { %12738 = vmatpush.msk.msra.mxu2 %vm3644_vm4, %v7452_v57 }
 0x792   : > { %7411 = vmatpush.bf16.msrb.mxu3 %v12585_v36  ;;  %7428 = vmatpush.bf16.msrb.mxu0 %v12617_v60  ;;  %v14453_v36 = vld [vmem:[#allocation16 + $0x54] sm:$0xf0]  ;;  %v12861_v60 = vor.u32 %v14470_v59, %v12858_v30 }
 0x793   : > { %7477 = vmatpush.msra.mxu2 %v16485_v4  ;;  %7436 = vmatpush.bf16.msrb.mxu1 %v12721_v42  ;;  %v14396_v4 = vld [vmem:[#allocation15 + $0x194] sm:$0xf]  ;;  %v12785_v42 = vor.u32 %v14453_v36, %v12784_v15  ;;  %v14445_v15 = vld [vmem:[#allocation16 + $0x14] sm:$0xf0] }
 0x794   : > { %7364 = vmatmul.bf16.vlgmr.msra.gmra.mxu3 %v6708_v21  ;;  %v12561_v41 = vor.u32 %v14396_v4, %v12558_v53  ;;  %v14450_v4 = vld [vmem:[#allocation16 + $0x44] sm:$0xf]  ;;  %v14444_v36 = vld [vmem:[#allocation16 + $0x14] sm:$0xf]  ;;  %v12753_v48 = vor.u32 %v14445_v15, %v12752_v58 }
 0x795   : > { %7478 = vmatpush.msra.mxu2 %v16492_v63  ;;  %7429 = vmatmul.bf16.vlgmr.msrb.gmra.mxu0 %v16539_v46  ;;  %v12697_v63 = vor.u32 %v14430_v18, %v12694_v22  ;;  %v12553_v46 = vor.u32 %v14394_v9, %v12550_v23  ;;  %v12778_v22 = vld [vmem:[#allocation16 + $0x48] sm:$0xf0]  ;;  %v6808_v23 = vperm.slane %v16573_v0, 1  ;;  %v14463_v0 = vld [vmem:[#allocation16 + $0xa4] sm:$0xf0] }
 0x796   : > { %7412 = vmatpush.bf16.msrb.mxu3 %v12577_v56  ;;  %7703 = vmatpush.bf16.msra.mxu0 %v12801_v7  ;;  %v14468_v56 = vld [vmem:[#allocation16 + $0xd4] sm:$0xf]  ;;  %v12825_v30 = vor.u32 %v14463_v0, %v12824_v54 }
 0x797   : > { %7437 = vmatpush.bf16.msrb.mxu1 %v12713_v17 }
 0x799   : > { %7390 = vmatmul.bf16.vlgmr.msra.gmra.mxu1 %v16542_v33  ;;  %v12681_v33 = vor.u32 %v14426_v26, %v12678_v29  ;;  %v12842_v29 = vld [vmem:[#allocation16 + $0xc8] sm:$0xf0] }
 0x79a   : > { %7413 = vmatpush.bf16.msrb.mxu3 %v12569_v31  ;;  %7704 = vmatpush.bf16.msra.mxu0 %v12793_v2  ;;  %v12776_v31 = vld [vmem:[#allocation16 + $0x40] sm:$0xf]  ;;  %v12762_v2 = vld [vmem:[#allocation16 + $0x28] sm:$0xf0] }
 0x79b   : > { %7438 = vmatpush.bf16.msrb.mxu1 %v12705_v10  ;;  %v14451_v10 = vld [vmem:[#allocation16 + $0x44] sm:$0xf0] }
 0x79c   : > { %v12777_v18 = vor.u32 %v14451_v10, %v12776_v31  ;;  %v14442_v31 = vld [vmem:[#allocation16 + $0x4] sm:$0xf]  ;;  %v12746_v10 = vld [vmem:[#allocation16 + $0x8] sm:$0xf0] }
 0x79e   : > { %7414 = vmatpush.bf16.msrb.mxu3 %v12561_v41  ;;  %7705 = vmatpush.bf16.msra.mxu0 %v12785_v42 }
 0x79f   : > { %7439 = vmatpush.bf16.msrb.mxu1 %v12697_v63  ;;  %v12781_v63 = vor.u32 %v14450_v4, %v12778_v22 }
 0x7a0   : > { %12739 = vmatmul.msk.f32.vlgmr.msra.gmra.mxu2 %vm5768_vm6, %v7447_v28 }
 0x7a2   : > { %7415 = vmatpush.bf16.msrb.mxu3 %v12553_v46  ;;  %7706 = vmatpush.bf16.msra.mxu0 %v12777_v18  ;;  %v12840_v46 = vld [vmem:[#allocation16 + $0xc0] sm:$0xf] }
 0x7a3   : > { %7440 = vmatpush.bf16.msrb.mxu1 %v12689_v38  ;;  %v14466_v38 = vld [vmem:[#allocation16 + $0xc4] sm:$0xf] }
 0x7a4   : > { %v12845_v14 = vor.u32 %v14466_v38, %v12842_v29 }
 0x7a5   : > { %7416 = vmatmul.bf16.vlgmr.msrb.gmra.mxu3 %v16553_v52  ;;  %v12805_v52 = vor.u32 %v14456_v44, %v12802_v45  ;;  %v14448_v44 = vld [vmem:[#allocation16 + $0x34] sm:$0xf] }
 0x7a6   : > { %12740 = vmatpush.msk.msra.mxu3 %vm3644_vm4, %v7453_v11  ;;  %v12768_v11 = vld [vmem:[#allocation16 + $0x30] sm:$0xf] }
 0x7a7   : > { %7441 = vmatpush.bf16.msrb.mxu1 %v12681_v33  ;;  %7729 = vmatpush.bf16.msrb.mxu2 %v12805_v52  ;;  %v14449_v33 = vld [vmem:[#allocation16 + $0x34] sm:$0xf0]  ;;  %v12834_v52 = vld [vmem:[#allocation16 + $0xb8] sm:$0xf0] }
 0x7a8   : > { %7497 = vmatpush.msra.mxu3 %v16487_v34  ;;  %v12864_v34 = vld [vmem:[#allocation16 + $0xf0] sm:$0xf]  ;;  %v12769_v50 = vor.u32 %v14449_v33, %v12768_v11 }
 0x7a9   : > { %v12865_v6 = vor.u32 %v14473_v35, %v12864_v34  ;;  %v14465_v34 = vld [vmem:[#allocation16 + $0xb4] sm:$0xf0]  ;;  %v14464_v35 = vld [vmem:[#allocation16 + $0xb4] sm:$0xf] }
 0x7aa   : > { %7498 = vmatpush.msra.mxu3 %v16494_v8  ;;  %7442 = vmatmul.bf16.vlgmr.msrb.gmra.mxu1 %v6708_v21  ;;  %v12866_v8 = vld [vmem:[#allocation16 + $0xf8] sm:$0xf0] }
 0x7ab   : > { %v12869_v62 = vor.u32 %v14472_v25, %v12866_v8  ;;  %7716 = vmatpush.bf16.msra.mxu1 %v12865_v6  ;;  %7730 = vmatpush.bf16.msrb.mxu2 %v12797_v19  ;;  %v12850_v21 = vld [vmem:[#allocation16 + $0xd8] sm:$0xf0]  ;;  %v12837_v8 = vor.u32 %v14464_v35, %v12834_v52  ;;  %v12765_v19 = vor.u32 %v14446_v27, %v12762_v2 }
 0x7ac   : > { %v12853_v16 = vor.u32 %v14468_v56, %v12850_v21  ;;  %7707 = vmatpush.bf16.msra.mxu0 %v12769_v50 }
 0x7ad   : > { %7742 = vmatpush.bf16.msrb.mxu3 %v12869_v62  ;;  %v12760_v62 = vld [vmem:[#allocation16 + $0x20] sm:$0xf] }
 0x7ae   : > { %v12761_v3 = vor.u32 %v14447_v5, %v12760_v62  ;;  %v7537_v62 = vld [vmem:[%s16961_s25] sm:$0x3] }
 0x7af   : > { %7717 = vmatpush.bf16.msra.mxu1 %v12857_v55  ;;  %7731 = vmatpush.bf16.msrb.mxu2 %v12789_v47  ;;  %v14461_v47 = vld [vmem:[#allocation16 + $0x94] sm:$0xf0]  ;;  %v7539_v5 = vperm.slane %v7537_v62, 0  ;;  %v7540_v2 = vperm.slane %v7537_v62, 1  ;;  %v12990_v62 = vld [vmem:[#allocation18 + $0xd0] sm:$0xf] }
 0x7b0   : > { %7708 = vmatpush.bf16.msra.mxu0 %v12761_v3  ;;  %v12817_v18 = vor.u32 %v14461_v47, %v12816_v13  ;;  %v7778_v13 = vld [vmem:[%s16962_s7] sm:$0xf]  ;;  %s9847_s7 = scalar_lea.hbm %s16970_s11, %s15539_s0  ;;  %s15234_s0 = scalar_lea.hbm %s16970_s11, 2 }
 0x7b1   : > { %7743 = vmatpush.bf16.msrb.mxu3 %v12861_v60  ;;  %v12754_v60 = vld [vmem:[#allocation16 + $0x18] sm:$0xf0] }
 0x7b2   : > { %v12757_v21 = vor.u32 %v14444_v36, %v12754_v60 }
 0x7b3   : > { %7718 = vmatpush.bf16.msra.mxu1 %v12849_v1  ;;  %7732 = vmatpush.bf16.msrb.mxu2 %v12781_v63  ;;  %v12818_v1 = vld [vmem:[#allocation16 + $0x98] sm:$0xf0] }
 0x7b4   : > { %7709 = vmatpush.bf16.msra.mxu0 %v12753_v48  ;;  %v14521_v48 = vld [vmem:[#allocation18 + $0x174] sm:$0xf0] }
 0x7b5   : > { %12741 = vmatmul.msk.f32.vlgmr.msra.gmra.mxu3 %vm5768_vm6, %v7447_v28  ;;  %v14467_v28 = vld [vmem:[#allocation16 + $0xc4] sm:$0xf0] }
 0x7b6   : > { %7744 = vmatpush.bf16.msrb.mxu3 %v12853_v16  ;;  %v12841_v26 = vor.u32 %v14467_v28, %v12840_v46  ;;  %v12744_v16 = vld [vmem:[#allocation16] sm:$0xf]  ;;  %v14458_v46 = vld [vmem:[#allocation16 + $0x84] sm:$0xf] }
 0x7b8   : > { %7719 = vmatpush.bf16.msra.mxu1 %v12841_v26  ;;  %v12810_v26 = vld [vmem:[#allocation16 + $0x88] sm:$0xf0] }
 0x7ba   : > { %7745 = vmatpush.bf16.msrb.mxu3 %v12845_v14 }
 0x7be   : > { %7746 = vmatpush.bf16.msrb.mxu3 %v12837_v8 }
 0x7f1   : > { %v16570_v37 = vpop.f32.mrf.mxu0 }
 0x7f3   : > { %v7300_v61 = vpop.f32.mrf.mxu2 }
 0x7f4   : > { %v7301_v41 = vadd.f32 %v7300_v61, %v6807_v51  ;;  %v12770_v61 = vld [vmem:[#allocation16 + $0x38] sm:$0xf0]  ;;  %v14443_v51 = vld [vmem:[#allocation16 + $0x4] sm:$0xf0] }
 0x7f5   : > { %v12773_v45 = vor.u32 %v14448_v44, %v12770_v61  ;;  %v12745_v63 = vor.u32 %v14443_v51, %v12744_v16  ;;  %v13062_v51 = vld [vmem:[#allocation18 + $0x160] sm:$0xf] }
 0x7f7   : > { %7733 = vmatpush.bf16.msrb.mxu2 %v12773_v45  ;;  %7710 = vmatpush.bf16.msra.mxu0 %v12745_v63  ;;  %v13006_v63 = vld [vmem:[#allocation18 + $0xf0] sm:$0xf] }
 0x7f9   : > { %v7328_v49 = vpop.f32.mrf.mxu0 }
 0x7fb   : > { %v7302_v12 = vpop.f32.mrf.mxu2  ;;  %7734 = vmatpush.bf16.msrb.mxu2 %v12765_v19 }
 0x7fc   : > { %v12832_v12 = vld [vmem:[#allocation16 + $0xb0] sm:$0xf] }
 0x7fd   : > { %v12833_v25 = vor.u32 %v14465_v34, %v12832_v12 }
 0x7ff   : > { %7720 = vmatpush.bf16.msra.mxu1 %v12833_v25  ;;  %7735 = vmatpush.bf16.msrb.mxu2 %v12757_v21  ;;  %v14489_v21 = vld [vmem:[#allocation18 + $0x74] sm:$0xf0] }
 0x801   : > { %v16575_v57 = vpop.f32.mrf.mxu0 }
 0x802   : > { %v7379_v56 = vadd.f32 %v16575_v57, %v6808_v23  ;;  %v12749_v23 = vor.u32 %v14442_v31, %v12746_v10  ;;  %v12934_v10 = vld [vmem:[#allocation18 + $0x60] sm:$0xf] }
 0x803   : > { %v16577_v17 = vpop.f32.mrf.mxu2  ;;  %7721 = vmatpush.bf16.msra.mxu1 %v12825_v30 }
 0x804   : > { %7736 = vmatpush.bf16.msrb.mxu2 %v12749_v23  ;;  %v14517_v23 = vld [vmem:[#allocation18 + $0x154] sm:$0xf0] }
 0x806   : > { %v7339_v24 = vpop.f32.mrf.mxu1 }
 0x807   : > { %v7313_v53 = vpop.f32.mrf.mxu3  ;;  %7722 = vmatpush.bf16.msra.mxu1 %v12817_v18  ;;  %v14537_v18 = vld [vmem:[#allocation18 + $0x1f4] sm:$0xf0] }
 0x808   : > { %v7314_v20 = vadd.f32 %v7313_v53, %v7301_v41  ;;  %v12821_v41 = vor.u32 %v14460_v43, %v12818_v1  ;;  %v12879_v43 = vld [vmem:[%s16963_s22 + $0x8] sm:$0xf] }
 0x809   : > { %v7380_v9 = vpop.f32.mrf.mxu0 }
 0x80a   : > { %v7327_v7 = vadd.f32 %v16570_v37, %v7314_v20  ;;  %v14462_v37 = vld [vmem:[#allocation16 + $0xa4] sm:$0xf]  ;;  %v12808_v20 = vld [vmem:[#allocation16 + $0x80] sm:$0xf] }
 0x80b   : > { %v7354_v39 = vpop.f32.mrf.mxu2  ;;  %v12829_v32 = vor.u32 %v14462_v37, %v12826_v40 }
 0x80c   : > { %v7340_v55 = vadd.f32 %v7339_v24, %v7327_v7  ;;  %v14459_v39 = vld [vmem:[#allocation16 + $0x84] sm:$0xf0] }
 0x80d   : > { %7747 = vmatpush.bf16.msrb.mxu3 %v12829_v32  ;;  %v12809_v38 = vor.u32 %v14459_v39, %v12808_v20  ;;  %v13070_v32 = vld [vmem:[#allocation18 + $0x170] sm:$0xf] }
 0x80e   : > { %v7341_v49 = vpop.f32.mrf.mxu1  ;;  %v7353_v53 = vadd.f32 %v16577_v17, %v7340_v55  ;;  %v12813_v17 = vor.u32 %v14458_v46, %v12810_v26  ;;  %v13071_v1 = vor.u32 %v14521_v48, %v13070_v32  ;;  %v12874_v46 = vld [vmem:[%s16963_s22 + $0x4] sm:$0xf]  ;;  %v14535_v26 = vld [vmem:[#allocation18 + $0x1e4] sm:$0xf0]  ;;  %v12902_v32 = vld [vmem:[#allocation18 + $0x20] sm:$0xf] }
 0x80f   : > { %v7315_v6 = vpop.f32.mrf.mxu3  ;;  %7723 = vmatpush.bf16.msra.mxu1 %v12809_v38  ;;  %v13126_v38 = vld [vmem:[#allocation18 + $0x1e0] sm:$0xf]  ;;  %v14479_v48 = vld [vmem:[#allocation18 + $0x24] sm:$0xf0] }
 0x811   : > { %7748 = vmatpush.bf16.msrb.mxu3 %v12821_v41  ;;  %v14487_v41 = vld [vmem:[#allocation18 + $0x64] sm:$0xf0] }
 0x812   : > { %v7430_v59 = vpop.f32.mrf.mxu0 }
 0x813   : > { %v7404_v42 = vpop.f32.mrf.mxu2 }
 0x815   : > { %7749 = vmatpush.bf16.msrb.mxu3 %v12813_v17  ;;  %v12926_v17 = vld [vmem:[#allocation18 + $0x50] sm:$0xf] }
 0x816   : > { %v7391_v24 = vpop.f32.mrf.mxu1 }
 0x817   : > { %v7392_v4 = vadd.f32 %v7391_v24, %v7379_v56  ;;  %v7365_v22 = vpop.f32.mrf.mxu3  ;;  %v12942_v56 = vld [vmem:[#allocation18 + $0x70] sm:$0xf]  ;;  %v14519_v24 = vld [vmem:[#allocation18 + $0x164] sm:$0xf0] }
 0x818   : > { %v7366_v9 = vadd.f32 %v7365_v22, %v7353_v53  ;;  %v12943_v31 = vor.u32 %v14489_v21, %v12942_v56  ;;  %v13134_v53 = vld [vmem:[#allocation18 + $0x1f0] sm:$0xf]  ;;  %v14509_v56 = vld [vmem:[#allocation18 + $0x114] sm:$0xf0] }
 0x819   : > { %v7405_v57 = vadd.f32 %v7404_v42, %v7392_v4  ;;  %v13063_v4 = vor.u32 %v14519_v24, %v13062_v51  ;;  %v13135_v39 = vor.u32 %v14537_v18, %v13134_v53  ;;  %v12974_v21 = vld [vmem:[#allocation18 + $0xb0] sm:$0xf]  ;;  %v12903_v51 = vor.u32 %v14479_v48, %v12902_v32  ;;  %v13094_v24 = vld [vmem:[#allocation18 + $0x1a0] sm:$0xf]  ;;  %v14482_v32 = vld [vmem:[#allocation18 + $0x44] sm:$0xf] }
 0x81a   : > { %v7432_v28 = vpop.f32.mrf.mxu0  ;;  %v12920_v48 = vld [vmem:[#allocation18 + $0x48] sm:$0xf0] }
 0x81b   : > { %v7406_v29 = vpop.f32.mrf.mxu2  ;;  %v12935_v28 = vor.u32 %v14487_v41, %v12934_v10  ;;  %v12894_v10 = vld [vmem:[#allocation18 + $0x10] sm:$0xf]  ;;  %v13014_v41 = vld [vmem:[#allocation18 + $0x100] sm:$0xf] }
 0x81e   : > { %v7393_v11 = vpop.f32.mrf.mxu1 }
 0x81f   : > { %v7367_v33 = vpop.f32.mrf.mxu3  ;;  %v14485_v11 = vld [vmem:[#allocation18 + $0x54] sm:$0xf0] }
 0x823   : > { %v7480_v49 = vpop.f32.mrf.mxu2 }
 0x824   : > { %v7503_v14 = vpack.c.bf16 %v7480_v49, %v7480_v49  ;;  %v13046_v49 = vld [vmem:[#allocation18 + $0x140] sm:$0xf] }
 0x826   : > { %7711 = vmatmul.bf16.vlgmr.msra.gmra.mxu0 %v7503_v14  ;;  %7737 = vmatmul.bf16.vlgmr.msrb.gmra.mxu2 %v7503_v14  ;;  %v14515_v14 = vld [vmem:[#allocation18 + $0x144] sm:$0xf0] }
 0x827   : > { %v7443_v50 = vpop.f32.mrf.mxu1 }
 0x828   : > { %v7417_v44 = vpop.f32.mrf.mxu3 }
 0x829   : > { %v7418_v61 = vadd.f32 %v7417_v44, %v7405_v57  ;;  %v13054_v57 = vld [vmem:[#allocation18 + $0x150] sm:$0xf]  ;;  %v14503_v44 = vld [vmem:[#allocation18 + $0xe4] sm:$0xf0] }
 0x82a   : > { %v13055_v33 = vor.u32 %v14517_v23, %v13054_v57  ;;  %v14488_v23 = vld [vmem:[#allocation18 + $0x74] sm:$0xf] }
 0x82b   : > { %v7431_v12 = vadd.f32 %v7430_v59, %v7418_v61  ;;  %v13127_v61 = vor.u32 %v14535_v26, %v13126_v38  ;;  %v12886_v38 = vld [vmem:[#allocation18] sm:$0xf]  ;;  %v14475_v26 = vld [vmem:[#allocation18 + $0x4] sm:$0xf0] }
 0x82d   : > { %v7444_v7 = vadd.f32 %v7443_v50, %v7431_v12  ;;  %v12998_v50 = vld [vmem:[#allocation18 + $0xe0] sm:$0xf]  ;;  %v12927_v12 = vor.u32 %v14485_v11, %v12926_v17  ;;  %v13198_v11 = vld [vmem:[#allocation18 + $0x270] sm:$0xf] }
 0x82f   : > { %v7445_v45 = vpop.f32.mrf.mxu1 }
 0x830   : > { %v7419_v34 = vpop.f32.mrf.mxu3  ;;  %v14533_v45 = vld [vmem:[#allocation18 + $0x1d4] sm:$0xf0] }
 0x831   : > { %v12918_v34 = vld [vmem:[#allocation18 + $0x40] sm:$0xf] }
 0x838   : > { %v7500_v35 = vpop.f32.mrf.mxu3 }
 0x839   : > { %v7504_v52 = vpack.c.bf16 %v7500_v35, %v7500_v35  ;;  %v14483_v35 = vld [vmem:[#allocation18 + $0x44] sm:$0xf0] }
 0x83b   : > { %7724 = vmatmul.bf16.vlgmr.msra.gmra.mxu1 %v7504_v52  ;;  %7750 = vmatmul.bf16.vlgmr.msrb.gmra.mxu3 %v7504_v52  ;;  %v13047_v52 = vor.u32 %v14515_v14, %v13046_v49  ;;  %v12958_v49 = vld [vmem:[#allocation18 + $0x90] sm:$0xf] }
 0x8a3   : > { %v7712_v6 = vpop.f32.mrf.mxu0 }
 0x8a4   : > { %v7713_v3 = vadd.f32 %v7712_v6, %v7539_v5  ;;  %v12999_v6 = vor.u32 %v14503_v44, %v12998_v50  ;;  %v14501_v5 = vld [vmem:[#allocation18 + $0xd4] sm:$0xf0] }
 0x8a5   : > { %v14493_v50 = vld [vmem:[#allocation18 + $0x94] sm:$0xf0] }
 0x8a9   : > { %v7738_v25 = vpop.f32.mrf.mxu2 }
 0x8aa   : > { %v7739_v37 = vadd.f32 %v7738_v25, %v7540_v2  ;;  %v13038_v25 = vld [vmem:[#allocation18 + $0x130] sm:$0xf]  ;;  %v13110_v2 = vld [vmem:[#allocation18 + $0x1c0] sm:$0xf] }
 0x8ab   : > { %v7714_v8 = vpop.f32.mrf.mxu0 }
 0x8ac   : > { %v14513_v8 = vld [vmem:[#allocation18 + $0x134] sm:$0xf0] }
 0x8b1   : > { %v7740_v27 = vpop.f32.mrf.mxu2 }
 0x8b8   : > { %v7725_v54 = vpop.f32.mrf.mxu1 }
 0x8b9   : > { %v7726_v0 = vadd.f32 %v7725_v54, %v7713_v3  ;;  %v12919_v3 = vor.u32 %v14483_v35, %v12918_v34  ;;  %v14531_v54 = vld [vmem:[#allocation18 + $0x1c4] sm:$0xf0] }
 0x8ba   : > { %v14523_v34 = vld [vmem:[#allocation18 + $0x184] sm:$0xf0] }
 0x8bb   : > { %v7755_v19 = vadd.f32 %v7726_v0, %v7366_v9  ;;  %v14505_v9 = vld [vmem:[#allocation18 + $0xf4] sm:$0xf0]  ;;  %v12910_v0 = vld [vmem:[#allocation18 + $0x30] sm:$0xf] }
 0x8bc   : > { %v13007_v29 = vor.u32 %v14505_v9, %v13006_v63  ;;  %v14507_v63 = vld [vmem:[#allocation18 + $0x104] sm:$0xf0] }
 0x8bd   : > { %v7757_v40 = vmax.f32 %v7755_v19, 0.0  ;;  %v14481_v19 = vld [vmem:[#allocation18 + $0x34] sm:$0xf0]  ;;  %v14495_v9 = vld [vmem:[#allocation18 + $0xa4] sm:$0xf0] }
 0x8be   : > { %v7751_v58 = vpop.f32.mrf.mxu3 }
 0x8bf   : > { %v7766_v59 = vrot.slane %v7757_v40, 7  ;;  %v7752_v55 = vadd.f32 %v7751_v58, %v7739_v37  ;;  %v13039_v37 = vor.u32 %v14513_v8, %v13038_v25  ;;  %v12991_v40 = vor.u32 %v14501_v5, %v12990_v62  ;;  %v13030_v58 = vld [vmem:[#allocation18 + $0x120] sm:$0xf]  ;;  %v14551_v62 = vld [vmem:[#allocation18 + $0x264] sm:$0xf0] }
 0x8c0   : > { %v7727_v30 = vpop.f32.mrf.mxu1  ;;  %v12959_v25 = vor.u32 %v14493_v50, %v12958_v49  ;;  %v13190_v8 = vld [vmem:[#allocation18 + $0x260] sm:$0xf]  ;;  %v14541_v49 = vld [vmem:[#allocation18 + $0x214] sm:$0xf0] }
 0x8c1   : > { %7772 = vst [vmem:[#allocation2 + $0x10] sm:$0x1] %v7766_v59  ;;  %v7756_v15 = vadd.f32 %v7752_v55, %v7444_v7  ;;  %v13118_v7 = vld [vmem:[#allocation18 + $0x1d0] sm:$0xf]  ;;  %v12982_v55 = vld [vmem:[#allocation18 + $0xc0] sm:$0xf] }
 0x8c2   : > { %7770 = vst [vmem:[#allocation2] sm:$0xfe] %v7766_v59  ;;  %v13119_v27 = vor.u32 %v14533_v45, %v13118_v7  ;;  %v14511_v59 = vld [vmem:[#allocation18 + $0x124] sm:$0xf0]  ;;  %v12887_v7 = vor.u32 %v14475_v26, %v12886_v38  ;;  %v13078_v45 = vld [vmem:[#allocation18 + $0x180] sm:$0xf] }
 0x8c3   : > { %v7758_v36 = vmax.f32 %v7756_v15, 0.0  ;;  %v14499_v30 = vld [vmem:[#allocation18 + $0xc4] sm:$0xf0]  ;;  %v13111_v15 = vor.u32 %v14531_v54, %v13110_v2  ;;  %v12950_v5 = vld [vmem:[#allocation18 + $0x80] sm:$0xf]  ;;  %v13079_v2 = vor.u32 %v14523_v34, %v13078_v45 }
 0x8c4   : > { %v14484_v54 = vld [vmem:[#allocation18 + $0x54] sm:$0xf]  ;;  %v14543_v38 = vld [vmem:[#allocation18 + $0x224] sm:$0xf0]  ;;  %v12984_v45 = vld [vmem:[#allocation18 + $0xc8] sm:$0xf0] }
 0x8c5   : > { %v7767_v60 = vrot.slane %v7758_v36, 7  ;;  %v12911_v36 = vor.u32 %v14481_v19, %v12910_v0  ;;  %v12928_v0 = vld [vmem:[#allocation18 + $0x58] sm:$0xf0]  ;;  %v13262_v19 = vld [vmem:[#allocation18 + $0x2f0] sm:$0xf] }
 0x8c6   : > { %v7753_v42 = vpop.f32.mrf.mxu3 }
 0x8c7   : > { %7773 = vst [vmem:[#allocation2 + $0x18] sm:$0x1] %v7767_v60  ;;  %v14529_v42 = vld [vmem:[#allocation18 + $0x1b4] sm:$0xf0] }
 0x8c8   : > { %7771 = vst [vmem:[#allocation2 + $0x8] sm:$0xfe] %v7767_v60  ;;  %v7776_v47 = vld [vmem:[#allocation2 + $0x10] sm:$0x3] }
 0x8c9   : > { %12870 = vmatpush.msk.msrb.mxu0 %vm3644_vm4, %v7776_v47  ;;  %12880 = vmatpush.msk.msra.mxu2 %vm3644_vm4, %v7776_v47  ;;  %v7774_v16 = vld [vmem:[#allocation2] sm:$0xff]  ;;  %v13102_v60 = vld [vmem:[#allocation18 + $0x1b0] sm:$0xf] }
 0x8cb   : > { %7804 = vmatpush.msrb.mxu0 %v7774_v16  ;;  %7894 = vmatpush.msra.mxu2 %v7774_v16 }
 0x8cc   : > { %12871 = vmatmul.msk.f32.vlgmr.msrb.gmra.mxu0 %vm7779_vm7, %v7778_v13  ;;  %12881 = vmatmul.msk.f32.vlgmr.msra.gmra.mxu2 %vm7779_vm7, %v12879_v43 }
 0x8cd   : > { %12875 = vmatpush.msk.msra.mxu0 %vm3644_vm4, %v7776_v47  ;;  %8533 = vmatpush.bf16.msrb.mxu2 %v13071_v1  ;;  %v12983_v47 = vor.u32 %v14499_v30, %v12982_v55  ;;  %v14497_v1 = vld [vmem:[#allocation18 + $0xb4] sm:$0xf0]  ;;  %v13000_v55 = vld [vmem:[#allocation18 + $0xe8] sm:$0xf0] }
 0x8ce   : > { %v7777_v22 = vld [vmem:[#allocation2 + $0x18] sm:$0x3]  ;;  %v12975_v18 = vor.u32 %v14497_v1, %v12974_v21  ;;  %v14500_v21 = vld [vmem:[#allocation18 + $0xd4] sm:$0xf]  ;;  %v12992_v1 = vld [vmem:[#allocation18 + $0xd8] sm:$0xf0] }
 0x8cf   : > { %7849 = vmatpush.msra.mxu0 %v7774_v16  ;;  %12872 = vmatpush.msk.msrb.mxu1 %vm3644_vm4, %v7777_v22  ;;  %v7775_v20 = vld [vmem:[#allocation2 + $0x8] sm:$0xff]  ;;  %v13103_v16 = vor.u32 %v14529_v42, %v13102_v60  ;;  %v12931_v60 = vor.u32 %v14484_v54, %v12928_v0  ;;  %v12976_v54 = vld [vmem:[#allocation18 + $0xb8] sm:$0xf0] }
 0x8d0   : > { %12882 = vmatpush.msk.msra.mxu3 %vm3644_vm4, %v7777_v22 }
 0x8d1   : > { %8507 = vmatpush.bf16.msrb.mxu0 %v12943_v31  ;;  %7824 = vmatpush.msrb.mxu1 %v7775_v20  ;;  %v14527_v31 = vld [vmem:[#allocation18 + $0x1a4] sm:$0xf0] }
 0x8d2   : > { %8534 = vmatpush.bf16.msrb.mxu2 %v13063_v4  ;;  %7914 = vmatpush.msra.mxu3 %v7775_v20  ;;  %v14477_v4 = vld [vmem:[#allocation18 + $0x14] sm:$0xf0]  ;;  %v13095_v57 = vor.u32 %v14527_v31, %v13094_v24  ;;  %v12923_v24 = vor.u32 %v14482_v32, %v12920_v48  ;;  %v14492_v48 = vld [vmem:[#allocation18 + $0x94] sm:$0xf] }
 0x8d3   : > { %12873 = vmatmul.msk.f32.vlgmr.msrb.gmra.mxu1 %vm7779_vm7, %v7778_v13  ;;  %12883 = vmatmul.msk.f32.vlgmr.msra.gmra.mxu3 %vm7779_vm7, %v12879_v43  ;;  %v13031_v13 = vor.u32 %v14511_v59, %v13030_v58  ;;  %v13022_v43 = vld [vmem:[#allocation18 + $0x110] sm:$0xf]  ;;  %v13191_v58 = vor.u32 %v14551_v62, %v13190_v8  ;;  %v14502_v59 = vld [vmem:[#allocation18 + $0xe4] sm:$0xf]  ;;  %v12904_v8 = vld [vmem:[#allocation18 + $0x28] sm:$0xf0] }
 0x8d4   : > { %12877 = vmatpush.msk.msra.mxu1 %vm3644_vm4, %v7777_v22  ;;  %12876 = vmatmul.msk.f32.vlgmr.msra.gmra.mxu0 %vm7779_vm7, %v12874_v46  ;;  %v13023_v53 = vor.u32 %v14509_v56, %v13022_v43  ;;  %v12966_v22 = vld [vmem:[#allocation18 + $0xa0] sm:$0xf]  ;;  %v13003_v43 = vor.u32 %v14502_v59, %v13000_v55  ;;  %v14555_v59 = vld [vmem:[#allocation18 + $0x284] sm:$0xf0]  ;;  %v14494_v55 = vld [vmem:[#allocation18 + $0xa4] sm:$0xf] }
 0x8d5   : > { %8546 = vmatpush.bf16.msrb.mxu3 %v13135_v39  ;;  %8508 = vmatpush.bf16.msrb.mxu0 %v12935_v28  ;;  %v12895_v39 = vor.u32 %v14477_v4, %v12894_v10  ;;  %v14525_v28 = vld [vmem:[#allocation18 + $0x194] sm:$0xf0]  ;;  %v12967_v17 = vor.u32 %v14495_v9, %v12966_v22  ;;  %v14480_v10 = vld [vmem:[#allocation18 + $0x34] sm:$0xf]  ;;  %v12912_v4 = vld [vmem:[#allocation18 + $0x38] sm:$0xf0]  ;;  %v12995_v22 = vor.u32 %v14500_v21, %v12992_v1 }
 0x8d6   : > { %7869 = vmatpush.msra.mxu1 %v7775_v20  ;;  %8535 = vmatpush.bf16.msrb.mxu2 %v13055_v33  ;;  %v12944_v20 = vld [vmem:[#allocation18 + $0x78] sm:$0xf0]  ;;  %v14553_v33 = vld [vmem:[#allocation18 + $0x274] sm:$0xf0]  ;;  %v14520_v1 = vld [vmem:[#allocation18 + $0x174] sm:$0xf] }
 0x8d7   : > { %v12947_v14 = vor.u32 %v14488_v23, %v12944_v20  ;;  %v13199_v35 = vor.u32 %v14553_v33, %v13198_v11  ;;  %v14545_v9 = vld [vmem:[#allocation18 + $0x234] sm:$0xf0]  ;;  %v13238_v20 = vld [vmem:[#allocation18 + $0x2c0] sm:$0xf]  ;;  %v13150_v33 = vld [vmem:[#allocation18 + $0x210] sm:$0xf] }
 0x8d8   : > { %8520 = vmatpush.bf16.msrb.mxu1 %v13007_v29  ;;  %v13015_v29 = vor.u32 %v14507_v63, %v13014_v41  ;;  %v13166_v63 = vld [vmem:[#allocation18 + $0x230] sm:$0xf]  ;;  %v13151_v50 = vor.u32 %v14541_v49, %v13150_v33  ;;  %v13048_v33 = vld [vmem:[#allocation18 + $0x148] sm:$0xf0]  ;;  %v14550_v49 = vld [vmem:[#allocation18 + $0x264] sm:$0xf] }
 0x8d9   : > { %8547 = vmatpush.bf16.msrb.mxu3 %v13127_v61  ;;  %8509 = vmatpush.bf16.msrb.mxu0 %v12927_v12  ;;  %v14486_v61 = vld [vmem:[#allocation18 + $0x64] sm:$0xf]  ;;  %v12936_v12 = vld [vmem:[#allocation18 + $0x68] sm:$0xf0] }
 0x8da   : > { %8536 = vmatpush.bf16.msrb.mxu2 %v13047_v52  ;;  %v14504_v52 = vld [vmem:[#allocation18 + $0xf4] sm:$0xf] }
 0x8db   : > { %12878 = vmatmul.msk.f32.vlgmr.msra.gmra.mxu1 %vm7779_vm7, %v12874_v46  ;;  %v13086_v46 = vld [vmem:[#allocation18 + $0x190] sm:$0xf] }
 0x8dc   : > { %8521 = vmatpush.bf16.msrb.mxu1 %v12999_v6  ;;  %v13087_v44 = vor.u32 %v14525_v28, %v13086_v46  ;;  %v13008_v6 = vld [vmem:[#allocation18 + $0xf8] sm:$0xf0]  ;;  %v13167_v46 = vor.u32 %v14545_v9, %v13166_v63  ;;  %v13158_v28 = vld [vmem:[#allocation18 + $0x220] sm:$0xf]  ;;  %v14552_v9 = vld [vmem:[#allocation18 + $0x274] sm:$0xf] }
 0x8dd   : > { %8548 = vmatpush.bf16.msrb.mxu3 %v13119_v27  ;;  %8510 = vmatpush.bf16.msrb.mxu0 %v12919_v3  ;;  %v12939_v27 = vor.u32 %v14486_v61, %v12936_v12  ;;  %v14491_v3 = vld [vmem:[#allocation18 + $0x84] sm:$0xf0]  ;;  %v13159_v11 = vor.u32 %v14543_v38, %v13158_v28  ;;  %v14498_v12 = vld [vmem:[#allocation18 + $0xc4] sm:$0xf]  ;;  %v13056_v63 = vld [vmem:[#allocation18 + $0x158] sm:$0xf0] }
 0x8de   : > { %8537 = vmatpush.bf16.msrb.mxu2 %v13039_v37  ;;  %v14569_v37 = vld [vmem:[#allocation18 + $0x2f4] sm:$0xf0]  ;;  %v12951_v30 = vor.u32 %v14491_v3, %v12950_v5  ;;  %v14559_v61 = vld [vmem:[#allocation18 + $0x2a4] sm:$0xf0]  ;;  %v12987_v34 = vor.u32 %v14498_v12, %v12984_v45  ;;  %v13214_v5 = vld [vmem:[#allocation18 + $0x290] sm:$0xf] }
 0x8df   : > { %v13263_v42 = vor.u32 %v14569_v37, %v13262_v19  ;;  %v14496_v3 = vld [vmem:[#allocation18 + $0xb4] sm:$0xf]  ;;  %v12896_v37 = vld [vmem:[#allocation18 + $0x18] sm:$0xf0]  ;;  %v13128_v28 = vld [vmem:[#allocation18 + $0x1e8] sm:$0xf0] }
 0x8e0   : > { %8522 = vmatpush.bf16.msrb.mxu1 %v12991_v40  ;;  %v13011_v40 = vor.u32 %v14504_v52, %v13008_v6  ;;  %v14539_v52 = vld [vmem:[#allocation18 + $0x204] sm:$0xf0]  ;;  %v14478_v6 = vld [vmem:[#allocation18 + $0x24] sm:$0xf]  ;;  %v12979_v0 = vor.u32 %v14496_v3, %v12976_v54  ;;  %v14476_v19 = vld [vmem:[#allocation18 + $0x14] sm:$0xf] }
 0x8e1   : > { %8549 = vmatpush.bf16.msrb.mxu3 %v13111_v15  ;;  %8511 = vmatpush.bf16.msrb.mxu0 %v12911_v36  ;;  %v13182_v15 = vld [vmem:[#allocation18 + $0x250] sm:$0xf]  ;;  %v14549_v36 = vld [vmem:[#allocation18 + $0x254] sm:$0xf0]  ;;  %v12907_v62 = vor.u32 %v14478_v6, %v12904_v8  ;;  %v14568_v12 = vld [vmem:[#allocation18 + $0x2f4] sm:$0xf] }
 0x8e2   : > { %8538 = vmatpush.bf16.msrb.mxu2 %v13031_v13  ;;  %v13254_v13 = vld [vmem:[#allocation18 + $0x2e0] sm:$0xf]  ;;  %v13183_v56 = vor.u32 %v14549_v36, %v13182_v15  ;;  %v13040_v6 = vld [vmem:[#allocation18 + $0x138] sm:$0xf0]  ;;  %v14530_v3 = vld [vmem:[#allocation18 + $0x1c4] sm:$0xf] }
 0x8e3   : > { %v13184_v8 = vld [vmem:[#allocation18 + $0x258] sm:$0xf0] }
 0x8e4   : > { %8523 = vmatpush.bf16.msrb.mxu1 %v12983_v47  ;;  %v14567_v47 = vld [vmem:[#allocation18 + $0x2e4] sm:$0xf0] }
 0x8e5   : > { %8550 = vmatpush.bf16.msrb.mxu3 %v13103_v16  ;;  %8512 = vmatpush.bf16.msrb.mxu0 %v12903_v51  ;;  %v13174_v16 = vld [vmem:[#allocation18 + $0x240] sm:$0xf]  ;;  %v14547_v51 = vld [vmem:[#allocation18 + $0x244] sm:$0xf0]  ;;  %v13255_v31 = vor.u32 %v14567_v47, %v13254_v13  ;;  %v12960_v13 = vld [vmem:[#allocation18 + $0x98] sm:$0xf0] }
 0x8e6   : > { %8539 = vmatpush.bf16.msrb.mxu2 %v13023_v53  ;;  %v13246_v53 = vld [vmem:[#allocation18 + $0x2d0] sm:$0xf]  ;;  %v13175_v41 = vor.u32 %v14547_v51, %v13174_v16  ;;  %v12963_v47 = vor.u32 %v14492_v48, %v12960_v13  ;;  %v13072_v16 = vld [vmem:[#allocation18 + $0x178] sm:$0xf0]  ;;  %v14564_v13 = vld [vmem:[#allocation18 + $0x2d4] sm:$0xf] }
 0x8e7   : > { %v13104_v48 = vld [vmem:[#allocation18 + $0x1b8] sm:$0xf0] }
 0x8e8   : > { %8524 = vmatpush.bf16.msrb.mxu1 %v12975_v18  ;;  %v14565_v18 = vld [vmem:[#allocation18 + $0x2d4] sm:$0xf0] }
 0x8e9   : > { %8551 = vmatpush.bf16.msrb.mxu3 %v13095_v57  ;;  %8513 = vmatpush.bf16.msrb.mxu0 %v12895_v39  ;;  %v12915_v57 = vor.u32 %v14480_v10, %v12912_v4  ;;  %v13247_v23 = vor.u32 %v14565_v18, %v13246_v53  ;;  %v14563_v39 = vld [vmem:[#allocation18 + $0x2c4] sm:$0xf0]  ;;  %v14518_v10 = vld [vmem:[#allocation18 + $0x164] sm:$0xf]  ;;  %v13064_v4 = vld [vmem:[#allocation18 + $0x168] sm:$0xf0] }
 0x8ea   : > { %8540 = vmatpush.bf16.msrb.mxu2 %v13015_v29  ;;  %v13239_v26 = vor.u32 %v14563_v39, %v13238_v20  ;;  %v13230_v29 = vld [vmem:[#allocation18 + $0x2b0] sm:$0xf]  ;;  %v14536_v53 = vld [vmem:[#allocation18 + $0x1f4] sm:$0xf]  ;;  %v13136_v18 = vld [vmem:[#allocation18 + $0x1f8] sm:$0xf0] }
 0x8eb   : > { %v13139_v20 = vor.u32 %v14536_v53, %v13136_v18  ;;  %v14526_v53 = vld [vmem:[#allocation18 + $0x1a4] sm:$0xf]  ;;  %v13096_v18 = vld [vmem:[#allocation18 + $0x1a8] sm:$0xf0] }
 0x8ec   : > { %8525 = vmatpush.bf16.msrb.mxu1 %v12967_v17  ;;  %v14561_v17 = vld [vmem:[#allocation18 + $0x2b4] sm:$0xf0] }
 0x8ed   : > { %8552 = vmatpush.bf16.msrb.mxu3 %v13087_v44  ;;  %8514 = vmatpush.bf16.msrb.mxu0 %v12887_v7  ;;  %v13222_v44 = vld [vmem:[#allocation18 + $0x2a0] sm:$0xf] }
 0x8ee   : > { %8585 = vmatpush.bf16.msra.mxu2 %v12947_v14  ;;  %v13231_v14 = vor.u32 %v14561_v17, %v13230_v29  ;;  %v13223_v7 = vor.u32 %v14559_v61, %v13222_v44  ;;  %v14514_v17 = vld [vmem:[#allocation18 + $0x144] sm:$0xf]  ;;  %v14532_v44 = vld [vmem:[#allocation18 + $0x1d4] sm:$0xf]  ;;  %v13120_v61 = vld [vmem:[#allocation18 + $0x1d8] sm:$0xf0] }
 0x8f0   : > { %8526 = vmatpush.bf16.msrb.mxu1 %v12959_v25 }
 0x8f1   : > { %8559 = vmatpush.bf16.msra.mxu0 %v13199_v35  ;;  %8553 = vmatpush.bf16.msrb.mxu3 %v13079_v2  ;;  %v13142_v35 = vld [vmem:[#allocation18 + $0x200] sm:$0xf] }
 0x8f2   : > { %8586 = vmatpush.bf16.msra.mxu2 %v12939_v27  ;;  %v13143_v25 = vor.u32 %v14539_v52, %v13142_v35  ;;  %v14557_v27 = vld [vmem:[#allocation18 + $0x294] sm:$0xf0]  ;;  %v14512_v52 = vld [vmem:[#allocation18 + $0x134] sm:$0xf] }
 0x8f3   : > { %v13215_v2 = vor.u32 %v14557_v27, %v13214_v5  ;;  %v13123_v5 = vor.u32 %v14532_v44, %v13120_v61  ;;  %v14540_v61 = vld [vmem:[#allocation18 + $0x214] sm:$0xf] }
 0x8f4   : > { %8527 = vmatpush.bf16.msrb.mxu1 %v12951_v30  ;;  %v12968_v30 = vld [vmem:[#allocation18 + $0xa8] sm:$0xf0] }
 0x8f5   : > { %8598 = vmatpush.bf16.msra.mxu3 %v13011_v40  ;;  %8560 = vmatpush.bf16.msra.mxu0 %v13191_v58  ;;  %v12899_v40 = vor.u32 %v14476_v19, %v12896_v37  ;;  %v13206_v58 = vld [vmem:[#allocation18 + $0x280] sm:$0xf]  ;;  %v12971_v36 = vor.u32 %v14494_v55, %v12968_v30  ;;  %v14566_v19 = vld [vmem:[#allocation18 + $0x2e4] sm:$0xf]  ;;  %v13256_v37 = vld [vmem:[#allocation18 + $0x2e8] sm:$0xf0] }
 0x8f6   : > { %8587 = vmatpush.bf16.msra.mxu2 %v12931_v60  ;;  %v13207_v15 = vor.u32 %v14555_v59, %v13206_v58  ;;  %v14474_v60 = vld [vmem:[#allocation18 + $0x4] sm:$0xf]  ;;  %v13032_v55 = vld [vmem:[#allocation18 + $0x128] sm:$0xf0] }
 0x8f7   : > { %v14510_v59 = vld [vmem:[#allocation18 + $0x124] sm:$0xf] }
 0x8f8   : > { %8572 = vmatpush.bf16.msra.mxu1 %v13263_v42  ;;  %v12888_v42 = vld [vmem:[#allocation18 + $0x8] sm:$0xf0]  ;;  %v14546_v30 = vld [vmem:[#allocation18 + $0x244] sm:$0xf] }
 0x8f9   : > { %8599 = vmatpush.bf16.msra.mxu3 %v13003_v43  ;;  %8561 = vmatpush.bf16.msra.mxu0 %v13183_v56  ;;  %v12891_v32 = vor.u32 %v14474_v60, %v12888_v42  ;;  %v14490_v43 = vld [vmem:[#allocation18 + $0x84] sm:$0xf]  ;;  %v12952_v56 = vld [vmem:[#allocation18 + $0x88] sm:$0xf0]  ;;  %v13259_v42 = vor.u32 %v14566_v19, %v13256_v37  ;;  %v14556_v37 = vld [vmem:[#allocation18 + $0x294] sm:$0xf] }
 0x8fa   : > { %8588 = vmatpush.bf16.msra.mxu2 %v12923_v24  ;;  %v12955_v21 = vor.u32 %v14490_v43, %v12952_v56  ;;  %v13075_v24 = vor.u32 %v14520_v1, %v13072_v16  ;;  %v13035_v43 = vor.u32 %v14510_v59, %v13032_v55  ;;  %v13024_v16 = vld [vmem:[#allocation18 + $0x118] sm:$0xf0]  ;;  %v13310_v55 = vld [vmem:[%s16965_s26 + $0x50] sm:$0xf] }
 0x8fb   : > { %v13216_v59 = vld [vmem:[#allocation18 + $0x298] sm:$0xf0] }
 0x8fc   : > { %8573 = vmatpush.bf16.msra.mxu1 %v13255_v31 }
 0x8fd   : > { %8600 = vmatpush.bf16.msra.mxu3 %v12995_v22  ;;  %8562 = vmatpush.bf16.msra.mxu0 %v13175_v41  ;;  %v13067_v22 = vor.u32 %v14518_v10, %v13064_v4  ;;  %v14516_v41 = vld [vmem:[#allocation18 + $0x154] sm:$0xf] }
 0x8fe   : > { %8589 = vmatpush.bf16.msra.mxu2 %v12915_v57  ;;  %v13200_v57 = vld [vmem:[#allocation18 + $0x278] sm:$0xf0] }
 0x8ff   : > { %v13203_v29 = vor.u32 %v14552_v9, %v13200_v57  ;;  %v14506_v57 = vld [vmem:[#allocation18 + $0x104] sm:$0xf] }
 0x900   : > { %8574 = vmatpush.bf16.msra.mxu1 %v13247_v23 }
 0x901   : > { %8563 = vmatpush.bf16.msra.mxu0 %v13167_v46  ;;  %8601 = vmatpush.bf16.msra.mxu3 %v12987_v34  ;;  %v14534_v46 = vld [vmem:[#allocation18 + $0x1e4] sm:$0xf]  ;;  %v13051_v34 = vor.u32 %v14514_v17, %v13048_v33  ;;  %v14585_v17 = vld [vmem:[%s16965_s26 + $0x74] sm:$0xf0]  ;;  %v13088_v33 = vld [vmem:[#allocation18 + $0x198] sm:$0xf0] }
 0x902   : > { %8590 = vmatpush.bf16.msra.mxu2 %v12907_v62 }
 0x904   : > { %8575 = vmatpush.bf16.msra.mxu1 %v13239_v26  ;;  %v13059_v26 = vor.u32 %v14516_v41, %v13056_v63  ;;  %v13240_v41 = vld [vmem:[#allocation18 + $0x2c8] sm:$0xf0] }
 0x905   : > { %8564 = vmatpush.bf16.msra.mxu0 %v13159_v11  ;;  %8602 = vmatpush.bf16.msra.mxu3 %v12979_v0  ;;  %v13112_v0 = vld [vmem:[#allocation18 + $0x1c8] sm:$0xf0] }
 0x906   : > { %8591 = vmatpush.bf16.msra.mxu2 %v12899_v40  ;;  %v13043_v40 = vor.u32 %v14512_v52, %v13040_v6  ;;  %v13115_v60 = vor.u32 %v14530_v3, %v13112_v0  ;;  %v13318_v52 = vld [vmem:[%s16965_s26 + $0x60] sm:$0xf]  ;;  %v14583_v6 = vld [vmem:[%s16965_s26 + $0x64] sm:$0xf0] }
 0x907   : > { %v13319_v3 = vor.u32 %v14583_v6, %v13318_v52  ;;  %v14603_v52 = vld [vmem:[%s16965_s26 + $0x104] sm:$0xf0]  ;;  %v13518_v6 = vld [vmem:[%s16965_s26 + $0x1f0] sm:$0xf] }
 0x908   : > { %8576 = vmatpush.bf16.msra.mxu1 %v13231_v14  ;;  %v13192_v14 = vld [vmem:[#allocation18 + $0x268] sm:$0xf0] }
 0x909   : > { %8565 = vmatpush.bf16.msra.mxu0 %v13151_v50  ;;  %8603 = vmatpush.bf16.msra.mxu3 %v12971_v36  ;;  %v13131_v50 = vor.u32 %v14534_v46, %v13128_v28  ;;  %v13195_v35 = vor.u32 %v14550_v49, %v13192_v14  ;;  %v13160_v46 = vld [vmem:[#allocation18 + $0x228] sm:$0xf0]  ;;  %v13099_v28 = vor.u32 %v14526_v53, %v13096_v18  ;;  %v14560_v49 = vld [vmem:[#allocation18 + $0x2b4] sm:$0xf]  ;;  %v13232_v14 = vld [vmem:[#allocation18 + $0x2b8] sm:$0xf0] }
 0x90a   : > { %8592 = vmatpush.bf16.msra.mxu2 %v12891_v32  ;;  %v14528_v32 = vld [vmem:[#allocation18 + $0x1b4] sm:$0xf]  ;;  %v14611_v53 = vld [vmem:[%s16965_s26 + $0x144] sm:$0xf0] }
 0x90b   : > { %v13107_v10 = vor.u32 %v14528_v32, %v13104_v48  ;;  %v14615_v32 = vld [vmem:[%s16965_s26 + $0x164] sm:$0xf0] }
 0x90c   : > { %8577 = vmatpush.bf16.msra.mxu1 %v13223_v7  ;;  %v13264_v7 = vld [vmem:[#allocation18 + $0x2f8] sm:$0xf0] }
 0x90d   : > { %8566 = vmatpush.bf16.msra.mxu0 %v13143_v25  ;;  %8604 = vmatpush.bf16.msra.mxu3 %v12963_v47  ;;  %v14548_v25 = vld [vmem:[#allocation18 + $0x254] sm:$0xf]  ;;  %v13267_v27 = vor.u32 %v14568_v12, %v13264_v7  ;;  %v13248_v47 = vld [vmem:[#allocation18 + $0x2d8] sm:$0xf0] }
 0x90e   : > { %v13187_v58 = vor.u32 %v14548_v25, %v13184_v8  ;;  %v13251_v4 = vor.u32 %v14564_v13, %v13248_v47  ;;  %v13152_v12 = vld [vmem:[#allocation18 + $0x218] sm:$0xf0]  ;;  %v14558_v25 = vld [vmem:[#allocation18 + $0x2a4] sm:$0xf]  ;;  %v13224_v8 = vld [vmem:[#allocation18 + $0x2a8] sm:$0xf0] }
 0x90f   : > { %v13227_v19 = vor.u32 %v14558_v25, %v13224_v8  ;;  %v13302_v13 = vld [vmem:[%s16965_s26 + $0x40] sm:$0xf]  ;;  %v14579_v47 = vld [vmem:[%s16965_s26 + $0x44] sm:$0xf0]  ;;  %v14633_v25 = vld [vmem:[%s16965_s26 + $0x1f4] sm:$0xf0] }
 0x910   : > { %8578 = vmatpush.bf16.msra.mxu1 %v13215_v2  ;;  %v13382_v8 = vld [vmem:[%s16965_s26 + $0xe0] sm:$0xf] }
 0x911   : > { %8605 = vmatpush.bf16.msra.mxu3 %v12955_v21  ;;  %v14508_v21 = vld [vmem:[#allocation18 + $0x114] sm:$0xf] }
 0x912   : > { %v13027_v63 = vor.u32 %v14508_v21, %v13024_v16  ;;  %v13438_v21 = vld [vmem:[%s16965_s26 + $0x150] sm:$0xf]  ;;  %v14613_v16 = vld [vmem:[%s16965_s26 + $0x154] sm:$0xf0] }
 0x914   : > { %8579 = vmatpush.bf16.msra.mxu1 %v13207_v15  ;;  %v13176_v15 = vld [vmem:[#allocation18 + $0x248] sm:$0xf0] }
 0x915   : > { %v13179_v56 = vor.u32 %v14546_v30, %v13176_v15 }
 0x949   : > { %v7806_v51 = vpop.f32.mrf.mxu0 }
 0x94a   : > { %v16600_v31 = vpack.c.bf16 %v7806_v51, %v7806_v51  ;;  %v14544_v51 = vld [vmem:[#allocation18 + $0x234] sm:$0xf] }
 0x94c   : > { %8515 = vmatmul.bf16.vlgmr.msrb.gmra.mxu0 %v16600_v31 }
 0x94d   : > { %8611 = vmatpush.bf16.msrb.mxu0 %v13075_v24  ;;  %v13168_v24 = vld [vmem:[#allocation18 + $0x238] sm:$0xf0] }
 0x94e   : > { %v13171_v9 = vor.u32 %v14544_v51, %v13168_v24  ;;  %v13303_v51 = vor.u32 %v14579_v47, %v13302_v13  ;;  %v13294_v24 = vld [vmem:[%s16965_s26 + $0x30] sm:$0xf]  ;;  %v16677_v47 = vld [vmem:[%s16966_s18] sm:$0x3] }
 0x94f   : > { %v7896_v45 = vpop.f32.mrf.mxu2 }
 0x950   : > { %v7826_v23 = vpop.f32.mrf.mxu1  ;;  %v16611_v54 = vpack.c.bf16 %v7896_v45, %v7896_v45 }
 0x951   : > { %v16603_v39 = vpack.c.bf16 %v7826_v23, %v7826_v23  ;;  %v7851_v38 = vpop.f32.mrf.mxu0  ;;  %8612 = vmatpush.bf16.msrb.mxu0 %v13067_v22  ;;  %v14562_v22 = vld [vmem:[#allocation18 + $0x2c4] sm:$0xf]  ;;  %v13016_v23 = vld [vmem:[#allocation18 + $0x108] sm:$0xf0] }
 0x952   : > { %v16605_v11 = vpack.c.bf16 %v7851_v38, %v7851_v38  ;;  %v13243_v38 = vor.u32 %v14562_v22, %v13240_v41  ;;  %v13422_v22 = vld [vmem:[%s16965_s26 + $0x130] sm:$0xf]  ;;  %v14609_v41 = vld [vmem:[%s16965_s26 + $0x134] sm:$0xf0] }
 0x953   : > { %8528 = vmatmul.bf16.vlgmr.msrb.gmra.mxu1 %v16603_v39 }
 0x954   : > { %8624 = vmatpush.bf16.msrb.mxu1 %v13139_v20  ;;  %8541 = vmatmul.bf16.vlgmr.msrb.gmra.mxu2 %v16605_v11  ;;  %v14542_v20 = vld [vmem:[#allocation18 + $0x224] sm:$0xf] }
 0x955   : > { %8613 = vmatpush.bf16.msrb.mxu0 %v13059_v26  ;;  %8637 = vmatpush.bf16.msrb.mxu2 %v13203_v29  ;;  %v14524_v26 = vld [vmem:[#allocation18 + $0x194] sm:$0xf]  ;;  %v13326_v29 = vld [vmem:[%s16964_s28 + $0x70] sm:$0xf]  ;;  %v13163_v44 = vor.u32 %v14542_v20, %v13160_v46  ;;  %v14607_v20 = vld [vmem:[%s16965_s26 + $0x124] sm:$0xf0] }
 0x956   : > { %v7916_v36 = vpop.f32.mrf.mxu3  ;;  %v13327_v7 = vor.u32 %v14585_v17, %v13326_v29  ;;  %v13091_v45 = vor.u32 %v14524_v26, %v13088_v33  ;;  %v13278_v46 = vld [vmem:[%s16965_s26 + $0x10] sm:$0xf]  ;;  %v14605_v29 = vld [vmem:[%s16965_s26 + $0x114] sm:$0xf0]  ;;  %v13270_v33 = vld [vmem:[%s16965_s26] sm:$0xf] }
 0x957   : > { %v16615_v1 = vpack.c.bf16 %v7916_v36, %v7916_v36  ;;  %v13219_v36 = vor.u32 %v14556_v37, %v13216_v59  ;;  %v13406_v26 = vld [vmem:[%s16965_s26 + $0x110] sm:$0xf]  ;;  %v14631_v59 = vld [vmem:[%s16965_s26 + $0x1e4] sm:$0xf0]  ;;  %s1160_s28 = scalar_lea.vmem [#allocation22], %s1159_s2 }
 0x958   : > { %v7871_v62 = vpop.f32.mrf.mxu1  ;;  %8625 = vmatpush.bf16.msrb.mxu1 %v13131_v50  ;;  %v13019_v50 = vor.u32 %v14506_v57, %v13016_v23  ;;  %v14575_v57 = vld [vmem:[%s16965_s26 + $0x24] sm:$0xf0]  ;;  %s9849_s18 = sshll.u32 %s1160_s28, 4  ;;  %s9850_s18 = int_to_ptr.vmem [resolvable:$true] %s9849_s18 }
 0x959   : > { %v16609_v2 = vpack.c.bf16 %v7871_v62, %v7871_v62  ;;  %8614 = vmatpush.bf16.msrb.mxu0 %v13051_v34  ;;  %8638 = vmatpush.bf16.msrb.mxu2 %v13195_v35  ;;  %v13235_v34 = vor.u32 %v14560_v49, %v13232_v14  ;;  %v14522_v35 = vld [vmem:[#allocation18 + $0x184] sm:$0xf]  ;;  %v13155_v62 = vor.u32 %v14540_v61, %v13152_v12  ;;  %v14571_v49 = vld [vmem:[%s16965_s26 + $0x4] sm:$0xf0]  ;;  %v13390_v14 = vld [vmem:[%s16965_s26 + $0xf0] sm:$0xf] }
 0x95a   : > { %v13582_v61 = vld [vmem:[%s16965_s26 + $0x270] sm:$0xf]  ;;  %v14649_v12 = vld [vmem:[%s16965_s26 + $0x274] sm:$0xf0] }
 0x95b   : > { %8554 = vmatmul.bf16.vlgmr.msrb.gmra.mxu3 %v16609_v2 }
 0x95c   : > { %8626 = vmatpush.bf16.msrb.mxu1 %v13123_v5  ;;  %8650 = vmatpush.bf16.msrb.mxu3 %v13267_v27  ;;  %v14538_v5 = vld [vmem:[#allocation18 + $0x204] sm:$0xf]  ;;  %v13144_v27 = vld [vmem:[#allocation18 + $0x208] sm:$0xf0] }
 0x95d   : > { %8567 = vmatmul.bf16.vlgmr.msra.gmra.mxu0 %v16611_v54  ;;  %8639 = vmatpush.bf16.msrb.mxu2 %v13187_v58  ;;  %v14617_v58 = vld [vmem:[%s16965_s26 + $0x174] sm:$0xf0]  ;;  %v13147_v30 = vor.u32 %v14538_v5, %v13144_v27  ;;  %v13519_v5 = vor.u32 %v14633_v25, %v13518_v6  ;;  %v13478_v6 = vld [vmem:[%s16965_s26 + $0x1a0] sm:$0xf] }
 0x95e   : > { %8615 = vmatpush.bf16.msrb.mxu0 %v13043_v40  ;;  %v13454_v40 = vld [vmem:[%s16965_s26 + $0x170] sm:$0xf] }
 0x95f   : > { %v13455_v15 = vor.u32 %v14617_v58, %v13454_v40  ;;  %v14647_v40 = vld [vmem:[%s16965_s26 + $0x264] sm:$0xf0]  ;;  %v13510_v58 = vld [vmem:[%s16965_s26 + $0x1e0] sm:$0xf] }
 0x960   : > { %8627 = vmatpush.bf16.msrb.mxu1 %v13115_v60  ;;  %8651 = vmatpush.bf16.msrb.mxu3 %v13259_v42  ;;  %v14554_v60 = vld [vmem:[#allocation18 + $0x284] sm:$0xf]  ;;  %v13446_v42 = vld [vmem:[%s16965_s26 + $0x160] sm:$0xf] }
 0x961   : > { %8640 = vmatpush.bf16.msrb.mxu2 %v13179_v56 }
 0x962   : > { %8616 = vmatpush.bf16.msrb.mxu0 %v13035_v43  ;;  %v13447_v43 = vor.u32 %v14615_v32, %v13446_v42  ;;  %v13320_v42 = vld [vmem:[%s16965_s26 + $0x68] sm:$0xf0] }
 0x963   : > { %8580 = vmatmul.bf16.vlgmr.msra.gmra.mxu1 %v16615_v1 }
 0x964   : > { %8628 = vmatpush.bf16.msrb.mxu1 %v13107_v10  ;;  %8652 = vmatpush.bf16.msrb.mxu3 %v13251_v4  ;;  %v14577_v10 = vld [vmem:[%s16965_s26 + $0x34] sm:$0xf0]  ;;  %v13430_v4 = vld [vmem:[%s16965_s26 + $0x140] sm:$0xf] }
 0x965   : > { %8593 = vmatmul.bf16.vlgmr.msra.gmra.mxu2 %v16600_v31  ;;  %v13080_v31 = vld [vmem:[#allocation18 + $0x188] sm:$0xf0]  ;;  %v13295_v18 = vor.u32 %v14577_v10, %v13294_v24  ;;  %v14595_v24 = vld [vmem:[%s16965_s26 + $0xc4] sm:$0xf0]  ;;  %v14580_v10 = vld [vmem:[%s16965_s26 + $0x54] sm:$0xf] }
 0x966   : > { %8617 = vmatpush.bf16.msrb.mxu0 %v13027_v63  ;;  %8641 = vmatpush.bf16.msrb.mxu2 %v13171_v9  ;;  %v13083_v0 = vor.u32 %v14522_v35, %v13080_v31  ;;  %v13286_v63 = vld [vmem:[%s16965_s26 + $0x20] sm:$0xf]  ;;  %v13423_v9 = vor.u32 %v14609_v41, %v13422_v22 }
 0x967   : > { %v13287_v23 = vor.u32 %v14575_v57, %v13286_v63  ;;  %v13398_v35 = vld [vmem:[%s16965_s26 + $0x100] sm:$0xf]  ;;  %v14627_v63 = vld [vmem:[%s16965_s26 + $0x1c4] sm:$0xf0]  ;;  %v14593_v57 = vld [vmem:[%s16965_s26 + $0xb4] sm:$0xf0] }
 0x968   : > { %8629 = vmatpush.bf16.msrb.mxu1 %v13099_v28  ;;  %8653 = vmatpush.bf16.msrb.mxu3 %v13243_v38  ;;  %v14573_v38 = vld [vmem:[%s16965_s26 + $0x14] sm:$0xf0]  ;;  %v13399_v31 = vor.u32 %v14603_v52, %v13398_v35  ;;  %v13494_v22 = vld [vmem:[%s16965_s26 + $0x1c0] sm:$0xf]  ;;  %v14639_v52 = vld [vmem:[%s16965_s26 + $0x224] sm:$0xf0] }
 0x969   : > { %v13279_v17 = vor.u32 %v14573_v38, %v13278_v46  ;;  %v13304_v46 = vld [vmem:[%s16965_s26 + $0x48] sm:$0xf0]  ;;  %v8023_v38 = vperm.slane %v16677_v47, 0 }
 0x96a   : > { %8618 = vmatpush.bf16.msrb.mxu0 %v13019_v50  ;;  %8642 = vmatpush.bf16.msrb.mxu2 %v13163_v44  ;;  %v13407_v50 = vor.u32 %v14605_v29, %v13406_v26  ;;  %v14601_v44 = vld [vmem:[%s16965_s26 + $0xf4] sm:$0xf0] }
 0x96b   : > { %8606 = vmatmul.bf16.vlgmr.msra.gmra.mxu3 %v16603_v39  ;;  %v14581_v39 = vld [vmem:[%s16965_s26 + $0x54] sm:$0xf0] }
 0x96c   : > { %8630 = vmatpush.bf16.msrb.mxu1 %v13091_v45  ;;  %8654 = vmatpush.bf16.msrb.mxu3 %v13235_v34  ;;  %v13311_v48 = vor.u32 %v14581_v39, %v13310_v55  ;;  %v13391_v45 = vor.u32 %v14601_v44, %v13390_v14  ;;  %v13583_v34 = vor.u32 %v14649_v12, %v13582_v61  ;;  %v14641_v29 = vld [vmem:[%s16965_s26 + $0x234] sm:$0xf0]  ;;  %v13350_v14 = vld [vmem:[%s16965_s26 + $0xa0] sm:$0xf]  ;;  %v14576_v12 = vld [vmem:[%s16965_s26 + $0x34] sm:$0xf] }
 0x96d   : > { %8619 = vmatmul.bf16.vlgmr.msrb.gmra.mxu0 %v16605_v11  ;;  %v13208_v11 = vld [vmem:[#allocation18 + $0x288] sm:$0xf0]  ;;  %v13511_v39 = vor.u32 %v14631_v59, %v13510_v58 }
 0x96e   : > { %9284 = vmatpush.bf16.msra.mxu0 %v13327_v7  ;;  %8643 = vmatpush.bf16.msrb.mxu2 %v13155_v62  ;;  %v13211_v56 = vor.u32 %v14554_v60, %v13208_v11  ;;  %v13271_v7 = vor.u32 %v14571_v49, %v13270_v33  ;;  %v14599_v62 = vld [vmem:[%s16965_s26 + $0xe4] sm:$0xf0]  ;;  %v14645_v11 = vld [vmem:[%s16965_s26 + $0x254] sm:$0xf0] }
 0x96f   : > { %v13383_v27 = vor.u32 %v14599_v62, %v13382_v8  ;;  %v14625_v49 = vld [vmem:[%s16965_s26 + $0x1b4] sm:$0xf0]  ;;  %v13342_v62 = vld [vmem:[%s16965_s26 + $0x90] sm:$0xf] }
 0x970   : > { %8631 = vmatpush.bf16.msrb.mxu1 %v13083_v0  ;;  %8655 = vmatpush.bf16.msrb.mxu3 %v13227_v19  ;;  %v13328_v0 = vld [vmem:[%s16965_s26 + $0x78] sm:$0xf0]  ;;  %v13574_v19 = vld [vmem:[%s16965_s26 + $0x260] sm:$0xf] }
 0x971   : > { %v13575_v55 = vor.u32 %v14647_v40, %v13574_v19  ;;  %v14637_v19 = vld [vmem:[%s16965_s26 + $0x214] sm:$0xf0]  ;;  %v13470_v40 = vld [vmem:[%s16965_s26 + $0x190] sm:$0xf] }
 0x972   : > { %9285 = vmatpush.bf16.msra.mxu0 %v13319_v3  ;;  %8644 = vmatpush.bf16.msrb.mxu2 %v13147_v30  ;;  %v14584_v3 = vld [vmem:[%s16965_s26 + $0x74] sm:$0xf]  ;;  %v13374_v30 = vld [vmem:[%s16965_s26 + $0xd0] sm:$0xf] }
 0x973   : > { %8632 = vmatmul.bf16.vlgmr.msrb.gmra.mxu1 %v16609_v2  ;;  %v13439_v2 = vor.u32 %v14613_v16, %v13438_v21  ;;  %v13331_v37 = vor.u32 %v14584_v3, %v13328_v0  ;;  %v13366_v21 = vld [vmem:[%s16965_s26 + $0xc0] sm:$0xf]  ;;  %v13288_v3 = vld [vmem:[%s16965_s26 + $0x28] sm:$0xf0]  ;;  %v13534_v0 = vld [vmem:[%s16965_s26 + $0x210] sm:$0xf] }
 0x974   : > { %8656 = vmatpush.bf16.msrb.mxu3 %v13219_v36  ;;  %9297 = vmatpush.bf16.msra.mxu1 %v13391_v45  ;;  %v14582_v36 = vld [vmem:[%s16965_s26 + $0x64] sm:$0xf]  ;;  %v13542_v45 = vld [vmem:[%s16965_s26 + $0x220] sm:$0xf] }
 0x975   : > { %8645 = vmatmul.bf16.vlgmr.msrb.gmra.mxu2 %v16611_v54  ;;  %v13431_v54 = vor.u32 %v14611_v53, %v13430_v4  ;;  %v13323_v32 = vor.u32 %v14582_v36, %v13320_v42  ;;  %v13367_v4 = vor.u32 %v14595_v24, %v13366_v21  ;;  %v13543_v8 = vor.u32 %v14639_v52, %v13542_v45  ;;  %v14572_v36 = vld [vmem:[%s16965_s26 + $0x14] sm:$0xf]  ;;  %v13526_v42 = vld [vmem:[%s16965_s26 + $0x200] sm:$0xf] }
 0x976   : > { %9310 = vmatpush.bf16.msra.mxu2 %v13455_v15  ;;  %9286 = vmatpush.bf16.msra.mxu0 %v13311_v48  ;;  %v14597_v15 = vld [vmem:[%s16965_s26 + $0xd4] sm:$0xf0]  ;;  %v13566_v48 = vld [vmem:[%s16965_s26 + $0x250] sm:$0xf]  ;;  %v14596_v45 = vld [vmem:[%s16965_s26 + $0xd4] sm:$0xf] }
 0x977   : > { %v13375_v60 = vor.u32 %v14597_v15, %v13374_v30  ;;  %v13567_v13 = vor.u32 %v14645_v11, %v13566_v48  ;;  %v14587_v30 = vld [vmem:[%s16965_s26 + $0x84] sm:$0xf0]  ;;  %v13535_v15 = vor.u32 %v14637_v19, %v13534_v0  ;;  %v13646_v11 = vld [vmem:[%s16965_s26 + $0x2f0] sm:$0xf]  ;;  %v13368_v19 = vld [vmem:[%s16965_s26 + $0xc8] sm:$0xf0] }
 0x978   : > { %8657 = vmatpush.bf16.msrb.mxu3 %v13211_v56  ;;  %9298 = vmatpush.bf16.msra.mxu1 %v13383_v27  ;;  %v14629_v56 = vld [vmem:[%s16965_s26 + $0x1d4] sm:$0xf0]  ;;  %v14574_v27 = vld [vmem:[%s16965_s26 + $0x24] sm:$0xf]  ;;  %v14635_v48 = vld [vmem:[%s16965_s26 + $0x204] sm:$0xf0] }
 0x979   : > { %v13291_v59 = vor.u32 %v14574_v27, %v13288_v3  ;;  %v14594_v27 = vld [vmem:[%s16965_s26 + $0xc4] sm:$0xf] }
 0x97a   : > { %9311 = vmatpush.bf16.msra.mxu2 %v13447_v43  ;;  %9287 = vmatpush.bf16.msra.mxu0 %v13303_v51  ;;  %v13502_v43 = vld [vmem:[%s16965_s26 + $0x1d0] sm:$0xf] }
 0x97b   : > { %8658 = vmatmul.bf16.vlgmr.msrb.gmra.mxu3 %v16615_v1  ;;  %v13414_v1 = vld [vmem:[%s16965_s26 + $0x120] sm:$0xf]  ;;  %v13503_v51 = vor.u32 %v14629_v56, %v13502_v43 }
 0x97c   : > { %v13415_v28 = vor.u32 %v14607_v20, %v13414_v1  ;;  %9323 = vmatpush.bf16.msra.mxu3 %v13519_v5  ;;  %9299 = vmatpush.bf16.msra.mxu1 %v13375_v60  ;;  %v14578_v20 = vld [vmem:[%s16965_s26 + $0x44] sm:$0xf]  ;;  %v14589_v5 = vld [vmem:[%s16965_s26 + $0x94] sm:$0xf0]  ;;  %v13280_v60 = vld [vmem:[%s16965_s26 + $0x18] sm:$0xf0] }
 0x97d   : > { %v13307_v26 = vor.u32 %v14578_v20, %v13304_v46  ;;  %v13343_v58 = vor.u32 %v14589_v5, %v13342_v62  ;;  %v13283_v24 = vor.u32 %v14572_v36, %v13280_v60  ;;  %v14655_v36 = vld [vmem:[%s16965_s26 + $0x2a4] sm:$0xf0]  ;;  %v8024_v60 = vperm.slane %v16677_v47, 1 }
 0x97e   : > { %9312 = vmatpush.bf16.msra.mxu2 %v13439_v2  ;;  %9288 = vmatpush.bf16.msra.mxu0 %v13295_v18  ;;  %v13312_v2 = vld [vmem:[%s16965_s26 + $0x58] sm:$0xf0]  ;;  %v13558_v18 = vld [vmem:[%s16965_s26 + $0x240] sm:$0xf] }
 0x97f   : > { %v13315_v53 = vor.u32 %v14580_v10, %v13312_v2  ;;  %v13462_v10 = vld [vmem:[%s16965_s26 + $0x180] sm:$0xf]  ;;  %v14619_v2 = vld [vmem:[%s16965_s26 + $0x184] sm:$0xf0] }
 0x980   : > { %9324 = vmatpush.bf16.msra.mxu3 %v13511_v39  ;;  %9300 = vmatpush.bf16.msra.mxu1 %v13367_v4  ;;  %v13334_v39 = vld [vmem:[%s16965_s26 + $0x80] sm:$0xf]  ;;  %v14570_v4 = vld [vmem:[%s16965_s26 + $0x4] sm:$0xf] }
 0x982   : > { %9313 = vmatpush.bf16.msra.mxu2 %v13431_v54  ;;  %9289 = vmatpush.bf16.msra.mxu0 %v13287_v23  ;;  %v14643_v54 = vld [vmem:[%s16965_s26 + $0x244] sm:$0xf0]  ;;  %v13495_v23 = vor.u32 %v14627_v63, %v13494_v22  ;;  %v14600_v22 = vld [vmem:[%s16965_s26 + $0xf4] sm:$0xf] }
 0x983   : > { %v13559_v41 = vor.u32 %v14643_v54, %v13558_v18  ;;  %v13272_v54 = vld [vmem:[%s16965_s26 + $0x8] sm:$0xf0] }
 0x984   : > { %9325 = vmatpush.bf16.msra.mxu3 %v13503_v51  ;;  %v13335_v51 = vor.u32 %v14587_v30, %v13334_v39  ;;  %v13275_v20 = vor.u32 %v14570_v4, %v13272_v54  ;;  %v14592_v39 = vld [vmem:[%s16965_s26 + $0xb4] sm:$0xf]  ;;  %v13360_v30 = vld [vmem:[%s16965_s26 + $0xb8] sm:$0xf0] }
 0x986   : > { %9314 = vmatpush.bf16.msra.mxu2 %v13423_v9  ;;  %9290 = vmatpush.bf16.msra.mxu0 %v13279_v17  ;;  %v13358_v9 = vld [vmem:[%s16965_s26 + $0xb0] sm:$0xf] }
 0x987   : > { %v13359_v1 = vor.u32 %v14593_v57, %v13358_v9  ;;  %v13486_v17 = vld [vmem:[%s16965_s26 + $0x1b0] sm:$0xf]  ;;  %v13638_v9 = vld [vmem:[%s16965_s26 + $0x2e0] sm:$0xf]  ;;  %v14663_v57 = vld [vmem:[%s16965_s26 + $0x2e4] sm:$0xf0] }
 0x988   : > { %9326 = vmatpush.bf16.msra.mxu3 %v13495_v23  ;;  %v13487_v61 = vor.u32 %v14625_v49, %v13486_v17  ;;  %v13463_v23 = vor.u32 %v14619_v2, %v13462_v10  ;;  %v14661_v49 = vld [vmem:[%s16965_s26 + $0x2d4] sm:$0xf0] }
 0x989   : > { %9301 = vmatpush.bf16.msra.mxu1 %v13359_v1  ;;  %v14653_v10 = vld [vmem:[%s16965_s26 + $0x294] sm:$0xf0] }
 0x98a   : > { %9315 = vmatpush.bf16.msra.mxu2 %v13415_v28  ;;  %9291 = vmatpush.bf16.msra.mxu0 %v13271_v7  ;;  %v13550_v28 = vld [vmem:[%s16965_s26 + $0x230] sm:$0xf]  ;;  %v13296_v7 = vld [vmem:[%s16965_s26 + $0x38] sm:$0xf0] }
 0x98b   : > { %v13551_v33 = vor.u32 %v14641_v29, %v13550_v28  ;;  %v13299_v35 = vor.u32 %v14576_v12, %v13296_v7  ;;  %v13384_v29 = vld [vmem:[%s16965_s26 + $0xe8] sm:$0xf0] }
 0x98c   : > { %9327 = vmatpush.bf16.msra.mxu3 %v13487_v61 }
 0x98e   : > { %9316 = vmatpush.bf16.msra.mxu2 %v13407_v50  ;;  %9336 = vmatpush.bf16.msrb.mxu0 %v13583_v34  ;;  %v14591_v50 = vld [vmem:[%s16965_s26 + $0xa4] sm:$0xf0] }
 0x98f   : > { %v13351_v34 = vor.u32 %v14591_v50, %v13350_v14 }
 0x991   : > { %9302 = vmatpush.bf16.msra.mxu1 %v13351_v34  ;;  %v13376_v34 = vld [vmem:[%s16965_s26 + $0xd8] sm:$0xf0] }
 0x992   : > { %9317 = vmatpush.bf16.msra.mxu2 %v13399_v31  ;;  %9337 = vmatpush.bf16.msrb.mxu0 %v13575_v55  ;;  %v14623_v31 = vld [vmem:[%s16965_s26 + $0x1a4] sm:$0xf0]  ;;  %v14621_v55 = vld [vmem:[%s16965_s26 + $0x194] sm:$0xf0] }
 0x993   : > { %v13471_v21 = vor.u32 %v14621_v55, %v13470_v40  ;;  %v14657_v40 = vld [vmem:[%s16965_s26 + $0x2b4] sm:$0xf0] }
 0x995   : > { %9303 = vmatpush.bf16.msra.mxu1 %v13343_v58  ;;  %v13371_v58 = vor.u32 %v14594_v27, %v13368_v19 }
 0x996   : > { %9362 = vmatpush.bf16.msrb.mxu2 %v13331_v37  ;;  %9338 = vmatpush.bf16.msrb.mxu0 %v13567_v13  ;;  %v13479_v37 = vor.u32 %v14623_v31, %v13478_v6  ;;  %v14665_v13 = vld [vmem:[%s16965_s26 + $0x2f4] sm:$0xf0]  ;;  %v13379_v6 = vor.u32 %v14596_v45, %v13376_v34  ;;  %v13622_v31 = vld [vmem:[%s16965_s26 + $0x2c0] sm:$0xf]  ;;  %v14586_v45 = vld [vmem:[%s16965_s26 + $0x84] sm:$0xf] }
 0x997   : > { %v13647_v18 = vor.u32 %v14665_v13, %v13646_v11  ;;  %v14648_v13 = vld [vmem:[%s16965_s26 + $0x274] sm:$0xf]  ;;  %v13336_v34 = vld [vmem:[%s16965_s26 + $0x88] sm:$0xf0] }
 0x998   : > { %9328 = vmatpush.bf16.msra.mxu3 %v13479_v37  ;;  %v13614_v37 = vld [vmem:[%s16965_s26 + $0x2b0] sm:$0xf]  ;;  %v13339_v27 = vor.u32 %v14586_v45, %v13336_v34  ;;  %v14662_v34 = vld [vmem:[%s16965_s26 + $0x2e4] sm:$0xf] }
 0x999   : > { %9304 = vmatpush.bf16.msra.mxu1 %v13335_v51  ;;  %v13615_v55 = vor.u32 %v14657_v40, %v13614_v37  ;;  %v13584_v51 = vld [vmem:[%s16965_s26 + $0x278] sm:$0xf0]  ;;  %v14642_v37 = vld [vmem:[%s16965_s26 + $0x244] sm:$0xf]  ;;  %v13560_v40 = vld [vmem:[%s16965_s26 + $0x248] sm:$0xf0] }
 0x99a   : > { %9363 = vmatpush.bf16.msrb.mxu2 %v13323_v32  ;;  %9339 = vmatpush.bf16.msrb.mxu0 %v13559_v41  ;;  %v13392_v41 = vld [vmem:[%s16965_s26 + $0xf8] sm:$0xf0] }
 0x99b   : > { %v13395_v46 = vor.u32 %v14600_v22, %v13392_v41  ;;  %v14614_v41 = vld [vmem:[%s16965_s26 + $0x164] sm:$0xf] }
 0x99c   : > { %9329 = vmatpush.bf16.msra.mxu3 %v13471_v21  ;;  %v13352_v21 = vld [vmem:[%s16965_s26 + $0xa8] sm:$0xf0] }
 0x99d   : > { %9349 = vmatpush.bf16.msrb.mxu1 %v13647_v18 }
 0x99e   : > { %9364 = vmatpush.bf16.msrb.mxu2 %v13315_v53  ;;  %9340 = vmatpush.bf16.msrb.mxu0 %v13551_v33  ;;  %v13527_v53 = vor.u32 %v14635_v48, %v13526_v42  ;;  %v13630_v33 = vld [vmem:[%s16965_s26 + $0x2d0] sm:$0xf]  ;;  %v14616_v42 = vld [vmem:[%s16965_s26 + $0x174] sm:$0xf]  ;;  %v13363_v48 = vor.u32 %v14592_v39, %v13360_v30  ;;  %v13424_v30 = vld [vmem:[%s16965_s26 + $0x138] sm:$0xf0] }
 0x99f   : > { %v13631_v7 = vor.u32 %v14661_v49, %v13630_v33  ;;  %v14651_v33 = vld [vmem:[%s16965_s26 + $0x284] sm:$0xf0]  ;;  %v14608_v39 = vld [vmem:[%s16965_s26 + $0x134] sm:$0xf] }
 0x9a0   : > { %9330 = vmatpush.bf16.msra.mxu3 %v13463_v23  ;;  %v13587_v23 = vor.u32 %v14648_v13, %v13584_v51 }
 0x9a2   : > { %9365 = vmatpush.bf16.msrb.mxu2 %v13307_v26  ;;  %9341 = vmatpush.bf16.msrb.mxu0 %v13543_v8  ;;  %v14598_v26 = vld [vmem:[%s16965_s26 + $0xe4] sm:$0xf] }
 0x9a3   : > { %v13387_v61 = vor.u32 %v14598_v26, %v13384_v29  ;;  %v13576_v29 = vld [vmem:[%s16965_s26 + $0x268] sm:$0xf0] }
 0x9a4   : > { %9375 = vmatpush.bf16.msrb.mxu3 %v13395_v46  ;;  %v14588_v46 = vld [vmem:[%s16965_s26 + $0x94] sm:$0xf] }
 0x9a6   : > { %9366 = vmatpush.bf16.msrb.mxu2 %v13299_v35  ;;  %9342 = vmatpush.bf16.msrb.mxu0 %v13535_v15  ;;  %v13606_v15 = vld [vmem:[%s16965_s26 + $0x2a0] sm:$0xf] }
 0x9a8   : > { %9376 = vmatpush.bf16.msrb.mxu3 %v13387_v61 }
 0x9aa   : > { %9367 = vmatpush.bf16.msrb.mxu2 %v13291_v59  ;;  %9343 = vmatpush.bf16.msrb.mxu0 %v13527_v53 }
 0x9ac   : > { %9377 = vmatpush.bf16.msrb.mxu3 %v13379_v6  ;;  %v13568_v6 = vld [vmem:[%s16965_s26 + $0x258] sm:$0xf0] }
 0x9ae   : > { %9368 = vmatpush.bf16.msrb.mxu2 %v13283_v24  ;;  %v13598_v24 = vld [vmem:[%s16965_s26 + $0x290] sm:$0xf] }
 0x9b0   : > { %9378 = vmatpush.bf16.msrb.mxu3 %v13371_v58 }
 0x9b2   : > { %9369 = vmatpush.bf16.msrb.mxu2 %v13275_v20  ;;  %v13599_v20 = vor.u32 %v14653_v10, %v13598_v24  ;;  %v14638_v10 = vld [vmem:[%s16965_s26 + $0x224] sm:$0xf] }
 0x9b4   : > { %9379 = vmatpush.bf16.msrb.mxu3 %v13363_v48  ;;  %v13427_v48 = vor.u32 %v14608_v39, %v13424_v30  ;;  %v13488_v30 = vld [vmem:[%s16965_s26 + $0x1b8] sm:$0xf0] }
 0x9c9   : > { %v16682_v16 = vpop.f32.mrf.mxu0 }
 0x9ca   : > { %v8517_v32 = vadd.f32 %v16682_v16, %v8023_v38  ;;  %v13639_v38 = vor.u32 %v14663_v57, %v13638_v9 }
 0x9cc   : > { %9350 = vmatpush.bf16.msrb.mxu1 %v13639_v38 }
 0x9d0   : > { %v8529_v44 = vpop.f32.mrf.mxu1  ;;  %9351 = vmatpush.bf16.msrb.mxu1 %v13631_v7 }
 0x9d1   : > { %v8518_v25 = vpop.f32.mrf.mxu0  ;;  %v8530_v63 = vadd.f32 %v8529_v44, %v8517_v32  ;;  %v13456_v32 = vld [vmem:[%s16965_s26 + $0x178] sm:$0xf0] }
 0x9d2   : > { %v14659_v25 = vld [vmem:[%s16965_s26 + $0x2c4] sm:$0xf0] }
 0x9d3   : > { %v13623_v62 = vor.u32 %v14659_v25, %v13622_v31 }
 0x9d5   : > { %9352 = vmatpush.bf16.msrb.mxu1 %v13623_v62  ;;  %v14610_v62 = vld [vmem:[%s16965_s26 + $0x144] sm:$0xf] }
 0x9d7   : > { %v8542_v56 = vpop.f32.mrf.mxu2 }
 0x9d8   : > { %v8531_v43 = vpop.f32.mrf.mxu1  ;;  %v8543_v1 = vadd.f32 %v8542_v56, %v8530_v63  ;;  %v14590_v56 = vld [vmem:[%s16965_s26 + $0xa4] sm:$0xf]  ;;  %v13448_v63 = vld [vmem:[%s16965_s26 + $0x168] sm:$0xf0] }
 0x9d9   : > { %9353 = vmatpush.bf16.msrb.mxu1 %v13615_v55  ;;  %v13607_v43 = vor.u32 %v14655_v36, %v13606_v15  ;;  %v13355_v9 = vor.u32 %v14590_v56, %v13352_v21  ;;  %v13451_v49 = vor.u32 %v14614_v41, %v13448_v63  ;;  %v13563_v36 = vor.u32 %v14642_v37, %v13560_v40  ;;  %v14606_v56 = vld [vmem:[%s16965_s26 + $0x124] sm:$0xf]  ;;  %v13416_v21 = vld [vmem:[%s16965_s26 + $0x128] sm:$0xf0]  ;;  %v13536_v41 = vld [vmem:[%s16965_s26 + $0x218] sm:$0xf0] }
 0x9da   : > { %v8568_v16 = vpop.f32.mrf.mxu0 }
 0x9db   : > { %9380 = vmatpush.bf16.msrb.mxu3 %v13355_v9  ;;  %v14602_v9 = vld [vmem:[%s16965_s26 + $0x104] sm:$0xf] }
 0x9dd   : > { %9354 = vmatpush.bf16.msrb.mxu1 %v13607_v43 }
 0x9de   : > { %v8555_v28 = vpop.f32.mrf.mxu3 }
 0x9df   : > { %v8556_v17 = vadd.f32 %v8555_v28, %v8543_v1  ;;  %v8544_v14 = vpop.f32.mrf.mxu2  ;;  %v14646_v1 = vld [vmem:[%s16965_s26 + $0x264] sm:$0xf]  ;;  %v13344_v28 = vld [vmem:[%s16965_s26 + $0x98] sm:$0xf0] }
 0x9e0   : > { %v8581_v50 = vpop.f32.mrf.mxu1  ;;  %v14612_v14 = vld [vmem:[%s16965_s26 + $0x154] sm:$0xf] }
 0x9e1   : > { %v8569_v44 = vadd.f32 %v8568_v16, %v8556_v17  ;;  %v13459_v16 = vor.u32 %v14616_v42, %v13456_v32  ;;  %v13590_v17 = vld [vmem:[%s16965_s26 + $0x280] sm:$0xf]  ;;  %9355 = vmatpush.bf16.msrb.mxu1 %v13599_v20  ;;  %v14640_v42 = vld [vmem:[%s16965_s26 + $0x234] sm:$0xf]  ;;  %v13552_v32 = vld [vmem:[%s16965_s26 + $0x238] sm:$0xf0] }
 0x9e2   : > { %v8570_v12 = vpop.f32.mrf.mxu0  ;;  %v13591_v7 = vor.u32 %v14651_v33, %v13590_v17  ;;  %v13555_v51 = vor.u32 %v14640_v42, %v13552_v32  ;;  %v14634_v20 = vld [vmem:[%s16965_s26 + $0x204] sm:$0xf] }
 0x9e3   : > { %v8582_v35 = vadd.f32 %v8581_v50, %v8569_v44  ;;  %v13440_v50 = vld [vmem:[%s16965_s26 + $0x158] sm:$0xf0]  ;;  %v13347_v44 = vor.u32 %v14588_v46, %v13344_v28  ;;  %v13579_v12 = vor.u32 %v14646_v1, %v13576_v29  ;;  %v13528_v46 = vld [vmem:[%s16965_s26 + $0x208] sm:$0xf0]  ;;  %v14664_v28 = vld [vmem:[%s16965_s26 + $0x2f4] sm:$0xf] }
 0x9e4   : > { %v13520_v1 = vld [vmem:[%s16965_s26 + $0x1f8] sm:$0xf0] }
 0x9e5   : > { %v8663_v52 = vmax.f32 %v8582_v35, 0.0  ;;  %9381 = vmatpush.bf16.msrb.mxu3 %v13347_v44  ;;  %9356 = vmatpush.bf16.msrb.mxu1 %v13591_v7  ;;  %v14630_v44 = vld [vmem:[%s16965_s26 + $0x1e4] sm:$0xf] }
 0x9e6   : > { %v8557_v8 = vpop.f32.mrf.mxu3 }
 0x9e7   : > { %v8672_v5 = vrot.slane %v8663_v52, 7  ;;  %v14644_v52 = vld [vmem:[%s16965_s26 + $0x254] sm:$0xf]  ;;  %v13443_v8 = vor.u32 %v14612_v14, %v13440_v50 }
 0x9e8   : > { %v8583_v3 = vpop.f32.mrf.mxu1  ;;  %v8594_v0 = vpop.f32.mrf.mxu2 }
 0x9e9   : > { %8676 = vst [vmem:[#allocation3] sm:$0x1e] %v8672_v5  ;;  %v8595_v18 = vadd.f32 %v8594_v0, %v8024_v60  ;;  %v13432_v5 = vld [vmem:[%s16965_s26 + $0x148] sm:$0xf0]  ;;  %v13571_v3 = vor.u32 %v14644_v52, %v13568_v6  ;;  %9382 = vmatpush.bf16.msrb.mxu3 %v13339_v27  ;;  %v9443_v52 = vld [vmem:[#allocation2 + $0x10] sm:$0x3] }
 0x9ea   : > { %v8620_v59 = vpop.f32.mrf.mxu0  ;;  %v13435_v58 = vor.u32 %v14610_v62, %v13432_v5  ;;  %v14660_v5 = vld [vmem:[%s16965_s26 + $0x2d4] sm:$0xf]  ;;  %v13632_v27 = vld [vmem:[%s16965_s26 + $0x2d8] sm:$0xf0] }
 0x9eb   : > { %v13635_v37 = vor.u32 %v14660_v5, %v13632_v27  ;;  %v13770_v27 = vld [vmem:[#allocation19 + $0xe0] sm:$0xf] }
 0x9ee   : > { %v8607_v11 = vpop.f32.mrf.mxu3 }
 0x9ef   : > { %v8608_v38 = vadd.f32 %v8607_v11, %v8595_v18 }
 0x9f0   : > { %v8596_v2 = vpop.f32.mrf.mxu2  ;;  %v8633_v4 = vpop.f32.mrf.mxu1  ;;  %v8678_v47 = vld [vmem:[#allocation3] sm:$0xf] }
 0x9f1   : > { %v8680_v53 = vld [vmem:[#allocation3] sm:$0x1e]  ;;  %v16758_v54 = vpack.c.bf16 %v8678_v47, %v8678_v47  ;;  %v8621_v35 = vadd.f32 %v8620_v59, %v8608_v38  ;;  %v13544_v2 = vld [vmem:[%s16965_s26 + $0x228] sm:$0xf0]  ;;  %v13648_v38 = vld [vmem:[%s16965_s26 + $0x2f8] sm:$0xf0] }
 0x9f2   : > { %v8686_v22 = vrot.slane %v8680_v53, 1  ;;  %v8622_v57 = vpop.f32.mrf.mxu0  ;;  %v8682_v0 = vld [vmem:[#allocation3] sm:$0x3c]  ;;  %v13547_v18 = vor.u32 %v14638_v10, %v13544_v2  ;;  %v13651_v7 = vor.u32 %v14664_v28, %v13648_v38  ;;  %v9440_v10 = vld [vmem:[%s16967_s10] sm:$0xf]  ;;  %s9851_s10 = sshll.u32 %s9847_s7, 4  ;;  %s9852_s10 = int_to_ptr.hbm [resolvable:$true] %s9851_s10 }
 0x9f3   : > { %9292 = vmatmul.bf16.vlgmr.msra.gmra.mxu0 %v16758_v54  ;;  %v8634_v19 = vadd.f32 %v8633_v4, %v8621_v35  ;;  %v8692_v55 = vrot.slane %v8682_v0, 2  ;;  %v13419_v4 = vor.u32 %v14606_v56, %v13416_v21  ;;  %v14604_v47 = vld [vmem:[%s16965_s26 + $0x114] sm:$0xf]  ;;  %v13400_v57 = vld [vmem:[%s16965_s26 + $0x108] sm:$0xf0]  ;;  %s15228_s3 = sshra.s32 %s9852_s10, 4  ;;  %s15229_s3 = int_to_ptr.hbm [resolvable:$true] %s15228_s3 }
 0x9f4   : > { %v16766_v26 = vpack.c.bf16 %v8686_v22, %v8686_v22  ;;  %9388 = vmatpush.bf16.msra.mxu0 %v13459_v16  ;;  %v13408_v16 = vld [vmem:[%s16965_s26 + $0x118] sm:$0xf0]  ;;  %v14636_v22 = vld [vmem:[%s16965_s26 + $0x214] sm:$0xf]  ;;  %v13403_v17 = vor.u32 %v14602_v9, %v13400_v57  ;;  %v13640_v35 = vld [vmem:[%s16965_s26 + $0x2e8] sm:$0xf0]  ;;  %p15235_p7 = scmp.lt.s32.totalorder %s15229_s3, %s16970_s11 }
 0x9f5   : > { %v16786_v43 = vpack.c.bf16 %v8692_v55, %v8692_v55  ;;  %v13411_v63 = vor.u32 %v14604_v47, %v13408_v16  ;;  %v13643_v62 = vor.u32 %v14662_v34, %v13640_v35  ;;  %v14626_v0 = vld [vmem:[%s16965_s26 + $0x1c4] sm:$0xf]  ;;  %v13608_v56 = vld [vmem:[%s16965_s26 + $0x2a8] sm:$0xf0]  ;;  %v13600_v47 = vld [vmem:[%s16965_s26 + $0x298] sm:$0xf0] }
 0x9f6   : > { %9318 = vmatmul.bf16.vlgmr.msra.gmra.mxu2 %v16766_v26  ;;  %v8609_v61 = vpop.f32.mrf.mxu3  ;;  %v13714_v28 = vld [vmem:[#allocation19 + $0x70] sm:$0xf]  ;;  %v14681_v38 = vld [vmem:[#allocation19 + $0x74] sm:$0xf0]  ;;  %v13780_v34 = vld [vmem:[#allocation19 + $0xf8] sm:$0xf0] }
 0x9f7   : > { %9414 = vmatpush.bf16.msra.mxu2 %v13587_v23  ;;  %v14632_v23 = vld [vmem:[%s16965_s26 + $0x1f4] sm:$0xf]  ;;  %v13512_v61 = vld [vmem:[%s16965_s26 + $0x1e8] sm:$0xf0]  ;;  %v13706_v35 = vld [vmem:[#allocation19 + $0x60] sm:$0xf] }
 0x9f8   : > { %9389 = vmatpush.bf16.msra.mxu0 %v13451_v49  ;;  %v8635_v31 = vpop.f32.mrf.mxu1  ;;  %v8646_v25 = vpop.f32.mrf.mxu2  ;;  %v13523_v33 = vor.u32 %v14632_v23, %v13520_v1  ;;  %v13515_v6 = vor.u32 %v14630_v44, %v13512_v61  ;;  %v9444_v23 = vld [vmem:[#allocation2 + $0x18] sm:$0x3]  ;;  %v9442_v1 = vld [vmem:[#allocation2 + $0x8] sm:$0xff]  ;;  %v13778_v61 = vld [vmem:[#allocation19 + $0xf0] sm:$0xf]  ;;  %s15230_s4 = scalar_lea.hbm %s15229_s3, 1 }
 0x9f9   : > { %v8647_v59 = vadd.f32 %v8646_v25, %v8634_v19  ;;  %v14628_v31 = vld [vmem:[%s16965_s26 + $0x1d4] sm:$0xf]  ;;  %v13504_v25 = vld [vmem:[%s16965_s26 + $0x1d8] sm:$0xf0]  ;;  %v13496_v19 = vld [vmem:[%s16965_s26 + $0x1c8] sm:$0xf0]  ;;  %p15231_p10 = scmp.ne.s32.totalorder %s15229_s3, %s15230_s4  ;;  %p15236_p8 = scmp.lt.s32.totalorder %s15234_s0, %s15230_s4 }
 0x9fa   : > { %v13499_v55 = vor.u32 %v14626_v0, %v13496_v19  ;;  %v14694_v0 = vld [vmem:[#allocation19 + $0xe4] sm:$0xf] }
 0x9fb   : > { %9415 = vmatpush.bf16.msra.mxu2 %v13579_v12  ;;  %v13531_v12 = vor.u32 %v14634_v20, %v13528_v46  ;;  %p15232_p12 = pnand %p15231_p10, %p15556_p5  ;;  %p15237_p11 = por %p15236_p8, %p15235_p7 }
 0x9fc   : > { %9390 = vmatpush.bf16.msra.mxu0 %v13443_v8  ;;  %v9441_v8 = vld [vmem:[#allocation2] sm:$0xff] }
 0x9fd   : > { %p15233_p0 = pneg %p15232_p12 }
 0x9fe   : > { %v8659_v15 = vpop.f32.mrf.mxu3 }
 0x9ff   : > { %9416 = vmatpush.bf16.msra.mxu2 %v13571_v3  ;;  %v8660_v60 = vadd.f32 %v8659_v15, %v8647_v59  ;;  %v13507_v3 = vor.u32 %v14628_v31, %v13504_v25  ;;  %v13624_v59 = vld [vmem:[%s16965_s26 + $0x2c8] sm:$0xf0]  ;;  %v14678_v25 = vld [vmem:[#allocation19 + $0x64] sm:$0xf]  ;;  %p15238_p13 = pnand %p15237_p11, %p15233_p0 }
 0xa00   : > { %9391 = vmatpush.bf16.msra.mxu0 %v13435_v58  ;;  %v8648_v11 = vpop.f32.mrf.mxu2  ;;  %v14658_v58 = vld [vmem:[%s16965_s26 + $0x2c4] sm:$0xf] }
 0xa01   : > { %v8664_v13 = vmax.f32 %v8660_v60, 0.0  ;;  %v13627_v15 = vor.u32 %v14658_v58, %v13624_v59  ;;  %v13616_v60 = vld [vmem:[%s16965_s26 + $0x2b8] sm:$0xf0]  ;;  %v13480_v11 = vld [vmem:[%s16965_s26 + $0x1a8] sm:$0xf0] }
 0xa02   : > { %v14677_v58 = vld [vmem:[#allocation19 + $0x54] sm:$0xf0] }
 0xa03   : > { %9417 = vmatpush.bf16.msra.mxu2 %v13563_v36  ;;  %v8673_v24 = vrot.slane %v8664_v13, 7  ;;  %9344 = vmatmul.bf16.vlgmr.msrb.gmra.mxu0 %v16786_v43  ;;  %v14656_v36 = vld [vmem:[%s16965_s26 + $0x2b4] sm:$0xf] }
 0xa04   : > { %9392 = vmatpush.bf16.msra.mxu0 %v13427_v48  ;;  %v14622_v48 = vld [vmem:[%s16965_s26 + $0x1a4] sm:$0xf]  ;;  %v13619_v13 = vor.u32 %v14656_v36, %v13616_v60 }
 0xa05   : > { %8677 = vst [vmem:[#allocation3 + $0x8] sm:$0x1e] %v8673_v24  ;;  %v13483_v21 = vor.u32 %v14622_v48, %v13480_v11  ;;  %v13472_v24 = vld [vmem:[%s16965_s26 + $0x198] sm:$0xf0] }
 0xa06   : > { %9370 = vmatmul.bf16.vlgmr.msrb.gmra.mxu2 %v16758_v54  ;;  %v8661_v53 = vpop.f32.mrf.mxu3  ;;  %v13539_v54 = vor.u32 %v14636_v22, %v13536_v41  ;;  %v14650_v41 = vld [vmem:[%s16965_s26 + $0x284] sm:$0xf]  ;;  %v13764_v48 = vld [vmem:[#allocation19 + $0xd8] sm:$0xf0] }
 0xa07   : > { %9418 = vmatpush.bf16.msra.mxu2 %v13555_v51  ;;  %v14620_v51 = vld [vmem:[%s16965_s26 + $0x194] sm:$0xf]  ;;  %v14618_v53 = vld [vmem:[%s16965_s26 + $0x184] sm:$0xf] }
 0xa08   : > { %9393 = vmatpush.bf16.msra.mxu0 %v13419_v4  ;;  %v14652_v4 = vld [vmem:[%s16965_s26 + $0x294] sm:$0xf]  ;;  %v13475_v16 = vor.u32 %v14620_v51, %v13472_v24  ;;  %v13692_v24 = vld [vmem:[#allocation19 + $0x48] sm:$0xf0] }
 0xa09   : > { %v13603_v22 = vor.u32 %v14652_v4, %v13600_v47 }
 0xa0b   : > { %9419 = vmatpush.bf16.msra.mxu2 %v13547_v18  ;;  %v13464_v18 = vld [vmem:[%s16965_s26 + $0x188] sm:$0xf0] }
 0xa0c   : > { %9394 = vmatpush.bf16.msra.mxu0 %v13411_v63  ;;  %v8679_v29 = vld [vmem:[#allocation3 + $0x8] sm:$0xf]  ;;  %v13592_v63 = vld [vmem:[%s16965_s26 + $0x288] sm:$0xf0]  ;;  %v13467_v9 = vor.u32 %v14618_v53, %v13464_v18  ;;  %v14691_v53 = vld [vmem:[#allocation19 + $0xc4] sm:$0xf0] }
 0xa0d   : > { %v8681_v49 = vld [vmem:[#allocation3 + $0x8] sm:$0x1e]  ;;  %v8697_v14 = vpack.c.bf16 %v8679_v29, %v8679_v29  ;;  %v13595_v57 = vor.u32 %v14650_v41, %v13592_v63  ;;  %v14680_v29 = vld [vmem:[#allocation19 + $0x74] sm:$0xf]  ;;  %v14690_v18 = vld [vmem:[#allocation19 + $0xc4] sm:$0xf] }
 0xa0e   : > { %v8687_v50 = vrot.slane %v8681_v49, 1  ;;  %v8683_v40 = vld [vmem:[#allocation3 + $0x8] sm:$0x3c]  ;;  %v16848_v49 = vld [vmem:[%s16968_s27] sm:$0x3]  ;;  %s9839_s27 = scalar_lea.sflag [#allocation6], %s1159_s2 }
 0xa0f   : > { %9420 = vmatpush.bf16.msra.mxu2 %v13539_v54  ;;  %9305 = vmatmul.bf16.vlgmr.msra.gmra.mxu1 %v8697_v14  ;;  %v8693_v39 = vrot.slane %v8683_v40, 2  ;;  %v8800_v5 = vperm.slane %v16848_v49, 0  ;;  %v13698_v40 = vld [vmem:[#allocation19 + $0x50] sm:$0xf]  ;;  %v13756_v63 = vld [vmem:[#allocation19 + $0xc8] sm:$0xf0] }
 0xa10   : > { %v16808_v45 = vpack.c.bf16 %v8687_v50, %v8687_v50  ;;  %9395 = vmatpush.bf16.msra.mxu0 %v13403_v17  ;;  %9401 = vmatpush.bf16.msra.mxu1 %v13523_v33  ;;  %v13715_v17 = vor.u32 %v14681_v38, %v13714_v28  ;;  %v13716_v33 = vld [vmem:[#allocation19 + $0x78] sm:$0xf0]  ;;  %v13746_v38 = vld [vmem:[#allocation19 + $0xb0] sm:$0xf] }
 0xa11   : > { %v8701_v32 = vpack.c.bf16 %v8693_v39, %v8693_v39  ;;  %v14676_v39 = vld [vmem:[#allocation19 + $0x54] sm:$0xf]  ;;  %v13684_v28 = vld [vmem:[#allocation19 + $0x38] sm:$0xf0] }
 0xa12   : > { %9331 = vmatmul.bf16.vlgmr.msra.gmra.mxu3 %v16808_v45 }
 0xa13   : > { %9421 = vmatpush.bf16.msra.mxu2 %v13531_v12  ;;  %9427 = vmatpush.bf16.msra.mxu3 %v13651_v7  ;;  %v14697_v12 = vld [vmem:[#allocation19 + $0xf4] sm:$0xf0]  ;;  %v14696_v7 = vld [vmem:[#allocation19 + $0xf4] sm:$0xf] }
 0xa14   : > { %13652 = vmatpush.msk.msrb.mxu0 %vm3644_vm4, %v9443_v52  ;;  %9402 = vmatpush.bf16.msra.mxu1 %v13515_v6  ;;  %v14679_v52 = vld [vmem:[#allocation19 + $0x64] sm:$0xf0]  ;;  %v13783_v6 = vor.u32 %v14696_v7, %v13780_v34 }
 0xa15   : > { %9396 = vmatmul.bf16.vlgmr.msra.gmra.mxu0 %v16766_v26  ;;  %v14624_v26 = vld [vmem:[%s16965_s26 + $0x1b4] sm:$0xf]  ;;  %v13707_v31 = vor.u32 %v14679_v52, %v13706_v35  ;;  %v14671_v7 = vld [vmem:[#allocation19 + $0x24] sm:$0xf0]  ;;  %v13676_v35 = vld [vmem:[#allocation19 + $0x28] sm:$0xf0] }
 0xa16   : > { %9469 = vmatpush.msrb.mxu0 %v9441_v8  ;;  %9422 = vmatmul.bf16.vlgmr.msra.gmra.mxu2 %v16786_v43  ;;  %v13491_v42 = vor.u32 %v14624_v26, %v13488_v30  ;;  %v14654_v43 = vld [vmem:[%s16965_s26 + $0x2a4] sm:$0xf]  ;;  %v13708_v8 = vld [vmem:[#allocation19 + $0x68] sm:$0xf0]  ;;  %v13700_v26 = vld [vmem:[#allocation19 + $0x58] sm:$0xf0] }
 0xa17   : > { %9428 = vmatpush.bf16.msra.mxu3 %v13643_v62  ;;  %v13611_v2 = vor.u32 %v14654_v43, %v13608_v56  ;;  %9694 = vmatpush.bf16.msrb.mxu2 %v13715_v17  ;;  %v13711_v62 = vor.u32 %v14678_v25, %v13708_v8  ;;  %v13762_v30 = vld [vmem:[#allocation19 + $0xd0] sm:$0xf]  ;;  %v13703_v60 = vor.u32 %v14676_v39, %v13700_v26  ;;  %v13690_v43 = vld [vmem:[#allocation19 + $0x40] sm:$0xf]  ;;  %v14675_v56 = vld [vmem:[#allocation19 + $0x44] sm:$0xf0] }
 0xa18   : > { %9403 = vmatpush.bf16.msra.mxu1 %v13507_v3  ;;  %v14695_v3 = vld [vmem:[#allocation19 + $0xe4] sm:$0xf0]  ;;  %v13691_v51 = vor.u32 %v14675_v56, %v13690_v43  ;;  %v13738_v8 = vld [vmem:[#allocation19 + $0xa0] sm:$0xf]  ;;  %v13730_v39 = vld [vmem:[#allocation19 + $0x90] sm:$0xf] }
 0xa19   : > { %v13771_v19 = vor.u32 %v14695_v3, %v13770_v27  ;;  %v13740_v3 = vld [vmem:[#allocation19 + $0xa8] sm:$0xf0]  ;;  %v14666_v43 = vld [vmem:[#allocation19 + $0x4] sm:$0xf] }
 0xa1b   : > { %9429 = vmatpush.bf16.msra.mxu3 %v13635_v37  ;;  %9695 = vmatpush.bf16.msrb.mxu2 %v13707_v31  ;;  %v13772_v37 = vld [vmem:[#allocation19 + $0xe8] sm:$0xf0] }
 0xa1c   : > { %9404 = vmatpush.bf16.msra.mxu1 %v13499_v55  ;;  %v13775_v59 = vor.u32 %v14694_v0, %v13772_v37  ;;  %v13699_v55 = vor.u32 %v14677_v58, %v13698_v40  ;;  %v13666_v0 = vld [vmem:[#allocation19 + $0x10] sm:$0xf] }
 0xa1f   : > { %9430 = vmatpush.bf16.msra.mxu3 %v13627_v15  ;;  %9357 = vmatmul.bf16.vlgmr.msrb.gmra.mxu1 %v8701_v32 }
 0xa20   : > { %9405 = vmatpush.bf16.msra.mxu1 %v13491_v42  ;;  %v14693_v42 = vld [vmem:[#allocation19 + $0xd4] sm:$0xf0]  ;;  %9696 = vmatpush.bf16.msrb.mxu2 %v13699_v55  ;;  %v13668_v55 = vld [vmem:[#allocation19 + $0x18] sm:$0xf0] }
 0xa21   : > { %v13763_v11 = vor.u32 %v14693_v42, %v13762_v30  ;;  %v13732_v42 = vld [vmem:[#allocation19 + $0x98] sm:$0xf0] }
 0xa22   : > { %9383 = vmatmul.bf16.vlgmr.msrb.gmra.mxu3 %v8697_v14  ;;  %v13719_v14 = vor.u32 %v14680_v29, %v13716_v33  ;;  %v14689_v33 = vld [vmem:[#allocation19 + $0xb4] sm:$0xf0] }
 0xa23   : > { %9431 = vmatpush.bf16.msra.mxu3 %v13619_v13 }
 0xa24   : > { %9406 = vmatpush.bf16.msra.mxu1 %v13483_v21  ;;  %9720 = vmatpush.bf16.msra.mxu0 %v13719_v14  ;;  %v14674_v21 = vld [vmem:[#allocation19 + $0x44] sm:$0xf]  ;;  %v14688_v14 = vld [vmem:[#allocation19 + $0xb4] sm:$0xf] }
 0xa25   : > { %13653 = vmatmul.msk.f32.vlgmr.msrb.gmra.mxu0 %vm7779_vm7, %v9440_v10  ;;  %9697 = vmatpush.bf16.msrb.mxu2 %v13691_v51 }
 0xa27   : > { %9432 = vmatpush.bf16.msra.mxu3 %v13611_v2  ;;  %v13695_v2 = vor.u32 %v14674_v21, %v13692_v24  ;;  %v13660_v21 = vld [vmem:[#allocation19 + $0x8] sm:$0xf0] }
 0xa28   : > { %9407 = vmatpush.bf16.msra.mxu1 %v13475_v16  ;;  %9721 = vmatpush.bf16.msra.mxu0 %v13711_v62  ;;  %v13754_v16 = vld [vmem:[#allocation19 + $0xc0] sm:$0xf]  ;;  %v14687_v62 = vld [vmem:[#allocation19 + $0xa4] sm:$0xf0]  ;;  %v13663_v51 = vor.u32 %v14666_v43, %v13660_v21  ;;  %v9783_v43 = vld [vmem:[#allocation21 + $0x90] sm:$0xff] }
 0xa29   : > { %v13755_v41 = vor.u32 %v14691_v53, %v13754_v16  ;;  %v13739_v27 = vor.u32 %v14687_v62, %v13738_v8  ;;  %v14682_v16 = vld [vmem:[#allocation19 + $0x84] sm:$0xf]  ;;  %v8801_v53 = vperm.slane %v16848_v49, 1  ;;  %v9794_v49 = vld [vmem:[#allocation21 + $0xe8] sm:$0xff]  ;;  %v9791_v8 = vld [vmem:[#allocation21 + $0xd0] sm:$0xff] }
 0xa2a   : > { %v9769_v21 = vld [vmem:[#allocation21 + $0x20] sm:$0xff] }
 0xa2b   : > { %9433 = vmatpush.bf16.msra.mxu3 %v13603_v22 }
 0xa2c   : > { %9408 = vmatpush.bf16.msra.mxu1 %v13467_v9  ;;  %9722 = vmatpush.bf16.msra.mxu0 %v13703_v60  ;;  %v13682_v9 = vld [vmem:[#allocation19 + $0x30] sm:$0xf]  ;;  %v14684_v60 = vld [vmem:[#allocation19 + $0x94] sm:$0xf] }
 0xa2f   : > { %9434 = vmatpush.bf16.msra.mxu3 %v13595_v57  ;;  %9409 = vmatmul.bf16.vlgmr.msra.gmra.mxu1 %v16808_v45  ;;  %v13779_v45 = vor.u32 %v14697_v12, %v13778_v61  ;;  %v14673_v57 = vld [vmem:[#allocation19 + $0x34] sm:$0xf0]  ;;  %v13674_v12 = vld [vmem:[#allocation19 + $0x20] sm:$0xf] }
 0xa30   : > { %13654 = vmatpush.msk.msrb.mxu1 %vm3644_vm4, %v9444_v23  ;;  %9723 = vmatpush.bf16.msra.mxu0 %v13695_v2  ;;  %v13675_v34 = vor.u32 %v14671_v7, %v13674_v12 }
 0xa32   : > { %9489 = vmatpush.msrb.mxu1 %v9442_v1  ;;  %9435 = vmatmul.bf16.vlgmr.msra.gmra.mxu3 %v8701_v32  ;;  %v14692_v32 = vld [vmem:[#allocation19 + $0xd4] sm:$0xf]  ;;  %v13759_v1 = vor.u32 %v14690_v18, %v13756_v63 }
 0xa33   : > { %9707 = vmatpush.bf16.msrb.mxu3 %v13779_v45  ;;  %v13767_v13 = vor.u32 %v14692_v32, %v13764_v48  ;;  %v14670_v45 = vld [vmem:[#allocation19 + $0x24] sm:$0xf] }
 0xa34   : > { %9733 = vmatpush.bf16.msra.mxu1 %v13783_v6  ;;  %v13679_v31 = vor.u32 %v14670_v45, %v13676_v35 }
 0xa37   : > { %9708 = vmatpush.bf16.msrb.mxu3 %v13771_v19  ;;  %v14669_v19 = vld [vmem:[#allocation19 + $0x14] sm:$0xf0] }
 0xa38   : > { %9734 = vmatpush.bf16.msra.mxu1 %v13775_v59  ;;  %v13667_v58 = vor.u32 %v14669_v19, %v13666_v0  ;;  %v14668_v59 = vld [vmem:[#allocation19 + $0x14] sm:$0xf]  ;;  %v9776_v0 = vld [vmem:[#allocation21 + $0x58] sm:$0xff]  ;;  %v9789_v19 = vld [vmem:[#allocation21 + $0xc0] sm:$0xff] }
 0xa39   : > { %v13671_v30 = vor.u32 %v14668_v59, %v13668_v55  ;;  %v9774_v55 = vld [vmem:[#allocation21 + $0x48] sm:$0xff] }
 0xa3b   : > { %9709 = vmatpush.bf16.msrb.mxu3 %v13763_v11  ;;  %v13658_v11 = vld [vmem:[#allocation19] sm:$0xf] }
 0xa3c   : > { %9735 = vmatpush.bf16.msra.mxu1 %v13767_v13  ;;  %v14667_v13 = vld [vmem:[#allocation19 + $0x4] sm:$0xf0] }
 0xa3d   : > { %v13659_v56 = vor.u32 %v14667_v13, %v13658_v11  ;;  %v9770_v13 = vld [vmem:[#allocation21 + $0x28] sm:$0xff] }
 0xa3f   : > { %13655 = vmatmul.msk.f32.vlgmr.msrb.gmra.mxu1 %vm7779_vm7, %v9440_v10  ;;  %9710 = vmatpush.bf16.msrb.mxu3 %v13755_v41 }
 0xa40   : > { %9736 = vmatpush.bf16.msra.mxu1 %v13759_v1 }
 0xa70   : > { %v9293_v54 = vpop.f32.mrf.mxu0 }
 0xa71   : > { %v9294_v10 = vadd.f32 %v9293_v54, %v8800_v5  ;;  %v14672_v54 = vld [vmem:[#allocation19 + $0x34] sm:$0xf]  ;;  %v14686_v5 = vld [vmem:[#allocation19 + $0xa4] sm:$0xf] }
 0xa72   : > { %v13687_v17 = vor.u32 %v14672_v54, %v13684_v28  ;;  %v13743_v40 = vor.u32 %v14686_v5, %v13740_v3  ;;  %v9779_v54 = vld [vmem:[#allocation21 + $0x70] sm:$0xff]  ;;  %v9790_v3 = vld [vmem:[#allocation21 + $0xc8] sm:$0xff] }
 0xa74   : > { %9724 = vmatpush.bf16.msra.mxu0 %v13687_v17 }
 0xa78   : > { %v9295_v20 = vpop.f32.mrf.mxu0  ;;  %9725 = vmatpush.bf16.msra.mxu0 %v13679_v31 }
 0xa79   : > { %v16845_v46 = vpop.f32.mrf.mxu2  ;;  %v13683_v20 = vor.u32 %v14673_v57, %v13682_v9  ;;  %v9796_v9 = vld [vmem:[#allocation21 + $0xf8] sm:$0xff] }
 0xa7b   : > { %9698 = vmatpush.bf16.msrb.mxu2 %v13683_v20  ;;  %v9795_v20 = vld [vmem:[#allocation21 + $0xf0] sm:$0xff] }
 0xa7c   : > { %9726 = vmatpush.bf16.msra.mxu0 %v13671_v30 }
 0xa7f   : > { %9699 = vmatpush.bf16.msrb.mxu2 %v13675_v34 }
 0xa80   : > { %v16850_v44 = vpop.f32.mrf.mxu0  ;;  %9727 = vmatpush.bf16.msra.mxu0 %v13663_v51  ;;  %v9782_v51 = vld [vmem:[#allocation21 + $0x88] sm:$0xff] }
 0xa81   : > { %v9321_v50 = vpop.f32.mrf.mxu2 }
 0xa82   : > { %v13748_v50 = vld [vmem:[#allocation19 + $0xb8] sm:$0xf0] }
 0xa83   : > { %v13751_v61 = vor.u32 %v14688_v14, %v13748_v50  ;;  %9700 = vmatpush.bf16.msrb.mxu2 %v13667_v58  ;;  %v9793_v14 = vld [vmem:[#allocation21 + $0xe0] sm:$0xff] }
 0xa84   : > { %v9528_v58 = vld [vmem:[%s15506_s12] sm:$0x3] }
 0xa85   : > { %9737 = vmatpush.bf16.msra.mxu1 %v13751_v61  ;;  %v9531_v30 = vperm.slane %v9528_v58, 1 }
 0xa87   : > { %9701 = vmatpush.bf16.msrb.mxu2 %v13659_v56 }
 0xa88   : > { %v9347_v15 = vpop.f32.mrf.mxu0 }
 0xa89   : > { %v16853_v36 = vpop.f32.mrf.mxu2  ;;  %v14685_v15 = vld [vmem:[#allocation19 + $0x94] sm:$0xf0]  ;;  %9738 = vmatpush.bf16.msra.mxu1 %v13743_v40 }
 0xa8a   : > { %v13731_v48 = vor.u32 %v14685_v15, %v13730_v39  ;;  %v9372_v28 = vadd.f32 %v16853_v36, %v8801_v53  ;;  %v9788_v40 = vld [vmem:[#allocation21 + $0xb8] sm:$0xff]  ;;  %v9787_v39 = vld [vmem:[#allocation21 + $0xb0] sm:$0xff]  ;;  %v9786_v15 = vld [vmem:[#allocation21 + $0xa8] sm:$0xff] }
 0xa8b   : > { %v9767_v53 = vld [vmem:[#allocation21 + $0x10] sm:$0xff] }
 0xa8c   : > { %v9306_v4 = vpop.f32.mrf.mxu1 }
 0xa8d   : > { %v9307_v47 = vadd.f32 %v9306_v4, %v9294_v10  ;;  %v13722_v4 = vld [vmem:[#allocation19 + $0x80] sm:$0xf] }
 0xa8f   : > { %v9320_v22 = vadd.f32 %v16845_v46, %v9307_v47  ;;  %v13747_v46 = vor.u32 %v14689_v33, %v13746_v38  ;;  %v14683_v47 = vld [vmem:[#allocation19 + $0x84] sm:$0xf0] }
 0xa90   : > { %v13723_v18 = vor.u32 %v14683_v47, %v13722_v4  ;;  %v9781_v4 = vld [vmem:[#allocation21 + $0x80] sm:$0xff] }
 0xa91   : > { %v9373_v23 = vpop.f32.mrf.mxu2  ;;  %9711 = vmatpush.bf16.msrb.mxu3 %v13747_v46  ;;  %v9792_v46 = vld [vmem:[#allocation21 + $0xd8] sm:$0xff] }
 0xa92   : > { %v16856_v29 = vpop.f32.mrf.mxu0  ;;  %v9780_v23 = vld [vmem:[#allocation21 + $0x78] sm:$0xff] }
 0xa93   : > { %9797 = vmatpush.msra.mxu2 %v9780_v23 }
 0xa94   : > { %v9308_v52 = vpop.f32.mrf.mxu1 }
 0xa95   : > { %v9332_v6 = vpop.f32.mrf.mxu3  ;;  %9712 = vmatpush.bf16.msrb.mxu3 %v13739_v27  ;;  %9798 = vmatpush.msra.mxu2 %v9779_v54  ;;  %v9777_v27 = vld [vmem:[#allocation21 + $0x60] sm:$0xff] }
 0xa96   : > { %v9333_v25 = vadd.f32 %v9332_v6, %v9320_v22  ;;  %v13724_v22 = vld [vmem:[#allocation19 + $0x88] sm:$0xf0] }
 0xa97   : > { %v13727_v63 = vor.u32 %v14682_v16, %v13724_v22 }
 0xa98   : > { %v9346_v37 = vadd.f32 %v16850_v44, %v9333_v25  ;;  %v13735_v44 = vor.u32 %v14684_v60, %v13732_v42  ;;  %v9778_v25 = vld [vmem:[#allocation21 + $0x68] sm:$0xff]  ;;  %v9772_v60 = vld [vmem:[#allocation21 + $0x38] sm:$0xff]  ;;  %v9785_v42 = vld [vmem:[#allocation21 + $0xa0] sm:$0xff] }
 0xa99   : > { %v9423_v26 = vpop.f32.mrf.mxu2  ;;  %9713 = vmatpush.bf16.msrb.mxu3 %v13731_v48  ;;  %9799 = vmatpush.msra.mxu2 %v9778_v25  ;;  %v9784_v48 = vld [vmem:[#allocation21 + $0x98] sm:$0xff] }
 0xa9a   : > { %v9399_v32 = vpop.f32.mrf.mxu0  ;;  %9739 = vmatpush.bf16.msra.mxu1 %v13735_v44  ;;  %v9530_v44 = vperm.slane %v9528_v58, 0 }
 0xa9b   : > { %9800 = vmatpush.msra.mxu2 %v9777_v27  ;;  %v9771_v32 = vld [vmem:[#allocation21 + $0x30] sm:$0xff] }
 0xa9c   : > { %v9358_v10 = vpop.f32.mrf.mxu1 }
 0xa9d   : > { %v9334_v24 = vpop.f32.mrf.mxu3  ;;  %v16859_v2 = vadd.f32 %v9358_v10, %v9346_v37  ;;  %9714 = vmatpush.bf16.msrb.mxu3 %v13723_v18  ;;  %v9775_v37 = vld [vmem:[#allocation21 + $0x50] sm:$0xff]  ;;  %9801 = vmatpush.msra.mxu2 %v9776_v0  ;;  %v9768_v10 = vld [vmem:[#allocation21 + $0x18] sm:$0xff] }
 0xa9e   : > { %9740 = vmatpush.bf16.msra.mxu1 %v13727_v63 }
 0xa9f   : > { %9802 = vmatpush.msra.mxu2 %v9775_v37 }
 0xaa1   : > { %v9425_v41 = vpop.f32.mrf.mxu2  ;;  %9817 = vmatpush.msra.mxu3 %v9796_v9  ;;  %9803 = vmatpush.msra.mxu2 %v9774_v55 }
 0xaa2   : > { %v9471_v57 = vpop.f32.mrf.mxu0  ;;  %v9766_v41 = vld [vmem:[#allocation21 + $0x8] sm:$0xff] }
 0xaa3   : > { %v9494_v1 = vpack.c.bf16 %v9471_v57, %v9471_v57  ;;  %9818 = vmatpush.msra.mxu3 %v9795_v20 }
 0xaa4   : > { %v9360_v38 = vpop.f32.mrf.mxu1 }
 0xaa5   : > { %v9384_v17 = vpop.f32.mrf.mxu3  ;;  %9702 = vmatmul.bf16.vlgmr.msrb.gmra.mxu2 %v9494_v1  ;;  %9728 = vmatmul.bf16.vlgmr.msra.gmra.mxu0 %v9494_v1  ;;  %v9765_v1 = vld [vmem:[#allocation21] sm:$0xff] }
 0xaa6   : > { %v9385_v33 = vadd.f32 %v9384_v17, %v9372_v28  ;;  %9819 = vmatpush.msra.mxu3 %v9794_v49 }
 0xaa8   : > { %v9398_v50 = vadd.f32 %v16856_v29, %v9385_v33  ;;  %9820 = vmatpush.msra.mxu3 %v9793_v14 }
 0xaaa   : > { %9821 = vmatpush.msra.mxu3 %v9792_v46 }
 0xaac   : > { %v9410_v12 = vpop.f32.mrf.mxu1  ;;  %9822 = vmatpush.msra.mxu3 %v9791_v8 }
 0xaad   : > { %v9386_v61 = vpop.f32.mrf.mxu3  ;;  %v9411_v7 = vadd.f32 %v9410_v12, %v9398_v50 }
 0xaae   : > { %9823 = vmatpush.msra.mxu3 %v9790_v3 }
 0xaaf   : > { %v9424_v36 = vadd.f32 %v9423_v26, %v9411_v7  ;;  %v9773_v26 = vld [vmem:[#allocation21 + $0x40] sm:$0xff] }
 0xab0   : > { %9824 = vmatpush.msra.mxu3 %v9789_v19  ;;  %9804 = vmatpush.msra.mxu2 %v9773_v26 }
 0xab2   : > { %9825 = vmatpush.msra.mxu3 %v9788_v40  ;;  %9805 = vmatpush.msra.mxu2 %v9772_v60 }
 0xab4   : > { %v9412_v34 = vpop.f32.mrf.mxu1  ;;  %9826 = vmatpush.msra.mxu3 %v9787_v39  ;;  %9806 = vmatpush.msra.mxu2 %v9771_v32 }
 0xab5   : > { %v9436_v45 = vpop.f32.mrf.mxu3 }
 0xab6   : > { %v9437_v35 = vadd.f32 %v9436_v45, %v9424_v36  ;;  %9827 = vmatpush.msra.mxu3 %v9786_v15  ;;  %9807 = vmatpush.msra.mxu2 %v9770_v13 }
 0xab8   : > { %9828 = vmatpush.msra.mxu3 %v9785_v42  ;;  %9808 = vmatpush.msra.mxu2 %v9769_v21 }
 0xaba   : > { %9829 = vmatpush.msra.mxu3 %v9784_v48  ;;  %9809 = vmatpush.msra.mxu2 %v9768_v10 }
 0xabc   : > { %v9491_v6 = vpop.f32.mrf.mxu1  ;;  %9830 = vmatpush.msra.mxu3 %v9783_v43  ;;  %9810 = vmatpush.msra.mxu2 %v9767_v53 }
 0xabd   : > { %v9438_v52 = vpop.f32.mrf.mxu3  ;;  %v9495_v31 = vpack.c.bf16 %v9491_v6, %v9491_v6 }
 0xabe   : > { %9831 = vmatpush.msra.mxu3 %v9782_v51  ;;  %9811 = vmatpush.msra.mxu2 %v9766_v41 }
 0xabf   : > { %9715 = vmatmul.bf16.vlgmr.msrb.gmra.mxu3 %v9495_v31  ;;  %9741 = vmatmul.bf16.vlgmr.msra.gmra.mxu1 %v9495_v31 }
 0xac0   : > { %9832 = vmatpush.msra.mxu3 %v9781_v4  ;;  %9812 = vmatpush.msra.mxu2 %v9765_v1 }
 0xb22   : > { %v9729_v29 = vpop.f32.mrf.mxu0 }
 0xb23   : > { %v9730_v11 = vadd.f32 %v9729_v29, %v9531_v30 }
 0xb28   : > { %v9703_v5 = vpop.f32.mrf.mxu2 }
 0xb29   : > { %v9704_v16 = vadd.f32 %v9703_v5, %v9530_v44 }
 0xb2a   : > { %v9731_v62 = vpop.f32.mrf.mxu0 }
 0xb30   : > { %v9705_v59 = vpop.f32.mrf.mxu2 }
 0xb3c   : > { %v9742_v56 = vpop.f32.mrf.mxu1 }
 0xb3d   : > { %v9743_v24 = vadd.f32 %v9742_v56, %v9730_v11 }
 0xb3f   : > { %v9747_v47 = vadd.f32 %v9743_v24, %v9437_v35 }
 0xb41   : > { %v9749_v18 = vmax.f32 %v9747_v47, 0.0 }
 0xb42   : > { %v9716_v22 = vpop.f32.mrf.mxu3 }
 0xb43   : > { %v9758_v63 = vsel %vm9750_vm8, %v9749_v18, 0.0  ;;  %v9717_v9 = vadd.f32 %v9716_v22, %v9704_v16 }
 0xb44   : > { %v9759_v57 = vrot.slane %v9758_v63, 4  ;;  %v9744_v23 = vpop.f32.mrf.mxu1 }
 0xb45   : > { %v9746_v20 = vadd.f32 %v9717_v9, %v16859_v2 }
 0xb46   : > { %v9760_v54 = vadd.f32 %v9759_v57, %v9758_v63 }
 0xb47   : > { %v9748_v28 = vmax.f32 %v9746_v20, 0.0 }
 0xb48   : > { %v9761_v38 = vrot.slane %v9760_v54, 2 }
 0xb49   : > { %v9751_v17 = vsel %vm9750_vm8, %v9748_v28, 0.0 }
 0xb4a   : > { %v9762_v49 = vadd.f32 %v9761_v38, %v9760_v54  ;;  %v9752_v33 = vrot.slane %v9751_v17, 4  ;;  %v9718_v14 = vpop.f32.mrf.mxu3 }
 0xb4c   : > { %v9763_v50 = vrot.slane %v9762_v49, 1  ;;  %v9753_v46 = vadd.f32 %v9752_v33, %v9751_v17 }
 0xb4e   : > { %v9764_v61 = vadd.f32 %v9763_v50, %v9762_v49  ;;  %v9754_v12 = vrot.slane %v9753_v46, 2 }
 0xb50   : > { %v9755_v7 = vadd.f32 %v9754_v12, %v9753_v46  ;;  %9833 = vmatmul.f32.vlgmr.msra.gmra.mxu3 %v9764_v61 }
 0xb52   : > { %v9756_v2 = vrot.slane %v9755_v7, 1 }
 0xb54   : > { %v9757_v36 = vadd.f32 %v9756_v2, %v9755_v7 }
 0xb56   : > { %9813 = vmatmul.f32.vlgmr.msra.gmra.mxu2 %v9757_v36 }
 0xbd3   : > { %v9834_v45 = vpop.f32.mrf.mxu3 }
 0xbd9   : > { %v9814_v34 = vpop.f32.mrf.mxu2 }
 0xbda   : > { %v9835_v35 = vadd.f32 %v9834_v45, %v9814_v34 }
 0xbdc   : > { %9837 = vst [vmem:[%s1160_s28] sm:$0x1] %v9835_v35 }
 0xbdd   : > { %15241 = shalt.err (!%p15238_p13)
}
 0xbde   : > { %14743 = dma.vmem_to_hbm [thread:$0]  (%p15556_p5), %s9850_s18, 16, %s9852_s10, %s9839_s27  }
 0xbdf PF: > { %s16972_s1 = sld [smem:[#allocation53_spill]] }
 0xbe0   : > { %s16973_s7 = sld [smem:[#allocation50_spill]] }
 0xbe5   : > { %p14805_p1 = scmp.ge.s32.totalorder %s16972_s1, 2 }
 0xbe6   : > { %s9863_s28 = sand.u32 1, %s16973_s7  }
 0xbe7   : > { %p14780_p2 = pnand %p14805_p1, %p15560_p6  ;;  %s9864_s5 = scalar_lea.sflag [#allocation6], %s9863_s28 }
 0xbe9   : > { %p14781_p3 = pneg %p14780_p2 }
 0xbeb   : > { %15283 = dma.done.wait (%p14781_p3), %s9864_s5, 16  }
 0xbec   : > { %15285 = vsyncadd (%p14781_p3), %s9864_s5, 4294967280  ;;  %s16975_s7 = sld [smem:[#allocation54_spill]] }
 0xbed   : > { %s16976_s28 = sld [smem:[#allocation51_spill]] }
 0xbee   : > { %s16977_s1 = sld [smem:[#allocation52_spill]] }
 0xbef   : > { %s16978_s2 = sld [smem:[#allocation55_spill]] }
 0xbf2   : > { %p81_p4 = scmp.ge.s32.totalorder %s16975_s7, 4  }
 0xbf4   :  { %83 = sbr.rel (!%p81_p4) target bundleno = 70 (0x46), region = 273 }
 0xbf9   :  { %9869 = vsyncpa [#allocation5], 1 }
 0xbfa   :  { %9871 = vsyncpa [#allocation5 + $0x1], 1 }
 0xbfb   :  { %9872 = vsyncpa [#allocation8], 1 }
 0xbfc   :  { %9873 = vsyncpa [#allocation11], 1 }
 0xbfd   :  { %9874 = vsyncpa [#allocation14], 1 }
 0xbfe   :  { %9875 = vsyncpa [#allocation17], 1 }
 0xbff   :  { %9876 = vsyncpa [#allocation20], 1 }
 0xc00   :  { %9877 = vsyncpa [#allocation6], 1 }
 0xc01   :  { %9879 = vsyncpa [#allocation6 + $0x1], 1 }

</bundles_post_ra>
